<compile_context>
chip_gen: v6e
topology: v6e:2x2x1
jax: 0.10.0
libtpu: 0.0.40
codegen_flags: <defaults>
</compile_context>

<pallas_src>
import functools
import math

import jax
import jax.numpy as jnp
from jax.experimental import pallas as pl
from jax.experimental.pallas import tpu as pltpu

# ------------------------- small BERT-like config -------------------------
B = 2              # documents
N = 3              # blocks per document
L = 8              # tokens per block (L_)
D = 128            # hidden size
NUM_HEADS = 4
D_FF = 256         # intermediate size
NUM_LAYERS = 2     # config.num_hidden_layers
LN_EPS = 1e-12


# ------------------------------ shared math -------------------------------
def _gelu_tanh(x):
    # TODO(synk): HF BERT uses exact erf-GELU; tanh approximation is used here
    # (in BOTH the kernel and the reference) since erf has no guaranteed Mosaic lowering.
    c = math.sqrt(2.0 / math.pi)
    return 0.5 * x * (1.0 + jnp.tanh(c * (x + 0.044715 * x * x * x)))


def _layer_norm(x, gamma, beta):
    mu = jnp.mean(x, axis=-1, keepdims=True)
    var = jnp.mean((x - mu) ** 2, axis=-1, keepdims=True)
    return (x - mu) * jax.lax.rsqrt(var + LN_EPS) * gamma + beta


# ----------------------- fused-kernel BertLayer body ------------------------
def _bert_layer_body(x2d, key_mask, wqkv, bqkv, wo, bo, g1, be1,
                     wi, bi, w2, b2, g2, be2, *, num_seqs, seq_len, num_heads):
    """One BertLayer on num_seqs independent sequences of length seq_len.

    x2d:      (num_seqs*seq_len, D) float32 activation slab
    key_mask: (num_seqs, seq_len)   float32 additive key mask
    Matmul operands are bf16 (f32 accumulation); softmax/LayerNorm stay in f32.
    """
    R, Dm = x2d.shape
    H = num_heads
    dh = Dm // H
    scale = 1.0 / math.sqrt(dh)

    xb = x2d.astype(jnp.bfloat16)
    qkv = jnp.dot(xb, wqkv, preferred_element_type=jnp.float32) + bqkv    # (R, 3D)
    q = (qkv[:, :Dm] * scale).astype(jnp.bfloat16).reshape(num_seqs, seq_len, Dm)
    k = qkv[:, Dm:2 * Dm].astype(jnp.bfloat16).reshape(num_seqs, seq_len, Dm)
    v = qkv[:, 2 * Dm:].astype(jnp.bfloat16).reshape(num_seqs, seq_len, Dm)

    # additive key mask broadcast once (hoisted out of the head loop)
    mask_b = jnp.broadcast_to(key_mask[:, None, :], (num_seqs, seq_len, seq_len))

    attn = jnp.zeros((R, Dm), jnp.float32)
    for h in range(H):                      # static unroll; each op is batched over seqs
        sl = slice(h * dh, (h + 1) * dh)
        qh, kh, vh = q[:, :, sl], k[:, :, sl], v[:, :, sl]
        sc = jnp.einsum('sqd,skd->sqk', qh, kh,
                        preferred_element_type=jnp.float32) + mask_b       # (S, T, T)
        sc = sc - jnp.max(sc, axis=-1, keepdims=True)
        p = jnp.exp(sc)
        p = p * pl.reciprocal(jnp.sum(p, axis=-1, keepdims=True), approx=True)
        ctx = jnp.einsum('sqk,skd->sqd', p.astype(jnp.bfloat16), vh,
                         preferred_element_type=jnp.float32)               # (S, T, dh)
        # head-combine fused into the output projection -> lane-dense (R, D) result,
        # no per-head concat / masked narrow stores.
        attn = attn + jnp.dot(ctx.reshape(R, dh).astype(jnp.bfloat16), wo[sl, :],
                              preferred_element_type=jnp.float32)
    attn = attn + bo
    h1 = _layer_norm(attn + x2d, g1, be1)

    inter = _gelu_tanh(jnp.dot(h1.astype(jnp.bfloat16), wi,
                               preferred_element_type=jnp.float32) + bi)
    out = jnp.dot(inter.astype(jnp.bfloat16), w2,
                  preferred_element_type=jnp.float32) + b2
    return _layer_norm(out + h1, g2, be2)


# ------------------------------ fused encoder kernel ------------------------------
def encoder_kernel(x_ref, m0_ref, m_ref, nm_ref, red0_ref,
                   wqkv_ref, bqkv_ref, wo_ref, bo_ref, g1_ref, be1_ref,
                   wi_ref, bi_ref, w2_ref, b2_ref, g2_ref, be2_ref,
                   red_out_ref, hs_out_ref,
                   *, num_docs, num_blocks, block_len, num_heads, num_layers):
    Bq, Nq, Lq = num_docs, num_blocks, block_len
    Dm = x_ref.shape[-1]

    hs_out_ref[...] = x_ref[...]                       # working hidden-state buffer (VMEM)
    red = jnp.broadcast_to(red0_ref[...], (Bq, Dm))    # (B, D) per-document station

    def layer_params(idx):
        return (wqkv_ref[idx], bqkv_ref[idx], wo_ref[idx], bo_ref[idx],
                g1_ref[idx], be1_ref[idx], wi_ref[idx], bi_ref[idx],
                w2_ref[idx], b2_ref[idx], g2_ref[idx], be2_ref[idx])

    node_mask = nm_ref[...]                            # (B, N+1) additive

    for i in range(num_layers):
        # ---- text-encoding layer over all B*N blocks in one (48, 128) slab ----
        key_mask = m0_ref[...] if i == 0 else m_ref[...]
        y = _bert_layer_body(hs_out_ref[...], key_mask, *layer_params(i),
                             num_seqs=Bq * Nq, seq_len=Lq, num_heads=num_heads)
        hs_out_ref[...] = y

        # ---- diagonal CLS gather: block n's CLS token is at position n + 1 ----
        cls = jnp.concatenate(
            [y[(b * Nq + n) * Lq + n + 1:(b * Nq + n) * Lq + n + 2, :]
             for b in range(Bq) for n in range(Nq)], axis=0)          # (B*N, D)

        # ---- update_blockwise_cls_tokens: hierarchical CLS broadcast ----
        # Faithful to the PyTorch repeat(N,1,1,1).view(B,N,N,D) semantics:
        # ext[b, n, m] == cls[(b*N + n) % B, m].
        if Nq > 1:
            for b in range(Bq):
                for n in range(Nq):
                    base = (b * Nq + n) * Lq
                    cb = (b * Nq + n) % Bq
                    if n > 0:        # positions 1..n  <- CLS of blocks 0..n-1
                        hs_out_ref[pl.ds(base + 1, n), :] = cls[cb * Nq:cb * Nq + n, :]
                    if n < Nq - 1:   # positions L-N+n+1..L-1 <- CLS of blocks n+1..N-1
                        hs_out_ref[pl.ds(base + Lq - Nq + n + 1, Nq - 1 - n), :] = \
                            cls[cb * Nq + n + 1:cb * Nq + Nq, :]

        # ---- information-exchange ("station") layer: both docs in one 8-row tile ----
        st_rows = []
        for b in range(Bq):
            st_rows.append(red[b:b + 1, :])
            st_rows.append(cls[b * Nq:(b + 1) * Nq, :])
        st_in = jnp.concatenate(st_rows, axis=0)                      # (B*(N+1), D)
        st_out = _bert_layer_body(st_in, node_mask, *layer_params(num_layers + i),
                                  num_seqs=Bq, seq_len=Nq + 1, num_heads=num_heads)

        red = jnp.concatenate(
            [st_out[b * (Nq + 1):b * (Nq + 1) + 1, :] for b in range(Bq)], axis=0)
        for b in range(Bq):          # write station tokens into position 0 of each block
            for n in range(Nq):
                hs_out_ref[pl.ds((b * Nq + n) * Lq, 1), :] = \
                    st_out[b * (Nq + 1) + 1 + n:b * (Nq + 1) + 2 + n, :]

    red_out_ref[...] = red


# ------------------------------ wrapper ------------------------------
def encoder_forward_pallas(text_params, info_params, hidden_states, attention_mask,
                           reduce_hidden_states, node_mask):
    S, L_, D_ = hidden_states.shape
    B_ = node_mask.shape[0]
    N_ = node_mask.shape[-1] - 1
    nl = len(text_params)
    assert S == B_ * N_
    # The PyTorch scatter bookkeeping is only well-formed in this regime
    # (post-index filter is a no-op and the diagonal CLS positions exist).
    assert L_ >= N_ + 1 and L_ > 2 * N_ - 2

    att2d = attention_mask[:, 0, 0, :].astype(jnp.float32)            # (B*N, L)
    att2d_l0 = att2d.at[:, 0].set(-10000.0)                           # layer-0 variant
    node2d = node_mask[:, 0, 0, :].astype(jnp.float32)                # (B, N+1)
    x2d = hidden_states.astype(jnp.float32).reshape(S * L_, D_)

    sets = list(text_params) + list(info_params)                      # text0.., info0..

    def stacked(name, bf16=False):
        a = jnp.stack([p[name] for p in sets], axis=0)
        return a.astype(jnp.bfloat16 if bf16 else jnp.float32)

    weights = (stacked('wqkv', True), stacked('bqkv'), stacked('wo', True),
               stacked('bo'), stacked('g1'), stacked('be1'),
               stacked('wi', True), stacked('bi'), stacked('w2', True),
               stacked('b2'), stacked('g2'), stacked('be2'))

    kernel = functools.partial(encoder_kernel, num_docs=B_, num_blocks=N_,
                               block_len=L_, num_heads=NUM_HEADS, num_layers=nl)
    red2d, hs2d = pl.pallas_call(
        kernel,
        out_shape=(jax.ShapeDtypeStruct((B_, D_), jnp.float32),
                   jax.ShapeDtypeStruct((S * L_, D_), jnp.float32)),
        compiler_params=pltpu.CompilerParams(vmem_limit_bytes=32 * 1024 * 1024),
    )(x2d, att2d_l0, att2d, node2d,
      reduce_hidden_states.astype(jnp.float32), *weights)
    return red2d.reshape(B_, 1, D_), hs2d.reshape(S, L_, D_)


# ------------------------- pure-JAX reference (f32) ------------------------
def bert_layer_ref(p, x, add_mask):
    S_, T_, D_ = x.shape
    dh = D_ // NUM_HEADS
    qkv = x @ p['wqkv'] + p['bqkv']
    q, k, v = qkv[..., :D_], qkv[..., D_:2 * D_], qkv[..., 2 * D_:]

    def split(t):
        return t.reshape(S_, T_, NUM_HEADS, dh).transpose(0, 2, 1, 3)

    qh, kh, vh = split(q), split(k), split(v)
    sc = jnp.einsum('shld,shmd->shlm', qh, kh) / math.sqrt(dh)
    sc = sc + add_mask[:, None, None, :]
    pa = jax.nn.softmax(sc, axis=-1)
    ctx = jnp.einsum('shlm,shmd->shld', pa, vh).transpose(0, 2, 1, 3).reshape(S_, T_, D_)
    attn = ctx @ p['wo'] + p['bo']
    h1 = _layer_norm(attn + x, p['g1'], p['be1'])
    inter = _gelu_tanh(h1 @ p['wi'] + p['bi'])
    out = inter @ p['w2'] + p['b2']
    return _layer_norm(out + h1, p['g2'], p['be2'])


def update_blockwise_cls_tokens_ref(cls, h4, B_, N_, L_, D_):
    """Faithful port of the PyTorch update_blockwise_cls_tokens."""
    ext = jnp.tile(cls[None, :, :, :], (N_, 1, 1, 1)).reshape(B_, N_, N_, D_)
    pre_rc = [(r, c) for r in range(N_) for c in range(r + 1) if c != 0]
    pre_cls = [(r, c) for r in range(N_) for c in range(r)]
    post_rc = [(r, c) for r in range(N_) for c in range(max(0, r + L_ - N_ + 1), L_)
               if c != N_ - 1]
    post_cls = [(r, c) for r in range(N_) for c in range(r + 1, N_)]
    assert len(pre_rc) == len(pre_cls) and len(post_rc) == len(post_cls)
    for (r, c), (rr, cc) in list(zip(pre_rc, pre_cls)) + list(zip(post_rc, post_cls)):
        h4 = h4.at[:, r, c, :].set(ext[:, rr, cc, :])
    return h4


def encoder_forward_ref(text_params, info_params, hidden_states, attention_mask,
                        reduce_hidden_states, node_mask):
    S, L_, D_ = hidden_states.shape
    B_ = node_mask.shape[0]
    N_ = node_mask.shape[-1] - 1
    att2d = attention_mask[:, 0, 0, :]
    node2d = node_mask[:, 0, 0, :]
    red = None
    for i in range(len(text_params)):
        if i == 0:
            m = att2d.at[:, 0].set(-10000.0)
            red = jnp.broadcast_to(reduce_hidden_states[None, :, :], (B_, 1, D_))
        else:
            m = att2d
        hidden_states = bert_layer_ref(text_params[i], hidden_states, m)
        h4 = hidden_states.reshape(B_, N_, L_, D_)
        cls = h4[:, jnp.arange(N_), jnp.arange(N_) + 1, :]            # (B, N, D)
        if N_ > 1:
            h4 = update_blockwise_cls_tokens_ref(cls, h4, B_, N_, L_, D_)
        reduce_cls = jnp.concatenate([red, cls], axis=1)              # (B, N+1, D)
        station = bert_layer_ref(info_params[i], reduce_cls, node2d)
        red = station[:, :1, :]
        h4 = h4.at[:, :, 0, :].set(station[:, 1:, :])
        hidden_states = h4.reshape(B_ * N_, L_, D_)
    return red, hidden_states


# ------------------------------ parameter init -----------------------------
def init_bert_layer_params(key):
    ks = jax.random.split(key, 6)

    def lin(k, din, dout):
        w = jax.random.normal(k, (din, dout), jnp.float32) * 0.02
        b = jnp.zeros((1, dout), jnp.float32)
        return w, b

    wq, bq = lin(ks[0], D, D)
    wk, bk = lin(ks[1], D, D)
    wv, bv = lin(ks[2], D, D)
    wo, bo = lin(ks[3], D, D)
    wi, bi = lin(ks[4], D, D_FF)
    w2, b2 = lin(ks[5], D_FF, D)
    return dict(
        wqkv=jnp.concatenate([wq, wk, wv], axis=1),      # fused QKV (D, 3D)
        bqkv=jnp.concatenate([bq, bk, bv], axis=1),      # (1, 3D)
        wo=wo, bo=bo,
        g1=jnp.ones((1, D), jnp.float32), be1=jnp.zeros((1, D), jnp.float32),
        wi=wi, bi=bi, w2=w2, b2=b2,
        g2=jnp.ones((1, D), jnp.float32), be2=jnp.zeros((1, D), jnp.float32))


# ----------------------------------- main -----------------------------------
if __name__ == "__main__":
    key = jax.random.PRNGKey(0)
    k_hs, k_red, k_params = jax.random.split(key, 3)

    hidden_states = jax.random.normal(k_hs, (B * N, L, D), jnp.float32) * 0.5
    reduce_hidden_states = jax.random.normal(k_red, (1, D), jnp.float32) * 0.5

    # additive attention mask (0 = attend, -10000 = masked), some padding per block
    lens = jnp.array([L, L - 1, L, L - 2, L, L - 1], dtype=jnp.int32)
    tok_idx = jnp.arange(L)[None, :]
    attention_mask = jnp.where(tok_idx < lens[:, None], 0.0, -10000.0)
    attention_mask = attention_mask.astype(jnp.float32)[:, None, None, :]  # (B*N,1,1,L)
    node_mask = jnp.zeros((B, 1, 1, N + 1), jnp.float32)                   # (B,1,1,N+1)

    layer_keys = jax.random.split(k_params, 2 * NUM_LAYERS)
    text_params = [init_bert_layer_params(layer_keys[i]) for i in range(NUM_LAYERS)]
    info_params = [init_bert_layer_params(layer_keys[NUM_LAYERS + i])
                   for i in range(NUM_LAYERS)]

    red_out, hs_out = encoder_forward_pallas(text_params, info_params, hidden_states,
                                             attention_mask, reduce_hidden_states,
                                             node_mask)
    jax.block_until_ready((red_out, hs_out))

    red_ref, hs_ref = encoder_forward_ref(text_params, info_params, hidden_states,
                                          attention_mask, reduce_hidden_states,
                                          node_mask)
    assert red_out.shape == (B, 1, D) and hs_out.shape == (B * N, L, D)
    assert jnp.allclose(red_out, red_ref, atol=3e-2, rtol=3e-2), "reduce mismatch"
    assert jnp.allclose(hs_out, hs_ref, atol=3e-2, rtol=3e-2), "hidden mismatch"
    print("KERNEL_OK")
</pallas_src>

<mosaic_0001>
module attributes {stable_mosaic.version = 11 : i64} {
  func.func @encoder_kernel(%arg0: memref<48x128xf32, #tpu.memory_space<vmem>>, %arg1: memref<6x8xf32, #tpu.memory_space<vmem>>, %arg2: memref<6x8xf32, #tpu.memory_space<vmem>>, %arg3: memref<2x4xf32, #tpu.memory_space<vmem>>, %arg4: memref<1x128xf32, #tpu.memory_space<vmem>>, %arg5: memref<4x128x384xbf16, #tpu.memory_space<vmem>>, %arg6: memref<4x1x384xf32, #tpu.memory_space<vmem>>, %arg7: memref<4x128x128xbf16, #tpu.memory_space<vmem>>, %arg8: memref<4x1x128xf32, #tpu.memory_space<vmem>>, %arg9: memref<4x1x128xf32, #tpu.memory_space<vmem>>, %arg10: memref<4x1x128xf32, #tpu.memory_space<vmem>>, %arg11: memref<4x128x256xbf16, #tpu.memory_space<vmem>>, %arg12: memref<4x1x256xf32, #tpu.memory_space<vmem>>, %arg13: memref<4x256x128xbf16, #tpu.memory_space<vmem>>, %arg14: memref<4x1x128xf32, #tpu.memory_space<vmem>>, %arg15: memref<4x1x128xf32, #tpu.memory_space<vmem>>, %arg16: memref<4x1x128xf32, #tpu.memory_space<vmem>>, %arg17: memref<2x128xf32, #tpu.memory_space<vmem>>, %arg18: memref<48x128xf32, #tpu.memory_space<vmem>>) attributes {dimension_semantics = [], scalar_prefetch = 0 : i64, scratch_operands = 0 : i64, tpu.core_type = #tpu.core_type<tc>} {
    %c0 = arith.constant 0 : index
    %c0_0 = arith.constant 0 : index
    %0 = vector.load %arg0[%c0, %c0_0] : memref<48x128xf32, #tpu.memory_space<vmem>>, vector<48x128xf32>
    %c0_1 = arith.constant 0 : index
    %c0_2 = arith.constant 0 : index
    %1 = vector.load %arg18[%c0_1, %c0_2] : memref<48x128xf32, #tpu.memory_space<vmem>>, vector<48x128xf32>
    tpu.vector_store %arg18[%c0_1, %c0_2], %0 {strides = array<i32>} : memref<48x128xf32, #tpu.memory_space<vmem>>, vector<48x128xf32>,
    %c0_3 = arith.constant 0 : index
    %c0_4 = arith.constant 0 : index
    %2 = vector.load %arg4[%c0_3, %c0_4] : memref<1x128xf32, #tpu.memory_space<vmem>>, vector<1x128xf32>
    %3 = vector.shape_cast %2 : vector<1x128xf32> to vector<1x128xf32>
    %4 = vector.broadcast %3 : vector<1x128xf32> to vector<2x128xf32>
    %c0_5 = arith.constant 0 : index
    %c0_6 = arith.constant 0 : index
    %5 = vector.load %arg3[%c0_5, %c0_6] : memref<2x4xf32, #tpu.memory_space<vmem>>, vector<2x4xf32>
    %c0_7 = arith.constant 0 : index
    %c0_8 = arith.constant 0 : index
    %6 = vector.load %arg1[%c0_7, %c0_8] : memref<6x8xf32, #tpu.memory_space<vmem>>, vector<6x8xf32>
    %c0_9 = arith.constant 0 : index
    %c0_10 = arith.constant 0 : index
    %7 = vector.load %arg18[%c0_9, %c0_10] : memref<48x128xf32, #tpu.memory_space<vmem>>, vector<48x128xf32>
    %c0_11 = arith.constant 0 : index
    %c0_12 = arith.constant 0 : index
    %c0_13 = arith.constant 0 : index
    %8 = vector.load %arg5[%c0_11, %c0_12, %c0_13] : memref<4x128x384xbf16, #tpu.memory_space<vmem>>, vector<1x128x384xbf16>
    %9 = vector.shape_cast %8 : vector<1x128x384xbf16> to vector<128x384xbf16>
    %c0_14 = arith.constant 0 : index
    %c0_15 = arith.constant 0 : index
    %c0_16 = arith.constant 0 : index
    %10 = vector.load %arg6[%c0_14, %c0_15, %c0_16] : memref<4x1x384xf32, #tpu.memory_space<vmem>>, vector<1x1x384xf32>
    %11 = vector.shape_cast %10 : vector<1x1x384xf32> to vector<1x384xf32>
    %c0_17 = arith.constant 0 : index
    %c0_18 = arith.constant 0 : index
    %c0_19 = arith.constant 0 : index
    %12 = vector.load %arg7[%c0_17, %c0_18, %c0_19] : memref<4x128x128xbf16, #tpu.memory_space<vmem>>, vector<1x128x128xbf16>
    %13 = vector.shape_cast %12 : vector<1x128x128xbf16> to vector<128x128xbf16>
    %c0_20 = arith.constant 0 : index
    %c0_21 = arith.constant 0 : index
    %c0_22 = arith.constant 0 : index
    %14 = vector.load %arg8[%c0_20, %c0_21, %c0_22] : memref<4x1x128xf32, #tpu.memory_space<vmem>>, vector<1x1x128xf32>
    %15 = vector.shape_cast %14 : vector<1x1x128xf32> to vector<1x128xf32>
    %c0_23 = arith.constant 0 : index
    %c0_24 = arith.constant 0 : index
    %c0_25 = arith.constant 0 : index
    %16 = vector.load %arg9[%c0_23, %c0_24, %c0_25] : memref<4x1x128xf32, #tpu.memory_space<vmem>>, vector<1x1x128xf32>
    %17 = vector.shape_cast %16 : vector<1x1x128xf32> to vector<1x128xf32>
    %c0_26 = arith.constant 0 : index
    %c0_27 = arith.constant 0 : index
    %c0_28 = arith.constant 0 : index
    %18 = vector.load %arg10[%c0_26, %c0_27, %c0_28] : memref<4x1x128xf32, #tpu.memory_space<vmem>>, vector<1x1x128xf32>
    %19 = vector.shape_cast %18 : vector<1x1x128xf32> to vector<1x128xf32>
    %c0_29 = arith.constant 0 : index
    %c0_30 = arith.constant 0 : index
    %c0_31 = arith.constant 0 : index
    %20 = vector.load %arg11[%c0_29, %c0_30, %c0_31] : memref<4x128x256xbf16, #tpu.memory_space<vmem>>, vector<1x128x256xbf16>
    %21 = vector.shape_cast %20 : vector<1x128x256xbf16> to vector<128x256xbf16>
    %c0_32 = arith.constant 0 : index
    %c0_33 = arith.constant 0 : index
    %c0_34 = arith.constant 0 : index
    %22 = vector.load %arg12[%c0_32, %c0_33, %c0_34] : memref<4x1x256xf32, #tpu.memory_space<vmem>>, vector<1x1x256xf32>
    %23 = vector.shape_cast %22 : vector<1x1x256xf32> to vector<1x256xf32>
    %c0_35 = arith.constant 0 : index
    %c0_36 = arith.constant 0 : index
    %c0_37 = arith.constant 0 : index
    %24 = vector.load %arg13[%c0_35, %c0_36, %c0_37] : memref<4x256x128xbf16, #tpu.memory_space<vmem>>, vector<1x256x128xbf16>
    %25 = vector.shape_cast %24 : vector<1x256x128xbf16> to vector<256x128xbf16>
    %c0_38 = arith.constant 0 : index
    %c0_39 = arith.constant 0 : index
    %c0_40 = arith.constant 0 : index
    %26 = vector.load %arg14[%c0_38, %c0_39, %c0_40] : memref<4x1x128xf32, #tpu.memory_space<vmem>>, vector<1x1x128xf32>
    %27 = vector.shape_cast %26 : vector<1x1x128xf32> to vector<1x128xf32>
    %c0_41 = arith.constant 0 : index
    %c0_42 = arith.constant 0 : index
    %c0_43 = arith.constant 0 : index
    %28 = vector.load %arg15[%c0_41, %c0_42, %c0_43] : memref<4x1x128xf32, #tpu.memory_space<vmem>>, vector<1x1x128xf32>
    %29 = vector.shape_cast %28 : vector<1x1x128xf32> to vector<1x128xf32>
    %c0_44 = arith.constant 0 : index
    %c0_45 = arith.constant 0 : index
    %c0_46 = arith.constant 0 : index
    %30 = vector.load %arg16[%c0_44, %c0_45, %c0_46] : memref<4x1x128xf32, #tpu.memory_space<vmem>>, vector<1x1x128xf32>
    %31 = vector.shape_cast %30 : vector<1x1x128xf32> to vector<1x128xf32>
    %32 = arith.truncf %7 : vector<48x128xf32> to vector<48x128xbf16>
    %cst = arith.constant dense<0.000000e+00> : vector<48x384xf32>
    %33 = tpu.matmul %32, %9, %cst {dimension_numbers = #tpu.dot_dimension_numbers<[1], [0], [0], [1], [0, 0, 1, 1], [], []>} : vector<48x128xbf16>, vector<128x384xbf16>, vector<48x384xf32> -> vector<48x384xf32>
    %34 = vector.broadcast %11 : vector<1x384xf32> to vector<48x384xf32>
    %35 = arith.addf %33, %34 : vector<48x384xf32>
    %36 = vector.extract_strided_slice %35 {offsets = [0, 0], sizes = [48, 128], strides = [1, 1]} : vector<48x384xf32> to vector<48x128xf32>
    %cst_47 = arith.constant 0.176776692 : f32
    %37 = vector.broadcast %cst_47 : f32 to vector<48x128xf32>
    %38 = arith.mulf %36, %37 : vector<48x128xf32>
    %39 = arith.truncf %38 : vector<48x128xf32> to vector<48x128xbf16>
    %40 = vector.shape_cast %39 : vector<48x128xbf16> to vector<6x8x128xbf16>
    %41 = vector.extract_strided_slice %35 {offsets = [0, 128], sizes = [48, 128], strides = [1, 1]} : vector<48x384xf32> to vector<48x128xf32>
    %42 = arith.truncf %41 : vector<48x128xf32> to vector<48x128xbf16>
    %43 = vector.shape_cast %42 : vector<48x128xbf16> to vector<6x8x128xbf16>
    %44 = vector.extract_strided_slice %35 {offsets = [0, 256], sizes = [48, 128], strides = [1, 1]} : vector<48x384xf32> to vector<48x128xf32>
    %45 = arith.truncf %44 : vector<48x128xf32> to vector<48x128xbf16>
    %46 = vector.shape_cast %45 : vector<48x128xbf16> to vector<6x8x128xbf16>
    %47 = vector.shape_cast %6 : vector<6x8xf32> to vector<6x1x8xf32>
    %48 = vector.shape_cast %47 : vector<6x1x8xf32> to vector<6x1x8xf32>
    %49 = vector.broadcast %48 : vector<6x1x8xf32> to vector<6x8x8xf32>
    %cst_48 = arith.constant 0.000000e+00 : f32
    %50 = vector.broadcast %cst_48 : f32 to vector<48x128xf32>
    %51 = vector.extract_strided_slice %40 {offsets = [0, 0, 0], sizes = [6, 8, 32], strides = [1, 1, 1]} : vector<6x8x128xbf16> to vector<6x8x32xbf16>
    %52 = vector.extract_strided_slice %43 {offsets = [0, 0, 0], sizes = [6, 8, 32], strides = [1, 1, 1]} : vector<6x8x128xbf16> to vector<6x8x32xbf16>
    %53 = vector.extract_strided_slice %46 {offsets = [0, 0, 0], sizes = [6, 8, 32], strides = [1, 1, 1]} : vector<6x8x128xbf16> to vector<6x8x32xbf16>
    "tpu.trace_start"() <{level = 10 : i32, message = "sqd,skd->sqk"}> : () -> ()
    %cst_49 = arith.constant dense<0.000000e+00> : vector<6x8x8xf32>
    %54 = tpu.matmul %51, %52, %cst_49 {dimension_numbers = #tpu.dot_dimension_numbers<[2], [2], [1], [1], [0, 0, 0, 1, 1, 1], [0], [0]>} : vector<6x8x32xbf16>, vector<6x8x32xbf16>, vector<6x8x8xf32> -> vector<6x8x8xf32>
    "tpu.trace_stop"() : () -> ()
    %55 = arith.addf %54, %49 : vector<6x8x8xf32>
    %cst_50 = arith.constant dense<0xFF800000> : vector<6x8xf32>
    %56 = vector.multi_reduction <maximumf>, %55, %cst_50 [2] : vector<6x8x8xf32> to vector<6x8xf32>
    %57 = vector.shape_cast %56 : vector<6x8xf32> to vector<6x8x1xf32>
    %58 = vector.broadcast %57 : vector<6x8x1xf32> to vector<6x8x8xf32>
    %59 = arith.subf %55, %58 : vector<6x8x8xf32>
    %60 = math.exp %59 : vector<6x8x8xf32>
    %cst_51 = arith.constant dense<0.000000e+00> : vector<6x8xf32>
    %61 = vector.multi_reduction <add>, %60, %cst_51 [2] : vector<6x8x8xf32> to vector<6x8xf32>
    %62 = vector.shape_cast %61 : vector<6x8xf32> to vector<6x8x1xf32>
    %63 = tpu.reciprocal %62 {approx = true} : vector<6x8x1xf32> -> vector<6x8x1xf32>
    %64 = vector.broadcast %63 : vector<6x8x1xf32> to vector<6x8x8xf32>
    %65 = arith.mulf %60, %64 : vector<6x8x8xf32>
    %66 = arith.truncf %65 : vector<6x8x8xf32> to vector<6x8x8xbf16>
    "tpu.trace_start"() <{level = 10 : i32, message = "sqk,skd->sqd"}> : () -> ()
    %cst_52 = arith.constant dense<0.000000e+00> : vector<6x8x32xf32>
    %67 = tpu.matmul %66, %53, %cst_52 {dimension_numbers = #tpu.dot_dimension_numbers<[2], [1], [1], [2], [0, 0, 0, 1, 1, 2], [0], [0]>} : vector<6x8x8xbf16>, vector<6x8x32xbf16>, vector<6x8x32xf32> -> vector<6x8x32xf32>
    "tpu.trace_stop"() : () -> ()
    %68 = vector.shape_cast %67 : vector<6x8x32xf32> to vector<48x32xf32>
    %69 = arith.truncf %68 : vector<48x32xf32> to vector<48x32xbf16>
    %70 = vector.extract_strided_slice %13 {offsets = [0, 0], sizes = [32, 128], strides = [1, 1]} : vector<128x128xbf16> to vector<32x128xbf16>
    %cst_53 = arith.constant dense<0.000000e+00> : vector<48x128xf32>
    %71 = tpu.matmul %69, %70, %cst_53 {dimension_numbers = #tpu.dot_dimension_numbers<[1], [0], [0], [1], [0, 0, 1, 1], [], []>} : vector<48x32xbf16>, vector<32x128xbf16>, vector<48x128xf32> -> vector<48x128xf32>
    %72 = arith.addf %50, %71 : vector<48x128xf32>
    %73 = vector.extract_strided_slice %40 {offsets = [0, 0, 32], sizes = [6, 8, 32], strides = [1, 1, 1]} : vector<6x8x128xbf16> to vector<6x8x32xbf16>
    %74 = vector.extract_strided_slice %43 {offsets = [0, 0, 32], sizes = [6, 8, 32], strides = [1, 1, 1]} : vector<6x8x128xbf16> to vector<6x8x32xbf16>
    %75 = vector.extract_strided_slice %46 {offsets = [0, 0, 32], sizes = [6, 8, 32], strides = [1, 1, 1]} : vector<6x8x128xbf16> to vector<6x8x32xbf16>
    "tpu.trace_start"() <{level = 10 : i32, message = "sqd,skd->sqk"}> : () -> ()
    %cst_54 = arith.constant dense<0.000000e+00> : vector<6x8x8xf32>
    %76 = tpu.matmul %73, %74, %cst_54 {dimension_numbers = #tpu.dot_dimension_numbers<[2], [2], [1], [1], [0, 0, 0, 1, 1, 1], [0], [0]>} : vector<6x8x32xbf16>, vector<6x8x32xbf16>, vector<6x8x8xf32> -> vector<6x8x8xf32>
    "tpu.trace_stop"() : () -> ()
    %77 = arith.addf %76, %49 : vector<6x8x8xf32>
    %cst_55 = arith.constant dense<0xFF800000> : vector<6x8xf32>
    %78 = vector.multi_reduction <maximumf>, %77, %cst_55 [2] : vector<6x8x8xf32> to vector<6x8xf32>
    %79 = vector.shape_cast %78 : vector<6x8xf32> to vector<6x8x1xf32>
    %80 = vector.broadcast %79 : vector<6x8x1xf32> to vector<6x8x8xf32>
    %81 = arith.subf %77, %80 : vector<6x8x8xf32>
    %82 = math.exp %81 : vector<6x8x8xf32>
    %cst_56 = arith.constant dense<0.000000e+00> : vector<6x8xf32>
    %83 = vector.multi_reduction <add>, %82, %cst_56 [2] : vector<6x8x8xf32> to vector<6x8xf32>
    %84 = vector.shape_cast %83 : vector<6x8xf32> to vector<6x8x1xf32>
    %85 = tpu.reciprocal %84 {approx = true} : vector<6x8x1xf32> -> vector<6x8x1xf32>
    %86 = vector.broadcast %85 : vector<6x8x1xf32> to vector<6x8x8xf32>
    %87 = arith.mulf %82, %86 : vector<6x8x8xf32>
    %88 = arith.truncf %87 : vector<6x8x8xf32> to vector<6x8x8xbf16>
    "tpu.trace_start"() <{level = 10 : i32, message = "sqk,skd->sqd"}> : () -> ()
    %cst_57 = arith.constant dense<0.000000e+00> : vector<6x8x32xf32>
    %89 = tpu.matmul %88, %75, %cst_57 {dimension_numbers = #tpu.dot_dimension_numbers<[2], [1], [1], [2], [0, 0, 0, 1, 1, 2], [0], [0]>} : vector<6x8x8xbf16>, vector<6x8x32xbf16>, vector<6x8x32xf32> -> vector<6x8x32xf32>
    "tpu.trace_stop"() : () -> ()
    %90 = vector.shape_cast %89 : vector<6x8x32xf32> to vector<48x32xf32>
    %91 = arith.truncf %90 : vector<48x32xf32> to vector<48x32xbf16>
    %92 = vector.extract_strided_slice %13 {offsets = [32, 0], sizes = [32, 128], strides = [1, 1]} : vector<128x128xbf16> to vector<32x128xbf16>
    %cst_58 = arith.constant dense<0.000000e+00> : vector<48x128xf32>
    %93 = tpu.matmul %91, %92, %cst_58 {dimension_numbers = #tpu.dot_dimension_numbers<[1], [0], [0], [1], [0, 0, 1, 1], [], []>} : vector<48x32xbf16>, vector<32x128xbf16>, vector<48x128xf32> -> vector<48x128xf32>
    %94 = arith.addf %72, %93 : vector<48x128xf32>
    %95 = vector.extract_strided_slice %40 {offsets = [0, 0, 64], sizes = [6, 8, 32], strides = [1, 1, 1]} : vector<6x8x128xbf16> to vector<6x8x32xbf16>
    %96 = vector.extract_strided_slice %43 {offsets = [0, 0, 64], sizes = [6, 8, 32], strides = [1, 1, 1]} : vector<6x8x128xbf16> to vector<6x8x32xbf16>
    %97 = vector.extract_strided_slice %46 {offsets = [0, 0, 64], sizes = [6, 8, 32], strides = [1, 1, 1]} : vector<6x8x128xbf16> to vector<6x8x32xbf16>
    "tpu.trace_start"() <{level = 10 : i32, message = "sqd,skd->sqk"}> : () -> ()
    %cst_59 = arith.constant dense<0.000000e+00> : vector<6x8x8xf32>
    %98 = tpu.matmul %95, %96, %cst_59 {dimension_numbers = #tpu.dot_dimension_numbers<[2], [2], [1], [1], [0, 0, 0, 1, 1, 1], [0], [0]>} : vector<6x8x32xbf16>, vector<6x8x32xbf16>, vector<6x8x8xf32> -> vector<6x8x8xf32>
    "tpu.trace_stop"() : () -> ()
    %99 = arith.addf %98, %49 : vector<6x8x8xf32>
    %cst_60 = arith.constant dense<0xFF800000> : vector<6x8xf32>
    %100 = vector.multi_reduction <maximumf>, %99, %cst_60 [2] : vector<6x8x8xf32> to vector<6x8xf32>
    %101 = vector.shape_cast %100 : vector<6x8xf32> to vector<6x8x1xf32>
    %102 = vector.broadcast %101 : vector<6x8x1xf32> to vector<6x8x8xf32>
    %103 = arith.subf %99, %102 : vector<6x8x8xf32>
    %104 = math.exp %103 : vector<6x8x8xf32>
    %cst_61 = arith.constant dense<0.000000e+00> : vector<6x8xf32>
    %105 = vector.multi_reduction <add>, %104, %cst_61 [2] : vector<6x8x8xf32> to vector<6x8xf32>
    %106 = vector.shape_cast %105 : vector<6x8xf32> to vector<6x8x1xf32>
    %107 = tpu.reciprocal %106 {approx = true} : vector<6x8x1xf32> -> vector<6x8x1xf32>
    %108 = vector.broadcast %107 : vector<6x8x1xf32> to vector<6x8x8xf32>
    %109 = arith.mulf %104, %108 : vector<6x8x8xf32>
    %110 = arith.truncf %109 : vector<6x8x8xf32> to vector<6x8x8xbf16>
    "tpu.trace_start"() <{level = 10 : i32, message = "sqk,skd->sqd"}> : () -> ()
    %cst_62 = arith.constant dense<0.000000e+00> : vector<6x8x32xf32>
    %111 = tpu.matmul %110, %97, %cst_62 {dimension_numbers = #tpu.dot_dimension_numbers<[2], [1], [1], [2], [0, 0, 0, 1, 1, 2], [0], [0]>} : vector<6x8x8xbf16>, vector<6x8x32xbf16>, vector<6x8x32xf32> -> vector<6x8x32xf32>
    "tpu.trace_stop"() : () -> ()
    %112 = vector.shape_cast %111 : vector<6x8x32xf32> to vector<48x32xf32>
    %113 = arith.truncf %112 : vector<48x32xf32> to vector<48x32xbf16>
    %114 = vector.extract_strided_slice %13 {offsets = [64, 0], sizes = [32, 128], strides = [1, 1]} : vector<128x128xbf16> to vector<32x128xbf16>
    %cst_63 = arith.constant dense<0.000000e+00> : vector<48x128xf32>
    %115 = tpu.matmul %113, %114, %cst_63 {dimension_numbers = #tpu.dot_dimension_numbers<[1], [0], [0], [1], [0, 0, 1, 1], [], []>} : vector<48x32xbf16>, vector<32x128xbf16>, vector<48x128xf32> -> vector<48x128xf32>
    %116 = arith.addf %94, %115 : vector<48x128xf32>
    %117 = vector.extract_strided_slice %40 {offsets = [0, 0, 96], sizes = [6, 8, 32], strides = [1, 1, 1]} : vector<6x8x128xbf16> to vector<6x8x32xbf16>
    %118 = vector.extract_strided_slice %43 {offsets = [0, 0, 96], sizes = [6, 8, 32], strides = [1, 1, 1]} : vector<6x8x128xbf16> to vector<6x8x32xbf16>
    %119 = vector.extract_strided_slice %46 {offsets = [0, 0, 96], sizes = [6, 8, 32], strides = [1, 1, 1]} : vector<6x8x128xbf16> to vector<6x8x32xbf16>
    "tpu.trace_start"() <{level = 10 : i32, message = "sqd,skd->sqk"}> : () -> ()
    %cst_64 = arith.constant dense<0.000000e+00> : vector<6x8x8xf32>
    %120 = tpu.matmul %117, %118, %cst_64 {dimension_numbers = #tpu.dot_dimension_numbers<[2], [2], [1], [1], [0, 0, 0, 1, 1, 1], [0], [0]>} : vector<6x8x32xbf16>, vector<6x8x32xbf16>, vector<6x8x8xf32> -> vector<6x8x8xf32>
    "tpu.trace_stop"() : () -> ()
    %121 = arith.addf %120, %49 : vector<6x8x8xf32>
    %cst_65 = arith.constant dense<0xFF800000> : vector<6x8xf32>
    %122 = vector.multi_reduction <maximumf>, %121, %cst_65 [2] : vector<6x8x8xf32> to vector<6x8xf32>
    %123 = vector.shape_cast %122 : vector<6x8xf32> to vector<6x8x1xf32>
    %124 = vector.broadcast %123 : vector<6x8x1xf32> to vector<6x8x8xf32>
    %125 = arith.subf %121, %124 : vector<6x8x8xf32>
    %126 = math.exp %125 : vector<6x8x8xf32>
    %cst_66 = arith.constant dense<0.000000e+00> : vector<6x8xf32>
    %127 = vector.multi_reduction <add>, %126, %cst_66 [2] : vector<6x8x8xf32> to vector<6x8xf32>
    %128 = vector.shape_cast %127 : vector<6x8xf32> to vector<6x8x1xf32>
    %129 = tpu.reciprocal %128 {approx = true} : vector<6x8x1xf32> -> vector<6x8x1xf32>
    %130 = vector.broadcast %129 : vector<6x8x1xf32> to vector<6x8x8xf32>
    %131 = arith.mulf %126, %130 : vector<6x8x8xf32>
    %132 = arith.truncf %131 : vector<6x8x8xf32> to vector<6x8x8xbf16>
    "tpu.trace_start"() <{level = 10 : i32, message = "sqk,skd->sqd"}> : () -> ()
    %cst_67 = arith.constant dense<0.000000e+00> : vector<6x8x32xf32>
    %133 = tpu.matmul %132, %119, %cst_67 {dimension_numbers = #tpu.dot_dimension_numbers<[2], [1], [1], [2], [0, 0, 0, 1, 1, 2], [0], [0]>} : vector<6x8x8xbf16>, vector<6x8x32xbf16>, vector<6x8x32xf32> -> vector<6x8x32xf32>
    "tpu.trace_stop"() : () -> ()
    %134 = vector.shape_cast %133 : vector<6x8x32xf32> to vector<48x32xf32>
    %135 = arith.truncf %134 : vector<48x32xf32> to vector<48x32xbf16>
    %136 = vector.extract_strided_slice %13 {offsets = [96, 0], sizes = [32, 128], strides = [1, 1]} : vector<128x128xbf16> to vector<32x128xbf16>
    %cst_68 = arith.constant dense<0.000000e+00> : vector<48x128xf32>
    %137 = tpu.matmul %135, %136, %cst_68 {dimension_numbers = #tpu.dot_dimension_numbers<[1], [0], [0], [1], [0, 0, 1, 1], [], []>} : vector<48x32xbf16>, vector<32x128xbf16>, vector<48x128xf32> -> vector<48x128xf32>
    %138 = arith.addf %116, %137 : vector<48x128xf32>
    %139 = vector.broadcast %15 : vector<1x128xf32> to vector<48x128xf32>
    %140 = arith.addf %138, %139 : vector<48x128xf32>
    %141 = arith.addf %140, %7 : vector<48x128xf32>
    %cst_69 = arith.constant dense<0.000000e+00> : vector<48xf32>
    %142 = vector.multi_reduction <add>, %141, %cst_69 [1] : vector<48x128xf32> to vector<48xf32>
    %143 = vector.shape_cast %142 : vector<48xf32> to vector<48x1xf32>
    %cst_70 = arith.constant 1.280000e+02 : f32
    %144 = vector.broadcast %cst_70 : f32 to vector<48x1xf32>
    %145 = arith.divf %143, %144 : vector<48x1xf32>
    %146 = vector.broadcast %145 : vector<48x1xf32> to vector<48x128xf32>
    %147 = arith.subf %141, %146 : vector<48x128xf32>
    %148 = arith.mulf %147, %147 : vector<48x128xf32>
    %cst_71 = arith.constant dense<0.000000e+00> : vector<48xf32>
    %149 = vector.multi_reduction <add>, %148, %cst_71 [1] : vector<48x128xf32> to vector<48xf32>
    %150 = vector.shape_cast %149 : vector<48xf32> to vector<48x1xf32>
    %cst_72 = arith.constant 1.280000e+02 : f32
    %151 = vector.broadcast %cst_72 : f32 to vector<48x1xf32>
    %152 = arith.divf %150, %151 : vector<48x1xf32>
    %153 = vector.broadcast %145 : vector<48x1xf32> to vector<48x128xf32>
    %154 = arith.subf %141, %153 : vector<48x128xf32>
    %cst_73 = arith.constant 9.99999996E-13 : f32
    %155 = vector.broadcast %cst_73 : f32 to vector<48x1xf32>
    %156 = arith.addf %152, %155 : vector<48x1xf32>
    %157 = math.rsqrt %156 : vector<48x1xf32>
    %158 = vector.broadcast %157 : vector<48x1xf32> to vector<48x128xf32>
    %159 = arith.mulf %154, %158 : vector<48x128xf32>
    %160 = vector.broadcast %17 : vector<1x128xf32> to vector<48x128xf32>
    %161 = arith.mulf %159, %160 : vector<48x128xf32>
    %162 = vector.broadcast %19 : vector<1x128xf32> to vector<48x128xf32>
    %163 = arith.addf %161, %162 : vector<48x128xf32>
    %164 = arith.truncf %163 : vector<48x128xf32> to vector<48x128xbf16>
    %cst_74 = arith.constant dense<0.000000e+00> : vector<48x256xf32>
    %165 = tpu.matmul %164, %21, %cst_74 {dimension_numbers = #tpu.dot_dimension_numbers<[1], [0], [0], [1], [0, 0, 1, 1], [], []>} : vector<48x128xbf16>, vector<128x256xbf16>, vector<48x256xf32> -> vector<48x256xf32>
    %166 = vector.broadcast %23 : vector<1x256xf32> to vector<48x256xf32>
    %167 = arith.addf %165, %166 : vector<48x256xf32>
    %cst_75 = arith.constant 5.000000e-01 : f32
    %168 = vector.broadcast %cst_75 : f32 to vector<48x256xf32>
    %169 = arith.mulf %168, %167 : vector<48x256xf32>
    %cst_76 = arith.constant 4.471500e-02 : f32
    %170 = vector.broadcast %cst_76 : f32 to vector<48x256xf32>
    %171 = arith.mulf %170, %167 : vector<48x256xf32>
    %172 = arith.mulf %171, %167 : vector<48x256xf32>
    %173 = arith.mulf %172, %167 : vector<48x256xf32>
    %174 = arith.addf %167, %173 : vector<48x256xf32>
    %cst_77 = arith.constant 0.797884583 : f32
    %175 = vector.broadcast %cst_77 : f32 to vector<48x256xf32>
    %176 = arith.mulf %175, %174 : vector<48x256xf32>
    %177 = math.tanh %176 : vector<48x256xf32>
    %cst_78 = arith.constant 1.000000e+00 : f32
    %178 = vector.broadcast %cst_78 : f32 to vector<48x256xf32>
    %179 = arith.addf %178, %177 : vector<48x256xf32>
    %180 = arith.mulf %169, %179 : vector<48x256xf32>
    %181 = arith.truncf %180 : vector<48x256xf32> to vector<48x256xbf16>
    %cst_79 = arith.constant dense<0.000000e+00> : vector<48x128xf32>
    %182 = tpu.matmul %181, %25, %cst_79 {dimension_numbers = #tpu.dot_dimension_numbers<[1], [0], [0], [1], [0, 0, 1, 1], [], []>} : vector<48x256xbf16>, vector<256x128xbf16>, vector<48x128xf32> -> vector<48x128xf32>
    %183 = vector.broadcast %27 : vector<1x128xf32> to vector<48x128xf32>
    %184 = arith.addf %182, %183 : vector<48x128xf32>
    %185 = arith.addf %184, %163 : vector<48x128xf32>
    %cst_80 = arith.constant dense<0.000000e+00> : vector<48xf32>
    %186 = vector.multi_reduction <add>, %185, %cst_80 [1] : vector<48x128xf32> to vector<48xf32>
    %187 = vector.shape_cast %186 : vector<48xf32> to vector<48x1xf32>
    %cst_81 = arith.constant 1.280000e+02 : f32
    %188 = vector.broadcast %cst_81 : f32 to vector<48x1xf32>
    %189 = arith.divf %187, %188 : vector<48x1xf32>
    %190 = vector.broadcast %189 : vector<48x1xf32> to vector<48x128xf32>
    %191 = arith.subf %185, %190 : vector<48x128xf32>
    %192 = arith.mulf %191, %191 : vector<48x128xf32>
    %cst_82 = arith.constant dense<0.000000e+00> : vector<48xf32>
    %193 = vector.multi_reduction <add>, %192, %cst_82 [1] : vector<48x128xf32> to vector<48xf32>
    %194 = vector.shape_cast %193 : vector<48xf32> to vector<48x1xf32>
    %cst_83 = arith.constant 1.280000e+02 : f32
    %195 = vector.broadcast %cst_83 : f32 to vector<48x1xf32>
    %196 = arith.divf %194, %195 : vector<48x1xf32>
    %197 = vector.broadcast %189 : vector<48x1xf32> to vector<48x128xf32>
    %198 = arith.subf %185, %197 : vector<48x128xf32>
    %cst_84 = arith.constant 9.99999996E-13 : f32
    %199 = vector.broadcast %cst_84 : f32 to vector<48x1xf32>
    %200 = arith.addf %196, %199 : vector<48x1xf32>
    %201 = math.rsqrt %200 : vector<48x1xf32>
    %202 = vector.broadcast %201 : vector<48x1xf32> to vector<48x128xf32>
    %203 = arith.mulf %198, %202 : vector<48x128xf32>
    %204 = vector.broadcast %29 : vector<1x128xf32> to vector<48x128xf32>
    %205 = arith.mulf %203, %204 : vector<48x128xf32>
    %206 = vector.broadcast %31 : vector<1x128xf32> to vector<48x128xf32>
    %207 = arith.addf %205, %206 : vector<48x128xf32>
    %c0_85 = arith.constant 0 : index
    %c0_86 = arith.constant 0 : index
    %208 = vector.load %arg18[%c0_85, %c0_86] : memref<48x128xf32, #tpu.memory_space<vmem>>, vector<48x128xf32>
    tpu.vector_store %arg18[%c0_85, %c0_86], %207 {strides = array<i32>} : memref<48x128xf32, #tpu.memory_space<vmem>>, vector<48x128xf32>,
    %209 = vector.extract_strided_slice %207 {offsets = [1, 0], sizes = [1, 128], strides = [1, 1]} : vector<48x128xf32> to vector<1x128xf32>
    %210 = vector.extract_strided_slice %207 {offsets = [10, 0], sizes = [1, 128], strides = [1, 1]} : vector<48x128xf32> to vector<1x128xf32>
    %211 = vector.extract_strided_slice %207 {offsets = [19, 0], sizes = [1, 128], strides = [1, 1]} : vector<48x128xf32> to vector<1x128xf32>
    %212 = vector.extract_strided_slice %207 {offsets = [25, 0], sizes = [1, 128], strides = [1, 1]} : vector<48x128xf32> to vector<1x128xf32>
    %213 = vector.extract_strided_slice %207 {offsets = [34, 0], sizes = [1, 128], strides = [1, 1]} : vector<48x128xf32> to vector<1x128xf32>
    %214 = vector.extract_strided_slice %207 {offsets = [43, 0], sizes = [1, 128], strides = [1, 1]} : vector<48x128xf32> to vector<1x128xf32>
    %215 = tpu.concatenate %209, %210, %211, %212, %213, %214 in 0 : vector<1x128xf32>, vector<1x128xf32>, vector<1x128xf32>, vector<1x128xf32>, vector<1x128xf32>, vector<1x128xf32> -> vector<6x128xf32>
    %216 = vector.extract_strided_slice %215 {offsets = [1, 0], sizes = [2, 128], strides = [1, 1]} : vector<6x128xf32> to vector<2x128xf32>
    %c6 = arith.constant 6 : index
    %c0_87 = arith.constant 0 : index
    %217 = vector.load %arg18[%c6, %c0_87] : memref<48x128xf32, #tpu.memory_space<vmem>>, vector<2x128xf32>
    tpu.vector_store %arg18[%c6, %c0_87], %216 {strides = array<i32>} : memref<48x128xf32, #tpu.memory_space<vmem>>, vector<2x128xf32>,
    %218 = vector.extract_strided_slice %215 {offsets = [3, 0], sizes = [1, 128], strides = [1, 1]} : vector<6x128xf32> to vector<1x128xf32>
    %c9 = arith.constant 9 : index
    %c0_88 = arith.constant 0 : index
    %219 = vector.load %arg18[%c9, %c0_88] : memref<48x128xf32, #tpu.memory_space<vmem>>, vector<1x128xf32>
    tpu.vector_store %arg18[%c9, %c0_88], %218 {strides = array<i32>} : memref<48x128xf32, #tpu.memory_space<vmem>>, vector<1x128xf32>,
    %220 = vector.extract_strided_slice %215 {offsets = [5, 0], sizes = [1, 128], strides = [1, 1]} : vector<6x128xf32> to vector<1x128xf32>
    %c15 = arith.constant 15 : index
    %c0_89 = arith.constant 0 : index
    %221 = vector.load %arg18[%c15, %c0_89] : memref<48x128xf32, #tpu.memory_space<vmem>>, vector<1x128xf32>
    tpu.vector_store %arg18[%c15, %c0_89], %220 {strides = array<i32>} : memref<48x128xf32, #tpu.memory_space<vmem>>, vector<1x128xf32>,
    %222 = vector.extract_strided_slice %215 {offsets = [0, 0], sizes = [2, 128], strides = [1, 1]} : vector<6x128xf32> to vector<2x128xf32>
    %c17 = arith.constant 17 : index
    %c0_90 = arith.constant 0 : index
    %223 = vector.load %arg18[%c17, %c0_90] : memref<48x128xf32, #tpu.memory_space<vmem>>, vector<2x128xf32>
    tpu.vector_store %arg18[%c17, %c0_90], %222 {strides = array<i32>} : memref<48x128xf32, #tpu.memory_space<vmem>>, vector<2x128xf32>,
    %224 = vector.extract_strided_slice %215 {offsets = [4, 0], sizes = [2, 128], strides = [1, 1]} : vector<6x128xf32> to vector<2x128xf32>
    %c30 = arith.constant 30 : index
    %c0_91 = arith.constant 0 : index
    %225 = vector.load %arg18[%c30, %c0_91] : memref<48x128xf32, #tpu.memory_space<vmem>>, vector<2x128xf32>
    tpu.vector_store %arg18[%c30, %c0_91], %224 {strides = array<i32>} : memref<48x128xf32, #tpu.memory_space<vmem>>, vector<2x128xf32>,
    %226 = vector.extract_strided_slice %215 {offsets = [0, 0], sizes = [1, 128], strides = [1, 1]} : vector<6x128xf32> to vector<1x128xf32>
    %c33 = arith.constant 33 : index
    %c0_92 = arith.constant 0 : index
    %227 = vector.load %arg18[%c33, %c0_92] : memref<48x128xf32, #tpu.memory_space<vmem>>, vector<1x128xf32>
    tpu.vector_store %arg18[%c33, %c0_92], %226 {strides = array<i32>} : memref<48x128xf32, #tpu.memory_space<vmem>>, vector<1x128xf32>,
    %228 = vector.extract_strided_slice %215 {offsets = [2, 0], sizes = [1, 128], strides = [1, 1]} : vector<6x128xf32> to vector<1x128xf32>
    %c39 = arith.constant 39 : index
    %c0_93 = arith.constant 0 : index
    %229 = vector.load %arg18[%c39, %c0_93] : memref<48x128xf32, #tpu.memory_space<vmem>>, vector<1x128xf32>
    tpu.vector_store %arg18[%c39, %c0_93], %228 {strides = array<i32>} : memref<48x128xf32, #tpu.memory_space<vmem>>, vector<1x128xf32>,
    %230 = vector.extract_strided_slice %215 {offsets = [3, 0], sizes = [2, 128], strides = [1, 1]} : vector<6x128xf32> to vector<2x128xf32>
    %c41 = arith.constant 41 : index
    %c0_94 = arith.constant 0 : index
    %231 = vector.load %arg18[%c41, %c0_94] : memref<48x128xf32, #tpu.memory_space<vmem>>, vector<2x128xf32>
    tpu.vector_store %arg18[%c41, %c0_94], %230 {strides = array<i32>} : memref<48x128xf32, #tpu.memory_space<vmem>>, vector<2x128xf32>,
    %232 = vector.extract_strided_slice %4 {offsets = [0, 0], sizes = [1, 128], strides = [1, 1]} : vector<2x128xf32> to vector<1x128xf32>
    %233 = vector.extract_strided_slice %215 {offsets = [0, 0], sizes = [3, 128], strides = [1, 1]} : vector<6x128xf32> to vector<3x128xf32>
    %234 = vector.extract_strided_slice %4 {offsets = [1, 0], sizes = [1, 128], strides = [1, 1]} : vector<2x128xf32> to vector<1x128xf32>
    %235 = vector.extract_strided_slice %215 {offsets = [3, 0], sizes = [3, 128], strides = [1, 1]} : vector<6x128xf32> to vector<3x128xf32>
    %236 = tpu.concatenate %232, %233, %234, %235 in 0 : vector<1x128xf32>, vector<3x128xf32>, vector<1x128xf32>, vector<3x128xf32> -> vector<8x128xf32>
    %c2 = arith.constant 2 : index
    %c0_95 = arith.constant 0 : index
    %c0_96 = arith.constant 0 : index
    %237 = vector.load %arg5[%c2, %c0_95, %c0_96] : memref<4x128x384xbf16, #tpu.memory_space<vmem>>, vector<1x128x384xbf16>
    %238 = vector.shape_cast %237 : vector<1x128x384xbf16> to vector<128x384xbf16>
    %c2_97 = arith.constant 2 : index
    %c0_98 = arith.constant 0 : index
    %c0_99 = arith.constant 0 : index
    %239 = vector.load %arg6[%c2_97, %c0_98, %c0_99] : memref<4x1x384xf32, #tpu.memory_space<vmem>>, vector<1x1x384xf32>
    %240 = vector.shape_cast %239 : vector<1x1x384xf32> to vector<1x384xf32>
    %c2_100 = arith.constant 2 : index
    %c0_101 = arith.constant 0 : index
    %c0_102 = arith.constant 0 : index
    %241 = vector.load %arg7[%c2_100, %c0_101, %c0_102] : memref<4x128x128xbf16, #tpu.memory_space<vmem>>, vector<1x128x128xbf16>
    %242 = vector.shape_cast %241 : vector<1x128x128xbf16> to vector<128x128xbf16>
    %c2_103 = arith.constant 2 : index
    %c0_104 = arith.constant 0 : index
    %c0_105 = arith.constant 0 : index
    %243 = vector.load %arg8[%c2_103, %c0_104, %c0_105] : memref<4x1x128xf32, #tpu.memory_space<vmem>>, vector<1x1x128xf32>
    %244 = vector.shape_cast %243 : vector<1x1x128xf32> to vector<1x128xf32>
    %c2_106 = arith.constant 2 : index
    %c0_107 = arith.constant 0 : index
    %c0_108 = arith.constant 0 : index
    %245 = vector.load %arg9[%c2_106, %c0_107, %c0_108] : memref<4x1x128xf32, #tpu.memory_space<vmem>>, vector<1x1x128xf32>
    %246 = vector.shape_cast %245 : vector<1x1x128xf32> to vector<1x128xf32>
    %c2_109 = arith.constant 2 : index
    %c0_110 = arith.constant 0 : index
    %c0_111 = arith.constant 0 : index
    %247 = vector.load %arg10[%c2_109, %c0_110, %c0_111] : memref<4x1x128xf32, #tpu.memory_space<vmem>>, vector<1x1x128xf32>
    %248 = vector.shape_cast %247 : vector<1x1x128xf32> to vector<1x128xf32>
    %c2_112 = arith.constant 2 : index
    %c0_113 = arith.constant 0 : index
    %c0_114 = arith.constant 0 : index
    %249 = vector.load %arg11[%c2_112, %c0_113, %c0_114] : memref<4x128x256xbf16, #tpu.memory_space<vmem>>, vector<1x128x256xbf16>
    %250 = vector.shape_cast %249 : vector<1x128x256xbf16> to vector<128x256xbf16>
    %c2_115 = arith.constant 2 : index
    %c0_116 = arith.constant 0 : index
    %c0_117 = arith.constant 0 : index
    %251 = vector.load %arg12[%c2_115, %c0_116, %c0_117] : memref<4x1x256xf32, #tpu.memory_space<vmem>>, vector<1x1x256xf32>
    %252 = vector.shape_cast %251 : vector<1x1x256xf32> to vector<1x256xf32>
    %c2_118 = arith.constant 2 : index
    %c0_119 = arith.constant 0 : index
    %c0_120 = arith.constant 0 : index
    %253 = vector.load %arg13[%c2_118, %c0_119, %c0_120] : memref<4x256x128xbf16, #tpu.memory_space<vmem>>, vector<1x256x128xbf16>
    %254 = vector.shape_cast %253 : vector<1x256x128xbf16> to vector<256x128xbf16>
    %c2_121 = arith.constant 2 : index
    %c0_122 = arith.constant 0 : index
    %c0_123 = arith.constant 0 : index
    %255 = vector.load %arg14[%c2_121, %c0_122, %c0_123] : memref<4x1x128xf32, #tpu.memory_space<vmem>>, vector<1x1x128xf32>
    %256 = vector.shape_cast %255 : vector<1x1x128xf32> to vector<1x128xf32>
    %c2_124 = arith.constant 2 : index
    %c0_125 = arith.constant 0 : index
    %c0_126 = arith.constant 0 : index
    %257 = vector.load %arg15[%c2_124, %c0_125, %c0_126] : memref<4x1x128xf32, #tpu.memory_space<vmem>>, vector<1x1x128xf32>
    %258 = vector.shape_cast %257 : vector<1x1x128xf32> to vector<1x128xf32>
    %c2_127 = arith.constant 2 : index
    %c0_128 = arith.constant 0 : index
    %c0_129 = arith.constant 0 : index
    %259 = vector.load %arg16[%c2_127, %c0_128, %c0_129] : memref<4x1x128xf32, #tpu.memory_space<vmem>>, vector<1x1x128xf32>
    %260 = vector.shape_cast %259 : vector<1x1x128xf32> to vector<1x128xf32>
    %261 = arith.truncf %236 : vector<8x128xf32> to vector<8x128xbf16>
    %cst_130 = arith.constant dense<0.000000e+00> : vector<8x384xf32>
    %262 = tpu.matmul %261, %238, %cst_130 {dimension_numbers = #tpu.dot_dimension_numbers<[1], [0], [0], [1], [0, 0, 1, 1], [], []>} : vector<8x128xbf16>, vector<128x384xbf16>, vector<8x384xf32> -> vector<8x384xf32>
    %263 = vector.broadcast %240 : vector<1x384xf32> to vector<8x384xf32>
    %264 = arith.addf %262, %263 : vector<8x384xf32>
    %265 = vector.extract_strided_slice %264 {offsets = [0, 0], sizes = [8, 128], strides = [1, 1]} : vector<8x384xf32> to vector<8x128xf32>
    %cst_131 = arith.constant 0.176776692 : f32
    %266 = vector.broadcast %cst_131 : f32 to vector<8x128xf32>
    %267 = arith.mulf %265, %266 : vector<8x128xf32>
    %268 = arith.truncf %267 : vector<8x128xf32> to vector<8x128xbf16>
    %269 = vector.shape_cast %268 : vector<8x128xbf16> to vector<2x4x128xbf16>
    %270 = vector.extract_strided_slice %264 {offsets = [0, 128], sizes = [8, 128], strides = [1, 1]} : vector<8x384xf32> to vector<8x128xf32>
    %271 = arith.truncf %270 : vector<8x128xf32> to vector<8x128xbf16>
    %272 = vector.shape_cast %271 : vector<8x128xbf16> to vector<2x4x128xbf16>
    %273 = vector.extract_strided_slice %264 {offsets = [0, 256], sizes = [8, 128], strides = [1, 1]} : vector<8x384xf32> to vector<8x128xf32>
    %274 = arith.truncf %273 : vector<8x128xf32> to vector<8x128xbf16>
    %275 = vector.shape_cast %274 : vector<8x128xbf16> to vector<2x4x128xbf16>
    %276 = vector.shape_cast %5 : vector<2x4xf32> to vector<2x1x4xf32>
    %277 = vector.shape_cast %276 : vector<2x1x4xf32> to vector<2x1x4xf32>
    %278 = vector.broadcast %277 : vector<2x1x4xf32> to vector<2x4x4xf32>
    %cst_132 = arith.constant 0.000000e+00 : f32
    %279 = vector.broadcast %cst_132 : f32 to vector<8x128xf32>
    %280 = vector.extract_strided_slice %269 {offsets = [0, 0, 0], sizes = [2, 4, 32], strides = [1, 1, 1]} : vector<2x4x128xbf16> to vector<2x4x32xbf16>
    %281 = vector.extract_strided_slice %272 {offsets = [0, 0, 0], sizes = [2, 4, 32], strides = [1, 1, 1]} : vector<2x4x128xbf16> to vector<2x4x32xbf16>
    %282 = vector.extract_strided_slice %275 {offsets = [0, 0, 0], sizes = [2, 4, 32], strides = [1, 1, 1]} : vector<2x4x128xbf16> to vector<2x4x32xbf16>
    "tpu.trace_start"() <{level = 10 : i32, message = "sqd,skd->sqk"}> : () -> ()
    %cst_133 = arith.constant dense<0.000000e+00> : vector<2x4x4xf32>
    %283 = tpu.matmul %280, %281, %cst_133 {dimension_numbers = #tpu.dot_dimension_numbers<[2], [2], [1], [1], [0, 0, 0, 1, 1, 1], [0], [0]>} : vector<2x4x32xbf16>, vector<2x4x32xbf16>, vector<2x4x4xf32> -> vector<2x4x4xf32>
    "tpu.trace_stop"() : () -> ()
    %284 = arith.addf %283, %278 : vector<2x4x4xf32>
    %cst_134 = arith.constant dense<0xFF800000> : vector<2x4xf32>
    %285 = vector.multi_reduction <maximumf>, %284, %cst_134 [2] : vector<2x4x4xf32> to vector<2x4xf32>
    %286 = vector.shape_cast %285 : vector<2x4xf32> to vector<2x4x1xf32>
    %287 = vector.broadcast %286 : vector<2x4x1xf32> to vector<2x4x4xf32>
    %288 = arith.subf %284, %287 : vector<2x4x4xf32>
    %289 = math.exp %288 : vector<2x4x4xf32>
    %cst_135 = arith.constant dense<0.000000e+00> : vector<2x4xf32>
    %290 = vector.multi_reduction <add>, %289, %cst_135 [2] : vector<2x4x4xf32> to vector<2x4xf32>
    %291 = vector.shape_cast %290 : vector<2x4xf32> to vector<2x4x1xf32>
    %292 = tpu.reciprocal %291 {approx = true} : vector<2x4x1xf32> -> vector<2x4x1xf32>
    %293 = vector.broadcast %292 : vector<2x4x1xf32> to vector<2x4x4xf32>
    %294 = arith.mulf %289, %293 : vector<2x4x4xf32>
    %295 = arith.truncf %294 : vector<2x4x4xf32> to vector<2x4x4xbf16>
    "tpu.trace_start"() <{level = 10 : i32, message = "sqk,skd->sqd"}> : () -> ()
    %cst_136 = arith.constant dense<0.000000e+00> : vector<2x4x32xf32>
    %296 = tpu.matmul %295, %282, %cst_136 {dimension_numbers = #tpu.dot_dimension_numbers<[2], [1], [1], [2], [0, 0, 0, 1, 1, 2], [0], [0]>} : vector<2x4x4xbf16>, vector<2x4x32xbf16>, vector<2x4x32xf32> -> vector<2x4x32xf32>
    "tpu.trace_stop"() : () -> ()
    %297 = vector.shape_cast %296 : vector<2x4x32xf32> to vector<8x32xf32>
    %298 = arith.truncf %297 : vector<8x32xf32> to vector<8x32xbf16>
    %299 = vector.extract_strided_slice %242 {offsets = [0, 0], sizes = [32, 128], strides = [1, 1]} : vector<128x128xbf16> to vector<32x128xbf16>
    %cst_137 = arith.constant dense<0.000000e+00> : vector<8x128xf32>
    %300 = tpu.matmul %298, %299, %cst_137 {dimension_numbers = #tpu.dot_dimension_numbers<[1], [0], [0], [1], [0, 0, 1, 1], [], []>} : vector<8x32xbf16>, vector<32x128xbf16>, vector<8x128xf32> -> vector<8x128xf32>
    %301 = arith.addf %279, %300 : vector<8x128xf32>
    %302 = vector.extract_strided_slice %269 {offsets = [0, 0, 32], sizes = [2, 4, 32], strides = [1, 1, 1]} : vector<2x4x128xbf16> to vector<2x4x32xbf16>
    %303 = vector.extract_strided_slice %272 {offsets = [0, 0, 32], sizes = [2, 4, 32], strides = [1, 1, 1]} : vector<2x4x128xbf16> to vector<2x4x32xbf16>
    %304 = vector.extract_strided_slice %275 {offsets = [0, 0, 32], sizes = [2, 4, 32], strides = [1, 1, 1]} : vector<2x4x128xbf16> to vector<2x4x32xbf16>
    "tpu.trace_start"() <{level = 10 : i32, message = "sqd,skd->sqk"}> : () -> ()
    %cst_138 = arith.constant dense<0.000000e+00> : vector<2x4x4xf32>
    %305 = tpu.matmul %302, %303, %cst_138 {dimension_numbers = #tpu.dot_dimension_numbers<[2], [2], [1], [1], [0, 0, 0, 1, 1, 1], [0], [0]>} : vector<2x4x32xbf16>, vector<2x4x32xbf16>, vector<2x4x4xf32> -> vector<2x4x4xf32>
    "tpu.trace_stop"() : () -> ()
    %306 = arith.addf %305, %278 : vector<2x4x4xf32>
    %cst_139 = arith.constant dense<0xFF800000> : vector<2x4xf32>
    %307 = vector.multi_reduction <maximumf>, %306, %cst_139 [2] : vector<2x4x4xf32> to vector<2x4xf32>
    %308 = vector.shape_cast %307 : vector<2x4xf32> to vector<2x4x1xf32>
    %309 = vector.broadcast %308 : vector<2x4x1xf32> to vector<2x4x4xf32>
    %310 = arith.subf %306, %309 : vector<2x4x4xf32>
    %311 = math.exp %310 : vector<2x4x4xf32>
    %cst_140 = arith.constant dense<0.000000e+00> : vector<2x4xf32>
    %312 = vector.multi_reduction <add>, %311, %cst_140 [2] : vector<2x4x4xf32> to vector<2x4xf32>
    %313 = vector.shape_cast %312 : vector<2x4xf32> to vector<2x4x1xf32>
    %314 = tpu.reciprocal %313 {approx = true} : vector<2x4x1xf32> -> vector<2x4x1xf32>
    %315 = vector.broadcast %314 : vector<2x4x1xf32> to vector<2x4x4xf32>
    %316 = arith.mulf %311, %315 : vector<2x4x4xf32>
    %317 = arith.truncf %316 : vector<2x4x4xf32> to vector<2x4x4xbf16>
    "tpu.trace_start"() <{level = 10 : i32, message = "sqk,skd->sqd"}> : () -> ()
    %cst_141 = arith.constant dense<0.000000e+00> : vector<2x4x32xf32>
    %318 = tpu.matmul %317, %304, %cst_141 {dimension_numbers = #tpu.dot_dimension_numbers<[2], [1], [1], [2], [0, 0, 0, 1, 1, 2], [0], [0]>} : vector<2x4x4xbf16>, vector<2x4x32xbf16>, vector<2x4x32xf32> -> vector<2x4x32xf32>
    "tpu.trace_stop"() : () -> ()
    %319 = vector.shape_cast %318 : vector<2x4x32xf32> to vector<8x32xf32>
    %320 = arith.truncf %319 : vector<8x32xf32> to vector<8x32xbf16>
    %321 = vector.extract_strided_slice %242 {offsets = [32, 0], sizes = [32, 128], strides = [1, 1]} : vector<128x128xbf16> to vector<32x128xbf16>
    %cst_142 = arith.constant dense<0.000000e+00> : vector<8x128xf32>
    %322 = tpu.matmul %320, %321, %cst_142 {dimension_numbers = #tpu.dot_dimension_numbers<[1], [0], [0], [1], [0, 0, 1, 1], [], []>} : vector<8x32xbf16>, vector<32x128xbf16>, vector<8x128xf32> -> vector<8x128xf32>
    %323 = arith.addf %301, %322 : vector<8x128xf32>
    %324 = vector.extract_strided_slice %269 {offsets = [0, 0, 64], sizes = [2, 4, 32], strides = [1, 1, 1]} : vector<2x4x128xbf16> to vector<2x4x32xbf16>
    %325 = vector.extract_strided_slice %272 {offsets = [0, 0, 64], sizes = [2, 4, 32], strides = [1, 1, 1]} : vector<2x4x128xbf16> to vector<2x4x32xbf16>
    %326 = vector.extract_strided_slice %275 {offsets = [0, 0, 64], sizes = [2, 4, 32], strides = [1, 1, 1]} : vector<2x4x128xbf16> to vector<2x4x32xbf16>
    "tpu.trace_start"() <{level = 10 : i32, message = "sqd,skd->sqk"}> : () -> ()
    %cst_143 = arith.constant dense<0.000000e+00> : vector<2x4x4xf32>
    %327 = tpu.matmul %324, %325, %cst_143 {dimension_numbers = #tpu.dot_dimension_numbers<[2], [2], [1], [1], [0, 0, 0, 1, 1, 1], [0], [0]>} : vector<2x4x32xbf16>, vector<2x4x32xbf16>, vector<2x4x4xf32> -> vector<2x4x4xf32>
    "tpu.trace_stop"() : () -> ()
    %328 = arith.addf %327, %278 : vector<2x4x4xf32>
    %cst_144 = arith.constant dense<0xFF800000> : vector<2x4xf32>
    %329 = vector.multi_reduction <maximumf>, %328, %cst_144 [2] : vector<2x4x4xf32> to vector<2x4xf32>
    %330 = vector.shape_cast %329 : vector<2x4xf32> to vector<2x4x1xf32>
    %331 = vector.broadcast %330 : vector<2x4x1xf32> to vector<2x4x4xf32>
    %332 = arith.subf %328, %331 : vector<2x4x4xf32>
    %333 = math.exp %332 : vector<2x4x4xf32>
    %cst_145 = arith.constant dense<0.000000e+00> : vector<2x4xf32>
    %334 = vector.multi_reduction <add>, %333, %cst_145 [2] : vector<2x4x4xf32> to vector<2x4xf32>
    %335 = vector.shape_cast %334 : vector<2x4xf32> to vector<2x4x1xf32>
    %336 = tpu.reciprocal %335 {approx = true} : vector<2x4x1xf32> -> vector<2x4x1xf32>
    %337 = vector.broadcast %336 : vector<2x4x1xf32> to vector<2x4x4xf32>
    %338 = arith.mulf %333, %337 : vector<2x4x4xf32>
    %339 = arith.truncf %338 : vector<2x4x4xf32> to vector<2x4x4xbf16>
    "tpu.trace_start"() <{level = 10 : i32, message = "sqk,skd->sqd"}> : () -> ()
    %cst_146 = arith.constant dense<0.000000e+00> : vector<2x4x32xf32>
    %340 = tpu.matmul %339, %326, %cst_146 {dimension_numbers = #tpu.dot_dimension_numbers<[2], [1], [1], [2], [0, 0, 0, 1, 1, 2], [0], [0]>} : vector<2x4x4xbf16>, vector<2x4x32xbf16>, vector<2x4x32xf32> -> vector<2x4x32xf32>
    "tpu.trace_stop"() : () -> ()
    %341 = vector.shape_cast %340 : vector<2x4x32xf32> to vector<8x32xf32>
    %342 = arith.truncf %341 : vector<8x32xf32> to vector<8x32xbf16>
    %343 = vector.extract_strided_slice %242 {offsets = [64, 0], sizes = [32, 128], strides = [1, 1]} : vector<128x128xbf16> to vector<32x128xbf16>
    %cst_147 = arith.constant dense<0.000000e+00> : vector<8x128xf32>
    %344 = tpu.matmul %342, %343, %cst_147 {dimension_numbers = #tpu.dot_dimension_numbers<[1], [0], [0], [1], [0, 0, 1, 1], [], []>} : vector<8x32xbf16>, vector<32x128xbf16>, vector<8x128xf32> -> vector<8x128xf32>
    %345 = arith.addf %323, %344 : vector<8x128xf32>
    %346 = vector.extract_strided_slice %269 {offsets = [0, 0, 96], sizes = [2, 4, 32], strides = [1, 1, 1]} : vector<2x4x128xbf16> to vector<2x4x32xbf16>
    %347 = vector.extract_strided_slice %272 {offsets = [0, 0, 96], sizes = [2, 4, 32], strides = [1, 1, 1]} : vector<2x4x128xbf16> to vector<2x4x32xbf16>
    %348 = vector.extract_strided_slice %275 {offsets = [0, 0, 96], sizes = [2, 4, 32], strides = [1, 1, 1]} : vector<2x4x128xbf16> to vector<2x4x32xbf16>
    "tpu.trace_start"() <{level = 10 : i32, message = "sqd,skd->sqk"}> : () -> ()
    %cst_148 = arith.constant dense<0.000000e+00> : vector<2x4x4xf32>
    %349 = tpu.matmul %346, %347, %cst_148 {dimension_numbers = #tpu.dot_dimension_numbers<[2], [2], [1], [1], [0, 0, 0, 1, 1, 1], [0], [0]>} : vector<2x4x32xbf16>, vector<2x4x32xbf16>, vector<2x4x4xf32> -> vector<2x4x4xf32>
    "tpu.trace_stop"() : () -> ()
    %350 = arith.addf %349, %278 : vector<2x4x4xf32>
    %cst_149 = arith.constant dense<0xFF800000> : vector<2x4xf32>
    %351 = vector.multi_reduction <maximumf>, %350, %cst_149 [2] : vector<2x4x4xf32> to vector<2x4xf32>
    %352 = vector.shape_cast %351 : vector<2x4xf32> to vector<2x4x1xf32>
    %353 = vector.broadcast %352 : vector<2x4x1xf32> to vector<2x4x4xf32>
    %354 = arith.subf %350, %353 : vector<2x4x4xf32>
    %355 = math.exp %354 : vector<2x4x4xf32>
    %cst_150 = arith.constant dense<0.000000e+00> : vector<2x4xf32>
    %356 = vector.multi_reduction <add>, %355, %cst_150 [2] : vector<2x4x4xf32> to vector<2x4xf32>
    %357 = vector.shape_cast %356 : vector<2x4xf32> to vector<2x4x1xf32>
    %358 = tpu.reciprocal %357 {approx = true} : vector<2x4x1xf32> -> vector<2x4x1xf32>
    %359 = vector.broadcast %358 : vector<2x4x1xf32> to vector<2x4x4xf32>
    %360 = arith.mulf %355, %359 : vector<2x4x4xf32>
    %361 = arith.truncf %360 : vector<2x4x4xf32> to vector<2x4x4xbf16>
    "tpu.trace_start"() <{level = 10 : i32, message = "sqk,skd->sqd"}> : () -> ()
    %cst_151 = arith.constant dense<0.000000e+00> : vector<2x4x32xf32>
    %362 = tpu.matmul %361, %348, %cst_151 {dimension_numbers = #tpu.dot_dimension_numbers<[2], [1], [1], [2], [0, 0, 0, 1, 1, 2], [0], [0]>} : vector<2x4x4xbf16>, vector<2x4x32xbf16>, vector<2x4x32xf32> -> vector<2x4x32xf32>
    "tpu.trace_stop"() : () -> ()
    %363 = vector.shape_cast %362 : vector<2x4x32xf32> to vector<8x32xf32>
    %364 = arith.truncf %363 : vector<8x32xf32> to vector<8x32xbf16>
    %365 = vector.extract_strided_slice %242 {offsets = [96, 0], sizes = [32, 128], strides = [1, 1]} : vector<128x128xbf16> to vector<32x128xbf16>
    %cst_152 = arith.constant dense<0.000000e+00> : vector<8x128xf32>
    %366 = tpu.matmul %364, %365, %cst_152 {dimension_numbers = #tpu.dot_dimension_numbers<[1], [0], [0], [1], [0, 0, 1, 1], [], []>} : vector<8x32xbf16>, vector<32x128xbf16>, vector<8x128xf32> -> vector<8x128xf32>
    %367 = arith.addf %345, %366 : vector<8x128xf32>
    %368 = vector.broadcast %244 : vector<1x128xf32> to vector<8x128xf32>
    %369 = arith.addf %367, %368 : vector<8x128xf32>
    %370 = arith.addf %369, %236 : vector<8x128xf32>
    %cst_153 = arith.constant dense<0.000000e+00> : vector<8xf32>
    %371 = vector.multi_reduction <add>, %370, %cst_153 [1] : vector<8x128xf32> to vector<8xf32>
    %372 = vector.shape_cast %371 : vector<8xf32> to vector<8x1xf32>
    %cst_154 = arith.constant 1.280000e+02 : f32
    %373 = vector.broadcast %cst_154 : f32 to vector<8x1xf32>
    %374 = arith.divf %372, %373 : vector<8x1xf32>
    %375 = vector.broadcast %374 : vector<8x1xf32> to vector<8x128xf32>
    %376 = arith.subf %370, %375 : vector<8x128xf32>
    %377 = arith.mulf %376, %376 : vector<8x128xf32>
    %cst_155 = arith.constant dense<0.000000e+00> : vector<8xf32>
    %378 = vector.multi_reduction <add>, %377, %cst_155 [1] : vector<8x128xf32> to vector<8xf32>
    %379 = vector.shape_cast %378 : vector<8xf32> to vector<8x1xf32>
    %cst_156 = arith.constant 1.280000e+02 : f32
    %380 = vector.broadcast %cst_156 : f32 to vector<8x1xf32>
    %381 = arith.divf %379, %380 : vector<8x1xf32>
    %382 = vector.broadcast %374 : vector<8x1xf32> to vector<8x128xf32>
    %383 = arith.subf %370, %382 : vector<8x128xf32>
    %cst_157 = arith.constant 9.99999996E-13 : f32
    %384 = vector.broadcast %cst_157 : f32 to vector<8x1xf32>
    %385 = arith.addf %381, %384 : vector<8x1xf32>
    %386 = math.rsqrt %385 : vector<8x1xf32>
    %387 = vector.broadcast %386 : vector<8x1xf32> to vector<8x128xf32>
    %388 = arith.mulf %383, %387 : vector<8x128xf32>
    %389 = vector.broadcast %246 : vector<1x128xf32> to vector<8x128xf32>
    %390 = arith.mulf %388, %389 : vector<8x128xf32>
    %391 = vector.broadcast %248 : vector<1x128xf32> to vector<8x128xf32>
    %392 = arith.addf %390, %391 : vector<8x128xf32>
    %393 = arith.truncf %392 : vector<8x128xf32> to vector<8x128xbf16>
    %cst_158 = arith.constant dense<0.000000e+00> : vector<8x256xf32>
    %394 = tpu.matmul %393, %250, %cst_158 {dimension_numbers = #tpu.dot_dimension_numbers<[1], [0], [0], [1], [0, 0, 1, 1], [], []>} : vector<8x128xbf16>, vector<128x256xbf16>, vector<8x256xf32> -> vector<8x256xf32>
    %395 = vector.broadcast %252 : vector<1x256xf32> to vector<8x256xf32>
    %396 = arith.addf %394, %395 : vector<8x256xf32>
    %cst_159 = arith.constant 5.000000e-01 : f32
    %397 = vector.broadcast %cst_159 : f32 to vector<8x256xf32>
    %398 = arith.mulf %397, %396 : vector<8x256xf32>
    %cst_160 = arith.constant 4.471500e-02 : f32
    %399 = vector.broadcast %cst_160 : f32 to vector<8x256xf32>
    %400 = arith.mulf %399, %396 : vector<8x256xf32>
    %401 = arith.mulf %400, %396 : vector<8x256xf32>
    %402 = arith.mulf %401, %396 : vector<8x256xf32>
    %403 = arith.addf %396, %402 : vector<8x256xf32>
    %cst_161 = arith.constant 0.797884583 : f32
    %404 = vector.broadcast %cst_161 : f32 to vector<8x256xf32>
    %405 = arith.mulf %404, %403 : vector<8x256xf32>
    %406 = math.tanh %405 : vector<8x256xf32>
    %cst_162 = arith.constant 1.000000e+00 : f32
    %407 = vector.broadcast %cst_162 : f32 to vector<8x256xf32>
    %408 = arith.addf %407, %406 : vector<8x256xf32>
    %409 = arith.mulf %398, %408 : vector<8x256xf32>
    %410 = arith.truncf %409 : vector<8x256xf32> to vector<8x256xbf16>
    %cst_163 = arith.constant dense<0.000000e+00> : vector<8x128xf32>
    %411 = tpu.matmul %410, %254, %cst_163 {dimension_numbers = #tpu.dot_dimension_numbers<[1], [0], [0], [1], [0, 0, 1, 1], [], []>} : vector<8x256xbf16>, vector<256x128xbf16>, vector<8x128xf32> -> vector<8x128xf32>
    %412 = vector.broadcast %256 : vector<1x128xf32> to vector<8x128xf32>
    %413 = arith.addf %411, %412 : vector<8x128xf32>
    %414 = arith.addf %413, %392 : vector<8x128xf32>
    %cst_164 = arith.constant dense<0.000000e+00> : vector<8xf32>
    %415 = vector.multi_reduction <add>, %414, %cst_164 [1] : vector<8x128xf32> to vector<8xf32>
    %416 = vector.shape_cast %415 : vector<8xf32> to vector<8x1xf32>
    %cst_165 = arith.constant 1.280000e+02 : f32
    %417 = vector.broadcast %cst_165 : f32 to vector<8x1xf32>
    %418 = arith.divf %416, %417 : vector<8x1xf32>
    %419 = vector.broadcast %418 : vector<8x1xf32> to vector<8x128xf32>
    %420 = arith.subf %414, %419 : vector<8x128xf32>
    %421 = arith.mulf %420, %420 : vector<8x128xf32>
    %cst_166 = arith.constant dense<0.000000e+00> : vector<8xf32>
    %422 = vector.multi_reduction <add>, %421, %cst_166 [1] : vector<8x128xf32> to vector<8xf32>
    %423 = vector.shape_cast %422 : vector<8xf32> to vector<8x1xf32>
    %cst_167 = arith.constant 1.280000e+02 : f32
    %424 = vector.broadcast %cst_167 : f32 to vector<8x1xf32>
    %425 = arith.divf %423, %424 : vector<8x1xf32>
    %426 = vector.broadcast %418 : vector<8x1xf32> to vector<8x128xf32>
    %427 = arith.subf %414, %426 : vector<8x128xf32>
    %cst_168 = arith.constant 9.99999996E-13 : f32
    %428 = vector.broadcast %cst_168 : f32 to vector<8x1xf32>
    %429 = arith.addf %425, %428 : vector<8x1xf32>
    %430 = math.rsqrt %429 : vector<8x1xf32>
    %431 = vector.broadcast %430 : vector<8x1xf32> to vector<8x128xf32>
    %432 = arith.mulf %427, %431 : vector<8x128xf32>
    %433 = vector.broadcast %258 : vector<1x128xf32> to vector<8x128xf32>
    %434 = arith.mulf %432, %433 : vector<8x128xf32>
    %435 = vector.broadcast %260 : vector<1x128xf32> to vector<8x128xf32>
    %436 = arith.addf %434, %435 : vector<8x128xf32>
    %437 = vector.extract_strided_slice %436 {offsets = [0, 0], sizes = [1, 128], strides = [1, 1]} : vector<8x128xf32> to vector<1x128xf32>
    %438 = vector.extract_strided_slice %436 {offsets = [4, 0], sizes = [1, 128], strides = [1, 1]} : vector<8x128xf32> to vector<1x128xf32>
    %439 = tpu.concatenate %437, %438 in 0 : vector<1x128xf32>, vector<1x128xf32> -> vector<2x128xf32>
    %440 = vector.extract_strided_slice %436 {offsets = [1, 0], sizes = [1, 128], strides = [1, 1]} : vector<8x128xf32> to vector<1x128xf32>
    %c0_169 = arith.constant 0 : index
    %c0_170 = arith.constant 0 : index
    %441 = vector.load %arg18[%c0_169, %c0_170] : memref<48x128xf32, #tpu.memory_space<vmem>>, vector<1x128xf32>
    tpu.vector_store %arg18[%c0_169, %c0_170], %440 {strides = array<i32>} : memref<48x128xf32, #tpu.memory_space<vmem>>, vector<1x128xf32>,
    %442 = vector.extract_strided_slice %436 {offsets = [2, 0], sizes = [1, 128], strides = [1, 1]} : vector<8x128xf32> to vector<1x128xf32>
    %c8 = arith.constant 8 : index
    %c0_171 = arith.constant 0 : index
    %443 = vector.load %arg18[%c8, %c0_171] : memref<48x128xf32, #tpu.memory_space<vmem>>, vector<1x128xf32>
    tpu.vector_store %arg18[%c8, %c0_171], %442 {strides = array<i32>} : memref<48x128xf32, #tpu.memory_space<vmem>>, vector<1x128xf32>,
    %444 = vector.extract_strided_slice %436 {offsets = [3, 0], sizes = [1, 128], strides = [1, 1]} : vector<8x128xf32> to vector<1x128xf32>
    %c16 = arith.constant 16 : index
    %c0_172 = arith.constant 0 : index
    %445 = vector.load %arg18[%c16, %c0_172] : memref<48x128xf32, #tpu.memory_space<vmem>>, vector<1x128xf32>
    tpu.vector_store %arg18[%c16, %c0_172], %444 {strides = array<i32>} : memref<48x128xf32, #tpu.memory_space<vmem>>, vector<1x128xf32>,
    %446 = vector.extract_strided_slice %436 {offsets = [5, 0], sizes = [1, 128], strides = [1, 1]} : vector<8x128xf32> to vector<1x128xf32>
    %c24 = arith.constant 24 : index
    %c0_173 = arith.constant 0 : index
    %447 = vector.load %arg18[%c24, %c0_173] : memref<48x128xf32, #tpu.memory_space<vmem>>, vector<1x128xf32>
    tpu.vector_store %arg18[%c24, %c0_173], %446 {strides = array<i32>} : memref<48x128xf32, #tpu.memory_space<vmem>>, vector<1x128xf32>,
    %448 = vector.extract_strided_slice %436 {offsets = [6, 0], sizes = [1, 128], strides = [1, 1]} : vector<8x128xf32> to vector<1x128xf32>
    %c32 = arith.constant 32 : index
    %c0_174 = arith.constant 0 : index
    %449 = vector.load %arg18[%c32, %c0_174] : memref<48x128xf32, #tpu.memory_space<vmem>>, vector<1x128xf32>
    tpu.vector_store %arg18[%c32, %c0_174], %448 {strides = array<i32>} : memref<48x128xf32, #tpu.memory_space<vmem>>, vector<1x128xf32>,
    %450 = vector.extract_strided_slice %436 {offsets = [7, 0], sizes = [1, 128], strides = [1, 1]} : vector<8x128xf32> to vector<1x128xf32>
    %c40 = arith.constant 40 : index
    %c0_175 = arith.constant 0 : index
    %451 = vector.load %arg18[%c40, %c0_175] : memref<48x128xf32, #tpu.memory_space<vmem>>, vector<1x128xf32>
    tpu.vector_store %arg18[%c40, %c0_175], %450 {strides = array<i32>} : memref<48x128xf32, #tpu.memory_space<vmem>>, vector<1x128xf32>,
    %c0_176 = arith.constant 0 : index
    %c0_177 = arith.constant 0 : index
    %452 = vector.load %arg2[%c0_176, %c0_177] : memref<6x8xf32, #tpu.memory_space<vmem>>, vector<6x8xf32>
    %c0_178 = arith.constant 0 : index
    %c0_179 = arith.constant 0 : index
    %453 = vector.load %arg18[%c0_178, %c0_179] : memref<48x128xf32, #tpu.memory_space<vmem>>, vector<48x128xf32>
    %c1 = arith.constant 1 : index
    %c0_180 = arith.constant 0 : index
    %c0_181 = arith.constant 0 : index
    %454 = vector.load %arg5[%c1, %c0_180, %c0_181] : memref<4x128x384xbf16, #tpu.memory_space<vmem>>, vector<1x128x384xbf16>
    %455 = vector.shape_cast %454 : vector<1x128x384xbf16> to vector<128x384xbf16>
    %c1_182 = arith.constant 1 : index
    %c0_183 = arith.constant 0 : index
    %c0_184 = arith.constant 0 : index
    %456 = vector.load %arg6[%c1_182, %c0_183, %c0_184] : memref<4x1x384xf32, #tpu.memory_space<vmem>>, vector<1x1x384xf32>
    %457 = vector.shape_cast %456 : vector<1x1x384xf32> to vector<1x384xf32>
    %c1_185 = arith.constant 1 : index
    %c0_186 = arith.constant 0 : index
    %c0_187 = arith.constant 0 : index
    %458 = vector.load %arg7[%c1_185, %c0_186, %c0_187] : memref<4x128x128xbf16, #tpu.memory_space<vmem>>, vector<1x128x128xbf16>
    %459 = vector.shape_cast %458 : vector<1x128x128xbf16> to vector<128x128xbf16>
    %c1_188 = arith.constant 1 : index
    %c0_189 = arith.constant 0 : index
    %c0_190 = arith.constant 0 : index
    %460 = vector.load %arg8[%c1_188, %c0_189, %c0_190] : memref<4x1x128xf32, #tpu.memory_space<vmem>>, vector<1x1x128xf32>
    %461 = vector.shape_cast %460 : vector<1x1x128xf32> to vector<1x128xf32>
    %c1_191 = arith.constant 1 : index
    %c0_192 = arith.constant 0 : index
    %c0_193 = arith.constant 0 : index
    %462 = vector.load %arg9[%c1_191, %c0_192, %c0_193] : memref<4x1x128xf32, #tpu.memory_space<vmem>>, vector<1x1x128xf32>
    %463 = vector.shape_cast %462 : vector<1x1x128xf32> to vector<1x128xf32>
    %c1_194 = arith.constant 1 : index
    %c0_195 = arith.constant 0 : index
    %c0_196 = arith.constant 0 : index
    %464 = vector.load %arg10[%c1_194, %c0_195, %c0_196] : memref<4x1x128xf32, #tpu.memory_space<vmem>>, vector<1x1x128xf32>
    %465 = vector.shape_cast %464 : vector<1x1x128xf32> to vector<1x128xf32>
    %c1_197 = arith.constant 1 : index
    %c0_198 = arith.constant 0 : index
    %c0_199 = arith.constant 0 : index
    %466 = vector.load %arg11[%c1_197, %c0_198, %c0_199] : memref<4x128x256xbf16, #tpu.memory_space<vmem>>, vector<1x128x256xbf16>
    %467 = vector.shape_cast %466 : vector<1x128x256xbf16> to vector<128x256xbf16>
    %c1_200 = arith.constant 1 : index
    %c0_201 = arith.constant 0 : index
    %c0_202 = arith.constant 0 : index
    %468 = vector.load %arg12[%c1_200, %c0_201, %c0_202] : memref<4x1x256xf32, #tpu.memory_space<vmem>>, vector<1x1x256xf32>
    %469 = vector.shape_cast %468 : vector<1x1x256xf32> to vector<1x256xf32>
    %c1_203 = arith.constant 1 : index
    %c0_204 = arith.constant 0 : index
    %c0_205 = arith.constant 0 : index
    %470 = vector.load %arg13[%c1_203, %c0_204, %c0_205] : memref<4x256x128xbf16, #tpu.memory_space<vmem>>, vector<1x256x128xbf16>
    %471 = vector.shape_cast %470 : vector<1x256x128xbf16> to vector<256x128xbf16>
    %c1_206 = arith.constant 1 : index
    %c0_207 = arith.constant 0 : index
    %c0_208 = arith.constant 0 : index
    %472 = vector.load %arg14[%c1_206, %c0_207, %c0_208] : memref<4x1x128xf32, #tpu.memory_space<vmem>>, vector<1x1x128xf32>
    %473 = vector.shape_cast %472 : vector<1x1x128xf32> to vector<1x128xf32>
    %c1_209 = arith.constant 1 : index
    %c0_210 = arith.constant 0 : index
    %c0_211 = arith.constant 0 : index
    %474 = vector.load %arg15[%c1_209, %c0_210, %c0_211] : memref<4x1x128xf32, #tpu.memory_space<vmem>>, vector<1x1x128xf32>
    %475 = vector.shape_cast %474 : vector<1x1x128xf32> to vector<1x128xf32>
    %c1_212 = arith.constant 1 : index
    %c0_213 = arith.constant 0 : index
    %c0_214 = arith.constant 0 : index
    %476 = vector.load %arg16[%c1_212, %c0_213, %c0_214] : memref<4x1x128xf32, #tpu.memory_space<vmem>>, vector<1x1x128xf32>
    %477 = vector.shape_cast %476 : vector<1x1x128xf32> to vector<1x128xf32>
    %478 = arith.truncf %453 : vector<48x128xf32> to vector<48x128xbf16>
    %cst_215 = arith.constant dense<0.000000e+00> : vector<48x384xf32>
    %479 = tpu.matmul %478, %455, %cst_215 {dimension_numbers = #tpu.dot_dimension_numbers<[1], [0], [0], [1], [0, 0, 1, 1], [], []>} : vector<48x128xbf16>, vector<128x384xbf16>, vector<48x384xf32> -> vector<48x384xf32>
    %480 = vector.broadcast %457 : vector<1x384xf32> to vector<48x384xf32>
    %481 = arith.addf %479, %480 : vector<48x384xf32>
    %482 = vector.extract_strided_slice %481 {offsets = [0, 0], sizes = [48, 128], strides = [1, 1]} : vector<48x384xf32> to vector<48x128xf32>
    %cst_216 = arith.constant 0.176776692 : f32
    %483 = vector.broadcast %cst_216 : f32 to vector<48x128xf32>
    %484 = arith.mulf %482, %483 : vector<48x128xf32>
    %485 = arith.truncf %484 : vector<48x128xf32> to vector<48x128xbf16>
    %486 = vector.shape_cast %485 : vector<48x128xbf16> to vector<6x8x128xbf16>
    %487 = vector.extract_strided_slice %481 {offsets = [0, 128], sizes = [48, 128], strides = [1, 1]} : vector<48x384xf32> to vector<48x128xf32>
    %488 = arith.truncf %487 : vector<48x128xf32> to vector<48x128xbf16>
    %489 = vector.shape_cast %488 : vector<48x128xbf16> to vector<6x8x128xbf16>
    %490 = vector.extract_strided_slice %481 {offsets = [0, 256], sizes = [48, 128], strides = [1, 1]} : vector<48x384xf32> to vector<48x128xf32>
    %491 = arith.truncf %490 : vector<48x128xf32> to vector<48x128xbf16>
    %492 = vector.shape_cast %491 : vector<48x128xbf16> to vector<6x8x128xbf16>
    %493 = vector.shape_cast %452 : vector<6x8xf32> to vector<6x1x8xf32>
    %494 = vector.shape_cast %493 : vector<6x1x8xf32> to vector<6x1x8xf32>
    %495 = vector.broadcast %494 : vector<6x1x8xf32> to vector<6x8x8xf32>
    %cst_217 = arith.constant 0.000000e+00 : f32
    %496 = vector.broadcast %cst_217 : f32 to vector<48x128xf32>
    %497 = vector.extract_strided_slice %486 {offsets = [0, 0, 0], sizes = [6, 8, 32], strides = [1, 1, 1]} : vector<6x8x128xbf16> to vector<6x8x32xbf16>
    %498 = vector.extract_strided_slice %489 {offsets = [0, 0, 0], sizes = [6, 8, 32], strides = [1, 1, 1]} : vector<6x8x128xbf16> to vector<6x8x32xbf16>
    %499 = vector.extract_strided_slice %492 {offsets = [0, 0, 0], sizes = [6, 8, 32], strides = [1, 1, 1]} : vector<6x8x128xbf16> to vector<6x8x32xbf16>
    "tpu.trace_start"() <{level = 10 : i32, message = "sqd,skd->sqk"}> : () -> ()
    %cst_218 = arith.constant dense<0.000000e+00> : vector<6x8x8xf32>
    %500 = tpu.matmul %497, %498, %cst_218 {dimension_numbers = #tpu.dot_dimension_numbers<[2], [2], [1], [1], [0, 0, 0, 1, 1, 1], [0], [0]>} : vector<6x8x32xbf16>, vector<6x8x32xbf16>, vector<6x8x8xf32> -> vector<6x8x8xf32>
    "tpu.trace_stop"() : () -> ()
    %501 = arith.addf %500, %495 : vector<6x8x8xf32>
    %cst_219 = arith.constant dense<0xFF800000> : vector<6x8xf32>
    %502 = vector.multi_reduction <maximumf>, %501, %cst_219 [2] : vector<6x8x8xf32> to vector<6x8xf32>
    %503 = vector.shape_cast %502 : vector<6x8xf32> to vector<6x8x1xf32>
    %504 = vector.broadcast %503 : vector<6x8x1xf32> to vector<6x8x8xf32>
    %505 = arith.subf %501, %504 : vector<6x8x8xf32>
    %506 = math.exp %505 : vector<6x8x8xf32>
    %cst_220 = arith.constant dense<0.000000e+00> : vector<6x8xf32>
    %507 = vector.multi_reduction <add>, %506, %cst_220 [2] : vector<6x8x8xf32> to vector<6x8xf32>
    %508 = vector.shape_cast %507 : vector<6x8xf32> to vector<6x8x1xf32>
    %509 = tpu.reciprocal %508 {approx = true} : vector<6x8x1xf32> -> vector<6x8x1xf32>
    %510 = vector.broadcast %509 : vector<6x8x1xf32> to vector<6x8x8xf32>
    %511 = arith.mulf %506, %510 : vector<6x8x8xf32>
    %512 = arith.truncf %511 : vector<6x8x8xf32> to vector<6x8x8xbf16>
    "tpu.trace_start"() <{level = 10 : i32, message = "sqk,skd->sqd"}> : () -> ()
    %cst_221 = arith.constant dense<0.000000e+00> : vector<6x8x32xf32>
    %513 = tpu.matmul %512, %499, %cst_221 {dimension_numbers = #tpu.dot_dimension_numbers<[2], [1], [1], [2], [0, 0, 0, 1, 1, 2], [0], [0]>} : vector<6x8x8xbf16>, vector<6x8x32xbf16>, vector<6x8x32xf32> -> vector<6x8x32xf32>
    "tpu.trace_stop"() : () -> ()
    %514 = vector.shape_cast %513 : vector<6x8x32xf32> to vector<48x32xf32>
    %515 = arith.truncf %514 : vector<48x32xf32> to vector<48x32xbf16>
    %516 = vector.extract_strided_slice %459 {offsets = [0, 0], sizes = [32, 128], strides = [1, 1]} : vector<128x128xbf16> to vector<32x128xbf16>
    %cst_222 = arith.constant dense<0.000000e+00> : vector<48x128xf32>
    %517 = tpu.matmul %515, %516, %cst_222 {dimension_numbers = #tpu.dot_dimension_numbers<[1], [0], [0], [1], [0, 0, 1, 1], [], []>} : vector<48x32xbf16>, vector<32x128xbf16>, vector<48x128xf32> -> vector<48x128xf32>
    %518 = arith.addf %496, %517 : vector<48x128xf32>
    %519 = vector.extract_strided_slice %486 {offsets = [0, 0, 32], sizes = [6, 8, 32], strides = [1, 1, 1]} : vector<6x8x128xbf16> to vector<6x8x32xbf16>
    %520 = vector.extract_strided_slice %489 {offsets = [0, 0, 32], sizes = [6, 8, 32], strides = [1, 1, 1]} : vector<6x8x128xbf16> to vector<6x8x32xbf16>
    %521 = vector.extract_strided_slice %492 {offsets = [0, 0, 32], sizes = [6, 8, 32], strides = [1, 1, 1]} : vector<6x8x128xbf16> to vector<6x8x32xbf16>
    "tpu.trace_start"() <{level = 10 : i32, message = "sqd,skd->sqk"}> : () -> ()
    %cst_223 = arith.constant dense<0.000000e+00> : vector<6x8x8xf32>
    %522 = tpu.matmul %519, %520, %cst_223 {dimension_numbers = #tpu.dot_dimension_numbers<[2], [2], [1], [1], [0, 0, 0, 1, 1, 1], [0], [0]>} : vector<6x8x32xbf16>, vector<6x8x32xbf16>, vector<6x8x8xf32> -> vector<6x8x8xf32>
    "tpu.trace_stop"() : () -> ()
    %523 = arith.addf %522, %495 : vector<6x8x8xf32>
    %cst_224 = arith.constant dense<0xFF800000> : vector<6x8xf32>
    %524 = vector.multi_reduction <maximumf>, %523, %cst_224 [2] : vector<6x8x8xf32> to vector<6x8xf32>
    %525 = vector.shape_cast %524 : vector<6x8xf32> to vector<6x8x1xf32>
    %526 = vector.broadcast %525 : vector<6x8x1xf32> to vector<6x8x8xf32>
    %527 = arith.subf %523, %526 : vector<6x8x8xf32>
    %528 = math.exp %527 : vector<6x8x8xf32>
    %cst_225 = arith.constant dense<0.000000e+00> : vector<6x8xf32>
    %529 = vector.multi_reduction <add>, %528, %cst_225 [2] : vector<6x8x8xf32> to vector<6x8xf32>
    %530 = vector.shape_cast %529 : vector<6x8xf32> to vector<6x8x1xf32>
    %531 = tpu.reciprocal %530 {approx = true} : vector<6x8x1xf32> -> vector<6x8x1xf32>
    %532 = vector.broadcast %531 : vector<6x8x1xf32> to vector<6x8x8xf32>
    %533 = arith.mulf %528, %532 : vector<6x8x8xf32>
    %534 = arith.truncf %533 : vector<6x8x8xf32> to vector<6x8x8xbf16>
    "tpu.trace_start"() <{level = 10 : i32, message = "sqk,skd->sqd"}> : () -> ()
    %cst_226 = arith.constant dense<0.000000e+00> : vector<6x8x32xf32>
    %535 = tpu.matmul %534, %521, %cst_226 {dimension_numbers = #tpu.dot_dimension_numbers<[2], [1], [1], [2], [0, 0, 0, 1, 1, 2], [0], [0]>} : vector<6x8x8xbf16>, vector<6x8x32xbf16>, vector<6x8x32xf32> -> vector<6x8x32xf32>
    "tpu.trace_stop"() : () -> ()
    %536 = vector.shape_cast %535 : vector<6x8x32xf32> to vector<48x32xf32>
    %537 = arith.truncf %536 : vector<48x32xf32> to vector<48x32xbf16>
    %538 = vector.extract_strided_slice %459 {offsets = [32, 0], sizes = [32, 128], strides = [1, 1]} : vector<128x128xbf16> to vector<32x128xbf16>
    %cst_227 = arith.constant dense<0.000000e+00> : vector<48x128xf32>
    %539 = tpu.matmul %537, %538, %cst_227 {dimension_numbers = #tpu.dot_dimension_numbers<[1], [0], [0], [1], [0, 0, 1, 1], [], []>} : vector<48x32xbf16>, vector<32x128xbf16>, vector<48x128xf32> -> vector<48x128xf32>
    %540 = arith.addf %518, %539 : vector<48x128xf32>
    %541 = vector.extract_strided_slice %486 {offsets = [0, 0, 64], sizes = [6, 8, 32], strides = [1, 1, 1]} : vector<6x8x128xbf16> to vector<6x8x32xbf16>
    %542 = vector.extract_strided_slice %489 {offsets = [0, 0, 64], sizes = [6, 8, 32], strides = [1, 1, 1]} : vector<6x8x128xbf16> to vector<6x8x32xbf16>
    %543 = vector.extract_strided_slice %492 {offsets = [0, 0, 64], sizes = [6, 8, 32], strides = [1, 1, 1]} : vector<6x8x128xbf16> to vector<6x8x32xbf16>
    "tpu.trace_start"() <{level = 10 : i32, message = "sqd,skd->sqk"}> : () -> ()
    %cst_228 = arith.constant dense<0.000000e+00> : vector<6x8x8xf32>
    %544 = tpu.matmul %541, %542, %cst_228 {dimension_numbers = #tpu.dot_dimension_numbers<[2], [2], [1], [1], [0, 0, 0, 1, 1, 1], [0], [0]>} : vector<6x8x32xbf16>, vector<6x8x32xbf16>, vector<6x8x8xf32> -> vector<6x8x8xf32>
    "tpu.trace_stop"() : () -> ()
    %545 = arith.addf %544, %495 : vector<6x8x8xf32>
    %cst_229 = arith.constant dense<0xFF800000> : vector<6x8xf32>
    %546 = vector.multi_reduction <maximumf>, %545, %cst_229 [2] : vector<6x8x8xf32> to vector<6x8xf32>
    %547 = vector.shape_cast %546 : vector<6x8xf32> to vector<6x8x1xf32>
    %548 = vector.broadcast %547 : vector<6x8x1xf32> to vector<6x8x8xf32>
    %549 = arith.subf %545, %548 : vector<6x8x8xf32>
    %550 = math.exp %549 : vector<6x8x8xf32>
    %cst_230 = arith.constant dense<0.000000e+00> : vector<6x8xf32>
    %551 = vector.multi_reduction <add>, %550, %cst_230 [2] : vector<6x8x8xf32> to vector<6x8xf32>
    %552 = vector.shape_cast %551 : vector<6x8xf32> to vector<6x8x1xf32>
    %553 = tpu.reciprocal %552 {approx = true} : vector<6x8x1xf32> -> vector<6x8x1xf32>
    %554 = vector.broadcast %553 : vector<6x8x1xf32> to vector<6x8x8xf32>
    %555 = arith.mulf %550, %554 : vector<6x8x8xf32>
    %556 = arith.truncf %555 : vector<6x8x8xf32> to vector<6x8x8xbf16>
    "tpu.trace_start"() <{level = 10 : i32, message = "sqk,skd->sqd"}> : () -> ()
    %cst_231 = arith.constant dense<0.000000e+00> : vector<6x8x32xf32>
    %557 = tpu.matmul %556, %543, %cst_231 {dimension_numbers = #tpu.dot_dimension_numbers<[2], [1], [1], [2], [0, 0, 0, 1, 1, 2], [0], [0]>} : vector<6x8x8xbf16>, vector<6x8x32xbf16>, vector<6x8x32xf32> -> vector<6x8x32xf32>
    "tpu.trace_stop"() : () -> ()
    %558 = vector.shape_cast %557 : vector<6x8x32xf32> to vector<48x32xf32>
    %559 = arith.truncf %558 : vector<48x32xf32> to vector<48x32xbf16>
    %560 = vector.extract_strided_slice %459 {offsets = [64, 0], sizes = [32, 128], strides = [1, 1]} : vector<128x128xbf16> to vector<32x128xbf16>
    %cst_232 = arith.constant dense<0.000000e+00> : vector<48x128xf32>
    %561 = tpu.matmul %559, %560, %cst_232 {dimension_numbers = #tpu.dot_dimension_numbers<[1], [0], [0], [1], [0, 0, 1, 1], [], []>} : vector<48x32xbf16>, vector<32x128xbf16>, vector<48x128xf32> -> vector<48x128xf32>
    %562 = arith.addf %540, %561 : vector<48x128xf32>
    %563 = vector.extract_strided_slice %486 {offsets = [0, 0, 96], sizes = [6, 8, 32], strides = [1, 1, 1]} : vector<6x8x128xbf16> to vector<6x8x32xbf16>
    %564 = vector.extract_strided_slice %489 {offsets = [0, 0, 96], sizes = [6, 8, 32], strides = [1, 1, 1]} : vector<6x8x128xbf16> to vector<6x8x32xbf16>
    %565 = vector.extract_strided_slice %492 {offsets = [0, 0, 96], sizes = [6, 8, 32], strides = [1, 1, 1]} : vector<6x8x128xbf16> to vector<6x8x32xbf16>
    "tpu.trace_start"() <{level = 10 : i32, message = "sqd,skd->sqk"}> : () -> ()
    %cst_233 = arith.constant dense<0.000000e+00> : vector<6x8x8xf32>
    %566 = tpu.matmul %563, %564, %cst_233 {dimension_numbers = #tpu.dot_dimension_numbers<[2], [2], [1], [1], [0, 0, 0, 1, 1, 1], [0], [0]>} : vector<6x8x32xbf16>, vector<6x8x32xbf16>, vector<6x8x8xf32> -> vector<6x8x8xf32>
    "tpu.trace_stop"() : () -> ()
    %567 = arith.addf %566, %495 : vector<6x8x8xf32>
    %cst_234 = arith.constant dense<0xFF800000> : vector<6x8xf32>
    %568 = vector.multi_reduction <maximumf>, %567, %cst_234 [2] : vector<6x8x8xf32> to vector<6x8xf32>
    %569 = vector.shape_cast %568 : vector<6x8xf32> to vector<6x8x1xf32>
    %570 = vector.broadcast %569 : vector<6x8x1xf32> to vector<6x8x8xf32>
    %571 = arith.subf %567, %570 : vector<6x8x8xf32>
    %572 = math.exp %571 : vector<6x8x8xf32>
    %cst_235 = arith.constant dense<0.000000e+00> : vector<6x8xf32>
    %573 = vector.multi_reduction <add>, %572, %cst_235 [2] : vector<6x8x8xf32> to vector<6x8xf32>
    %574 = vector.shape_cast %573 : vector<6x8xf32> to vector<6x8x1xf32>
    %575 = tpu.reciprocal %574 {approx = true} : vector<6x8x1xf32> -> vector<6x8x1xf32>
    %576 = vector.broadcast %575 : vector<6x8x1xf32> to vector<6x8x8xf32>
    %577 = arith.mulf %572, %576 : vector<6x8x8xf32>
    %578 = arith.truncf %577 : vector<6x8x8xf32> to vector<6x8x8xbf16>
    "tpu.trace_start"() <{level = 10 : i32, message = "sqk,skd->sqd"}> : () -> ()
    %cst_236 = arith.constant dense<0.000000e+00> : vector<6x8x32xf32>
    %579 = tpu.matmul %578, %565, %cst_236 {dimension_numbers = #tpu.dot_dimension_numbers<[2], [1], [1], [2], [0, 0, 0, 1, 1, 2], [0], [0]>} : vector<6x8x8xbf16>, vector<6x8x32xbf16>, vector<6x8x32xf32> -> vector<6x8x32xf32>
    "tpu.trace_stop"() : () -> ()
    %580 = vector.shape_cast %579 : vector<6x8x32xf32> to vector<48x32xf32>
    %581 = arith.truncf %580 : vector<48x32xf32> to vector<48x32xbf16>
    %582 = vector.extract_strided_slice %459 {offsets = [96, 0], sizes = [32, 128], strides = [1, 1]} : vector<128x128xbf16> to vector<32x128xbf16>
    %cst_237 = arith.constant dense<0.000000e+00> : vector<48x128xf32>
    %583 = tpu.matmul %581, %582, %cst_237 {dimension_numbers = #tpu.dot_dimension_numbers<[1], [0], [0], [1], [0, 0, 1, 1], [], []>} : vector<48x32xbf16>, vector<32x128xbf16>, vector<48x128xf32> -> vector<48x128xf32>
    %584 = arith.addf %562, %583 : vector<48x128xf32>
    %585 = vector.broadcast %461 : vector<1x128xf32> to vector<48x128xf32>
    %586 = arith.addf %584, %585 : vector<48x128xf32>
    %587 = arith.addf %586, %453 : vector<48x128xf32>
    %cst_238 = arith.constant dense<0.000000e+00> : vector<48xf32>
    %588 = vector.multi_reduction <add>, %587, %cst_238 [1] : vector<48x128xf32> to vector<48xf32>
    %589 = vector.shape_cast %588 : vector<48xf32> to vector<48x1xf32>
    %cst_239 = arith.constant 1.280000e+02 : f32
    %590 = vector.broadcast %cst_239 : f32 to vector<48x1xf32>
    %591 = arith.divf %589, %590 : vector<48x1xf32>
    %592 = vector.broadcast %591 : vector<48x1xf32> to vector<48x128xf32>
    %593 = arith.subf %587, %592 : vector<48x128xf32>
    %594 = arith.mulf %593, %593 : vector<48x128xf32>
    %cst_240 = arith.constant dense<0.000000e+00> : vector<48xf32>
    %595 = vector.multi_reduction <add>, %594, %cst_240 [1] : vector<48x128xf32> to vector<48xf32>
    %596 = vector.shape_cast %595 : vector<48xf32> to vector<48x1xf32>
    %cst_241 = arith.constant 1.280000e+02 : f32
    %597 = vector.broadcast %cst_241 : f32 to vector<48x1xf32>
    %598 = arith.divf %596, %597 : vector<48x1xf32>
    %599 = vector.broadcast %591 : vector<48x1xf32> to vector<48x128xf32>
    %600 = arith.subf %587, %599 : vector<48x128xf32>
    %cst_242 = arith.constant 9.99999996E-13 : f32
    %601 = vector.broadcast %cst_242 : f32 to vector<48x1xf32>
    %602 = arith.addf %598, %601 : vector<48x1xf32>
    %603 = math.rsqrt %602 : vector<48x1xf32>
    %604 = vector.broadcast %603 : vector<48x1xf32> to vector<48x128xf32>
    %605 = arith.mulf %600, %604 : vector<48x128xf32>
    %606 = vector.broadcast %463 : vector<1x128xf32> to vector<48x128xf32>
    %607 = arith.mulf %605, %606 : vector<48x128xf32>
    %608 = vector.broadcast %465 : vector<1x128xf32> to vector<48x128xf32>
    %609 = arith.addf %607, %608 : vector<48x128xf32>
    %610 = arith.truncf %609 : vector<48x128xf32> to vector<48x128xbf16>
    %cst_243 = arith.constant dense<0.000000e+00> : vector<48x256xf32>
    %611 = tpu.matmul %610, %467, %cst_243 {dimension_numbers = #tpu.dot_dimension_numbers<[1], [0], [0], [1], [0, 0, 1, 1], [], []>} : vector<48x128xbf16>, vector<128x256xbf16>, vector<48x256xf32> -> vector<48x256xf32>
    %612 = vector.broadcast %469 : vector<1x256xf32> to vector<48x256xf32>
    %613 = arith.addf %611, %612 : vector<48x256xf32>
    %cst_244 = arith.constant 5.000000e-01 : f32
    %614 = vector.broadcast %cst_244 : f32 to vector<48x256xf32>
    %615 = arith.mulf %614, %613 : vector<48x256xf32>
    %cst_245 = arith.constant 4.471500e-02 : f32
    %616 = vector.broadcast %cst_245 : f32 to vector<48x256xf32>
    %617 = arith.mulf %616, %613 : vector<48x256xf32>
    %618 = arith.mulf %617, %613 : vector<48x256xf32>
    %619 = arith.mulf %618, %613 : vector<48x256xf32>
    %620 = arith.addf %613, %619 : vector<48x256xf32>
    %cst_246 = arith.constant 0.797884583 : f32
    %621 = vector.broadcast %cst_246 : f32 to vector<48x256xf32>
    %622 = arith.mulf %621, %620 : vector<48x256xf32>
    %623 = math.tanh %622 : vector<48x256xf32>
    %cst_247 = arith.constant 1.000000e+00 : f32
    %624 = vector.broadcast %cst_247 : f32 to vector<48x256xf32>
    %625 = arith.addf %624, %623 : vector<48x256xf32>
    %626 = arith.mulf %615, %625 : vector<48x256xf32>
    %627 = arith.truncf %626 : vector<48x256xf32> to vector<48x256xbf16>
    %cst_248 = arith.constant dense<0.000000e+00> : vector<48x128xf32>
    %628 = tpu.matmul %627, %471, %cst_248 {dimension_numbers = #tpu.dot_dimension_numbers<[1], [0], [0], [1], [0, 0, 1, 1], [], []>} : vector<48x256xbf16>, vector<256x128xbf16>, vector<48x128xf32> -> vector<48x128xf32>
    %629 = vector.broadcast %473 : vector<1x128xf32> to vector<48x128xf32>
    %630 = arith.addf %628, %629 : vector<48x128xf32>
    %631 = arith.addf %630, %609 : vector<48x128xf32>
    %cst_249 = arith.constant dense<0.000000e+00> : vector<48xf32>
    %632 = vector.multi_reduction <add>, %631, %cst_249 [1] : vector<48x128xf32> to vector<48xf32>
    %633 = vector.shape_cast %632 : vector<48xf32> to vector<48x1xf32>
    %cst_250 = arith.constant 1.280000e+02 : f32
    %634 = vector.broadcast %cst_250 : f32 to vector<48x1xf32>
    %635 = arith.divf %633, %634 : vector<48x1xf32>
    %636 = vector.broadcast %635 : vector<48x1xf32> to vector<48x128xf32>
    %637 = arith.subf %631, %636 : vector<48x128xf32>
    %638 = arith.mulf %637, %637 : vector<48x128xf32>
    %cst_251 = arith.constant dense<0.000000e+00> : vector<48xf32>
    %639 = vector.multi_reduction <add>, %638, %cst_251 [1] : vector<48x128xf32> to vector<48xf32>
    %640 = vector.shape_cast %639 : vector<48xf32> to vector<48x1xf32>
    %cst_252 = arith.constant 1.280000e+02 : f32
    %641 = vector.broadcast %cst_252 : f32 to vector<48x1xf32>
    %642 = arith.divf %640, %641 : vector<48x1xf32>
    %643 = vector.broadcast %635 : vector<48x1xf32> to vector<48x128xf32>
    %644 = arith.subf %631, %643 : vector<48x128xf32>
    %cst_253 = arith.constant 9.99999996E-13 : f32
    %645 = vector.broadcast %cst_253 : f32 to vector<48x1xf32>
    %646 = arith.addf %642, %645 : vector<48x1xf32>
    %647 = math.rsqrt %646 : vector<48x1xf32>
    %648 = vector.broadcast %647 : vector<48x1xf32> to vector<48x128xf32>
    %649 = arith.mulf %644, %648 : vector<48x128xf32>
    %650 = vector.broadcast %475 : vector<1x128xf32> to vector<48x128xf32>
    %651 = arith.mulf %649, %650 : vector<48x128xf32>
    %652 = vector.broadcast %477 : vector<1x128xf32> to vector<48x128xf32>
    %653 = arith.addf %651, %652 : vector<48x128xf32>
    %c0_254 = arith.constant 0 : index
    %c0_255 = arith.constant 0 : index
    %654 = vector.load %arg18[%c0_254, %c0_255] : memref<48x128xf32, #tpu.memory_space<vmem>>, vector<48x128xf32>
    tpu.vector_store %arg18[%c0_254, %c0_255], %653 {strides = array<i32>} : memref<48x128xf32, #tpu.memory_space<vmem>>, vector<48x128xf32>,
    %655 = vector.extract_strided_slice %653 {offsets = [1, 0], sizes = [1, 128], strides = [1, 1]} : vector<48x128xf32> to vector<1x128xf32>
    %656 = vector.extract_strided_slice %653 {offsets = [10, 0], sizes = [1, 128], strides = [1, 1]} : vector<48x128xf32> to vector<1x128xf32>
    %657 = vector.extract_strided_slice %653 {offsets = [19, 0], sizes = [1, 128], strides = [1, 1]} : vector<48x128xf32> to vector<1x128xf32>
    %658 = vector.extract_strided_slice %653 {offsets = [25, 0], sizes = [1, 128], strides = [1, 1]} : vector<48x128xf32> to vector<1x128xf32>
    %659 = vector.extract_strided_slice %653 {offsets = [34, 0], sizes = [1, 128], strides = [1, 1]} : vector<48x128xf32> to vector<1x128xf32>
    %660 = vector.extract_strided_slice %653 {offsets = [43, 0], sizes = [1, 128], strides = [1, 1]} : vector<48x128xf32> to vector<1x128xf32>
    %661 = tpu.concatenate %655, %656, %657, %658, %659, %660 in 0 : vector<1x128xf32>, vector<1x128xf32>, vector<1x128xf32>, vector<1x128xf32>, vector<1x128xf32>, vector<1x128xf32> -> vector<6x128xf32>
    %662 = vector.extract_strided_slice %661 {offsets = [1, 0], sizes = [2, 128], strides = [1, 1]} : vector<6x128xf32> to vector<2x128xf32>
    %c6_256 = arith.constant 6 : index
    %c0_257 = arith.constant 0 : index
    %663 = vector.load %arg18[%c6_256, %c0_257] : memref<48x128xf32, #tpu.memory_space<vmem>>, vector<2x128xf32>
    tpu.vector_store %arg18[%c6_256, %c0_257], %662 {strides = array<i32>} : memref<48x128xf32, #tpu.memory_space<vmem>>, vector<2x128xf32>,
    %664 = vector.extract_strided_slice %661 {offsets = [3, 0], sizes = [1, 128], strides = [1, 1]} : vector<6x128xf32> to vector<1x128xf32>
    %c9_258 = arith.constant 9 : index
    %c0_259 = arith.constant 0 : index
    %665 = vector.load %arg18[%c9_258, %c0_259] : memref<48x128xf32, #tpu.memory_space<vmem>>, vector<1x128xf32>
    tpu.vector_store %arg18[%c9_258, %c0_259], %664 {strides = array<i32>} : memref<48x128xf32, #tpu.memory_space<vmem>>, vector<1x128xf32>,
    %666 = vector.extract_strided_slice %661 {offsets = [5, 0], sizes = [1, 128], strides = [1, 1]} : vector<6x128xf32> to vector<1x128xf32>
    %c15_260 = arith.constant 15 : index
    %c0_261 = arith.constant 0 : index
    %667 = vector.load %arg18[%c15_260, %c0_261] : memref<48x128xf32, #tpu.memory_space<vmem>>, vector<1x128xf32>
    tpu.vector_store %arg18[%c15_260, %c0_261], %666 {strides = array<i32>} : memref<48x128xf32, #tpu.memory_space<vmem>>, vector<1x128xf32>,
    %668 = vector.extract_strided_slice %661 {offsets = [0, 0], sizes = [2, 128], strides = [1, 1]} : vector<6x128xf32> to vector<2x128xf32>
    %c17_262 = arith.constant 17 : index
    %c0_263 = arith.constant 0 : index
    %669 = vector.load %arg18[%c17_262, %c0_263] : memref<48x128xf32, #tpu.memory_space<vmem>>, vector<2x128xf32>
    tpu.vector_store %arg18[%c17_262, %c0_263], %668 {strides = array<i32>} : memref<48x128xf32, #tpu.memory_space<vmem>>, vector<2x128xf32>,
    %670 = vector.extract_strided_slice %661 {offsets = [4, 0], sizes = [2, 128], strides = [1, 1]} : vector<6x128xf32> to vector<2x128xf32>
    %c30_264 = arith.constant 30 : index
    %c0_265 = arith.constant 0 : index
    %671 = vector.load %arg18[%c30_264, %c0_265] : memref<48x128xf32, #tpu.memory_space<vmem>>, vector<2x128xf32>
    tpu.vector_store %arg18[%c30_264, %c0_265], %670 {strides = array<i32>} : memref<48x128xf32, #tpu.memory_space<vmem>>, vector<2x128xf32>,
    %672 = vector.extract_strided_slice %661 {offsets = [0, 0], sizes = [1, 128], strides = [1, 1]} : vector<6x128xf32> to vector<1x128xf32>
    %c33_266 = arith.constant 33 : index
    %c0_267 = arith.constant 0 : index
    %673 = vector.load %arg18[%c33_266, %c0_267] : memref<48x128xf32, #tpu.memory_space<vmem>>, vector<1x128xf32>
    tpu.vector_store %arg18[%c33_266, %c0_267], %672 {strides = array<i32>} : memref<48x128xf32, #tpu.memory_space<vmem>>, vector<1x128xf32>,
    %674 = vector.extract_strided_slice %661 {offsets = [2, 0], sizes = [1, 128], strides = [1, 1]} : vector<6x128xf32> to vector<1x128xf32>
    %c39_268 = arith.constant 39 : index
    %c0_269 = arith.constant 0 : index
    %675 = vector.load %arg18[%c39_268, %c0_269] : memref<48x128xf32, #tpu.memory_space<vmem>>, vector<1x128xf32>
    tpu.vector_store %arg18[%c39_268, %c0_269], %674 {strides = array<i32>} : memref<48x128xf32, #tpu.memory_space<vmem>>, vector<1x128xf32>,
    %676 = vector.extract_strided_slice %661 {offsets = [3, 0], sizes = [2, 128], strides = [1, 1]} : vector<6x128xf32> to vector<2x128xf32>
    %c41_270 = arith.constant 41 : index
    %c0_271 = arith.constant 0 : index
    %677 = vector.load %arg18[%c41_270, %c0_271] : memref<48x128xf32, #tpu.memory_space<vmem>>, vector<2x128xf32>
    tpu.vector_store %arg18[%c41_270, %c0_271], %676 {strides = array<i32>} : memref<48x128xf32, #tpu.memory_space<vmem>>, vector<2x128xf32>,
    %678 = vector.extract_strided_slice %439 {offsets = [0, 0], sizes = [1, 128], strides = [1, 1]} : vector<2x128xf32> to vector<1x128xf32>
    %679 = vector.extract_strided_slice %661 {offsets = [0, 0], sizes = [3, 128], strides = [1, 1]} : vector<6x128xf32> to vector<3x128xf32>
    %680 = vector.extract_strided_slice %439 {offsets = [1, 0], sizes = [1, 128], strides = [1, 1]} : vector<2x128xf32> to vector<1x128xf32>
    %681 = vector.extract_strided_slice %661 {offsets = [3, 0], sizes = [3, 128], strides = [1, 1]} : vector<6x128xf32> to vector<3x128xf32>
    %682 = tpu.concatenate %678, %679, %680, %681 in 0 : vector<1x128xf32>, vector<3x128xf32>, vector<1x128xf32>, vector<3x128xf32> -> vector<8x128xf32>
    %c3 = arith.constant 3 : index
    %c0_272 = arith.constant 0 : index
    %c0_273 = arith.constant 0 : index
    %683 = vector.load %arg5[%c3, %c0_272, %c0_273] : memref<4x128x384xbf16, #tpu.memory_space<vmem>>, vector<1x128x384xbf16>
    %684 = vector.shape_cast %683 : vector<1x128x384xbf16> to vector<128x384xbf16>
    %c3_274 = arith.constant 3 : index
    %c0_275 = arith.constant 0 : index
    %c0_276 = arith.constant 0 : index
    %685 = vector.load %arg6[%c3_274, %c0_275, %c0_276] : memref<4x1x384xf32, #tpu.memory_space<vmem>>, vector<1x1x384xf32>
    %686 = vector.shape_cast %685 : vector<1x1x384xf32> to vector<1x384xf32>
    %c3_277 = arith.constant 3 : index
    %c0_278 = arith.constant 0 : index
    %c0_279 = arith.constant 0 : index
    %687 = vector.load %arg7[%c3_277, %c0_278, %c0_279] : memref<4x128x128xbf16, #tpu.memory_space<vmem>>, vector<1x128x128xbf16>
    %688 = vector.shape_cast %687 : vector<1x128x128xbf16> to vector<128x128xbf16>
    %c3_280 = arith.constant 3 : index
    %c0_281 = arith.constant 0 : index
    %c0_282 = arith.constant 0 : index
    %689 = vector.load %arg8[%c3_280, %c0_281, %c0_282] : memref<4x1x128xf32, #tpu.memory_space<vmem>>, vector<1x1x128xf32>
    %690 = vector.shape_cast %689 : vector<1x1x128xf32> to vector<1x128xf32>
    %c3_283 = arith.constant 3 : index
    %c0_284 = arith.constant 0 : index
    %c0_285 = arith.constant 0 : index
    %691 = vector.load %arg9[%c3_283, %c0_284, %c0_285] : memref<4x1x128xf32, #tpu.memory_space<vmem>>, vector<1x1x128xf32>
    %692 = vector.shape_cast %691 : vector<1x1x128xf32> to vector<1x128xf32>
    %c3_286 = arith.constant 3 : index
    %c0_287 = arith.constant 0 : index
    %c0_288 = arith.constant 0 : index
    %693 = vector.load %arg10[%c3_286, %c0_287, %c0_288] : memref<4x1x128xf32, #tpu.memory_space<vmem>>, vector<1x1x128xf32>
    %694 = vector.shape_cast %693 : vector<1x1x128xf32> to vector<1x128xf32>
    %c3_289 = arith.constant 3 : index
    %c0_290 = arith.constant 0 : index
    %c0_291 = arith.constant 0 : index
    %695 = vector.load %arg11[%c3_289, %c0_290, %c0_291] : memref<4x128x256xbf16, #tpu.memory_space<vmem>>, vector<1x128x256xbf16>
    %696 = vector.shape_cast %695 : vector<1x128x256xbf16> to vector<128x256xbf16>
    %c3_292 = arith.constant 3 : index
    %c0_293 = arith.constant 0 : index
    %c0_294 = arith.constant 0 : index
    %697 = vector.load %arg12[%c3_292, %c0_293, %c0_294] : memref<4x1x256xf32, #tpu.memory_space<vmem>>, vector<1x1x256xf32>
    %698 = vector.shape_cast %697 : vector<1x1x256xf32> to vector<1x256xf32>
    %c3_295 = arith.constant 3 : index
    %c0_296 = arith.constant 0 : index
    %c0_297 = arith.constant 0 : index
    %699 = vector.load %arg13[%c3_295, %c0_296, %c0_297] : memref<4x256x128xbf16, #tpu.memory_space<vmem>>, vector<1x256x128xbf16>
    %700 = vector.shape_cast %699 : vector<1x256x128xbf16> to vector<256x128xbf16>
    %c3_298 = arith.constant 3 : index
    %c0_299 = arith.constant 0 : index
    %c0_300 = arith.constant 0 : index
    %701 = vector.load %arg14[%c3_298, %c0_299, %c0_300] : memref<4x1x128xf32, #tpu.memory_space<vmem>>, vector<1x1x128xf32>
    %702 = vector.shape_cast %701 : vector<1x1x128xf32> to vector<1x128xf32>
    %c3_301 = arith.constant 3 : index
    %c0_302 = arith.constant 0 : index
    %c0_303 = arith.constant 0 : index
    %703 = vector.load %arg15[%c3_301, %c0_302, %c0_303] : memref<4x1x128xf32, #tpu.memory_space<vmem>>, vector<1x1x128xf32>
    %704 = vector.shape_cast %703 : vector<1x1x128xf32> to vector<1x128xf32>
    %c3_304 = arith.constant 3 : index
    %c0_305 = arith.constant 0 : index
    %c0_306 = arith.constant 0 : index
    %705 = vector.load %arg16[%c3_304, %c0_305, %c0_306] : memref<4x1x128xf32, #tpu.memory_space<vmem>>, vector<1x1x128xf32>
    %706 = vector.shape_cast %705 : vector<1x1x128xf32> to vector<1x128xf32>
    %707 = arith.truncf %682 : vector<8x128xf32> to vector<8x128xbf16>
    %cst_307 = arith.constant dense<0.000000e+00> : vector<8x384xf32>
    %708 = tpu.matmul %707, %684, %cst_307 {dimension_numbers = #tpu.dot_dimension_numbers<[1], [0], [0], [1], [0, 0, 1, 1], [], []>} : vector<8x128xbf16>, vector<128x384xbf16>, vector<8x384xf32> -> vector<8x384xf32>
    %709 = vector.broadcast %686 : vector<1x384xf32> to vector<8x384xf32>
    %710 = arith.addf %708, %709 : vector<8x384xf32>
    %711 = vector.extract_strided_slice %710 {offsets = [0, 0], sizes = [8, 128], strides = [1, 1]} : vector<8x384xf32> to vector<8x128xf32>
    %cst_308 = arith.constant 0.176776692 : f32
    %712 = vector.broadcast %cst_308 : f32 to vector<8x128xf32>
    %713 = arith.mulf %711, %712 : vector<8x128xf32>
    %714 = arith.truncf %713 : vector<8x128xf32> to vector<8x128xbf16>
    %715 = vector.shape_cast %714 : vector<8x128xbf16> to vector<2x4x128xbf16>
    %716 = vector.extract_strided_slice %710 {offsets = [0, 128], sizes = [8, 128], strides = [1, 1]} : vector<8x384xf32> to vector<8x128xf32>
    %717 = arith.truncf %716 : vector<8x128xf32> to vector<8x128xbf16>
    %718 = vector.shape_cast %717 : vector<8x128xbf16> to vector<2x4x128xbf16>
    %719 = vector.extract_strided_slice %710 {offsets = [0, 256], sizes = [8, 128], strides = [1, 1]} : vector<8x384xf32> to vector<8x128xf32>
    %720 = arith.truncf %719 : vector<8x128xf32> to vector<8x128xbf16>
    %721 = vector.shape_cast %720 : vector<8x128xbf16> to vector<2x4x128xbf16>
    %722 = vector.shape_cast %5 : vector<2x4xf32> to vector<2x1x4xf32>
    %723 = vector.shape_cast %722 : vector<2x1x4xf32> to vector<2x1x4xf32>
    %724 = vector.broadcast %723 : vector<2x1x4xf32> to vector<2x4x4xf32>
    %cst_309 = arith.constant 0.000000e+00 : f32
    %725 = vector.broadcast %cst_309 : f32 to vector<8x128xf32>
    %726 = vector.extract_strided_slice %715 {offsets = [0, 0, 0], sizes = [2, 4, 32], strides = [1, 1, 1]} : vector<2x4x128xbf16> to vector<2x4x32xbf16>
    %727 = vector.extract_strided_slice %718 {offsets = [0, 0, 0], sizes = [2, 4, 32], strides = [1, 1, 1]} : vector<2x4x128xbf16> to vector<2x4x32xbf16>
    %728 = vector.extract_strided_slice %721 {offsets = [0, 0, 0], sizes = [2, 4, 32], strides = [1, 1, 1]} : vector<2x4x128xbf16> to vector<2x4x32xbf16>
    "tpu.trace_start"() <{level = 10 : i32, message = "sqd,skd->sqk"}> : () -> ()
    %cst_310 = arith.constant dense<0.000000e+00> : vector<2x4x4xf32>
    %729 = tpu.matmul %726, %727, %cst_310 {dimension_numbers = #tpu.dot_dimension_numbers<[2], [2], [1], [1], [0, 0, 0, 1, 1, 1], [0], [0]>} : vector<2x4x32xbf16>, vector<2x4x32xbf16>, vector<2x4x4xf32> -> vector<2x4x4xf32>
    "tpu.trace_stop"() : () -> ()
    %730 = arith.addf %729, %724 : vector<2x4x4xf32>
    %cst_311 = arith.constant dense<0xFF800000> : vector<2x4xf32>
    %731 = vector.multi_reduction <maximumf>, %730, %cst_311 [2] : vector<2x4x4xf32> to vector<2x4xf32>
    %732 = vector.shape_cast %731 : vector<2x4xf32> to vector<2x4x1xf32>
    %733 = vector.broadcast %732 : vector<2x4x1xf32> to vector<2x4x4xf32>
    %734 = arith.subf %730, %733 : vector<2x4x4xf32>
    %735 = math.exp %734 : vector<2x4x4xf32>
    %cst_312 = arith.constant dense<0.000000e+00> : vector<2x4xf32>
    %736 = vector.multi_reduction <add>, %735, %cst_312 [2] : vector<2x4x4xf32> to vector<2x4xf32>
    %737 = vector.shape_cast %736 : vector<2x4xf32> to vector<2x4x1xf32>
    %738 = tpu.reciprocal %737 {approx = true} : vector<2x4x1xf32> -> vector<2x4x1xf32>
    %739 = vector.broadcast %738 : vector<2x4x1xf32> to vector<2x4x4xf32>
    %740 = arith.mulf %735, %739 : vector<2x4x4xf32>
    %741 = arith.truncf %740 : vector<2x4x4xf32> to vector<2x4x4xbf16>
    "tpu.trace_start"() <{level = 10 : i32, message = "sqk,skd->sqd"}> : () -> ()
    %cst_313 = arith.constant dense<0.000000e+00> : vector<2x4x32xf32>
    %742 = tpu.matmul %741, %728, %cst_313 {dimension_numbers = #tpu.dot_dimension_numbers<[2], [1], [1], [2], [0, 0, 0, 1, 1, 2], [0], [0]>} : vector<2x4x4xbf16>, vector<2x4x32xbf16>, vector<2x4x32xf32> -> vector<2x4x32xf32>
    "tpu.trace_stop"() : () -> ()
    %743 = vector.shape_cast %742 : vector<2x4x32xf32> to vector<8x32xf32>
    %744 = arith.truncf %743 : vector<8x32xf32> to vector<8x32xbf16>
    %745 = vector.extract_strided_slice %688 {offsets = [0, 0], sizes = [32, 128], strides = [1, 1]} : vector<128x128xbf16> to vector<32x128xbf16>
    %cst_314 = arith.constant dense<0.000000e+00> : vector<8x128xf32>
    %746 = tpu.matmul %744, %745, %cst_314 {dimension_numbers = #tpu.dot_dimension_numbers<[1], [0], [0], [1], [0, 0, 1, 1], [], []>} : vector<8x32xbf16>, vector<32x128xbf16>, vector<8x128xf32> -> vector<8x128xf32>
    %747 = arith.addf %725, %746 : vector<8x128xf32>
    %748 = vector.extract_strided_slice %715 {offsets = [0, 0, 32], sizes = [2, 4, 32], strides = [1, 1, 1]} : vector<2x4x128xbf16> to vector<2x4x32xbf16>
    %749 = vector.extract_strided_slice %718 {offsets = [0, 0, 32], sizes = [2, 4, 32], strides = [1, 1, 1]} : vector<2x4x128xbf16> to vector<2x4x32xbf16>
    %750 = vector.extract_strided_slice %721 {offsets = [0, 0, 32], sizes = [2, 4, 32], strides = [1, 1, 1]} : vector<2x4x128xbf16> to vector<2x4x32xbf16>
    "tpu.trace_start"() <{level = 10 : i32, message = "sqd,skd->sqk"}> : () -> ()
    %cst_315 = arith.constant dense<0.000000e+00> : vector<2x4x4xf32>
    %751 = tpu.matmul %748, %749, %cst_315 {dimension_numbers = #tpu.dot_dimension_numbers<[2], [2], [1], [1], [0, 0, 0, 1, 1, 1], [0], [0]>} : vector<2x4x32xbf16>, vector<2x4x32xbf16>, vector<2x4x4xf32> -> vector<2x4x4xf32>
    "tpu.trace_stop"() : () -> ()
    %752 = arith.addf %751, %724 : vector<2x4x4xf32>
    %cst_316 = arith.constant dense<0xFF800000> : vector<2x4xf32>
    %753 = vector.multi_reduction <maximumf>, %752, %cst_316 [2] : vector<2x4x4xf32> to vector<2x4xf32>
    %754 = vector.shape_cast %753 : vector<2x4xf32> to vector<2x4x1xf32>
    %755 = vector.broadcast %754 : vector<2x4x1xf32> to vector<2x4x4xf32>
    %756 = arith.subf %752, %755 : vector<2x4x4xf32>
    %757 = math.exp %756 : vector<2x4x4xf32>
    %cst_317 = arith.constant dense<0.000000e+00> : vector<2x4xf32>
    %758 = vector.multi_reduction <add>, %757, %cst_317 [2] : vector<2x4x4xf32> to vector<2x4xf32>
    %759 = vector.shape_cast %758 : vector<2x4xf32> to vector<2x4x1xf32>
    %760 = tpu.reciprocal %759 {approx = true} : vector<2x4x1xf32> -> vector<2x4x1xf32>
    %761 = vector.broadcast %760 : vector<2x4x1xf32> to vector<2x4x4xf32>
    %762 = arith.mulf %757, %761 : vector<2x4x4xf32>
    %763 = arith.truncf %762 : vector<2x4x4xf32> to vector<2x4x4xbf16>
    "tpu.trace_start"() <{level = 10 : i32, message = "sqk,skd->sqd"}> : () -> ()
    %cst_318 = arith.constant dense<0.000000e+00> : vector<2x4x32xf32>
    %764 = tpu.matmul %763, %750, %cst_318 {dimension_numbers = #tpu.dot_dimension_numbers<[2], [1], [1], [2], [0, 0, 0, 1, 1, 2], [0], [0]>} : vector<2x4x4xbf16>, vector<2x4x32xbf16>, vector<2x4x32xf32> -> vector<2x4x32xf32>
    "tpu.trace_stop"() : () -> ()
    %765 = vector.shape_cast %764 : vector<2x4x32xf32> to vector<8x32xf32>
    %766 = arith.truncf %765 : vector<8x32xf32> to vector<8x32xbf16>
    %767 = vector.extract_strided_slice %688 {offsets = [32, 0], sizes = [32, 128], strides = [1, 1]} : vector<128x128xbf16> to vector<32x128xbf16>
    %cst_319 = arith.constant dense<0.000000e+00> : vector<8x128xf32>
    %768 = tpu.matmul %766, %767, %cst_319 {dimension_numbers = #tpu.dot_dimension_numbers<[1], [0], [0], [1], [0, 0, 1, 1], [], []>} : vector<8x32xbf16>, vector<32x128xbf16>, vector<8x128xf32> -> vector<8x128xf32>
    %769 = arith.addf %747, %768 : vector<8x128xf32>
    %770 = vector.extract_strided_slice %715 {offsets = [0, 0, 64], sizes = [2, 4, 32], strides = [1, 1, 1]} : vector<2x4x128xbf16> to vector<2x4x32xbf16>
    %771 = vector.extract_strided_slice %718 {offsets = [0, 0, 64], sizes = [2, 4, 32], strides = [1, 1, 1]} : vector<2x4x128xbf16> to vector<2x4x32xbf16>
    %772 = vector.extract_strided_slice %721 {offsets = [0, 0, 64], sizes = [2, 4, 32], strides = [1, 1, 1]} : vector<2x4x128xbf16> to vector<2x4x32xbf16>
    "tpu.trace_start"() <{level = 10 : i32, message = "sqd,skd->sqk"}> : () -> ()
    %cst_320 = arith.constant dense<0.000000e+00> : vector<2x4x4xf32>
    %773 = tpu.matmul %770, %771, %cst_320 {dimension_numbers = #tpu.dot_dimension_numbers<[2], [2], [1], [1], [0, 0, 0, 1, 1, 1], [0], [0]>} : vector<2x4x32xbf16>, vector<2x4x32xbf16>, vector<2x4x4xf32> -> vector<2x4x4xf32>
    "tpu.trace_stop"() : () -> ()
    %774 = arith.addf %773, %724 : vector<2x4x4xf32>
    %cst_321 = arith.constant dense<0xFF800000> : vector<2x4xf32>
    %775 = vector.multi_reduction <maximumf>, %774, %cst_321 [2] : vector<2x4x4xf32> to vector<2x4xf32>
    %776 = vector.shape_cast %775 : vector<2x4xf32> to vector<2x4x1xf32>
    %777 = vector.broadcast %776 : vector<2x4x1xf32> to vector<2x4x4xf32>
    %778 = arith.subf %774, %777 : vector<2x4x4xf32>
    %779 = math.exp %778 : vector<2x4x4xf32>
    %cst_322 = arith.constant dense<0.000000e+00> : vector<2x4xf32>
    %780 = vector.multi_reduction <add>, %779, %cst_322 [2] : vector<2x4x4xf32> to vector<2x4xf32>
    %781 = vector.shape_cast %780 : vector<2x4xf32> to vector<2x4x1xf32>
    %782 = tpu.reciprocal %781 {approx = true} : vector<2x4x1xf32> -> vector<2x4x1xf32>
    %783 = vector.broadcast %782 : vector<2x4x1xf32> to vector<2x4x4xf32>
    %784 = arith.mulf %779, %783 : vector<2x4x4xf32>
    %785 = arith.truncf %784 : vector<2x4x4xf32> to vector<2x4x4xbf16>
    "tpu.trace_start"() <{level = 10 : i32, message = "sqk,skd->sqd"}> : () -> ()
    %cst_323 = arith.constant dense<0.000000e+00> : vector<2x4x32xf32>
    %786 = tpu.matmul %785, %772, %cst_323 {dimension_numbers = #tpu.dot_dimension_numbers<[2], [1], [1], [2], [0, 0, 0, 1, 1, 2], [0], [0]>} : vector<2x4x4xbf16>, vector<2x4x32xbf16>, vector<2x4x32xf32> -> vector<2x4x32xf32>
    "tpu.trace_stop"() : () -> ()
    %787 = vector.shape_cast %786 : vector<2x4x32xf32> to vector<8x32xf32>
    %788 = arith.truncf %787 : vector<8x32xf32> to vector<8x32xbf16>
    %789 = vector.extract_strided_slice %688 {offsets = [64, 0], sizes = [32, 128], strides = [1, 1]} : vector<128x128xbf16> to vector<32x128xbf16>
    %cst_324 = arith.constant dense<0.000000e+00> : vector<8x128xf32>
    %790 = tpu.matmul %788, %789, %cst_324 {dimension_numbers = #tpu.dot_dimension_numbers<[1], [0], [0], [1], [0, 0, 1, 1], [], []>} : vector<8x32xbf16>, vector<32x128xbf16>, vector<8x128xf32> -> vector<8x128xf32>
    %791 = arith.addf %769, %790 : vector<8x128xf32>
    %792 = vector.extract_strided_slice %715 {offsets = [0, 0, 96], sizes = [2, 4, 32], strides = [1, 1, 1]} : vector<2x4x128xbf16> to vector<2x4x32xbf16>
    %793 = vector.extract_strided_slice %718 {offsets = [0, 0, 96], sizes = [2, 4, 32], strides = [1, 1, 1]} : vector<2x4x128xbf16> to vector<2x4x32xbf16>
    %794 = vector.extract_strided_slice %721 {offsets = [0, 0, 96], sizes = [2, 4, 32], strides = [1, 1, 1]} : vector<2x4x128xbf16> to vector<2x4x32xbf16>
    "tpu.trace_start"() <{level = 10 : i32, message = "sqd,skd->sqk"}> : () -> ()
    %cst_325 = arith.constant dense<0.000000e+00> : vector<2x4x4xf32>
    %795 = tpu.matmul %792, %793, %cst_325 {dimension_numbers = #tpu.dot_dimension_numbers<[2], [2], [1], [1], [0, 0, 0, 1, 1, 1], [0], [0]>} : vector<2x4x32xbf16>, vector<2x4x32xbf16>, vector<2x4x4xf32> -> vector<2x4x4xf32>
    "tpu.trace_stop"() : () -> ()
    %796 = arith.addf %795, %724 : vector<2x4x4xf32>
    %cst_326 = arith.constant dense<0xFF800000> : vector<2x4xf32>
    %797 = vector.multi_reduction <maximumf>, %796, %cst_326 [2] : vector<2x4x4xf32> to vector<2x4xf32>
    %798 = vector.shape_cast %797 : vector<2x4xf32> to vector<2x4x1xf32>
    %799 = vector.broadcast %798 : vector<2x4x1xf32> to vector<2x4x4xf32>
    %800 = arith.subf %796, %799 : vector<2x4x4xf32>
    %801 = math.exp %800 : vector<2x4x4xf32>
    %cst_327 = arith.constant dense<0.000000e+00> : vector<2x4xf32>
    %802 = vector.multi_reduction <add>, %801, %cst_327 [2] : vector<2x4x4xf32> to vector<2x4xf32>
    %803 = vector.shape_cast %802 : vector<2x4xf32> to vector<2x4x1xf32>
    %804 = tpu.reciprocal %803 {approx = true} : vector<2x4x1xf32> -> vector<2x4x1xf32>
    %805 = vector.broadcast %804 : vector<2x4x1xf32> to vector<2x4x4xf32>
    %806 = arith.mulf %801, %805 : vector<2x4x4xf32>
    %807 = arith.truncf %806 : vector<2x4x4xf32> to vector<2x4x4xbf16>
    "tpu.trace_start"() <{level = 10 : i32, message = "sqk,skd->sqd"}> : () -> ()
    %cst_328 = arith.constant dense<0.000000e+00> : vector<2x4x32xf32>
    %808 = tpu.matmul %807, %794, %cst_328 {dimension_numbers = #tpu.dot_dimension_numbers<[2], [1], [1], [2], [0, 0, 0, 1, 1, 2], [0], [0]>} : vector<2x4x4xbf16>, vector<2x4x32xbf16>, vector<2x4x32xf32> -> vector<2x4x32xf32>
    "tpu.trace_stop"() : () -> ()
    %809 = vector.shape_cast %808 : vector<2x4x32xf32> to vector<8x32xf32>
    %810 = arith.truncf %809 : vector<8x32xf32> to vector<8x32xbf16>
    %811 = vector.extract_strided_slice %688 {offsets = [96, 0], sizes = [32, 128], strides = [1, 1]} : vector<128x128xbf16> to vector<32x128xbf16>
    %cst_329 = arith.constant dense<0.000000e+00> : vector<8x128xf32>
    %812 = tpu.matmul %810, %811, %cst_329 {dimension_numbers = #tpu.dot_dimension_numbers<[1], [0], [0], [1], [0, 0, 1, 1], [], []>} : vector<8x32xbf16>, vector<32x128xbf16>, vector<8x128xf32> -> vector<8x128xf32>
    %813 = arith.addf %791, %812 : vector<8x128xf32>
    %814 = vector.broadcast %690 : vector<1x128xf32> to vector<8x128xf32>
    %815 = arith.addf %813, %814 : vector<8x128xf32>
    %816 = arith.addf %815, %682 : vector<8x128xf32>
    %cst_330 = arith.constant dense<0.000000e+00> : vector<8xf32>
    %817 = vector.multi_reduction <add>, %816, %cst_330 [1] : vector<8x128xf32> to vector<8xf32>
    %818 = vector.shape_cast %817 : vector<8xf32> to vector<8x1xf32>
    %cst_331 = arith.constant 1.280000e+02 : f32
    %819 = vector.broadcast %cst_331 : f32 to vector<8x1xf32>
    %820 = arith.divf %818, %819 : vector<8x1xf32>
    %821 = vector.broadcast %820 : vector<8x1xf32> to vector<8x128xf32>
    %822 = arith.subf %816, %821 : vector<8x128xf32>
    %823 = arith.mulf %822, %822 : vector<8x128xf32>
    %cst_332 = arith.constant dense<0.000000e+00> : vector<8xf32>
    %824 = vector.multi_reduction <add>, %823, %cst_332 [1] : vector<8x128xf32> to vector<8xf32>
    %825 = vector.shape_cast %824 : vector<8xf32> to vector<8x1xf32>
    %cst_333 = arith.constant 1.280000e+02 : f32
    %826 = vector.broadcast %cst_333 : f32 to vector<8x1xf32>
    %827 = arith.divf %825, %826 : vector<8x1xf32>
    %828 = vector.broadcast %820 : vector<8x1xf32> to vector<8x128xf32>
    %829 = arith.subf %816, %828 : vector<8x128xf32>
    %cst_334 = arith.constant 9.99999996E-13 : f32
    %830 = vector.broadcast %cst_334 : f32 to vector<8x1xf32>
    %831 = arith.addf %827, %830 : vector<8x1xf32>
    %832 = math.rsqrt %831 : vector<8x1xf32>
    %833 = vector.broadcast %832 : vector<8x1xf32> to vector<8x128xf32>
    %834 = arith.mulf %829, %833 : vector<8x128xf32>
    %835 = vector.broadcast %692 : vector<1x128xf32> to vector<8x128xf32>
    %836 = arith.mulf %834, %835 : vector<8x128xf32>
    %837 = vector.broadcast %694 : vector<1x128xf32> to vector<8x128xf32>
    %838 = arith.addf %836, %837 : vector<8x128xf32>
    %839 = arith.truncf %838 : vector<8x128xf32> to vector<8x128xbf16>
    %cst_335 = arith.constant dense<0.000000e+00> : vector<8x256xf32>
    %840 = tpu.matmul %839, %696, %cst_335 {dimension_numbers = #tpu.dot_dimension_numbers<[1], [0], [0], [1], [0, 0, 1, 1], [], []>} : vector<8x128xbf16>, vector<128x256xbf16>, vector<8x256xf32> -> vector<8x256xf32>
    %841 = vector.broadcast %698 : vector<1x256xf32> to vector<8x256xf32>
    %842 = arith.addf %840, %841 : vector<8x256xf32>
    %cst_336 = arith.constant 5.000000e-01 : f32
    %843 = vector.broadcast %cst_336 : f32 to vector<8x256xf32>
    %844 = arith.mulf %843, %842 : vector<8x256xf32>
    %cst_337 = arith.constant 4.471500e-02 : f32
    %845 = vector.broadcast %cst_337 : f32 to vector<8x256xf32>
    %846 = arith.mulf %845, %842 : vector<8x256xf32>
    %847 = arith.mulf %846, %842 : vector<8x256xf32>
    %848 = arith.mulf %847, %842 : vector<8x256xf32>
    %849 = arith.addf %842, %848 : vector<8x256xf32>
    %cst_338 = arith.constant 0.797884583 : f32
    %850 = vector.broadcast %cst_338 : f32 to vector<8x256xf32>
    %851 = arith.mulf %850, %849 : vector<8x256xf32>
    %852 = math.tanh %851 : vector<8x256xf32>
    %cst_339 = arith.constant 1.000000e+00 : f32
    %853 = vector.broadcast %cst_339 : f32 to vector<8x256xf32>
    %854 = arith.addf %853, %852 : vector<8x256xf32>
    %855 = arith.mulf %844, %854 : vector<8x256xf32>
    %856 = arith.truncf %855 : vector<8x256xf32> to vector<8x256xbf16>
    %cst_340 = arith.constant dense<0.000000e+00> : vector<8x128xf32>
    %857 = tpu.matmul %856, %700, %cst_340 {dimension_numbers = #tpu.dot_dimension_numbers<[1], [0], [0], [1], [0, 0, 1, 1], [], []>} : vector<8x256xbf16>, vector<256x128xbf16>, vector<8x128xf32> -> vector<8x128xf32>
    %858 = vector.broadcast %702 : vector<1x128xf32> to vector<8x128xf32>
    %859 = arith.addf %857, %858 : vector<8x128xf32>
    %860 = arith.addf %859, %838 : vector<8x128xf32>
    %cst_341 = arith.constant dense<0.000000e+00> : vector<8xf32>
    %861 = vector.multi_reduction <add>, %860, %cst_341 [1] : vector<8x128xf32> to vector<8xf32>
    %862 = vector.shape_cast %861 : vector<8xf32> to vector<8x1xf32>
    %cst_342 = arith.constant 1.280000e+02 : f32
    %863 = vector.broadcast %cst_342 : f32 to vector<8x1xf32>
    %864 = arith.divf %862, %863 : vector<8x1xf32>
    %865 = vector.broadcast %864 : vector<8x1xf32> to vector<8x128xf32>
    %866 = arith.subf %860, %865 : vector<8x128xf32>
    %867 = arith.mulf %866, %866 : vector<8x128xf32>
    %cst_343 = arith.constant dense<0.000000e+00> : vector<8xf32>
    %868 = vector.multi_reduction <add>, %867, %cst_343 [1] : vector<8x128xf32> to vector<8xf32>
    %869 = vector.shape_cast %868 : vector<8xf32> to vector<8x1xf32>
    %cst_344 = arith.constant 1.280000e+02 : f32
    %870 = vector.broadcast %cst_344 : f32 to vector<8x1xf32>
    %871 = arith.divf %869, %870 : vector<8x1xf32>
    %872 = vector.broadcast %864 : vector<8x1xf32> to vector<8x128xf32>
    %873 = arith.subf %860, %872 : vector<8x128xf32>
    %cst_345 = arith.constant 9.99999996E-13 : f32
    %874 = vector.broadcast %cst_345 : f32 to vector<8x1xf32>
    %875 = arith.addf %871, %874 : vector<8x1xf32>
    %876 = math.rsqrt %875 : vector<8x1xf32>
    %877 = vector.broadcast %876 : vector<8x1xf32> to vector<8x128xf32>
    %878 = arith.mulf %873, %877 : vector<8x128xf32>
    %879 = vector.broadcast %704 : vector<1x128xf32> to vector<8x128xf32>
    %880 = arith.mulf %878, %879 : vector<8x128xf32>
    %881 = vector.broadcast %706 : vector<1x128xf32> to vector<8x128xf32>
    %882 = arith.addf %880, %881 : vector<8x128xf32>
    %883 = vector.extract_strided_slice %882 {offsets = [0, 0], sizes = [1, 128], strides = [1, 1]} : vector<8x128xf32> to vector<1x128xf32>
    %884 = vector.extract_strided_slice %882 {offsets = [4, 0], sizes = [1, 128], strides = [1, 1]} : vector<8x128xf32> to vector<1x128xf32>
    %885 = tpu.concatenate %883, %884 in 0 : vector<1x128xf32>, vector<1x128xf32> -> vector<2x128xf32>
    %886 = vector.extract_strided_slice %882 {offsets = [1, 0], sizes = [1, 128], strides = [1, 1]} : vector<8x128xf32> to vector<1x128xf32>
    %c0_346 = arith.constant 0 : index
    %c0_347 = arith.constant 0 : index
    %887 = vector.load %arg18[%c0_346, %c0_347] : memref<48x128xf32, #tpu.memory_space<vmem>>, vector<1x128xf32>
    tpu.vector_store %arg18[%c0_346, %c0_347], %886 {strides = array<i32>} : memref<48x128xf32, #tpu.memory_space<vmem>>, vector<1x128xf32>,
    %888 = vector.extract_strided_slice %882 {offsets = [2, 0], sizes = [1, 128], strides = [1, 1]} : vector<8x128xf32> to vector<1x128xf32>
    %c8_348 = arith.constant 8 : index
    %c0_349 = arith.constant 0 : index
    %889 = vector.load %arg18[%c8_348, %c0_349] : memref<48x128xf32, #tpu.memory_space<vmem>>, vector<1x128xf32>
    tpu.vector_store %arg18[%c8_348, %c0_349], %888 {strides = array<i32>} : memref<48x128xf32, #tpu.memory_space<vmem>>, vector<1x128xf32>,
    %890 = vector.extract_strided_slice %882 {offsets = [3, 0], sizes = [1, 128], strides = [1, 1]} : vector<8x128xf32> to vector<1x128xf32>
    %c16_350 = arith.constant 16 : index
    %c0_351 = arith.constant 0 : index
    %891 = vector.load %arg18[%c16_350, %c0_351] : memref<48x128xf32, #tpu.memory_space<vmem>>, vector<1x128xf32>
    tpu.vector_store %arg18[%c16_350, %c0_351], %890 {strides = array<i32>} : memref<48x128xf32, #tpu.memory_space<vmem>>, vector<1x128xf32>,
    %892 = vector.extract_strided_slice %882 {offsets = [5, 0], sizes = [1, 128], strides = [1, 1]} : vector<8x128xf32> to vector<1x128xf32>
    %c24_352 = arith.constant 24 : index
    %c0_353 = arith.constant 0 : index
    %893 = vector.load %arg18[%c24_352, %c0_353] : memref<48x128xf32, #tpu.memory_space<vmem>>, vector<1x128xf32>
    tpu.vector_store %arg18[%c24_352, %c0_353], %892 {strides = array<i32>} : memref<48x128xf32, #tpu.memory_space<vmem>>, vector<1x128xf32>,
    %894 = vector.extract_strided_slice %882 {offsets = [6, 0], sizes = [1, 128], strides = [1, 1]} : vector<8x128xf32> to vector<1x128xf32>
    %c32_354 = arith.constant 32 : index
    %c0_355 = arith.constant 0 : index
    %895 = vector.load %arg18[%c32_354, %c0_355] : memref<48x128xf32, #tpu.memory_space<vmem>>, vector<1x128xf32>
    tpu.vector_store %arg18[%c32_354, %c0_355], %894 {strides = array<i32>} : memref<48x128xf32, #tpu.memory_space<vmem>>, vector<1x128xf32>,
    %896 = vector.extract_strided_slice %882 {offsets = [7, 0], sizes = [1, 128], strides = [1, 1]} : vector<8x128xf32> to vector<1x128xf32>
    %c40_356 = arith.constant 40 : index
    %c0_357 = arith.constant 0 : index
    %897 = vector.load %arg18[%c40_356, %c0_357] : memref<48x128xf32, #tpu.memory_space<vmem>>, vector<1x128xf32>
    tpu.vector_store %arg18[%c40_356, %c0_357], %896 {strides = array<i32>} : memref<48x128xf32, #tpu.memory_space<vmem>>, vector<1x128xf32>,
    %c0_358 = arith.constant 0 : index
    %c0_359 = arith.constant 0 : index
    %898 = vector.load %arg17[%c0_358, %c0_359] : memref<2x128xf32, #tpu.memory_space<vmem>>, vector<2x128xf32>
    tpu.vector_store %arg17[%c0_358, %c0_359], %885 {strides = array<i32>} : memref<2x128xf32, #tpu.memory_space<vmem>>, vector<2x128xf32>,
    return
  }
}

</mosaic_0001>

<bundles_post_ra>
// kernel: tpu_custom_call.1
= control target key start
LH: loop header
LB: loop body
LE: loop exit
PB: predicated region body
PF: predicated region fallthrough
CT: control target
= control target key end

     0   :  { %s18057_s0 = inlined_call_operand.hbm [shape: f32[48,128], index: 0, kind: input, shape index: {}]   ;;  %s18058_s1 = inlined_call_operand.hbm [shape: f32[6,8], index: 1, kind: input, shape index: {}]   ;;  %s18059_s2 = inlined_call_operand.hbm [shape: f32[6,8], index: 2, kind: input, shape index: {}]   ;;  %s18060_s3 = inlined_call_operand.hbm [shape: f32[2,4], index: 3, kind: input, shape index: {}]   ;;  %s18061_s4 = inlined_call_operand.hbm [shape: f32[1,128], index: 4, kind: input, shape index: {}]   ;;  %s18062_s5 = inlined_call_operand.hbm [shape: bf16[4,128,384], index: 5, kind: input, shape index: {}]   ;;  %s18063_s6 = inlined_call_operand.hbm [shape: f32[4,1,384], index: 6, kind: input, shape index: {}]   ;;  %s18064_s7 = inlined_call_operand.hbm [shape: bf16[4,128,128], index: 7, kind: input, shape index: {}]   ;;  %s18065_s8 = inlined_call_operand.vmem [shape: f32[4,1,128], index: 8, kind: input, shape index: {}]   ;;  %s18066_s9 = inlined_call_operand.vmem [shape: f32[4,1,128], index: 9, kind: input, shape index: {}]   ;;  %s18067_s10 = inlined_call_operand.hbm [shape: f32[4,1,128], index: 10, kind: input, shape index: {}]   ;;  %s18068_s11 = inlined_call_operand.hbm [shape: bf16[4,128,256], index: 11, kind: input, shape index: {}]   ;;  %s18069_s12 = inlined_call_operand.vmem [shape: f32[4,1,256], index: 12, kind: input, shape index: {}]   ;;  %s18070_s13 = inlined_call_operand.hbm [shape: bf16[4,256,128], index: 13, kind: input, shape index: {}]   ;;  %s18071_s14 = inlined_call_operand.vmem [shape: f32[4,1,128], index: 14, kind: input, shape index: {}]   ;;  %s18072_s15 = inlined_call_operand.vmem [shape: f32[4,1,128], index: 15, kind: input, shape index: {}]   ;;  %s18073_s16 = inlined_call_operand.vmem [shape: f32[4,1,128], index: 16, kind: input, shape index: {}]   ;;  %s18074_s17 = inlined_call_operand.hbm [shape: f32[2,128], index: 17, kind: output, shape index: {0}]   ;;  %s18075_s18 = inlined_call_operand.hbm [shape: f32[48,128], index: 18, kind: output, shape index: {1}]  }
   0x1   :  { %18084 = sst [smem:[#allocation33_spill]] %s18057_s0 }
   0x2   :  { %18085 = sst [smem:[#allocation34_spill]] %s18058_s1 }
   0x3   :  { %18086 = sst [smem:[#allocation35_spill]] %s18059_s2 }
   0x4   :  { %24 = vsyncpa [#allocation3], 0 }
   0x5   :  { %25 = vsyncpa [#allocation6], 0 }
   0x6   :  { %26 = vsyncpa [#allocation9], 0 }
   0x7   :  { %27 = vsyncpa [#allocation12], 0 }
   0x8   :  { %28 = vsyncpa [#allocation15], 0 }
   0x9   :  { %29 = vsyncpa [#allocation18], 0 }
   0xa   :  { %30 = vsyncpa [#allocation4], 0 }
   0xb   :  { %31 = vsyncpa [#allocation22], 0  ;;  %s15432_s27 = smov [#allocation5]   ;;  %s15433_s29 = smov [#allocation8]  }
   0xc   :  { %s50_s28 = sshll.u32 %s15432_s27, 4  ;;  %s70_s30 = sshll.u32 %s15433_s29, 4  ;;  %s51_s28 = int_to_ptr.vmem [resolvable:$true] %s50_s28  ;;  %s71_s30 = int_to_ptr.vmem [resolvable:$true] %s70_s30 }
   0xd   :  { %s15164_s0 = scalar_lea.vmem %s51_s28, 128  ;;  %p15169_p1 = scmp.lt.s32.totalorder %s51_s28, %s51_s28 }
   0xe   :  { %p15165_p0 = scmp.ne.s32.totalorder %s51_s28, %s15164_s0  ;;  %p15170_p2 = scmp.lt.s32.totalorder %s15164_s0, %s15164_s0 }
  0x10   :  { %p15171_p3 = por %p15170_p2, %p15169_p1 }
  0x12   :  { %p15172_p4 = pnand %p15171_p3, %p15165_p0 }
  0x14   :  { %15175 = shalt.err (!%p15172_p4)
}
  0x15   :  { %s18087_s20 = sld [smem:[#allocation34_spill]]  ;;  %s15184_s21 = scalar_lea.vmem %s71_s30, 32 }
  0x16   :  { %p15185_p5 = scmp.ne.s32.totalorder %s71_s30, %s15184_s21  ;;  %p15189_p6 = scmp.lt.s32.totalorder %s71_s30, %s71_s30 }
  0x17   :  { %p15190_p7 = scmp.lt.s32.totalorder %s15184_s21, %s15184_s21 }
  0x19   :  { %p15191_p8 = por %p15190_p7, %p15189_p6 }
  0x1b   :  { %53 = dma.hbm_to_vmem [thread:$0]  %s18087_s20, 128, %s51_s28, [#allocation6]  }
  0x1c   :  { %p15192_p9 = pnand %p15191_p8, %p15185_p5 }
  0x1e   :  { %15195 = shalt.err (!%p15192_p9)
}
  0x1f   :  { %73 = dma.hbm_to_vmem [thread:$0]  %s18060_s3, 32, %s71_s30, [#allocation9]  }
  0x20   :  { %s15434_s23 = smov [#allocation11]  }
  0x21   :  { %s89_s24 = sshll.u32 %s15434_s23, 4  ;;  %s90_s24 = int_to_ptr.vmem [resolvable:$true] %s89_s24 }
  0x22   :  { %s15204_s25 = scalar_lea.vmem %s90_s24, 12288  ;;  %p15209_p11 = scmp.lt.s32.totalorder %s90_s24, %s90_s24 }
  0x23   :  { %p15205_p10 = scmp.ne.s32.totalorder %s90_s24, %s15204_s25  ;;  %p15210_p12 = scmp.lt.s32.totalorder %s15204_s25, %s15204_s25 }
  0x25   :  { %p15211_p13 = por %p15210_p12, %p15209_p11 }
  0x27   :  { %p15212_p0 = pnand %p15211_p13, %p15205_p10 }
  0x29   :  { %15215 = shalt.err (!%p15212_p0)
}
  0x2a   :  { %s15435_s26 = smov 192   ;;  %s15436_s27 = smov 12  }
  0x2b   :  { %95 = dma.hbm_to_vmem [thread:$0]  %s18062_s5, 12288, %s90_s24, [#allocation12], %s15435_s26, %s15435_s26, %s15436_s27  }
  0x2c   :  { %s15437_s0 = smov [#allocation14]  }
  0x2d   :  { %s113_s19 = sshll.u32 %s15437_s0, 4  ;;  %s114_s19 = int_to_ptr.vmem [resolvable:$true] %s113_s19 }
  0x2e   :  { %s15224_s3 = scalar_lea.vmem %s114_s19, 4096  ;;  %p15229_p2 = scmp.lt.s32.totalorder %s114_s19, %s114_s19 }
  0x2f   :  { %p15225_p1 = scmp.ne.s32.totalorder %s114_s19, %s15224_s3  ;;  %p15230_p3 = scmp.lt.s32.totalorder %s15224_s3, %s15224_s3 }
  0x31   :  { %p15231_p4 = por %p15230_p3, %p15229_p2 }
  0x33   :  { %p15232_p5 = pnand %p15231_p4, %p15225_p1 }
  0x35   :  { %15235 = shalt.err (!%p15232_p5)
}
  0x36   :  { %s15438_s30 = smov 64   ;;  %s15439_s1 = smov 4  }
  0x37   :  { %119 = dma.hbm_to_vmem [thread:$0]  %s18064_s7, 4096, %s114_s19, [#allocation15], %s15438_s30, %s15438_s30, %s15439_s1  }
  0x38   :  { %s15440_s5 = smov [#allocation17]   ;;  %s15441_s2 = smov [#allocation2]  }
  0x39   :  { %s141_s22 = sshll.u32 %s15440_s5, 4  ;;  %s37_s23 = sshll.u32 %s15441_s2, 4  ;;  %s142_s22 = int_to_ptr.vmem [resolvable:$true] %s141_s22  ;;  %s38_s23 = int_to_ptr.vmem [resolvable:$true] %s37_s23 }
  0x3a   :  { %s15244_s24 = scalar_lea.vmem %s142_s22, 8192  ;;  %p15249_p7 = scmp.lt.s32.totalorder %s142_s22, %s142_s22 }
  0x3b   :  { %p15245_p6 = scmp.ne.s32.totalorder %s142_s22, %s15244_s24  ;;  %p15250_p8 = scmp.lt.s32.totalorder %s15244_s24, %s15244_s24 }
  0x3d   :  { %p15251_p9 = por %p15250_p8, %p15249_p7 }
  0x3f   :  { %p15252_p10 = pnand %p15251_p9, %p15245_p6 }
  0x41   :  { %15255 = shalt.err (!%p15252_p10)
}
  0x42   :  { %s15442_s25 = smov 128   ;;  %s15443_s26 = smov 8  }
  0x43   :  { %147 = dma.hbm_to_vmem [thread:$0]  %s18068_s11, 8192, %s142_s22, [#allocation18], %s15442_s25, %s15442_s25, %s15443_s26  }
  0x44   :  { %s15264_s28 = scalar_lea.vmem %s38_s23, 768  ;;  %p15269_p12 = scmp.lt.s32.totalorder %s38_s23, %s38_s23 }
  0x45   :  { %p15265_p11 = scmp.ne.s32.totalorder %s38_s23, %s15264_s28  ;;  %p15270_p13 = scmp.lt.s32.totalorder %s15264_s28, %s15264_s28 }
  0x47   :  { %p15271_p0 = por %p15270_p13, %p15269_p12 }
  0x49   :  { %p15272_p1 = pnand %p15271_p0, %p15265_p11 }
  0x4b   :  { %15275 = shalt.err (!%p15272_p1)
}
  0x4c   :  { %s18088_s19 = sld [smem:[#allocation33_spill]]  ;;  %s15444_s3 = smov [#allocation7]  }
  0x4d   :  { %s60_s20 = sshll.u32 %s15444_s3, 4  ;;  %s15445_s21 = smov [#allocation10]   ;;  %s61_s20 = int_to_ptr.vmem [resolvable:$true] %s60_s20 }
  0x4e   :  { %s80_s5 = sshll.u32 %s15445_s21, 4  ;;  %s15284_s11 = scalar_lea.vmem %s61_s20, 128  ;;  %s81_s5 = int_to_ptr.vmem [resolvable:$true] %s80_s5 }
  0x4f   :  { %p15285_p2 = scmp.ne.s32.totalorder %s61_s20, %s15284_s11  ;;  %p15289_p3 = scmp.lt.s32.totalorder %s61_s20, %s61_s20 }
  0x50   :  { %p15290_p4 = scmp.lt.s32.totalorder %s15284_s11, %s15284_s11 }
  0x52   :  { %43 = dma.hbm_to_vmem [thread:$0]  %s18088_s19, 768, %s38_s23, [#allocation3], %s15442_s25, %s15442_s25, %s15443_s26  }
  0x53   :  { %p15291_p5 = por %p15290_p4, %p15289_p3 }
  0x55   :  { %p15292_p6 = pnand %p15291_p5, %p15285_p2 }
  0x57   :  { %15295 = shalt.err (!%p15292_p6)
}
  0x58   :  { %s18089_s24 = sld [smem:[#allocation35_spill]]  ;;  %s15304_s27 = scalar_lea.vmem %s81_s5, 16 }
  0x59   :  { %p15305_p7 = scmp.ne.s32.totalorder %s81_s5, %s15304_s27  ;;  %s15308_s23 = scalar_lea.vmem %s81_s5, 32 }
  0x5a   :  { %p15309_p8 = scmp.lt.s32.totalorder %s81_s5, %s81_s5  ;;  %p15310_p9 = scmp.lt.s32.totalorder %s15308_s23, %s15304_s27 }
  0x5c   :  { %p15311_p10 = por %p15310_p9, %p15309_p8 }
  0x5e   :  { %63 = dma.hbm_to_vmem [thread:$0]  %s18089_s24, 128, %s61_s20, [#allocation6]  }
  0x5f   :  { %p15312_p11 = pnand %p15311_p10, %p15305_p7 }
  0x61   :  { %15315 = shalt.err (!%p15312_p11)
}
  0x62   :  { %83 = dma.hbm_to_vmem [thread:$0]  %s18061_s4, 16, %s81_s5, [#allocation9]  }
  0x63   :  { %s15446_s29 = smov [#allocation13]  }
  0x64   :  { %s101_s0 = sshll.u32 %s15446_s29, 4  ;;  %s102_s0 = int_to_ptr.vmem [resolvable:$true] %s101_s0 }
  0x65   :  { %s15324_s19 = scalar_lea.vmem %s102_s0, 192  ;;  %p15329_p13 = scmp.lt.s32.totalorder %s102_s0, %s102_s0 }
  0x66   :  { %p15325_p12 = scmp.ne.s32.totalorder %s102_s0, %s15324_s19  ;;  %p15330_p0 = scmp.lt.s32.totalorder %s15324_s19, %s15324_s19 }
  0x68   :  { %p15331_p1 = por %p15330_p0, %p15329_p13 }
  0x6a   :  { %p15332_p2 = pnand %p15331_p1, %p15325_p12 }
  0x6c   :  { %15335 = shalt.err (!%p15332_p2)
}
  0x6d   :  { %s15447_s3 = smov 48   ;;  %s15448_s20 = smov 3  }
  0x6e   :  { %107 = dma.hbm_to_vmem [thread:$0]  %s18063_s6, 192, %s102_s0, [#allocation12], %s15447_s3, %s15447_s3, %s15448_s20  }
  0x6f   :  { %s15449_s22 = smov [#allocation16]  }
  0x70   :  { %s129_s2 = sshll.u32 %s15449_s22, 4  ;;  %s130_s2 = int_to_ptr.vmem [resolvable:$true] %s129_s2 }
  0x71   :  { %s15344_s4 = scalar_lea.vmem %s130_s2, 64  ;;  %p15349_p4 = scmp.lt.s32.totalorder %s130_s2, %s130_s2 }
  0x72   :  { %p15345_p3 = scmp.ne.s32.totalorder %s130_s2, %s15344_s4  ;;  %p15350_p5 = scmp.lt.s32.totalorder %s15344_s4, %s15344_s4 }
  0x74   :  { %p15351_p6 = por %p15350_p5, %p15349_p4 }
  0x76   :  { %p15352_p7 = pnand %p15351_p6, %p15345_p3 }
  0x78   :  { %15355 = shalt.err (!%p15352_p7)
}
  0x79   :  { %s15450_s5 = smov 16   ;;  %s15451_s24 = smov 1  }
  0x7a   :  { %135 = dma.hbm_to_vmem [thread:$0]  %s18067_s10, 64, %s130_s2, [#allocation15], %s15450_s5, %s15450_s5, %s15451_s24  }
  0x7b   :  { %s15452_s7 = smov [#allocation19]  }
  0x7c   :  { %s155_s28 = sshll.u32 %s15452_s7, 4  ;;  %s156_s28 = int_to_ptr.vmem [resolvable:$true] %s155_s28 }
  0x7d   :  { %s15364_s6 = scalar_lea.vmem %s156_s28, 8192  ;;  %p15369_p9 = scmp.lt.s32.totalorder %s156_s28, %s156_s28 }
  0x7e   :  { %p15365_p8 = scmp.ne.s32.totalorder %s156_s28, %s15364_s6  ;;  %p15370_p10 = scmp.lt.s32.totalorder %s15364_s6, %s15364_s6 }
  0x80   :  { %p15371_p11 = por %p15370_p10, %p15369_p9 }
  0x82   :  { %p15372_p12 = pnand %p15371_p11, %p15365_p8 }
  0x84   :  { %15375 = shalt.err (!%p15372_p12)
}
  0x85   :  { %161 = dma.hbm_to_vmem [thread:$0]  %s18070_s13, 8192, %s156_s28, [#allocation18], %s15438_s30, %s15438_s30, %s15439_s1  }
  0x86   :  { %15416 = dma.done.wait [#allocation3], 768  }
  0x87   :  { %15417 = vsyncadd [#allocation3], 4294966528 }
  0x88   :  { %15418 = dma.done.wait [#allocation6], 256  }
  0x89   :  { %15419 = vsyncadd [#allocation6], 4294967040 }
  0x8a   :  { %15420 = dma.done.wait [#allocation9], 48  }
  0x8b   :  { %15421 = vsyncadd [#allocation9], 4294967248 }
  0x8c   :  { %15422 = dma.done.wait [#allocation12], 12480  }
  0x8d   :  { %15423 = vsyncadd [#allocation12], 4294954816 }
  0x8e   :  { %15424 = dma.done.wait [#allocation15], 4160  }
  0x8f   :  { %15425 = vsyncadd [#allocation15], 4294963136 }
  0x90   :  { %15426 = dma.done.wait [#allocation18], 16384  }
  0x91   :  { %15427 = vsyncadd [#allocation18], 4294950912  ;;  %v18076_v0 = vmov 0   ;;  %v18078_v1 = vmov 0.0   ;;  %vm15455_vm0 = vmmov 0   ;;  %v202_v22 = vld [vmem:[#allocation2] sm:$0xff]  ;;  %v331_v35 = vlaneseq }
  0x92   :  { %506 = vmatprep.mubr.bf16.mxu0 %v18076_v0  ;;  %13368 = vmatprep.subr.bf16.mxu1 %v18078_v1  ;;  %v14454_v2 = vld [vmem:[#allocation11 + $0xac] ss:$12 sps:$4 sm:$0xff]   ;;  %v14456_v3 = vld [vmem:[#allocation11 + $0xa8] ss:$12 sps:$4 sm:$0xff]   ;;  %v14459_v5 = vld [vmem:[#allocation11 + $0x90] ss:$12 sps:$4 sm:$0xff]  }
  0x93   :  { %13384 = vmatprep.mubr.msk.bf16.mxu1 %vm15455_vm0, %v18078_v1  ;;  %474 = vmatprep.subr.bf16.mxu0 %v14454_v2  ;;  %v14457_v4 = vld [vmem:[#allocation11 + $0x94] ss:$12 sps:$4 sm:$0xff]   ;;  %v14460_v6 = vld [vmem:[#allocation11 + $0x7c] ss:$12 sps:$4 sm:$0xff]   ;;  %v14462_v7 = vld [vmem:[#allocation11 + $0x78] ss:$12 sps:$4 sm:$0xff]  }
  0x94   :  { %475 = vmatpush1.bf16.msra.mxu0 %v14456_v3  ;;  %v14463_v8 = vld [vmem:[#allocation11 + $0x64] ss:$12 sps:$4 sm:$0xff]   ;;  %v14465_v9 = vld [vmem:[#allocation11 + $0x60] ss:$12 sps:$4 sm:$0xff]   ;;  %v14468_v12 = vld [vmem:[#allocation11 + $0x48] ss:$12 sps:$4 sm:$0xff]  }
  0x95   :  { %476 = vmatprep.subr.bf16.mxu0 %v14457_v4  ;;  %v14466_v10 = vld [vmem:[#allocation11 + $0x4c] ss:$12 sps:$4 sm:$0xff]   ;;  %v14478_v11 = vld [vmem:[#allocation11 + $0xb0] ss:$12 sps:$4 sm:$0xff]   ;;  %v14469_v14 = vld [vmem:[#allocation11 + $0x34] ss:$12 sps:$4 sm:$0xff]  }
  0x96   :  { %13369 = vmatpush3.bf16.msra.mxu1 %v14478_v11  ;;  %v14479_v13 = vld [vmem:[#allocation11 + $0x98] ss:$12 sps:$4 sm:$0xff]   ;;  %v14471_v15 = vld [vmem:[#allocation11 + $0x30] ss:$12 sps:$4 sm:$0xff]   ;;  %v14480_v16 = vld [vmem:[#allocation11 + $0x80] ss:$12 sps:$4 sm:$0xff]  }
  0x97   :  { %13370 = vmatprep.subr.bf16.mxu1 %v18078_v1  ;;  %v14472_v17 = vld [vmem:[#allocation11 + $0x1c] ss:$12 sps:$4 sm:$0xff]   ;;  %v14474_v18 = vld [vmem:[#allocation11 + $0x18] ss:$12 sps:$4 sm:$0xff]   ;;  %v14477_v21 = vld [vmem:[#allocation11] ss:$12 sps:$4 sm:$0xff]  }
  0x98   :  { %477 = vmatpush1.bf16.msra.mxu0 %v14459_v5  ;;  %v14481_v19 = vld [vmem:[#allocation11 + $0x68] ss:$12 sps:$4 sm:$0xff]   ;;  %v14475_v20 = vld [vmem:[#allocation11 + $0x4] ss:$12 sps:$4 sm:$0xff]   ;;  %v14484_v29 = vld [vmem:[#allocation11 + $0x20] ss:$12 sps:$4 sm:$0xff]  }
  0x99   :  { %478 = vmatprep.subr.bf16.mxu0 %v14460_v6  ;;  %v203_v23 = vld [vmem:[#allocation2 + $0x8] sm:$0xff]  ;;  %v14482_v24 = vld [vmem:[#allocation11 + $0x50] ss:$12 sps:$4 sm:$0xff]   ;;  %v205_v28 = vld [vmem:[#allocation2 + $0x18] sm:$0xff]  ;;  %v15625_v36 = vshrl.u32 %v331_v35, 7  ;;  %vm732_vm1 = vcmask 261120  }
  0x9a   :  { %13371 = vmatpush3.bf16.msra.mxu1 %v14479_v13  ;;  %v14483_v25 = vld [vmem:[#allocation11 + $0x38] ss:$12 sps:$4 sm:$0xff]   ;;  %v327_v26 = vpack.c.bf16 %v203_v23, %v202_v22  ;;  %v204_v27 = vld [vmem:[#allocation2 + $0x10] sm:$0xff]  ;;  %v14485_v30 = vld [vmem:[#allocation11 + $0x8] ss:$12 sps:$4 sm:$0xff]   ;;  %vm1085_vm2 = vcmask 1043456  }
  0x9b   :  { %13372 = vmatprep.subr.bf16.mxu1 %v18078_v1  ;;  %v328_v31 = vpack.c.bf16 %v205_v28, %v204_v27  ;;  %v206_v32 = vld [vmem:[#allocation2 + $0x20] sm:$0xff]  ;;  %v207_v33 = vld [vmem:[#allocation2 + $0x28] sm:$0xff]  ;;  %v15628_v37 = vsub.s32 1, %v15625_v36  ;;  %v15631_v38 = vsub.s32 0, %v15625_v36  ;;  %v15654_v59 = vsub.s32 2, %v15625_v36  ;;  %s15457_s10 = smov 96  }
  0x9c   :  { %479 = vmatpush1.bf16.msra.mxu0 %v14462_v7  ;;  %v329_v34 = vpack.c.bf16 %v207_v33, %v206_v32  ;;  %v255_v39 = vld [vmem:[#allocation13] sm:$0x7]  ;;  %vm1009_vm3 = vcmask 64512   ;;  %s15458_s13 = smov 32   ;;  %vm4334_vm4 = vcmask 1040384   ;;  %vm4336_vm5 = vcmask 1041408  }
  0x9d   :  { %480 = vmatprep.subr.bf16.mxu0 %v14463_v8  ;;  %v15634_v40 = vrot.slane %v255_v39, %v15628_v37  ;;  %v15637_v42 = vrot.slane %v255_v39, %v15631_v38  ;;  %vm4338_vm6 = vcmask 1042432   ;;  %vm4341_vm7 = vcmask 1044480   ;;  %s15460_s11 = smov [#allocation21]   ;;  %s15461_s2 = smov [#allocation20]  }
  0x9e   :  { %13373 = vmatpush3.bf16.msra.mxu1 %v14480_v16  ;;  %vm4863_vm8 = vcmask 27648   ;;  %vm4888_vm9 = vcmask 31744   ;;  %s12344_s22 = sshll.u32 %s15460_s11, 4  ;;  %s12335_s4 = sshll.u32 %s15461_s2, 4  ;;  %s12345_s22 = int_to_ptr.vmem [resolvable:$true] %s12344_s22  ;;  %s12336_s4 = int_to_ptr.vmem [resolvable:$true] %s12335_s4 }
  0x9f   :  { %13374 = vmatprep.subr.bf16.mxu1 %v18078_v1  ;;  %s15376_s5 = scalar_lea.vmem %s12345_s22, 768  ;;  %p15381_p0 = scmp.lt.s32.totalorder %s12345_s22, %s12345_s22 }
  0xa0   :  { %481 = vmatpush1.bf16.msra.mxu0 %v14465_v9  ;;  %v342_v9 = vrot.slane %v255_v39, %v15654_v59  ;;  %p15377_p13 = scmp.ne.s32.totalorder %s12345_s22, %s15376_s5  ;;  %p15382_p1 = scmp.lt.s32.totalorder %s15376_s5, %s15376_s5 }
  0xa1   :  { %482 = vmatprep.subr.bf16.mxu0 %v14466_v10 }
  0xa2   :  { %13375 = vmatpush3.bf16.msra.mxu1 %v14481_v19  ;;  %p15383_p2 = por %p15382_p1, %p15381_p0 }
  0xa3   :  { %13376 = vmatprep.subr.bf16.mxu1 %v18078_v1 }
  0xa4   :  { %483 = vmatpush1.bf16.msra.mxu0 %v14468_v12  ;;  %p15384_p3 = pnand %p15383_p2, %p15377_p13 }
  0xa5   :  { %484 = vmatprep.subr.bf16.mxu0 %v14469_v14 }
  0xa6   :  { %13377 = vmatpush3.bf16.msra.mxu1 %v14482_v24 }
  0xa7   :  { %13378 = vmatprep.subr.bf16.mxu1 %v18078_v1 }
  0xa8   :  { %485 = vmatpush1.bf16.msra.mxu0 %v14471_v15 }
  0xa9   :  { %486 = vmatprep.subr.bf16.mxu0 %v14472_v17 }
  0xaa   :  { %13379 = vmatpush3.bf16.msra.mxu1 %v14483_v25 }
  0xab   :  { %13380 = vmatprep.subr.bf16.mxu1 %v18078_v1 }
  0xac   :  { %487 = vmatpush1.bf16.msra.mxu0 %v14474_v18 }
  0xad   :  { %488 = vmatprep.subr.bf16.mxu0 %v14475_v20 }
  0xae   :  { %13381 = vmatpush3.bf16.msra.mxu1 %v14484_v29 }
  0xaf   :  { %13382 = vmatprep.subr.bf16.mxu1 %v18078_v1 }
  0xb0   :  { %489 = vmatpush1.bf16.msra.mxu0 %v14477_v21 }
  0xb1   :  { %13396 = vmatprep.subr.bf16.mxu0 %v18078_v1 }
  0xb2   :  { %13383 = vmatpush3.bf16.msra.mxu1 %v14485_v30 }
  0xb3   :  { %507 = vmatmul.mubr.bf16.vlgmr.msra.gmra.mxu0 %v327_v26  ;;  %13402 = vmatprep.subr.bf16.mxu1 %v18078_v1 }
  0xb4   :  { %516 = vmatprep.mubr.bf16.mxu0 %v18076_v0 }
  0xb5   :  { %13385 = vmatmul.mubr.bf16.vlgmr.msra.gmra.mxu1 %v327_v26 }
  0xb6   :  { %13388 = vmatprep.mubr.msk.bf16.mxu1 %vm15455_vm0, %v18078_v1 }
  0xbb   :  { %517 = vmatmul.mubr.bf16.gmra.mxu0 %v328_v31 }
  0xbc   :  { %526 = vmatprep.mubr.bf16.mxu0 %v18076_v0 }
  0xbd   :  { %13389 = vmatmul.mubr.bf16.gmra.mxu1 %v328_v31 }
  0xbe   :  { %13392 = vmatprep.mubr.msk.bf16.mxu1 %vm15455_vm0, %v18078_v1 }
  0xc3   :  { %527 = vmatmul.mubr.bf16.gmra.mxu0 %v329_v34 }
  0xc4   :  { %13398 = vmatprep.mubr.msk.bf16.mxu0 %vm15455_vm0, %v18078_v1 }
  0xc5   :  { %13393 = vmatmul.mubr.bf16.gmra.mxu1 %v329_v34 }
  0xc6   :  { %13404 = vmatprep.mubr.msk.bf16.mxu1 %vm15455_vm0, %v18078_v1 }
 0x173   :  { %v508_v41 = vpop.f32.mrf.mxu0 }
 0x174   :  { %v509_v46 = vadd.f32 %v508_v41, %v15637_v42 }
 0x175   :  { %v510_v43 = vpop.f32.mrf.mxu0  ;;  %v571_v60 = vpop.f32.mrf.mxu1 }
 0x176   :  { %v511_v44 = vadd.f32 %v510_v43, %v15634_v40  ;;  %v594_v52 = vmul.f32 0.17677669, %v509_v46  ;;  %v572_v21 = vadd.f32 %v571_v60, %v342_v9 }
 0x177   :  { %v512_v45 = vpop.f32.mrf.mxu0  ;;  %v13386_v4 = vpop.f32.mrf.mxu1 }
 0x178   :  { %v15641_v47 = vpack.c.bf16 %v511_v44, %v511_v44  ;;  %v513_v53 = vadd.f32 %v512_v45, %v15637_v42  ;;  %v15656_v61 = vpack.c.bf16 %v594_v52, %v594_v52  ;;  %v15700_v32 = vpack.c.bf16 %v572_v21, %v572_v21 }
 0x179   :  { %v514_v48 = vpop.f32.mrf.mxu0  ;;  %v574_v10 = vpop.f32.mrf.mxu1 }
 0x17a   :  { %v515_v49 = vadd.f32 %v514_v48, %v15634_v40  ;;  %v737_v50 = vsel %vm732_vm1, %v15641_v47, 0  ;;  %v595_v62 = vmul.f32 0.17677669, %v513_v53  ;;  %v575_v39 = vadd.f32 %v574_v10, %v342_v9 }
 0x17b   :  { %v518_v51 = vpop.f32.mrf.mxu0  ;;  %13397 = vmatpush3.bf16.xpose.msra.mxu0 %v737_v50  ;;  %v13387_v15 = vpop.f32.mrf.mxu1  ;;  %v1087_v48 = vsel %vm1085_vm2, %v15700_v32, 0 }
 0x17c   :  { %v15647_v54 = vpack.c.bf16 %v515_v49, %v515_v49  ;;  %13408 = vmatprep.subr.bf16.mxu0 %v18078_v1  ;;  %v519_v63 = vadd.f32 %v518_v51, %v15637_v42  ;;  %v15671_v11 = vpack.c.bf16 %v595_v62, %v595_v62  ;;  %v15716_v46 = vpack.c.bf16 %v575_v39, %v575_v39 }
 0x17d   :  { %v520_v55 = vpop.f32.mrf.mxu0  ;;  %v579_v22 = vpop.f32.mrf.mxu1 }
 0x17e   :  { %v521_v56 = vadd.f32 %v520_v55, %v15634_v40  ;;  %v783_v57 = vsel %vm732_vm1, %v15647_v54, 0  ;;  %v596_v12 = vmul.f32 0.17677669, %v519_v63  ;;  %v15689_v25 = vadd.f32 %v579_v22, %v342_v9  ;;  %v216_v63 = vld [vmem:[#allocation5] sm:$0x3f] }
 0x17f   :  { %v522_v58 = vpop.f32.mrf.mxu0  ;;  %13403 = vmatpush3.bf16.xpose.msra.mxu1 %v783_v57  ;;  %v13390_v27 = vpop.f32.mrf.mxu1  ;;  %v1133_v53 = vsel %vm1085_vm2, %v15716_v46, 0  ;;  %v15456_v57 = vmov 1966171168  }
 0x180   :  { %v15659_v2 = vpack.c.bf16 %v521_v56, %v521_v56  ;;  %13414 = vmatprep.subr.bf16.mxu1 %v18078_v1  ;;  %v523_v7 = vadd.f32 %v522_v58, %v15637_v42  ;;  %v15684_v23 = vpack.c.bf16 %v596_v12, %v596_v12  ;;  %v657_v58 = vunpack.c.l.s4 %v15456_v57 }
 0x181   :  { %v524_v3 = vpop.f32.mrf.mxu0  ;;  %v582_v33 = vpop.f32.mrf.mxu1 }
 0x182   :  { %v525_v5 = vadd.f32 %v524_v3, %v15634_v40  ;;  %13399 = vmatmul.mubr.msk.bf16.vlgmr.msra.gmra.mxu0 %vm732_vm1, %v15656_v61  ;;  %v829_v6 = vsel %vm732_vm1, %v15659_v2, 0  ;;  %v597_v19 = vmul.f32 0.17677669, %v523_v7  ;;  %v658_v60 = vunpack.c.0.s8 %v657_v58 }
 0x183   :  { %v528_v8 = vpop.f32.mrf.mxu0  ;;  %13409 = vmatpush3.bf16.xpose.msra.mxu0 %v829_v6  ;;  %13410 = vmatprep.mubr.msk.bf16.mxu0 %vm15455_vm0, %v18078_v1  ;;  %v13391_v41 = vpop.f32.mrf.mxu1 }
 0x184   :  { %v15673_v13 = vpack.c.bf16 %v525_v5, %v525_v5  ;;  %13420 = vmatprep.subr.bf16.mxu0 %v18078_v1  ;;  %v529_v16 = vadd.f32 %v528_v8, %v15637_v42  ;;  %v15696_v31 = vpack.c.bf16 %v597_v19, %v597_v19  ;;  %v15740_v62 = vsub.s32 %v658_v60, %v15625_v36 }
 0x185   :  { %v530_v14 = vpop.f32.mrf.mxu0 }
 0x186   :  { %v531_v17 = vadd.f32 %v530_v14, %v15634_v40  ;;  %13405 = vmatmul.mubr.msk.bf16.vlgmr.msra.gmra.mxu1 %vm732_vm1, %v15671_v11  ;;  %v875_v18 = vsel %vm732_vm1, %v15673_v13, 0  ;;  %v598_v28 = vmul.f32 0.17677669, %v529_v16  ;;  %v662_v3 = vrot.slane %v216_v63, %v15740_v62 }
 0x187   :  { %v532_v20 = vpop.f32.mrf.mxu0  ;;  %13415 = vmatpush3.bf16.xpose.msra.mxu1 %v875_v18  ;;  %13416 = vmatprep.mubr.msk.bf16.mxu1 %vm15455_vm0, %v18078_v1  ;;  %v655_v14 = vcombine.high %v216_v63, %v216_v63 }
 0x188   :  { %v15686_v24 = vpack.c.bf16 %v531_v17, %v531_v17  ;;  %13426 = vmatprep.subr.bf16.mxu1 %v18078_v1  ;;  %v533_v34 = vadd.f32 %v532_v20, %v15637_v42  ;;  %v15708_v43 = vpack.c.bf16 %v598_v28, %v598_v28  ;;  %v587_v42 = vpop.f32.mrf.mxu1  ;;  %v678_v4 = vrot.slane %v662_v3, %v15740_v62 }
 0x189   :  { %v534_v26 = vpop.f32.mrf.mxu0  ;;  %v15721_v49 = vadd.f32 %v587_v42, %v342_v9  ;;  %v670_v5 = vcombine.high %v662_v3, %v662_v3  ;;  %v669_v22 = vrot.slane %v655_v14, %v15740_v62 }
 0x18a   :  { %v535_v29 = vadd.f32 %v534_v26, %v15634_v40  ;;  %13411 = vmatmul.mubr.msk.bf16.vlgmr.msra.gmra.mxu0 %vm732_vm1, %v15684_v23  ;;  %v921_v30 = vsel %vm732_vm1, %v15686_v24, 0  ;;  %v15706_v40 = vadd.f32 %v582_v33, %v342_v9  ;;  %v599_v45 = vmul.f32 0.17677669, %v533_v34  ;;  %v13394_v50 = vpop.f32.mrf.mxu1 }
 0x18b   :  { %13421 = vmatpush3.bf16.xpose.msra.mxu0 %v921_v30  ;;  %13422 = vmatprep.mubr.msk.bf16.mxu0 %vm15455_vm0, %v18078_v1  ;;  %v15745_v6 = vrot.slane %v678_v4, %v15631_v38  ;;  %v692_v7 = vrot.slane %v670_v5, %v15740_v62  ;;  %v700_v12 = vcombine.high %v678_v4, %v678_v4 }
 0x18c   :  { %v15703_v35 = vpack.c.bf16 %v535_v29, %v535_v29  ;;  %13432 = vmatprep.subr.bf16.mxu0 %v18078_v1  ;;  %v590_v51 = vpop.f32.mrf.mxu1  ;;  %v15727_v52 = vpack.c.bf16 %v599_v45, %v599_v45  ;;  %v685_v39 = vrot.slane %v669_v22, %v15740_v62  ;;  %v671_v41 = vcombine.high %v669_v22, %v669_v22 }
 0x18d   :  { %v15731_v55 = vadd.f32 %v590_v51, %v342_v9  ;;  %v15750_v10 = vrot.slane %v692_v7, %v15631_v38  ;;  %v15755_v20 = vrot.slane %v700_v12, %v15631_v38  ;;  %v701_v21 = vcombine.high %v692_v7, %v692_v7 }
 0x18e   :  { %13417 = vmatmul.mubr.msk.bf16.vlgmr.msra.gmra.mxu1 %vm732_vm1, %v15696_v31  ;;  %v967_v44 = vsel %vm732_vm1, %v15703_v35, 0  ;;  %v13395_v56 = vpop.f32.mrf.mxu1 }
 0x18f   :  { %13427 = vmatpush3.bf16.xpose.msra.mxu1 %v967_v44  ;;  %13428 = vmatprep.mubr.msk.bf16.mxu1 %vm15455_vm0, %v18078_v1  ;;  %v15761_v34 = vrot.slane %v701_v21, %v15631_v38  ;;  %v699_v56 = vrot.slane %v671_v41, %v15740_v62 }
 0x190   :  { %13438 = vmatprep.subr.bf16.mxu1 %v18078_v1 }
 0x191   :  { %v15773_v5 = vrot.slane %v699_v56, %v15631_v38 }
 0x192   :  { %13423 = vmatmul.mubr.msk.bf16.vlgmr.msra.gmra.mxu0 %vm732_vm1, %v15708_v43 }
 0x193   :  { %13433 = vmatpush3.bf16.msra.mxu0 %v1087_v48  ;;  %13434 = vmatprep.mubr.msk.bf16.mxu0 %vm15455_vm0, %v18078_v1 }
 0x194   :  { %13444 = vmatprep.subr.bf16.mxu0 %v18078_v1 }
 0x196   :  { %13429 = vmatmul.mubr.msk.bf16.vlgmr.msra.gmra.mxu1 %vm732_vm1, %v15727_v52 }
 0x197   :  { %13439 = vmatpush3.bf16.msra.mxu1 %v1133_v53  ;;  %13440 = vmatprep.mubr.msk.bf16.mxu1 %vm15455_vm0, %v18078_v1  ;;  %v15767_v53 = vrot.slane %v685_v39, %v15631_v38 }
 0x198   :  { %13450 = vmatprep.subr.bf16.mxu1 %v18078_v1 }
 0x242   :  { %v773_v8 = vpop.f32.mrf.mxu0 }
 0x243   :  { %v774_v9 = vadd.f32 %v773_v8, %v15745_v6 }
 0x244   :  { %v13400_v15 = vpop.f32.mrf.mxu0 }
 0x245   :  { %v1010_v16 = vsel %vm1009_vm3, %v774_v9, -inf }
 0x246   :  { %v819_v17 = vpop.f32.mrf.mxu1  ;;  %1011 = vmax.xlane.f32.xlu0 %v1010_v16  ;;  %v776_v18 = vpop.f32.mrf.mxu0 }
 0x247   :  { %v820_v19 = vadd.f32 %v819_v17, %v15750_v10 }
 0x248   :  { %v13401_v26 = vpop.f32.mrf.mxu0  ;;  %v13406_v27 = vpop.f32.mrf.mxu1 }
 0x249   :  { %v1013_v28 = vsel %vm1009_vm3, %v820_v19, -inf }
 0x24a   :  { %v822_v29 = vpop.f32.mrf.mxu1  ;;  %1014 = vmax.xlane.f32.xlu0 %v1013_v28  ;;  %v865_v30 = vpop.f32.mrf.mxu0 }
 0x24b   :  { %v866_v33 = vadd.f32 %v865_v30, %v15755_v20 }
 0x24c   :  { %v13407_v44 = vpop.f32.mrf.mxu1  ;;  %v13412_v42 = vpop.f32.mrf.mxu0 }
 0x24d   :  { %v1016_v45 = vsel %vm1009_vm3, %v866_v33, -inf }
 0x24e   :  { %v911_v48 = vpop.f32.mrf.mxu1  ;;  %1017 = vmax.xlane.f32.xlu1 %v1016_v45  ;;  %v868_v50 = vpop.f32.mrf.mxu0 }
 0x24f   :  { %v912_v51 = vadd.f32 %v911_v48, %v15761_v34 }
 0x250   :  { %v13413_v57 = vpop.f32.mrf.mxu0  ;;  %v13418_v58 = vpop.f32.mrf.mxu1 }
 0x251   :  { %v1019_v60 = vsel %vm1009_vm3, %v912_v51, -inf }
 0x252   :  { %v914_v63 = vpop.f32.mrf.mxu1  ;;  %1020 = vmax.xlane.f32.xlu1 %v1019_v60  ;;  %v957_v3 = vpop.f32.mrf.mxu0 }
 0x253   :  { %v958_v4 = vadd.f32 %v957_v3, %v15767_v53 }
 0x254   :  { %v13419_v7 = vpop.f32.mrf.mxu1  ;;  %v13424_v8 = vpop.f32.mrf.mxu0 }
 0x255   :  { %v1022_v12 = vsel %vm1009_vm3, %v958_v4, -inf }
 0x256   :  { %v1003_v14 = vpop.f32.mrf.mxu1  ;;  %1023 = vmax.xlane.f32.xlu0 %v1022_v12  ;;  %v960_v15 = vpop.f32.mrf.mxu0 }
 0x257   :  { %v1004_v16 = vadd.f32 %v1003_v14, %v15773_v5 }
 0x258   :  { %v13425_v17 = vpop.f32.mrf.mxu0  ;;  %v13430_v18 = vpop.f32.mrf.mxu1 }
 0x259   :  { %v1025_v21 = vsel %vm1009_vm3, %v1004_v16, -inf }
 0x25a   :  { %v1006_v22 = vpop.f32.mrf.mxu1  ;;  %1026 = vmax.xlane.f32.xlu1 %v1025_v21 }
 0x25c   :  { %v13431_v26 = vpop.f32.mrf.mxu1 }
 0x2cf   :  { %v1012_v27 = vpop.xlane.xlu0 %1011 }
 0x2d0   :  { %v1028_v28 = vsub.f32 %v774_v9, %v1012_v27 }
 0x2d2   :  { %v1034_v29 = vmul.f32 1.442695, %v1028_v28 }
 0x2d3   :  { %v1015_v30 = vpop.xlane.xlu0 %1014 }
 0x2d4   :  { %14776 = vpow2.f32 %v1034_v29  ;;  %v1029_v39 = vsub.f32 %v820_v19, %v1015_v30  ;;  %v15816_v29 = vpack.c.bf16 %v15689_v25, %v15689_v25 }
 0x2d6   :  { %v1036_v41 = vmul.f32 1.442695, %v1029_v39 }
 0x2d7   :  { %v1018_v44 = vpop.xlane.xlu1 %1017 }
 0x2d8   :  { %14778 = vpow2.f32 %v1036_v41  ;;  %v1030_v42 = vsub.f32 %v866_v33, %v1018_v44 }
 0x2da   :  { %v1038_v45 = vmul.f32 1.442695, %v1030_v42  ;;  %v15820_v42 = vpack.c.bf16 %v15706_v40, %v15706_v40 }
 0x2db   :  { %v1021_v48 = vpop.xlane.xlu1 %1020 }
 0x2dc   :  { %14780 = vpow2.f32 %v1038_v45  ;;  %v1031_v50 = vsub.f32 %v912_v51, %v1021_v48  ;;  %v1179_v45 = vsel %vm1085_vm2, %v15816_v29, 0  ;;  %v1225_v40 = vsel %vm1085_vm2, %v15820_v42, 0 }
 0x2de   :  { %v1040_v56 = vmul.f32 1.442695, %v1031_v50 }
 0x2df   :  { %v1024_v57 = vpop.xlane.xlu0 %1023 }
 0x2e0   :  { %14782 = vpow2.f32 %v1040_v56  ;;  %v1032_v58 = vsub.f32 %v958_v4, %v1024_v57  ;;  %v15830_v56 = vpack.c.bf16 %v15721_v49, %v15721_v49 }
 0x2e1   :  { %v14777_v60 = vpop.eup %14776 }
 0x2e2   :  { %v1042_v63 = vmul.f32 1.442695, %v1032_v58  ;;  %v1046_v9 = vsel %vm1009_vm3, %v14777_v60, 0.0  ;;  %v1271_v49 = vsel %vm1085_vm2, %v15830_v56, 0 }
 0x2e3   :  { %1047 = vadd.xlane.f32.xlu0 %v1046_v9  ;;  %v1027_v14 = vpop.xlane.xlu1 %1026 }
 0x2e4   :  { %14784 = vpow2.f32 %v1042_v63  ;;  %v1033_v15 = vsub.f32 %v1004_v16, %v1027_v14  ;;  %v15840_v63 = vpack.c.bf16 %v15731_v55, %v15731_v55 }
 0x2e5   :  { %v14779_v3 = vpop.eup %14778 }
 0x2e6   :  { %v1049_v19 = vsel %vm1009_vm3, %v14779_v3, 0.0  ;;  %v1044_v17 = vmul.f32 1.442695, %v1033_v15  ;;  %v1317_v55 = vsel %vm1085_vm2, %v15840_v63, 0 }
 0x2e7   :  { %1050 = vadd.xlane.f32.xlu1 %v1049_v19 }
 0x2e8   :  { %14786 = vpow2.f32 %v1044_v17 }
 0x2e9   :  { %v14781_v7 = vpop.eup %14780 }
 0x2ea   :  { %v1052_v33 = vsel %vm1009_vm3, %v14781_v7, 0.0 }
 0x2eb   :  { %1053 = vadd.xlane.f32.xlu0 %v1052_v33 }
 0x2ed   :  { %v14783_v8 = vpop.eup %14782 }
 0x2ee   :  { %v1055_v51 = vsel %vm1009_vm3, %v14783_v8, 0.0 }
 0x2ef   :  { %1056 = vadd.xlane.f32.xlu1 %v1055_v51 }
 0x2f1   :  { %v15782_v12 = vpop.eup %14784 }
 0x2f2   :  { %v1058_v4 = vsel %vm1009_vm3, %v15782_v12, 0.0 }
 0x2f3   :  { %1059 = vadd.xlane.f32.xlu0 %v1058_v4 }
 0x2f5   :  { %v15800_v18 = vpop.eup %14786 }
 0x2f6   :  { %v1061_v21 = vsel %vm1009_vm3, %v15800_v18, 0.0 }
 0x300   :  { %1414 = vrot.lane.b32.xlu1 %v15647_v54, %s15457_s10 }
 0x304   :  { %1362 = vrot.lane.b32.xlu1 %v15656_v61, %s15457_s10 }
 0x309   :  { %1364 = vrot.lane.b32.xlu0 %v15641_v47, %s15457_s10 }
 0x30d   :  { %1464 = vrot.lane.b32.xlu0 %v15659_v2, %s15457_s10 }
 0x311   :  { %1462 = vrot.lane.b32.xlu0 %v15684_v23, %s15457_s10 }
 0x315   :  { %1564 = vrot.lane.b32.xlu0 %v15686_v24, %s15457_s10 }
 0x319   :  { %1562 = vrot.lane.b32.xlu0 %v15708_v43, %s15457_s10 }
 0x328   :  { %1062 = vadd.xlane.f32.xlu1 %v1061_v21 }
 0x339   :  { %1412 = vrot.lane.b32.xlu1 %v15671_v11, %s15457_s10 }
 0x33d   :  { %1514 = vrot.lane.b32.xlu1 %v15673_v13, %s15457_s10 }
 0x341   :  { %1512 = vrot.lane.b32.xlu1 %v15696_v31, %s15457_s10 }
 0x345   :  { %1614 = vrot.lane.b32.xlu1 %v15703_v35, %s15457_s10 }
 0x349   :  { %1612 = vrot.lane.b32.xlu1 %v15727_v52, %s15457_s10 }
 0x36c   :  { %v1048_v16 = vpop.xlane.xlu0 %1047 }
 0x36d   :  { %14788 = vrcp.f32 %v1048_v16 }
 0x370   :  { %v1051_v22 = vpop.xlane.xlu1 %1050 }
 0x371   :  { %14790 = vrcp.f32 %v1051_v22 }
 0x374   :  { %v1054_v26 = vpop.xlane.xlu0 %1053 }
 0x375   :  { %14792 = vrcp.f32 %v1054_v26 }
 0x378   :  { %v1057_v27 = vpop.xlane.xlu1 %1056 }
 0x379   :  { %14794 = vrcp.f32 %v1057_v27 }
 0x37a   :  { %v14789_v28 = vpop.eup %14788 }
 0x37b   :  { %v1070_v30 = vmul.f32 %v14789_v28, %v14777_v60 }
 0x37c   :  { %v1060_v39 = vpop.xlane.xlu0 %1059  ;;  %v1415_v4 = vpop.permute.xlu1 %1414 }
 0x37d   :  { %14796 = vrcp.f32 %v1060_v39  ;;  %v1076_v41 = vpack.c.bf16 %v1070_v30, %v1070_v30 }
 0x37e   :  { %v14791_v44 = vpop.eup %14790 }
 0x37f   :  { %13435 = vmatmul.mubr.msk.bf16.vlgmr.msra.gmra.mxu0 %vm1009_vm3, %v1076_v41  ;;  %v1071_v48 = vmul.f32 %v14791_v44, %v14779_v3  ;;  %v1420_v41 = vsel %vm732_vm1, %v1415_v4, 0 }
 0x380   :  { %13445 = vmatpush3.bf16.msra.mxu0 %v1179_v45  ;;  %13446 = vmatprep.mubr.msk.bf16.mxu0 %vm15455_vm0, %v18078_v1 }
 0x381   :  { %v1077_v25 = vpack.c.bf16 %v1071_v48, %v1071_v48  ;;  %13456 = vmatprep.subr.bf16.mxu0 %v18078_v1 }
 0x382   :  { %v14793_v50 = vpop.eup %14792 }
 0x383   :  { %13441 = vmatmul.mubr.msk.bf16.vlgmr.msra.gmra.mxu1 %vm1009_vm3, %v1077_v25  ;;  %v1072_v57 = vmul.f32 %v14793_v50, %v14781_v7  ;;  %v1365_v7 = vpop.permute.xlu0 %1364 }
 0x384   :  { %13451 = vmatpush3.bf16.msra.mxu1 %v1225_v40  ;;  %13452 = vmatprep.mubr.msk.bf16.mxu1 %vm15455_vm0, %v18078_v1  ;;  %v1370_v51 = vsel %vm732_vm1, %v1365_v7, 0 }
 0x385   :  { %v1078_v58 = vpack.c.bf16 %v1072_v57, %v1072_v57  ;;  %13462 = vmatprep.subr.bf16.mxu1 %v18078_v1 }
 0x386   :  { %v14795_v60 = vpop.eup %14794 }
 0x387   :  { %13447 = vmatmul.mubr.msk.bf16.vlgmr.msra.gmra.mxu0 %vm1009_vm3, %v1078_v58  ;;  %v1073_v9 = vmul.f32 %v14795_v60, %v14783_v8  ;;  %v1465_v14 = vpop.permute.xlu0 %1464 }
 0x388   :  { %13457 = vmatpush3.bf16.msra.mxu0 %v1271_v49  ;;  %13458 = vmatprep.mubr.msk.bf16.mxu0 %vm15455_vm0, %v18078_v1  ;;  %v1470_v17 = vsel %vm732_vm1, %v1465_v14, 0 }
 0x389   :  { %v1079_v3 = vpack.c.bf16 %v1073_v9, %v1073_v9  ;;  %13468 = vmatprep.subr.bf16.mxu0 %v18078_v1 }
 0x38a   :  { %v14797_v19 = vpop.eup %14796 }
 0x38b   :  { %13453 = vmatmul.mubr.msk.bf16.vlgmr.msra.gmra.mxu1 %vm1009_vm3, %v1079_v3  ;;  %v1074_v33 = vmul.f32 %v14797_v19, %v15782_v12  ;;  %v1363_v12 = vpop.permute.xlu1 %1362  ;;  %v1463_v15 = vpop.permute.xlu0 %1462 }
 0x38c   :  { %13463 = vmatpush3.bf16.msra.mxu1 %v1317_v55  ;;  %13464 = vmatprep.mubr.msk.bf16.mxu1 %vm15455_vm0, %v18078_v1 }
 0x38d   :  { %v1080_v8 = vpack.c.bf16 %v1074_v33, %v1074_v33  ;;  %13474 = vmatprep.subr.bf16.mxu1 %v18078_v1 }
 0x38f   :  { %13459 = vmatmul.mubr.msk.bf16.vlgmr.msra.gmra.mxu0 %vm1009_vm3, %v1080_v8  ;;  %v1565_v21 = vpop.permute.xlu0 %1564 }
 0x390   :  { %13469 = vmatpush3.bf16.xpose.msra.mxu0 %v1370_v51  ;;  %13470 = vmatprep.mubr.msk.bf16.mxu0 %vm15455_vm0, %v18078_v1  ;;  %v1570_v16 = vsel %vm732_vm1, %v1565_v21, 0 }
 0x391   :  { %13480 = vmatprep.subr.bf16.mxu0 %v18078_v1 }
 0x393   :  { %v1563_v22 = vpop.permute.xlu0 %1562 }
 0x397   :  { %13471 = vmatmul.mubr.msk.bf16.vlgmr.msra.gmra.mxu0 %vm732_vm1, %v1363_v12 }
 0x398   :  { %13481 = vmatpush3.bf16.xpose.msra.mxu0 %v1470_v17  ;;  %13482 = vmatprep.mubr.msk.bf16.mxu0 %vm15455_vm0, %v18078_v1 }
 0x399   :  { %13492 = vmatprep.subr.bf16.mxu0 %v18078_v1 }
 0x39f   :  { %13483 = vmatmul.mubr.msk.bf16.vlgmr.msra.gmra.mxu0 %vm732_vm1, %v1463_v15 }
 0x3a0   :  { %13493 = vmatpush3.bf16.xpose.msra.mxu0 %v1570_v16  ;;  %13494 = vmatprep.mubr.msk.bf16.mxu0 %vm15455_vm0, %v18078_v1 }
 0x3a1   :  { %13504 = vmatprep.subr.bf16.mxu0 %v18078_v1 }
 0x3a7   :  { %13495 = vmatmul.mubr.msk.bf16.vlgmr.msra.gmra.mxu0 %vm732_vm1, %v1563_v22 }
 0x3a8   :  { %13506 = vmatprep.mubr.msk.bf16.mxu0 %vm15455_vm0, %v18078_v1 }
 0x3b1   :  { %v1063_v26 = vpop.xlane.xlu1 %1062 }
 0x3b2   :  { %14798 = vrcp.f32 %v1063_v26 }
 0x3b5   :  { %v1413_v28 = vpop.permute.xlu1 %1412 }
 0x3b9   :  { %v1515_v44 = vpop.permute.xlu1 %1514 }
 0x3ba   :  { %v1520_v48 = vsel %vm732_vm1, %v1515_v44, 0 }
 0x3bd   :  { %v1513_v45 = vpop.permute.xlu1 %1512 }
 0x3bf   :  { %v14799_v27 = vpop.eup %14798 }
 0x3c0   :  { %v1075_v30 = vmul.f32 %v14799_v27, %v15800_v18 }
 0x3c1   :  { %v1615_v18 = vpop.permute.xlu1 %1614 }
 0x3c2   :  { %v1081_v39 = vpack.c.bf16 %v1075_v30, %v1075_v30  ;;  %v1620_v25 = vsel %vm732_vm1, %v1615_v18, 0 }
 0x3c4   :  { %13465 = vmatmul.mubr.msk.bf16.vlgmr.msra.gmra.mxu1 %vm1009_vm3, %v1081_v39 }
 0x3c5   :  { %13475 = vmatpush3.bf16.xpose.msra.mxu1 %v1420_v41  ;;  %13476 = vmatprep.mubr.msk.bf16.mxu1 %vm15455_vm0, %v18078_v1  ;;  %v1613_v50 = vpop.permute.xlu1 %1612 }
 0x3c6   :  { %13486 = vmatprep.subr.bf16.mxu1 %v18078_v1 }
 0x3cc   :  { %13477 = vmatmul.mubr.msk.bf16.vlgmr.msra.gmra.mxu1 %vm732_vm1, %v1413_v28 }
 0x3cd   :  { %13487 = vmatpush3.bf16.xpose.msra.mxu1 %v1520_v48  ;;  %13488 = vmatprep.mubr.msk.bf16.mxu1 %vm15455_vm0, %v18078_v1 }
 0x3ce   :  { %13498 = vmatprep.subr.bf16.mxu1 %v18078_v1 }
 0x3d4   :  { %13489 = vmatmul.mubr.msk.bf16.vlgmr.msra.gmra.mxu1 %vm732_vm1, %v1513_v45 }
 0x3d5   :  { %13499 = vmatpush3.bf16.xpose.msra.mxu1 %v1620_v25  ;;  %13500 = vmatprep.mubr.msk.bf16.mxu1 %vm15455_vm0, %v18078_v1 }
 0x3d6   :  { %13510 = vmatprep.subr.bf16.mxu1 %v18078_v1 }
 0x3dc   :  { %13501 = vmatmul.mubr.msk.bf16.vlgmr.msra.gmra.mxu1 %vm732_vm1, %v1613_v50 }
 0x3dd   :  { %13512 = vmatprep.mubr.msk.bf16.mxu1 %vm15455_vm0, %v18078_v1 }
 0x43f   :  { %v15892_v40 = vpop.f32.mrf.mxu0 }
 0x441   :  { %v13436_v57 = vpop.f32.mrf.mxu0 }
 0x443   :  { %v1126_v58 = vpop.f32.mrf.mxu0  ;;  %v15894_v60 = vpop.f32.mrf.mxu1 }
 0x444   :  { %v1359_v49 = vpack.c.bf16 %v15894_v60, %v15892_v40 }
 0x445   :  { %v13437_v9 = vpop.f32.mrf.mxu0  ;;  %v13442_v3 = vpop.f32.mrf.mxu1 }
 0x447   :  { %v1172_v19 = vpop.f32.mrf.mxu1  ;;  %v15898_v7 = vpop.f32.mrf.mxu0 }
 0x449   :  { %v13443_v55 = vpop.f32.mrf.mxu1  ;;  %v13448_v33 = vpop.f32.mrf.mxu0 }
 0x44b   :  { %v1218_v8 = vpop.f32.mrf.mxu0  ;;  %v15900_v51 = vpop.f32.mrf.mxu1 }
 0x44c   :  { %v1360_v4 = vpack.c.bf16 %v15900_v51, %v15898_v7 }
 0x44d   :  { %v13449_v14 = vpop.f32.mrf.mxu0  ;;  %v13454_v12 = vpop.f32.mrf.mxu1 }
 0x44f   :  { %v1264_v15 = vpop.f32.mrf.mxu1  ;;  %v15904_v17 = vpop.f32.mrf.mxu0 }
 0x451   :  { %v13455_v21 = vpop.f32.mrf.mxu1  ;;  %v13460_v16 = vpop.f32.mrf.mxu0 }
 0x453   :  { %v1310_v22 = vpop.f32.mrf.mxu0 }
 0x455   :  { %v13461_v26 = vpop.f32.mrf.mxu0 }
 0x457   :  { %v1406_v27 = vpop.f32.mrf.mxu0 }
 0x458   :  { %v1407_v28 = vadd.f32 %v1406_v27, %v15745_v6 }
 0x459   :  { %v13472_v30 = vpop.f32.mrf.mxu0 }
 0x45a   :  { %v1662_v39 = vsel %vm1009_vm3, %v1407_v28, -inf }
 0x45b   :  { %1663 = vmax.xlane.f32.xlu0 %v1662_v39  ;;  %v1409_v41 = vpop.f32.mrf.mxu0 }
 0x45d   :  { %v13473_v44 = vpop.f32.mrf.mxu0 }
 0x45f   :  { %v1506_v45 = vpop.f32.mrf.mxu0 }
 0x460   :  { %v1507_v48 = vadd.f32 %v1506_v45, %v15755_v20 }
 0x461   :  { %v13484_v18 = vpop.f32.mrf.mxu0 }
 0x462   :  { %v1668_v25 = vsel %vm1009_vm3, %v1507_v48, -inf }
 0x463   :  { %1669 = vmax.xlane.f32.xlu0 %v1668_v25  ;;  %v1509_v50 = vpop.f32.mrf.mxu0 }
 0x465   :  { %v13485_v57 = vpop.f32.mrf.mxu0 }
 0x467   :  { %v1606_v58 = vpop.f32.mrf.mxu0 }
 0x468   :  { %v1607_v44 = vadd.f32 %v1606_v58, %v15767_v53 }
 0x469   :  { %v13496_v9 = vpop.f32.mrf.mxu0 }
 0x46a   :  { %v1674_v50 = vsel %vm1009_vm3, %v1607_v44, -inf }
 0x46b   :  { %v1609_v3 = vpop.f32.mrf.mxu0 }
 0x46d   :  { %v13497_v19 = vpop.f32.mrf.mxu0 }
 0x484   :  { %v15910_v55 = vpop.f32.mrf.mxu1 }
 0x485   :  { %v1361_v33 = vpack.c.bf16 %v15910_v55, %v15904_v17 }
 0x486   :  { %v13466_v8 = vpop.f32.mrf.mxu1 }
 0x488   :  { %v1356_v14 = vpop.f32.mrf.mxu1 }
 0x48a   :  { %v13467_v12 = vpop.f32.mrf.mxu1 }
 0x48c   :  { %v1456_v15 = vpop.f32.mrf.mxu1 }
 0x48d   :  { %v1457_v21 = vadd.f32 %v1456_v15, %v15750_v10 }
 0x48e   :  { %v13478_v16 = vpop.f32.mrf.mxu1 }
 0x48f   :  { %v1665_v22 = vsel %vm1009_vm3, %v1457_v21, -inf }
 0x490   :  { %1666 = vmax.xlane.f32.xlu1 %v1665_v22  ;;  %v1459_v26 = vpop.f32.mrf.mxu1 }
 0x492   :  { %v13479_v27 = vpop.f32.mrf.mxu1 }
 0x494   :  { %v1556_v30 = vpop.f32.mrf.mxu1 }
 0x495   :  { %v1557_v39 = vadd.f32 %v1556_v30, %v15761_v34 }
 0x496   :  { %v13490_v41 = vpop.f32.mrf.mxu1 }
 0x497   :  { %v1671_v45 = vsel %vm1009_vm3, %v1557_v39, -inf }
 0x498   :  { %v1559_v18 = vpop.f32.mrf.mxu1  ;;  %1672 = vmax.xlane.f32.xlu0 %v1671_v45 }
 0x49a   :  { %v13491_v25 = vpop.f32.mrf.mxu1 }
 0x49c   :  { %v1656_v57 = vpop.f32.mrf.mxu1  ;;  %1675 = vmax.xlane.f32.xlu0 %v1674_v50 }
 0x49d   :  { %v1657_v9 = vadd.f32 %v1656_v57, %v15773_v5 }
 0x49e   :  { %v13502_v3 = vpop.f32.mrf.mxu1 }
 0x49f   :  { %v1677_v19 = vsel %vm1009_vm3, %v1657_v9, -inf }
 0x4a0   :  { %1678 = vmax.xlane.f32.xlu1 %v1677_v19  ;;  %v1659_v8 = vpop.f32.mrf.mxu1 }
 0x4a2   :  { %v13503_v14 = vpop.f32.mrf.mxu1 }
 0x4b1   :  { %1782 = vrot.lane.b32.xlu1 %v15716_v46, %s15457_s10 }
 0x4b5   :  { %1830 = vrot.lane.b32.xlu1 %v15816_v29, %s15457_s10 }
 0x4b9   :  { %1878 = vrot.lane.b32.xlu1 %v15820_v42, %s15457_s10 }
 0x4e4   :  { %v1664_v58 = vpop.xlane.xlu0 %1663 }
 0x4e5   :  { %v1680_v12 = vsub.f32 %v1407_v28, %v1664_v58 }
 0x4e7   :  { %v1686_v15 = vmul.f32 1.442695, %v1680_v12 }
 0x4e9   :  { %14800 = vpow2.f32 %v1686_v15 }
 0x4ec   :  { %v1670_v26 = vpop.xlane.xlu0 %1669 }
 0x4ed   :  { %v1682_v27 = vsub.f32 %v1507_v48, %v1670_v26 }
 0x4ef   :  { %v1690_v30 = vmul.f32 1.442695, %v1682_v27 }
 0x4f1   :  { %14802 = vpow2.f32 %v1690_v30 }
 0x4f6   :  { %v15928_v16 = vpop.eup %14800 }
 0x4f7   :  { %v1698_v22 = vsel %vm1009_vm3, %v15928_v16, 0.0 }
 0x4f8   :  { %1699 = vadd.xlane.f32.xlu0 %v1698_v22 }
 0x4fe   :  { %v15934_v8 = vpop.eup %14802 }
 0x50e   :  { %1734 = vrot.lane.b32.xlu0 %v15700_v32, %s15457_s10 }
 0x519   :  { %v1667_v41 = vpop.xlane.xlu1 %1666 }
 0x51a   :  { %v1681_v45 = vsub.f32 %v1457_v21, %v1667_v41  ;;  %v1704_v21 = vsel %vm1009_vm3, %v15934_v8, 0.0 }
 0x51c   :  { %v1688_v18 = vmul.f32 1.442695, %v1681_v45 }
 0x51e   :  { %14804 = vpow2.f32 %v1688_v18 }
 0x521   :  { %v1673_v28 = vpop.xlane.xlu0 %1672 }
 0x522   :  { %v1683_v25 = vsub.f32 %v1557_v39, %v1673_v28 }
 0x524   :  { %v1692_v50 = vmul.f32 1.442695, %v1683_v25 }
 0x525   :  { %v1676_v57 = vpop.xlane.xlu0 %1675 }
 0x526   :  { %14806 = vpow2.f32 %v1692_v50  ;;  %v1684_v3 = vsub.f32 %v1607_v44, %v1676_v57 }
 0x528   :  { %v1694_v19 = vmul.f32 1.442695, %v1684_v3 }
 0x529   :  { %v1679_v14 = vpop.xlane.xlu1 %1678 }
 0x52a   :  { %14808 = vpow2.f32 %v1694_v19  ;;  %v1685_v58 = vsub.f32 %v1657_v9, %v1679_v14 }
 0x52b   :  { %v14805_v12 = vpop.eup %14804 }
 0x52c   :  { %v1696_v48 = vmul.f32 1.442695, %v1685_v58  ;;  %v1701_v15 = vsel %vm1009_vm3, %v14805_v12, 0.0 }
 0x52d   :  { %1702 = vadd.xlane.f32.xlu1 %v1701_v15  ;;  %v1783_v22 = vpop.permute.xlu1 %1782  ;;  %1705 = vadd.xlane.f32.xlu0 %v1704_v21 }
 0x52e   :  { %14810 = vpow2.f32 %v1696_v48  ;;  %v1788_v39 = vsel %vm1085_vm2, %v1783_v22, 0 }
 0x52f   :  { %13511 = vmatpush3.bf16.msra.mxu1 %v1788_v39 }
 0x530   :  { %13522 = vmatprep.subr.bf16.mxu1 %v18078_v1 }
 0x531   :  { %v1831_v57 = vpop.permute.xlu1 %1830 }
 0x532   :  { %v1836_v19 = vsel %vm1085_vm2, %v1831_v57, 0 }
 0x533   :  { %v15941_v44 = vpop.eup %14806 }
 0x534   :  { %v1707_v9 = vsel %vm1009_vm3, %v15941_v44, 0.0 }
 0x535   :  { %1708 = vadd.xlane.f32.xlu1 %v1707_v9  ;;  %v1879_v14 = vpop.permute.xlu1 %1878 }
 0x537   :  { %v15945_v26 = vpop.eup %14808 }
 0x538   :  { %v1710_v27 = vsel %vm1009_vm3, %v15945_v26, 0.0 }
 0x539   :  { %1711 = vadd.xlane.f32.xlu0 %v1710_v27 }
 0x53b   :  { %v15949_v30 = vpop.eup %14810 }
 0x53c   :  { %v1713_v41 = vsel %vm1009_vm3, %v15949_v30, 0.0 }
 0x53d   :  { %1714 = vadd.xlane.f32.xlu1 %v1713_v41 }
 0x54e   :  { %1974 = vrot.lane.b32.xlu1 %v15840_v63, %s15457_s10 }
 0x54f   :  { %1926 = vrot.lane.b32.xlu0 %v15830_v56, %s15457_s10 }
 0x552   :  { %2233 = vrot.lane.b32.xlu1 %v15647_v54, %s15438_s30 }
 0x553   :  { %2183 = vrot.lane.b32.xlu0 %v15641_v47, %s15438_s30 }
 0x556   :  { %2231 = vrot.lane.b32.xlu1 %v15671_v11, %s15438_s30 }
 0x557   :  { %2181 = vrot.lane.b32.xlu0 %v15656_v61, %s15438_s30 }
 0x55a   :  { %2333 = vrot.lane.b32.xlu1 %v15673_v13, %s15438_s30 }
 0x55b   :  { %2283 = vrot.lane.b32.xlu0 %v15659_v2, %s15438_s30 }
 0x55e   :  { %2331 = vrot.lane.b32.xlu1 %v15696_v31, %s15438_s30 }
 0x55f   :  { %2281 = vrot.lane.b32.xlu0 %v15684_v23, %s15438_s30 }
 0x562   :  { %2433 = vrot.lane.b32.xlu1 %v15703_v35, %s15438_s30 }
 0x563   :  { %2383 = vrot.lane.b32.xlu0 %v15686_v24, %s15438_s30 }
 0x566   :  { %2431 = vrot.lane.b32.xlu1 %v15727_v52, %s15438_s30 }
 0x567   :  { %2381 = vrot.lane.b32.xlu0 %v15708_v43, %s15438_s30 }
 0x581   :  { %v1700_v45 = vpop.xlane.xlu0 %1699 }
 0x582   :  { %14812 = vrcp.f32 %v1700_v45 }
 0x585   :  { %v1735_v18 = vpop.permute.xlu0 %1734 }
 0x586   :  { %v1740_v28 = vsel %vm1085_vm2, %v1735_v18, 0 }
 0x587   :  { %13505 = vmatpush3.bf16.msra.mxu0 %v1740_v28 }
 0x588   :  { %13516 = vmatprep.subr.bf16.mxu0 %v18078_v1 }
 0x58f   :  { %v14813_v25 = vpop.eup %14812 }
 0x590   :  { %v1722_v50 = vmul.f32 %v14813_v25, %v15928_v16  ;;  %v1884_v25 = vsel %vm1085_vm2, %v1879_v14, 0 }
 0x592   :  { %v1728_v3 = vpack.c.bf16 %v1722_v50, %v1722_v50 }
 0x594   :  { %13507 = vmatmul.mubr.msk.bf16.vlgmr.msra.gmra.mxu0 %vm1009_vm3, %v1728_v3 }
 0x595   :  { %13517 = vmatpush3.bf16.msra.mxu0 %v1836_v19  ;;  %13518 = vmatprep.mubr.msk.bf16.mxu0 %vm15455_vm0, %v18078_v1 }
 0x596   :  { %13528 = vmatprep.subr.bf16.mxu0 %v18078_v1 }
 0x5b6   :  { %v1703_v58 = vpop.xlane.xlu1 %1702  ;;  %v1706_v48 = vpop.xlane.xlu0 %1705 }
 0x5b7   :  { %14814 = vrcp.f32 %v1703_v58 }
 0x5b8   :  { %14816 = vrcp.f32 %v1706_v48 }
 0x5be   :  { %v1709_v15 = vpop.xlane.xlu1 %1708 }
 0x5bf   :  { %14818 = vrcp.f32 %v1709_v15  ;;  %v14487_v15 = vld [vmem:[#allocation14 + $0x8] sm:$0xff]  }
 0x5c2   :  { %v1712_v16 = vpop.xlane.xlu0 %1711 }
 0x5c3   :  { %14820 = vrcp.f32 %v1712_v16 }
 0x5c4   :  { %v14815_v21 = vpop.eup %14814 }
 0x5c5   :  { %v14817_v22 = vpop.eup %14816  ;;  %v1723_v39 = vmul.f32 %v14815_v21, %v14805_v12  ;;  %v14489_v21 = vld [vmem:[#allocation14 + $0x18] sm:$0xff]  }
 0x5c6   :  { %v1715_v9 = vpop.xlane.xlu1 %1714  ;;  %v1927_v27 = vpop.permute.xlu0 %1926  ;;  %v1724_v41 = vmul.f32 %v14817_v22, %v15934_v8  ;;  %v14490_v22 = vld [vmem:[#allocation14 + $0x10] sm:$0xff]  }
 0x5c7   :  { %14822 = vrcp.f32 %v1715_v9  ;;  %v1729_v45 = vpack.c.bf16 %v1723_v39, %v1723_v39  ;;  %v1932_v18 = vsel %vm1085_vm2, %v1927_v27, 0 }
 0x5c8   :  { %v1730_v28 = vpack.c.bf16 %v1724_v41, %v1724_v41 }
 0x5c9   :  { %13513 = vmatmul.mubr.msk.bf16.vlgmr.msra.gmra.mxu1 %vm1009_vm3, %v1729_v45 }
 0x5ca   :  { %13519 = vmatmul.mubr.msk.bf16.vlgmr.msra.gmra.mxu0 %vm1009_vm3, %v1730_v28  ;;  %13523 = vmatpush3.bf16.msra.mxu1 %v1884_v25  ;;  %v1975_v50 = vpop.permute.xlu1 %1974  ;;  %v2184_v41 = vpop.permute.xlu0 %2183 }
 0x5cb   :  { %13529 = vmatpush3.bf16.msra.mxu0 %v1932_v18  ;;  %13524 = vmatprep.mubr.msk.bf16.mxu1 %vm15455_vm0, %v18078_v1  ;;  %v1980_v19 = vsel %vm1085_vm2, %v1975_v50, 0 }
 0x5cc   :  { %v14819_v12 = vpop.eup %14818  ;;  %13534 = vmatprep.subr.bf16.mxu1 %v18078_v1  ;;  %13530 = vmatprep.mubr.msk.bf16.mxu0 %vm15455_vm0, %v18078_v1 }
 0x5cd   :  { %v1725_v8 = vmul.f32 %v14819_v12, %v15941_v44  ;;  %13540 = vmatprep.subr.bf16.mxu0 %v18078_v1  ;;  %v2189_v12 = vsel %vm732_vm1, %v2184_v41, 0 }
 0x5cf   :  { %v1731_v57 = vpack.c.bf16 %v1725_v8, %v1725_v8 }
 0x5d0   :  { %v14821_v3 = vpop.eup %14820 }
 0x5d1   :  { %13525 = vmatmul.mubr.msk.bf16.vlgmr.msra.gmra.mxu1 %vm1009_vm3, %v1731_v57  ;;  %v1726_v14 = vmul.f32 %v14821_v3, %v15945_v26  ;;  %v14488_v26 = vld [vmem:[#allocation14] sm:$0xff]  }
 0x5d2   :  { %13535 = vmatpush3.bf16.msra.mxu1 %v1980_v19  ;;  %13536 = vmatprep.mubr.msk.bf16.mxu1 %vm15455_vm0, %v18078_v1 }
 0x5d3   :  { %v1732_v58 = vpack.c.bf16 %v1726_v14, %v1726_v14  ;;  %13556 = vmatprep.subr.bf16.mxu1 %v18078_v1 }
 0x5d4   :  { %v14823_v48 = vpop.eup %14822 }
 0x5d5   :  { %13531 = vmatmul.mubr.msk.bf16.vlgmr.msra.gmra.mxu0 %vm1009_vm3, %v1732_v58  ;;  %v1727_v44 = vmul.f32 %v14823_v48, %v15949_v30  ;;  %v2234_v30 = vpop.permute.xlu1 %2233 }
 0x5d6   :  { %13544 = vmatprep.mubr.msk.bf16.mxu0 %vm15455_vm0, %v18078_v1  ;;  %13541 = vmatpush3.bf16.msra.mxu0 %v14489_v21  ;;  %v2239_v39 = vsel %vm732_vm1, %v2234_v30, 0 }
 0x5d7   :  { %v1733_v16 = vpack.c.bf16 %v1727_v44, %v1727_v44  ;;  %13542 = vmatprep.subr.bf16.mxu0 %v18078_v1 }
 0x5d9   :  { %13537 = vmatmul.mubr.msk.bf16.vlgmr.msra.gmra.mxu1 %vm1009_vm3, %v1733_v16  ;;  %v2232_v9 = vpop.permute.xlu1 %2231  ;;  %v2182_v16 = vpop.permute.xlu0 %2181 }
 0x5da   :  { %13557 = vmatpush3.bf16.msra.mxu1 %v14487_v15  ;;  %13560 = vmatprep.mubr.msk.bf16.mxu1 %vm15455_vm0, %v18078_v1 }
 0x5db   :  { %13558 = vmatprep.subr.bf16.mxu1 %v18078_v1  ;;  %13543 = vmatpush3.bf16.msra.mxu0 %v14490_v22 }
 0x5dc   :  { %13572 = vmatprep.subr.bf16.mxu0 %v18078_v1 }
 0x5dd   :  { %v2334_v40 = vpop.permute.xlu1 %2333 }
 0x5de   :  { %13559 = vmatpush3.bf16.msra.mxu1 %v14488_v26 }
 0x5df   :  { %13578 = vmatprep.subr.bf16.mxu1 %v18078_v1 }
 0x5e1   :  { %13561 = vmatmul.mubr.msk.bf16.vlgmr.msra.gmra.mxu1 %vm732_vm1, %v1359_v49  ;;  %v2332_v60 = vpop.permute.xlu1 %2331  ;;  %v2339_v49 = vsel %vm732_vm1, %v2334_v40, 0 }
 0x5e2   :  { %13579 = vmatpush3.bf16.xpose.msra.mxu1 %v2239_v39  ;;  %13564 = vmatprep.mubr.msk.bf16.mxu1 %vm15455_vm0, %v18078_v1 }
 0x5e3   :  { %13590 = vmatprep.subr.bf16.mxu1 %v18078_v1 }
 0x5e5   :  { %v2434_v7 = vpop.permute.xlu1 %2433 }
 0x5e6   :  { %v2439_v51 = vsel %vm732_vm1, %v2434_v7, 0 }
 0x5e9   :  { %13565 = vmatmul.mubr.msk.bf16.gmra.mxu1 %vm732_vm1, %v1360_v4  ;;  %v2432_v4 = vpop.permute.xlu1 %2431 }
 0x5ea   :  { %13568 = vmatprep.mubr.msk.bf16.mxu1 %vm15455_vm0, %v18078_v1 }
 0x5f1   :  { %13569 = vmatmul.mubr.msk.bf16.gmra.mxu1 %vm732_vm1, %v1361_v33 }
 0x5f2   :  { %13580 = vmatprep.mubr.msk.bf16.mxu1 %vm15455_vm0, %v18078_v1 }
 0x5f9   :  { %13581 = vmatmul.mubr.msk.bf16.vlgmr.msra.gmra.mxu1 %vm732_vm1, %v2232_v9 }
 0x5fa   :  { %13591 = vmatpush3.bf16.xpose.msra.mxu1 %v2339_v49  ;;  %13592 = vmatprep.mubr.msk.bf16.mxu1 %vm15455_vm0, %v18078_v1 }
 0x5fb   :  { %13602 = vmatprep.subr.bf16.mxu1 %v18078_v1 }
 0x601   :  { %13593 = vmatmul.mubr.msk.bf16.vlgmr.msra.gmra.mxu1 %vm732_vm1, %v2332_v60  ;;  %v2284_v60 = vpop.permute.xlu0 %2283 }
 0x602   :  { %13603 = vmatpush3.bf16.xpose.msra.mxu1 %v2439_v51  ;;  %13604 = vmatprep.mubr.msk.bf16.mxu1 %vm15455_vm0, %v18078_v1 }
 0x603   :  { %13614 = vmatprep.subr.bf16.mxu1 %v18078_v1 }
 0x609   :  { %13605 = vmatmul.mubr.msk.bf16.vlgmr.msra.gmra.mxu1 %vm732_vm1, %v2432_v4  ;;  %v2282_v4 = vpop.permute.xlu0 %2281 }
 0x60a   :  { %13616 = vmatprep.mubr.msk.bf16.mxu1 %vm15455_vm0, %v18078_v1 }
 0x60d   :  { %v2384_v41 = vpop.permute.xlu0 %2383 }
 0x654   :  { %v1776_v17 = vpop.f32.mrf.mxu0 }
 0x656   :  { %v13508_v55 = vpop.f32.mrf.mxu0 }
 0x657   :  { %v2289_v55 = vsel %vm732_vm1, %v2284_v60, 0 }
 0x658   :  { %v1779_v33 = vpop.f32.mrf.mxu0 }
 0x65a   :  { %v13509_v27 = vpop.f32.mrf.mxu0 }
 0x689   :  { %v1824_v45 = vpop.f32.mrf.mxu1 }
 0x68a   :  { %v2022_v18 = vpack.c.bf16 %v1824_v45, %v1776_v17  ;;  %v1872_v28 = vpop.f32.mrf.mxu0 }
 0x68b   :  { %v13514_v25 = vpop.f32.mrf.mxu1 }
 0x68c   :  { %v13520_v8 = vpop.f32.mrf.mxu0  ;;  %13545 = vmatmul.mubr.msk.bf16.vlgmr.msra.gmra.mxu0 %vm732_vm1, %v2022_v18 }
 0x68d   :  { %13573 = vmatpush3.bf16.xpose.msra.mxu0 %v2189_v12  ;;  %v1827_v50 = vpop.f32.mrf.mxu1  ;;  %13548 = vmatprep.mubr.msk.bf16.mxu0 %vm15455_vm0, %v18078_v1 }
 0x68e   :  { %v1875_v57 = vpop.f32.mrf.mxu0  ;;  %13584 = vmatprep.subr.bf16.mxu0 %v18078_v1  ;;  %v2382_v50 = vpop.permute.xlu0 %2381 }
 0x68f   :  { %v13515_v3 = vpop.f32.mrf.mxu1 }
 0x690   :  { %v13521_v19 = vpop.f32.mrf.mxu0 }
 0x691   :  { %v1920_v14 = vpop.f32.mrf.mxu1 }
 0x692   :  { %v2023_v58 = vpack.c.bf16 %v1920_v14, %v1872_v28  ;;  %v2389_v28 = vsel %vm732_vm1, %v2384_v41, 0 }
 0x693   :  { %v13526_v48 = vpop.f32.mrf.mxu1 }
 0x694   :  { %13549 = vmatmul.mubr.msk.bf16.gmra.mxu0 %vm732_vm1, %v2023_v58 }
 0x695   :  { %v1923_v44 = vpop.f32.mrf.mxu1  ;;  %v1968_v15 = vpop.f32.mrf.mxu0  ;;  %13552 = vmatprep.mubr.msk.bf16.mxu0 %vm15455_vm0, %v18078_v1 }
 0x697   :  { %v13527_v26 = vpop.f32.mrf.mxu1  ;;  %v13532_v21 = vpop.f32.mrf.mxu0 }
 0x699   :  { %v1971_v22 = vpop.f32.mrf.mxu0  ;;  %v2016_v30 = vpop.f32.mrf.mxu1 }
 0x69a   :  { %v2024_v39 = vpack.c.bf16 %v2016_v30, %v1968_v15 }
 0x69b   :  { %v13533_v9 = vpop.f32.mrf.mxu0  ;;  %v13538_v40 = vpop.f32.mrf.mxu1 }
 0x69c   :  { %13553 = vmatmul.mubr.msk.bf16.gmra.mxu0 %vm732_vm1, %v2024_v39 }
 0x69d   :  { %v2019_v49 = vpop.f32.mrf.mxu1  ;;  %13574 = vmatprep.mubr.msk.bf16.mxu0 %vm15455_vm0, %v18078_v1 }
 0x69f   :  { %v13539_v7 = vpop.f32.mrf.mxu1 }
 0x6a1   :  { %v16062_v51 = vpop.f32.mrf.mxu1 }
 0x6a3   :  { %v13562_v17 = vpop.f32.mrf.mxu1 }
 0x6a4   :  { %13575 = vmatmul.mubr.msk.bf16.vlgmr.msra.gmra.mxu0 %vm732_vm1, %v2182_v16 }
 0x6a5   :  { %13585 = vmatpush3.bf16.xpose.msra.mxu0 %v2289_v55  ;;  %v16066_v33 = vpop.f32.mrf.mxu1  ;;  %13586 = vmatprep.mubr.msk.bf16.mxu0 %vm15455_vm0, %v18078_v1 }
 0x6a6   :  { %13596 = vmatprep.subr.bf16.mxu0 %v18078_v1 }
 0x6a7   :  { %v13563_v27 = vpop.f32.mrf.mxu1 }
 0x6a9   :  { %v16071_v45 = vpop.f32.mrf.mxu1 }
 0x6ab   :  { %v13566_v18 = vpop.f32.mrf.mxu1 }
 0x6ac   :  { %13587 = vmatmul.mubr.msk.bf16.vlgmr.msra.gmra.mxu0 %vm732_vm1, %v2282_v4 }
 0x6ad   :  { %13597 = vmatpush3.bf16.xpose.msra.mxu0 %v2389_v28  ;;  %v16075_v25 = vpop.f32.mrf.mxu1  ;;  %13598 = vmatprep.mubr.msk.bf16.mxu0 %vm15455_vm0, %v18078_v1 }
 0x6ae   :  { %13608 = vmatprep.subr.bf16.mxu0 %v18078_v1 }
 0x6af   :  { %v13567_v12 = vpop.f32.mrf.mxu1 }
 0x6b1   :  { %v16080_v8 = vpop.f32.mrf.mxu1 }
 0x6b3   :  { %v13570_v57 = vpop.f32.mrf.mxu1 }
 0x6b4   :  { %13599 = vmatmul.mubr.msk.bf16.vlgmr.msra.gmra.mxu0 %vm732_vm1, %v2382_v50 }
 0x6b5   :  { %v16083_v3 = vpop.f32.mrf.mxu1  ;;  %13610 = vmatprep.mubr.msk.bf16.mxu0 %vm15455_vm0, %v18078_v1 }
 0x6b7   :  { %v13571_v19 = vpop.f32.mrf.mxu1 }
 0x6b9   :  { %v2275_v14 = vpop.f32.mrf.mxu1 }
 0x6ba   :  { %v2276_v58 = vadd.f32 %v2275_v14, %v15750_v10 }
 0x6bb   :  { %v13582_v48 = vpop.f32.mrf.mxu1 }
 0x6bc   :  { %v2484_v44 = vsel %vm1009_vm3, %v2276_v58, -inf }
 0x6bd   :  { %2485 = vmax.xlane.f32.xlu1 %v2484_v44  ;;  %v2278_v15 = vpop.f32.mrf.mxu1 }
 0x6bf   :  { %v13583_v16 = vpop.f32.mrf.mxu1 }
 0x6c1   :  { %v2375_v26 = vpop.f32.mrf.mxu1 }
 0x6c3   :  { %v13594_v21 = vpop.f32.mrf.mxu1 }
 0x6c5   :  { %v2378_v22 = vpop.f32.mrf.mxu1 }
 0x6c7   :  { %v13595_v30 = vpop.f32.mrf.mxu1 }
 0x6c9   :  { %v2475_v39 = vpop.f32.mrf.mxu1 }
 0x6ca   :  { %v2476_v9 = vadd.f32 %v2475_v39, %v15773_v5 }
 0x6cb   :  { %v13606_v40 = vpop.f32.mrf.mxu1 }
 0x6cc   :  { %v2496_v60 = vsel %vm1009_vm3, %v2476_v9, -inf }
 0x6cd   :  { %2497 = vmax.xlane.f32.xlu1 %v2496_v60  ;;  %v2478_v49 = vpop.f32.mrf.mxu1 }
 0x6cf   :  { %v13607_v7 = vpop.f32.mrf.mxu1 }
 0x746   :  { %v2486_v4 = vpop.xlane.xlu1 %2485 }
 0x747   :  { %v2500_v17 = vsub.f32 %v2276_v58, %v2486_v4 }
 0x749   :  { %v2507_v55 = vmul.f32 1.442695, %v2500_v17  ;;  %v2376_v17 = vadd.f32 %v2375_v26, %v15761_v34 }
 0x74b   :  { %14824 = vpow2.f32 %v2507_v55 }
 0x74c   :  { %v16091_v27 = vpop.f32.mrf.mxu0 }
 0x74e   :  { %v13546_v41 = vpop.f32.mrf.mxu0 }
 0x750   :  { %v16093_v18 = vpop.f32.mrf.mxu0 }
 0x752   :  { %v13547_v28 = vpop.f32.mrf.mxu0 }
 0x754   :  { %v16095_v12 = vpop.f32.mrf.mxu0 }
 0x756   :  { %v13550_v50 = vpop.f32.mrf.mxu0 }
 0x757   :  { %v2490_v50 = vsel %vm1009_vm3, %v2376_v17, -inf }
 0x758   :  { %v16097_v57 = vpop.eup %14824  ;;  %v16099_v19 = vpop.f32.mrf.mxu0 }
 0x759   :  { %v2520_v14 = vsel %vm1009_vm3, %v16097_v57, 0.0 }
 0x75a   :  { %2521 = vadd.xlane.f32.xlu1 %v2520_v14  ;;  %v13551_v58 = vpop.f32.mrf.mxu0 }
 0x75c   :  { %v16103_v48 = vpop.f32.mrf.mxu0 }
 0x75e   :  { %v13554_v44 = vpop.f32.mrf.mxu0 }
 0x760   :  { %v16105_v15 = vpop.f32.mrf.mxu0 }
 0x762   :  { %v13555_v16 = vpop.f32.mrf.mxu0 }
 0x764   :  { %v2225_v21 = vpop.f32.mrf.mxu0 }
 0x765   :  { %v2226_v22 = vadd.f32 %v2225_v21, %v15745_v6 }
 0x766   :  { %v13576_v30 = vpop.f32.mrf.mxu0 }
 0x767   :  { %v2481_v39 = vsel %vm1009_vm3, %v2226_v22, -inf }
 0x768   :  { %2482 = vmax.xlane.f32.xlu0 %v2481_v39  ;;  %v2228_v40 = vpop.f32.mrf.mxu0 }
 0x76a   :  { %v13577_v60 = vpop.f32.mrf.mxu0 }
 0x76b   :  { %v2498_v60 = vpop.xlane.xlu1 %2497 }
 0x76c   :  { %v2325_v49 = vpop.f32.mrf.mxu0 }
 0x76d   :  { %v2326_v7 = vadd.f32 %v2325_v49, %v15755_v20 }
 0x76e   :  { %v13588_v4 = vpop.f32.mrf.mxu0 }
 0x76f   :  { %v2487_v55 = vsel %vm1009_vm3, %v2326_v7, -inf  ;;  %v2504_v4 = vsub.f32 %v2476_v9, %v2498_v60 }
 0x770   :  { %2488 = vmax.xlane.f32.xlu0 %v2487_v55  ;;  %v2328_v41 = vpop.f32.mrf.mxu0 }
 0x772   :  { %v13589_v28 = vpop.f32.mrf.mxu0 }
 0x773   :  { %v2515_v28 = vmul.f32 1.442695, %v2504_v4 }
 0x774   :  { %2491 = vmax.xlane.f32.xlu0 %v2490_v50  ;;  %v2425_v14 = vpop.f32.mrf.mxu0 }
 0x775   :  { %v2426_v58 = vadd.f32 %v2425_v14, %v15767_v53 }
 0x776   :  { %v13600_v44 = vpop.f32.mrf.mxu0 }
 0x777   :  { %v2493_v16 = vsel %vm1009_vm3, %v2426_v58, -inf }
 0x778   :  { %2494 = vmax.xlane.f32.xlu0 %v2493_v16  ;;  %v2428_v21 = vpop.f32.mrf.mxu0 }
 0x77a   :  { %v13601_v30 = vpop.f32.mrf.mxu0 }
 0x7f1   :  { %v2483_v39 = vpop.xlane.xlu0 %2482 }
 0x7f2   :  { %v2499_v40 = vsub.f32 %v2226_v22, %v2483_v39 }
 0x7f4   :  { %v2505_v26 = vmul.f32 1.442695, %v2499_v40 }
 0x7f6   :  { %14826 = vpow2.f32 %v2505_v26 }
 0x7f9   :  { %v2489_v49 = vpop.xlane.xlu0 %2488 }
 0x7fd   :  { %v2492_v55 = vpop.xlane.xlu0 %2491 }
 0x7fe   :  { %v2502_v41 = vsub.f32 %v2376_v17, %v2492_v55  ;;  %v2501_v17 = vsub.f32 %v2326_v7, %v2489_v49 }
 0x800   :  { %v2511_v50 = vmul.f32 1.442695, %v2502_v41  ;;  %v2509_v30 = vmul.f32 1.442695, %v2501_v17 }
 0x801   :  { %v2495_v21 = vpop.xlane.xlu0 %2494 }
 0x802   :  { %14828 = vpow2.f32 %v2511_v50  ;;  %v2503_v39 = vsub.f32 %v2426_v58, %v2495_v21 }
 0x803   :  { %v14827_v0 = vpop.eup %14826  ;;  %14830 = vpow2.f32 %v2515_v28 }
 0x804   :  { %v2517_v14 = vsel %vm1009_vm3, %v14827_v0, 0.0  ;;  %14832 = vpow2.f32 %v2509_v30  ;;  %v2513_v40 = vmul.f32 1.442695, %v2503_v39 }
 0x805   :  { %2518 = vadd.xlane.f32.xlu0 %v2517_v14 }
 0x806   :  { %14834 = vpow2.f32 %v2513_v40 }
 0x80f   :  { %v16116_v44 = vpop.eup %14828 }
 0x810   :  { %v2526_v22 = vsel %vm1009_vm3, %v16116_v44, 0.0  ;;  %v16120_v16 = vpop.eup %14830 }
 0x811   :  { %2527 = vadd.xlane.f32.xlu1 %v2526_v22  ;;  %v2532_v9 = vsel %vm1009_vm3, %v16120_v16, 0.0  ;;  %v16134_v26 = vpop.eup %14832 }
 0x812   :  { %v2523_v7 = vsel %vm1009_vm3, %v16134_v26, 0.0 }
 0x813   :  { %v16140_v58 = vpop.eup %14834 }
 0x814   :  { %v2529_v60 = vsel %vm1009_vm3, %v16140_v58, 0.0 }
 0x815   :  { %2533 = vadd.xlane.f32.xlu1 %v2532_v9 }
 0x81b   :  { %2553 = vrot.lane.b32.xlu0 %v15700_v32, %s15438_s30 }
 0x826   :  { %2601 = vrot.lane.b32.xlu1 %v15716_v46, %s15438_s30 }
 0x82a   :  { %2649 = vrot.lane.b32.xlu1 %v15816_v29, %s15438_s30 }
 0x82e   :  { %2697 = vrot.lane.b32.xlu1 %v15820_v42, %s15438_s30 }
 0x832   :  { %2793 = vrot.lane.b32.xlu1 %v15840_v63, %s15438_s30 }
 0x836   :  { %2928 = vrot.lane.b32.xlu1 %v15656_v61, %s15458_s13  ;;  %v2522_v61 = vpop.xlane.xlu1 %2521 }
 0x83a   :  { %2978 = vrot.lane.b32.xlu1 %v15671_v11, %s15458_s13  ;;  %2524 = vadd.xlane.f32.xlu0 %v2523_v7 }
 0x83e   :  { %3080 = vrot.lane.b32.xlu1 %v15673_v13, %s15458_s13  ;;  %2530 = vadd.xlane.f32.xlu0 %v2529_v60 }
 0x842   :  { %3078 = vrot.lane.b32.xlu1 %v15696_v31, %s15458_s13 }
 0x846   :  { %3180 = vrot.lane.b32.xlu1 %v15703_v35, %s15458_s13 }
 0x84a   :  { %3178 = vrot.lane.b32.xlu1 %v15727_v52, %s15458_s13 }
 0x854   :  { %2745 = vrot.lane.b32.xlu0 %v15830_v56, %s15438_s30 }
 0x858   :  { %2930 = vrot.lane.b32.xlu0 %v15641_v47, %s15458_s13 }
 0x85c   :  { %2980 = vrot.lane.b32.xlu0 %v15647_v54, %s15458_s13 }
 0x860   :  { %3030 = vrot.lane.b32.xlu0 %v15659_v2, %s15458_s13 }
 0x864   :  { %3028 = vrot.lane.b32.xlu0 %v15684_v23, %s15458_s13 }
 0x868   :  { %3130 = vrot.lane.b32.xlu0 %v15686_v24, %s15458_s13 }
 0x86c   :  { %3128 = vrot.lane.b32.xlu0 %v15708_v43, %s15458_s13 }
 0x88e   :  { %v2519_v11 = vpop.xlane.xlu0 %2518 }
 0x88f   :  { %14836 = vrcp.f32 %v2519_v11 }
 0x890   :  { %14838 = vrcp.f32 %v2522_v61 }
 0x892   :  { %v2554_v47 = vpop.permute.xlu0 %2553 }
 0x893   :  { %v2559_v13 = vsel %vm1085_vm2, %v2554_v47, 0 }
 0x894   :  { %13609 = vmatpush3.bf16.msra.mxu0 %v2559_v13 }
 0x895   :  { %13620 = vmatprep.subr.bf16.mxu0 %v18078_v1 }
 0x89a   :  { %v2528_v54 = vpop.xlane.xlu1 %2527 }
 0x89b   :  { %14840 = vrcp.f32 %v2528_v54 }
 0x89c   :  { %v14837_v2 = vpop.eup %14836 }
 0x89d   :  { %v2541_v23 = vmul.f32 %v14837_v2, %v14827_v0  ;;  %v14839_v31 = vpop.eup %14838 }
 0x89e   :  { %v2534_v35 = vpop.xlane.xlu1 %2533  ;;  %v2542_v43 = vmul.f32 %v14839_v31, %v16097_v57 }
 0x89f   :  { %v2547_v24 = vpack.c.bf16 %v2541_v23, %v2541_v23  ;;  %14842 = vrcp.f32 %v2534_v35 }
 0x8a0   :  { %v2548_v4 = vpack.c.bf16 %v2542_v43, %v2542_v43 }
 0x8a1   :  { %13611 = vmatmul.mubr.msk.bf16.vlgmr.msra.gmra.mxu0 %vm1009_vm3, %v2547_v24 }
 0x8a2   :  { %v2602_v52 = vpop.permute.xlu1 %2601  ;;  %13622 = vmatprep.mubr.msk.bf16.mxu0 %vm15455_vm0, %v18078_v1 }
 0x8a3   :  { %v2607_v49 = vsel %vm1085_vm2, %v2602_v52, 0 }
 0x8a4   :  { %13615 = vmatpush3.bf16.msra.mxu1 %v2607_v49 }
 0x8a5   :  { %13626 = vmatprep.subr.bf16.mxu1 %v18078_v1 }
 0x8a6   :  { %v2650_v55 = vpop.permute.xlu1 %2649 }
 0x8a7   :  { %v2655_v0 = vsel %vm1085_vm2, %v2650_v55, 0  ;;  %13617 = vmatmul.mubr.msk.bf16.vlgmr.msra.gmra.mxu1 %vm1009_vm3, %v2548_v4  ;;  %v14492_v4 = vld [vmem:[#allocation14 + $0x20] sm:$0xff]  }
 0x8a8   :  { %v14841_v41 = vpop.eup %14840  ;;  %13621 = vmatpush3.bf16.msra.mxu0 %v2655_v0  ;;  %13628 = vmatprep.mubr.msk.bf16.mxu1 %vm15455_vm0, %v18078_v1 }
 0x8a9   :  { %v2544_v57 = vmul.f32 %v14841_v41, %v16116_v44  ;;  %13632 = vmatprep.subr.bf16.mxu0 %v18078_v1 }
 0x8aa   :  { %v2698_v28 = vpop.permute.xlu1 %2697 }
 0x8ab   :  { %v2703_v50 = vsel %vm1085_vm2, %v2698_v28, 0  ;;  %v2550_v14 = vpack.c.bf16 %v2544_v57, %v2544_v57 }
 0x8ac   :  { %13627 = vmatpush3.bf16.msra.mxu1 %v2703_v50  ;;  %v14843_v22 = vpop.eup %14842 }
 0x8ad   :  { %13638 = vmatprep.subr.bf16.mxu1 %v18078_v1  ;;  %v2546_v44 = vmul.f32 %v14843_v22, %v16120_v16 }
 0x8ae   :  { %v2794_v9 = vpop.permute.xlu1 %2793 }
 0x8af   :  { %v2799_v17 = vsel %vm1085_vm2, %v2794_v9, 0  ;;  %13629 = vmatmul.mubr.msk.bf16.vlgmr.msra.gmra.mxu1 %vm1009_vm3, %v2550_v14  ;;  %v2552_v21 = vpack.c.bf16 %v2546_v44, %v2546_v44 }
 0x8b0   :  { %13639 = vmatpush3.bf16.msra.mxu1 %v2799_v17  ;;  %13640 = vmatprep.mubr.msk.bf16.mxu1 %vm15455_vm0, %v18078_v1 }
 0x8b1   :  { %13660 = vmatprep.subr.bf16.mxu1 %v18078_v1 }
 0x8b2   :  { %v2929_v2 = vpop.permute.xlu1 %2928 }
 0x8b6   :  { %v2979_v24 = vpop.permute.xlu1 %2978 }
 0x8b7   :  { %13641 = vmatmul.mubr.msk.bf16.vlgmr.msra.gmra.mxu1 %vm1009_vm3, %v2552_v21 }
 0x8b8   :  { %13662 = vmatprep.mubr.msk.bf16.mxu1 %vm15455_vm0, %v18078_v1 }
 0x8ba   :  { %v3081_v50 = vpop.permute.xlu1 %3080 }
 0x8bb   :  { %v3086_v44 = vsel %vm732_vm1, %v3081_v50, 0 }
 0x8c3   :  { %v2525_v30 = vpop.xlane.xlu0 %2524 }
 0x8c4   :  { %14844 = vrcp.f32 %v2525_v30 }
 0x8c7   :  { %v2531_v39 = vpop.xlane.xlu0 %2530 }
 0x8c8   :  { %14846 = vrcp.f32 %v2531_v39 }
 0x8cb   :  { %v2746_v40 = vpop.permute.xlu0 %2745 }
 0x8cc   :  { %v2751_v54 = vsel %vm1085_vm2, %v2746_v40, 0 }
 0x8cf   :  { %v2931_v7 = vpop.permute.xlu0 %2930 }
 0x8d0   :  { %v2936_v60 = vsel %vm732_vm1, %v2931_v7, 0 }
 0x8d1   :  { %v14845_v61 = vpop.eup %14844  ;;  %13661 = vmatpush3.bf16.xpose.msra.mxu1 %v2936_v60 }
 0x8d2   :  { %v2543_v16 = vmul.f32 %v14845_v61, %v16134_v26  ;;  %13666 = vmatprep.subr.bf16.mxu1 %v18078_v1 }
 0x8d3   :  { %v2981_v11 = vpop.permute.xlu0 %2980 }
 0x8d4   :  { %v2549_v47 = vpack.c.bf16 %v2543_v16, %v2543_v16  ;;  %v2986_v23 = vsel %vm732_vm1, %v2981_v11, 0 }
 0x8d5   :  { %v14847_v13 = vpop.eup %14846 }
 0x8d6   :  { %13623 = vmatmul.mubr.msk.bf16.vlgmr.msra.gmra.mxu0 %vm1009_vm3, %v2549_v47  ;;  %v2545_v26 = vmul.f32 %v14847_v13, %v16140_v58  ;;  %v14491_v58 = vld [vmem:[#allocation14 + $0x28] sm:$0xff]  }
 0x8d7   :  { %13633 = vmatpush3.bf16.msra.mxu0 %v2751_v54  ;;  %13634 = vmatprep.mubr.msk.bf16.mxu0 %vm15455_vm0, %v18078_v1  ;;  %v3031_v31 = vpop.permute.xlu0 %3030 }
 0x8d8   :  { %13663 = vmatmul.mubr.msk.bf16.vlgmr.msra.gmra.mxu1 %vm732_vm1, %v2929_v2  ;;  %13644 = vmatprep.subr.bf16.mxu0 %v18078_v1  ;;  %v2551_v35 = vpack.c.bf16 %v2545_v26, %v2545_v26  ;;  %v3036_v52 = vsel %vm732_vm1, %v3031_v31, 0 }
 0x8d9   :  { %13667 = vmatpush3.bf16.xpose.msra.mxu1 %v2986_v23  ;;  %13668 = vmatprep.mubr.msk.bf16.mxu1 %vm15455_vm0, %v18078_v1 }
 0x8da   :  { %13672 = vmatprep.subr.bf16.mxu1 %v18078_v1 }
 0x8db   :  { %v3029_v43 = vpop.permute.xlu0 %3028 }
 0x8de   :  { %13635 = vmatmul.mubr.msk.bf16.vlgmr.msra.gmra.mxu0 %vm1009_vm3, %v2551_v35 }
 0x8df   :  { %13648 = vmatprep.mubr.msk.bf16.mxu0 %vm15455_vm0, %v18078_v1  ;;  %13645 = vmatpush3.bf16.msra.mxu0 %v14491_v58  ;;  %v3131_v49 = vpop.permute.xlu0 %3130 }
 0x8e0   :  { %13669 = vmatmul.mubr.msk.bf16.vlgmr.msra.gmra.mxu1 %vm732_vm1, %v2979_v24  ;;  %13646 = vmatprep.subr.bf16.mxu0 %v18078_v1  ;;  %v3136_v55 = vsel %vm732_vm1, %v3131_v49, 0 }
 0x8e1   :  { %13673 = vmatpush3.bf16.xpose.msra.mxu1 %v3036_v52  ;;  %13674 = vmatprep.mubr.msk.bf16.mxu1 %vm15455_vm0, %v18078_v1 }
 0x8e2   :  { %13684 = vmatprep.subr.bf16.mxu1 %v18078_v1 }
 0x8e3   :  { %13647 = vmatpush3.bf16.msra.mxu0 %v14492_v4  ;;  %v3129_v0 = vpop.permute.xlu0 %3128  ;;  %v3079_v4 = vpop.permute.xlu1 %3078 }
 0x8e4   :  { %13678 = vmatprep.subr.bf16.mxu0 %v18078_v1 }
 0x8e8   :  { %13675 = vmatmul.mubr.msk.bf16.vlgmr.msra.gmra.mxu1 %vm732_vm1, %v3029_v43 }
 0x8e9   :  { %13685 = vmatpush3.bf16.xpose.msra.mxu1 %v3136_v55  ;;  %13686 = vmatprep.mubr.msk.bf16.mxu1 %vm15455_vm0, %v18078_v1 }
 0x8ea   :  { %13696 = vmatprep.subr.bf16.mxu1 %v18078_v1 }
 0x8f0   :  { %13687 = vmatmul.mubr.msk.bf16.vlgmr.msra.gmra.mxu1 %vm732_vm1, %v3129_v0 }
 0x8f1   :  { %13698 = vmatprep.mubr.msk.bf16.mxu1 %vm15455_vm0, %v18078_v1 }
 0x961   :  { %v2595_v41 = vpop.f32.mrf.mxu0 }
 0x963   :  { %v13612_v57 = vpop.f32.mrf.mxu0 }
 0x965   :  { %v2598_v28 = vpop.f32.mrf.mxu0 }
 0x967   :  { %v13613_v14 = vpop.f32.mrf.mxu0  ;;  %v2643_v22 = vpop.f32.mrf.mxu1 }
 0x968   :  { %v2841_v9 = vpack.c.bf16 %v2643_v22, %v2595_v41 }
 0x969   :  { %v13618_v17 = vpop.f32.mrf.mxu1 }
 0x96a   :  { %13649 = vmatmul.mubr.msk.bf16.vlgmr.msra.gmra.mxu0 %vm732_vm1, %v2841_v9  ;;  %v3181_v9 = vpop.permute.xlu1 %3180 }
 0x96b   :  { %13679 = vmatpush3.bf16.xpose.msra.mxu0 %v3086_v44  ;;  %v2646_v21 = vpop.f32.mrf.mxu1  ;;  %13652 = vmatprep.mubr.msk.bf16.mxu0 %vm15455_vm0, %v18078_v1 }
 0x96c   :  { %13690 = vmatprep.subr.bf16.mxu0 %v18078_v1  ;;  %v3186_v21 = vsel %vm732_vm1, %v3181_v9, 0 }
 0x96d   :  { %v13619_v30 = vpop.f32.mrf.mxu1 }
 0x96f   :  { %v2739_v39 = vpop.f32.mrf.mxu1 }
 0x971   :  { %v13630_v40 = vpop.f32.mrf.mxu1 }
 0x973   :  { %v2742_v7 = vpop.f32.mrf.mxu1 }
 0x975   :  { %v13631_v60 = vpop.f32.mrf.mxu1 }
 0x976   :  { %v3179_v60 = vpop.permute.xlu1 %3178 }
 0x977   :  { %v2835_v61 = vpop.f32.mrf.mxu1 }
 0x979   :  { %v13642_v16 = vpop.f32.mrf.mxu1 }
 0x97b   :  { %v2838_v11 = vpop.f32.mrf.mxu1 }
 0x97d   :  { %v13643_v47 = vpop.f32.mrf.mxu1 }
 0x97e   :  { %v2159_v47 = vadd.f32 %v16062_v51, %v16091_v27  ;;  %v2170_v51 = vadd.f32 %v16075_v25, %v16099_v19  ;;  %v2178_v25 = vadd.f32 %v16083_v3, %v16105_v15 }
 0x996   :  { %v2691_v13 = vpop.f32.mrf.mxu0 }
 0x997   :  { %v2842_v54 = vpack.c.bf16 %v2739_v39, %v2691_v13 }
 0x998   :  { %v13624_v2 = vpop.f32.mrf.mxu0  ;;  %v2972_v23 = vpop.f32.mrf.mxu1 }
 0x999   :  { %v16231_v26 = vadd.f32 %v2972_v23, %v15745_v6  ;;  %13653 = vmatmul.mubr.msk.bf16.gmra.mxu0 %vm732_vm1, %v2842_v54  ;;  %v2162_v23 = vadd.f32 %v16066_v33, %v16093_v18 }
 0x99a   :  { %v2694_v31 = vpop.f32.mrf.mxu0  ;;  %v13664_v35 = vpop.f32.mrf.mxu1  ;;  %13656 = vmatprep.mubr.msk.bf16.mxu0 %vm15455_vm0, %v18078_v1 }
 0x99b   :  { %v3228_v24 = vsel %vm1009_vm3, %v16231_v26, -inf }
 0x99c   :  { %3229 = vmax.xlane.f32.xlu0 %v3228_v24  ;;  %v13625_v43 = vpop.f32.mrf.mxu0  ;;  %v2975_v52 = vpop.f32.mrf.mxu1 }
 0x99d   :  { %v2167_v43 = vadd.f32 %v16071_v45, %v16095_v12  ;;  %v2175_v45 = vadd.f32 %v16080_v8, %v16103_v48 }
 0x99e   :  { %v2787_v58 = vpop.f32.mrf.mxu0  ;;  %v13665_v49 = vpop.f32.mrf.mxu1 }
 0x99f   :  { %v2843_v55 = vpack.c.bf16 %v2835_v61, %v2787_v58 }
 0x9a0   :  { %v13636_v0 = vpop.f32.mrf.mxu0  ;;  %v3022_v6 = vpop.f32.mrf.mxu1 }
 0x9a1   :  { %v3023_v41 = vadd.f32 %v3022_v6, %v15750_v10  ;;  %13657 = vmatmul.mubr.msk.bf16.gmra.mxu0 %vm732_vm1, %v2843_v55 }
 0x9a2   :  { %v2790_v57 = vpop.f32.mrf.mxu0  ;;  %v13670_v28 = vpop.f32.mrf.mxu1  ;;  %13680 = vmatprep.mubr.msk.bf16.mxu0 %vm15455_vm0, %v18078_v1 }
 0x9a3   :  { %v3231_v50 = vsel %vm1009_vm3, %v3023_v41, -inf }
 0x9a4   :  { %3232 = vmax.xlane.f32.xlu1 %v3231_v50  ;;  %v13637_v14 = vpop.f32.mrf.mxu0  ;;  %v3025_v22 = vpop.f32.mrf.mxu1 }
 0x9a6   :  { %v13671_v17 = vpop.f32.mrf.mxu1 }
 0x9a8   :  { %v3072_v44 = vpop.f32.mrf.mxu1 }
 0x9a9   :  { %v3073_v30 = vadd.f32 %v3072_v44, %v15755_v20  ;;  %13681 = vmatmul.mubr.msk.bf16.vlgmr.msra.gmra.mxu0 %vm732_vm1, %v3079_v4 }
 0x9aa   :  { %13691 = vmatpush3.bf16.xpose.msra.mxu0 %v3186_v21  ;;  %v13676_v10 = vpop.f32.mrf.mxu1  ;;  %13692 = vmatprep.mubr.msk.bf16.mxu0 %vm15455_vm0, %v18078_v1 }
 0x9ab   :  { %v3234_v39 = vsel %vm1009_vm3, %v3073_v30, -inf  ;;  %13702 = vmatprep.subr.bf16.mxu0 %v18078_v1 }
 0x9ac   :  { %3235 = vmax.xlane.f32.xlu0 %v3234_v39  ;;  %v3075_v40 = vpop.f32.mrf.mxu1 }
 0x9ae   :  { %v13677_v7 = vpop.f32.mrf.mxu1 }
 0x9b0   :  { %v3172_v61 = vpop.f32.mrf.mxu1 }
 0x9b1   :  { %13693 = vmatmul.mubr.msk.bf16.vlgmr.msra.gmra.mxu0 %vm732_vm1, %v3179_v60  ;;  %v3173_v21 = vadd.f32 %v3172_v61, %v15767_v53 }
 0x9b2   :  { %v13688_v16 = vpop.f32.mrf.mxu1  ;;  %13704 = vmatprep.mubr.msk.bf16.mxu0 %vm15455_vm0, %v18078_v1 }
 0x9b3   :  { %v3240_v3 = vsel %vm1009_vm3, %v3173_v21, -inf }
 0x9b4   :  { %v3175_v20 = vpop.f32.mrf.mxu1 }
 0x9b6   :  { %v13689_v11 = vpop.f32.mrf.mxu1 }
 0xa25   :  { %v3230_v52 = vpop.xlane.xlu0 %3229 }
 0xa26   :  { %v3246_v27 = vsub.f32 %v16231_v26, %v3230_v52 }
 0xa28   :  { %v3252_v12 = vmul.f32 1.442695, %v3246_v27 }
 0xa2a   :  { %v2899_v13 = vpop.f32.mrf.mxu0  ;;  %14848 = vpow2.f32 %v3252_v12 }
 0xa2b   :  { %v16255_v54 = vadd.f32 %v2899_v13, %v2159_v47 }
 0xa2c   :  { %v13650_v2 = vpop.f32.mrf.mxu0 }
 0xa2d   :  { %v3233_v55 = vpop.xlane.xlu1 %3232 }
 0xa2e   :  { %v2902_v31 = vpop.f32.mrf.mxu0  ;;  %v3247_v6 = vsub.f32 %v3023_v41, %v3233_v55 }
 0xa2f   :  { %v16259_v35 = vadd.f32 %v2902_v31, %v2162_v23 }
 0xa30   :  { %v13651_v24 = vpop.f32.mrf.mxu0  ;;  %v3254_v22 = vmul.f32 1.442695, %v3247_v6 }
 0xa32   :  { %14850 = vpow2.f32 %v3254_v22 }
 0xa35   :  { %v3236_v0 = vpop.xlane.xlu0 %3235 }
 0xa36   :  { %v3248_v28 = vsub.f32 %v3073_v30, %v3236_v0 }
 0xa37   :  { %v16282_v15 = vpop.eup %14848 }
 0xa38   :  { %v3256_v19 = vmul.f32 1.442695, %v3248_v28 }
 0xa3a   :  { %14852 = vpow2.f32 %v3256_v19 }
 0xa3f   :  { %v14851_v16 = vpop.eup %14850 }
 0xa40   :  { %v3267_v13 = vsel %vm1009_vm3, %v14851_v16, 0.0 }
 0xa47   :  { %v16288_v61 = vpop.eup %14852 }
 0xa48   :  { %v3270_v47 = vsel %vm1009_vm3, %v16288_v61, 0.0 }
 0xa59   :  { %v2907_v58 = vpop.f32.mrf.mxu0 }
 0xa5a   :  { %v16263_v49 = vadd.f32 %v2907_v58, %v2167_v43 }
 0xa5b   :  { %v13654_v4 = vpop.f32.mrf.mxu0 }
 0xa5d   :  { %v2910_v33 = vpop.f32.mrf.mxu0 }
 0xa5e   :  { %v16268_v18 = vadd.f32 %v2910_v33, %v2170_v51 }
 0xa5f   :  { %v13655_v57 = vpop.f32.mrf.mxu0 }
 0xa61   :  { %v2915_v50 = vpop.f32.mrf.mxu0 }
 0xa62   :  { %v16272_v14 = vadd.f32 %v2915_v50, %v2175_v45 }
 0xa63   :  { %v13658_v9 = vpop.f32.mrf.mxu0 }
 0xa65   :  { %v2918_v26 = vpop.f32.mrf.mxu0 }
 0xa66   :  { %v16276_v17 = vadd.f32 %v2918_v26, %v2178_v25 }
 0xa67   :  { %v13659_v41 = vpop.f32.mrf.mxu0 }
 0xa69   :  { %v3122_v44 = vpop.f32.mrf.mxu0 }
 0xa6a   :  { %v3123_v8 = vadd.f32 %v3122_v44, %v15761_v34  ;;  %v3264_v34 = vsel %vm1009_vm3, %v16282_v15, 0.0 }
 0xa6b   :  { %v13682_v48 = vpop.f32.mrf.mxu0 }
 0xa6c   :  { %v3237_v30 = vsel %vm1009_vm3, %v3123_v8, -inf }
 0xa6d   :  { %3238 = vmax.xlane.f32.xlu0 %v3237_v30  ;;  %v3125_v10 = vpop.f32.mrf.mxu0 }
 0xa6f   :  { %v13683_v39 = vpop.f32.mrf.mxu0 }
 0xa71   :  { %3241 = vmax.xlane.f32.xlu0 %v3240_v3  ;;  %v3222_v40 = vpop.f32.mrf.mxu0 }
 0xa72   :  { %v3223_v7 = vadd.f32 %v3222_v40, %v15773_v5 }
 0xa73   :  { %v13694_v60 = vpop.f32.mrf.mxu0 }
 0xa74   :  { %v3243_v53 = vsel %vm1009_vm3, %v3223_v7, -inf }
 0xa75   :  { %3265 = vadd.xlane.f32.xlu0 %v3264_v34  ;;  %3244 = vmax.xlane.f32.xlu1 %v3243_v53  ;;  %v3225_v20 = vpop.f32.mrf.mxu0 }
 0xa77   :  { %v13695_v11 = vpop.f32.mrf.mxu0 }
 0xa79   :  { %3271 = vadd.xlane.f32.xlu0 %v3270_v47  ;;  %3268 = vadd.xlane.f32.xlu1 %v3267_v13  ;;  %v14493_v47 = vld [vmem:[#allocation14 + $0x38] sm:$0xff]  }
 0xa8a   :  { %3348 = vrot.lane.b32.xlu1 %v15716_v46, %s15458_s13 }
 0xa8e   :  { %3396 = vrot.lane.b32.xlu1 %v15816_v29, %s15458_s13 }
 0xa92   :  { %3444 = vrot.lane.b32.xlu1 %v15820_v42, %s15458_s13 }
 0xaf6   :  { %v3239_v5 = vpop.xlane.xlu0 %3238 }
 0xaf7   :  { %v3249_v2 = vsub.f32 %v3123_v8, %v3239_v5  ;;  %v18090_v5 = vmov 0  }
 0xaf9   :  { %v3258_v23 = vmul.f32 1.442695, %v3249_v2 }
 0xafa   :  { %v3242_v31 = vpop.xlane.xlu0 %3241 }
 0xafb   :  { %14854 = vpow2.f32 %v3258_v23  ;;  %v3250_v24 = vsub.f32 %v3173_v21, %v3242_v31 }
 0xafd   :  { %v3260_v43 = vmul.f32 1.442695, %v3250_v24 }
 0xafe   :  { %v3245_v52 = vpop.xlane.xlu1 %3244  ;;  %v3266_v9 = vpop.xlane.xlu0 %3265 }
 0xaff   :  { %14856 = vpow2.f32 %v3260_v43  ;;  %v3251_v58 = vsub.f32 %v3223_v7, %v3245_v52  ;;  %v14494_v43 = vld [vmem:[#allocation14 + $0x30] sm:$0xff]  }
 0xb01   :  { %v3262_v4 = vmul.f32 1.442695, %v3251_v58 }
 0xb02   :  { %v3269_v51 = vpop.xlane.xlu1 %3268  ;;  %v3272_v25 = vpop.xlane.xlu0 %3271 }
 0xb03   :  { %14858 = vpow2.f32 %v3262_v4 }
 0xb04   :  { %14860 = vrcp.f32 %v3269_v51 }
 0xb05   :  { %14862 = vrcp.f32 %v3266_v9 }
 0xb06   :  { %v3349_v46 = vpop.permute.xlu1 %3348  ;;  %14864 = vrcp.f32 %v3272_v25 }
 0xb07   :  { %v3354_v29 = vsel %vm1085_vm2, %v3349_v46, 0 }
 0xb08   :  { %v14855_v27 = vpop.eup %14854  ;;  %13703 = vmatpush3.bf16.msra.mxu0 %v3354_v29 }
 0xb09   :  { %v3273_v42 = vsel %vm1009_vm3, %v14855_v27, 0.0  ;;  %13714 = vmatprep.subr.bf16.mxu0 %v18078_v1 }
 0xb0a   :  { %3274 = vadd.xlane.f32.xlu1 %v3273_v42  ;;  %v3397_v33 = vpop.permute.xlu1 %3396 }
 0xb0b   :  { %v3402_v21 = vsel %vm1085_vm2, %v3397_v33, 0 }
 0xb0c   :  { %v14857_v55 = vpop.eup %14856 }
 0xb0d   :  { %v3276_v0 = vsel %vm1009_vm3, %v14857_v55, 0.0 }
 0xb0e   :  { %3277 = vadd.xlane.f32.xlu0 %v3276_v0  ;;  %v3445_v28 = vpop.permute.xlu1 %3444 }
 0xb0f   :  { %v3450_v22 = vsel %vm1085_vm2, %v3445_v28, 0 }
 0xb10   :  { %v14859_v6 = vpop.eup %14858 }
 0xb11   :  { %v3279_v57 = vsel %vm1009_vm3, %v14859_v6, 0.0  ;;  %v14861_v45 = vpop.eup %14860 }
 0xb12   :  { %3280 = vadd.xlane.f32.xlu1 %v3279_v57  ;;  %v3289_v12 = vmul.f32 %v14861_v45, %v14851_v16  ;;  %v14863_v26 = vpop.eup %14862 }
 0xb13   :  { %v3288_v44 = vmul.f32 %v14863_v26, %v16282_v15 }
 0xb14   :  { %v3295_v50 = vpack.c.bf16 %v3289_v12, %v3289_v12 }
 0xb16   :  { %13705 = vmatmul.mubr.msk.bf16.vlgmr.msra.gmra.mxu0 %vm1009_vm3, %v3295_v50 }
 0xb17   :  { %13715 = vmatpush3.bf16.msra.mxu0 %v3450_v22  ;;  %13716 = vmatprep.mubr.msk.bf16.mxu0 %vm15455_vm0, %v18078_v1 }
 0xb18   :  { %13726 = vmatprep.subr.bf16.mxu0 %v18078_v1 }
 0xb23   :  { %3540 = vrot.lane.b32.xlu1 %v15840_v63, %s15458_s13 }
 0xb24   :  { %3300 = vrot.lane.b32.xlu0 %v15700_v32, %s15458_s13  ;;  %v3294_v32 = vpack.c.bf16 %v3288_v44, %v3288_v44  ;;  %v12475_v44 = vld [vmem:[%s18065_s8] ss:$0 sm:$0xff] }
 0xb28   :  { %3492 = vrot.lane.b32.xlu0 %v15830_v56, %s15458_s13  ;;  %v14865_v56 = vpop.eup %14864 }
 0xb29   :  { %v3290_v10 = vmul.f32 %v14865_v56, %v16288_v61 }
 0xb2b   :  { %v3296_v7 = vpack.c.bf16 %v3290_v10, %v3290_v10 }
 0xb93   :  { %v3275_v19 = vpop.xlane.xlu1 %3274 }
 0xb94   :  { %14866 = vrcp.f32 %v3275_v19 }
 0xb97   :  { %v3278_v41 = vpop.xlane.xlu0 %3277 }
 0xb98   :  { %14868 = vrcp.f32 %v3278_v41 }
 0xb9b   :  { %v3301_v8 = vpop.permute.xlu0 %3300  ;;  %v3281_v48 = vpop.xlane.xlu1 %3280 }
 0xb9c   :  { %v3306_v63 = vsel %vm1085_vm2, %v3301_v8, 0  ;;  %14870 = vrcp.f32 %v3281_v48 }
 0xb9d   :  { %13697 = vmatpush3.bf16.msra.mxu1 %v3306_v63 }
 0xb9e   :  { %13708 = vmatprep.subr.bf16.mxu1 %v18078_v1 }
 0xb9f   :  { %v3541_v3 = vpop.permute.xlu1 %3540  ;;  %v3493_v40 = vpop.permute.xlu0 %3492 }
 0xba0   :  { %13699 = vmatmul.mubr.msk.bf16.vlgmr.msra.gmra.mxu1 %vm1009_vm3, %v3294_v32  ;;  %v3546_v60 = vsel %vm1085_vm2, %v3541_v3, 0  ;;  %v3498_v34 = vsel %vm1085_vm2, %v3493_v40, 0 }
 0xba1   :  { %v14867_v30 = vpop.eup %14866  ;;  %13709 = vmatpush3.bf16.msra.mxu1 %v3402_v21  ;;  %13710 = vmatprep.mubr.msk.bf16.mxu1 %vm15455_vm0, %v18078_v1 }
 0xba2   :  { %v3291_v39 = vmul.f32 %v14867_v30, %v14855_v27  ;;  %13720 = vmatprep.subr.bf16.mxu1 %v18078_v1  ;;  %v15144_v30 = vld [vmem:[#allocation2] sm:$0xff] }
 0xba4   :  { %v3297_v15 = vpack.c.bf16 %v3291_v39, %v3291_v39 }
 0xba5   :  { %v14869_v16 = vpop.eup %14868 }
 0xba6   :  { %13717 = vmatmul.mubr.msk.bf16.vlgmr.msra.gmra.mxu0 %vm1009_vm3, %v3297_v15  ;;  %v3292_v61 = vmul.f32 %v14869_v16, %v14857_v55 }
 0xba7   :  { %13727 = vmatpush3.bf16.msra.mxu0 %v3546_v60  ;;  %13728 = vmatprep.mubr.msk.bf16.mxu0 %vm15455_vm0, %v18078_v1 }
 0xba8   :  { %13711 = vmatmul.mubr.msk.bf16.vlgmr.msra.gmra.mxu1 %vm1009_vm3, %v3296_v7  ;;  %v3298_v13 = vpack.c.bf16 %v3292_v61, %v3292_v61  ;;  %v15145_v7 = vld [vmem:[#allocation2 + $0x8] sm:$0xff]  ;;  %v15146_v61 = vld [vmem:[#allocation2 + $0x10] sm:$0xff] }
 0xba9   :  { %v14871_v53 = vpop.eup %14870  ;;  %13721 = vmatpush3.bf16.msra.mxu1 %v3498_v34  ;;  %13722 = vmatprep.mubr.msk.bf16.mxu1 %vm15455_vm0, %v18078_v1 }
 0xbaa   :  { %v3293_v20 = vmul.f32 %v14871_v53, %v14859_v6  ;;  %13732 = vmatprep.subr.bf16.mxu1 %v18078_v1 }
 0xbac   :  { %v3299_v11 = vpack.c.bf16 %v3293_v20, %v3293_v20 }
 0xbae   :  { %13729 = vmatmul.mubr.msk.bf16.vlgmr.msra.gmra.mxu0 %vm1009_vm3, %v3299_v11 }
 0xbaf   :  { %3910 = vmatprep.mubr.bf16.mxu0 %v18090_v5 }
 0xbb0   :  { %13723 = vmatmul.mubr.msk.bf16.vlgmr.msra.gmra.mxu1 %vm1009_vm3, %v3298_v13 }
 0xbb1   :  { %13733 = vmatpush3.bf16.msra.mxu1 %v14493_v47  ;;  %13736 = vmatprep.mubr.msk.bf16.mxu1 %vm15455_vm0, %v18078_v1 }
 0xbb2   :  { %13734 = vmatprep.subr.bf16.mxu1 %v18078_v1 }
 0xbb5   :  { %13735 = vmatpush3.bf16.msra.mxu1 %v14494_v43 }
 0xbd6   :  { %v3390_v2 = vpop.f32.mrf.mxu0 }
 0xbd8   :  { %v13706_v23 = vpop.f32.mrf.mxu0 }
 0xbda   :  { %v3393_v31 = vpop.f32.mrf.mxu0 }
 0xbdc   :  { %v13707_v24 = vpop.f32.mrf.mxu0 }
 0xc60   :  { %v3342_v52 = vpop.f32.mrf.mxu1 }
 0xc61   :  { %v3588_v58 = vpack.c.bf16 %v3390_v2, %v3342_v52  ;;  %v15147_v2 = vld [vmem:[#allocation2 + $0x18] sm:$0xff]  ;;  %v15148_v52 = vld [vmem:[#allocation2 + $0x20] sm:$0xff] }
 0xc62   :  { %v13700_v4 = vpop.f32.mrf.mxu1 }
 0xc63   :  { %13737 = vmatmul.mubr.msk.bf16.vlgmr.msra.gmra.mxu1 %vm732_vm1, %v3588_v58 }
 0xc64   :  { %v3345_v51 = vpop.f32.mrf.mxu1  ;;  %13740 = vmatprep.mubr.msk.bf16.mxu1 %vm15455_vm0, %v18078_v1 }
 0xc65   :  { %v15149_v51 = vld [vmem:[#allocation2 + $0x28] sm:$0xff] }
 0xc66   :  { %v13701_v46 = vpop.f32.mrf.mxu1  ;;  %v3486_v29 = vpop.f32.mrf.mxu0 }
 0xc68   :  { %v3438_v27 = vpop.f32.mrf.mxu1  ;;  %v13718_v42 = vpop.f32.mrf.mxu0 }
 0xc69   :  { %v3589_v55 = vpack.c.bf16 %v3486_v29, %v3438_v27  ;;  %v14495_v29 = vld [vmem:[#allocation17 + $0x70] ss:$8 sps:$4 sm:$0xff]   ;;  %v14497_v27 = vld [vmem:[#allocation17 + $0x74] ss:$8 sps:$4 sm:$0xff]  }
 0xc6a   :  { %v13712_v0 = vpop.f32.mrf.mxu1  ;;  %v3489_v33 = vpop.f32.mrf.mxu0  ;;  %3878 = vmatprep.subr.bf16.mxu0 %v14497_v27  ;;  %v12476_v27 = vld [vmem:[%s18066_s9] ss:$0 sm:$0xff] }
 0xc6b   :  { %13741 = vmatmul.mubr.msk.bf16.gmra.mxu1 %vm732_vm1, %v3589_v55  ;;  %3879 = vmatpush1.bf16.msra.mxu0 %v14495_v29 }
 0xc6c   :  { %v3441_v6 = vpop.f32.mrf.mxu1  ;;  %v13719_v57 = vpop.f32.mrf.mxu0  ;;  %13744 = vmatprep.mubr.msk.bf16.mxu1 %vm15455_vm0, %v18078_v1 }
 0xc6e   :  { %v13713_v45 = vpop.f32.mrf.mxu1  ;;  %v3582_v12 = vpop.f32.mrf.mxu0 }
 0xc70   :  { %v3534_v28 = vpop.f32.mrf.mxu1  ;;  %v13730_v50 = vpop.f32.mrf.mxu0 }
 0xc71   :  { %v3590_v22 = vpack.c.bf16 %v3582_v12, %v3534_v28 }
 0xc72   :  { %v13724_v9 = vpop.f32.mrf.mxu1  ;;  %v3585_v25 = vpop.f32.mrf.mxu0 }
 0xc73   :  { %13745 = vmatmul.mubr.msk.bf16.gmra.mxu1 %vm732_vm1, %v3590_v22 }
 0xc74   :  { %v3537_v19 = vpop.f32.mrf.mxu1  ;;  %v13731_v26 = vpop.f32.mrf.mxu0 }
 0xc76   :  { %v13725_v41 = vpop.f32.mrf.mxu1 }
 0xd23   :  { %v3646_v8 = vpop.f32.mrf.mxu1 }
 0xd24   :  { %v3669_v48 = vadd.f32 %v3646_v8, %v16255_v54 }
 0xd25   :  { %v13738_v63 = vpop.f32.mrf.mxu1 }
 0xd26   :  { %v3681_v32 = vadd.f32 %v12475_v44, %v3669_v48  ;;  %v14500_v48 = vld [vmem:[#allocation17 + $0x64] ss:$8 sps:$4 sm:$0xff]  }
 0xd27   :  { %v3649_v56 = vpop.f32.mrf.mxu1  ;;  %3880 = vmatprep.subr.bf16.mxu0 %v14500_v48 }
 0xd28   :  { %v3670_v21 = vadd.f32 %v3649_v56, %v16259_v35  ;;  %v3687_v10 = vadd.f32 %v15144_v30, %v3681_v32  ;;  %v14498_v56 = vld [vmem:[#allocation17 + $0x60] ss:$8 sps:$4 sm:$0xff]   ;;  %v14503_v30 = vld [vmem:[#allocation17 + $0x54] ss:$8 sps:$4 sm:$0xff]  }
 0xd29   :  { %v13739_v39 = vpop.f32.mrf.mxu1  ;;  %3881 = vmatpush1.bf16.msra.mxu0 %v14498_v56 }
 0xd2a   :  { %v3682_v3 = vadd.f32 %v12475_v44, %v3670_v21  ;;  %3693 = vadd.xlane.f32.xlu0 %v3687_v10  ;;  %v14501_v39 = vld [vmem:[#allocation17 + $0x50] ss:$8 sps:$4 sm:$0xff]   ;;  %3882 = vmatprep.subr.bf16.mxu0 %v14503_v30 }
 0xd2b   :  { %v3654_v15 = vpop.f32.mrf.mxu1 }
 0xd2c   :  { %v3671_v40 = vadd.f32 %v3654_v15, %v16263_v49  ;;  %v3688_v60 = vadd.f32 %v15145_v7, %v3682_v3  ;;  %v14506_v3 = vld [vmem:[#allocation17 + $0x44] ss:$8 sps:$4 sm:$0xff]   ;;  %v14504_v15 = vld [vmem:[#allocation17 + $0x40] ss:$8 sps:$4 sm:$0xff]   ;;  %v14507_v7 = vld [vmem:[#allocation17 + $0x30] ss:$8 sps:$4 sm:$0xff]  }
 0xd2d   :  { %v13742_v16 = vpop.f32.mrf.mxu1  ;;  %3883 = vmatpush1.bf16.msra.mxu0 %v14501_v39 }
 0xd2e   :  { %v3683_v34 = vadd.f32 %v12475_v44, %v3671_v40  ;;  %3695 = vadd.xlane.f32.xlu1 %v3688_v60  ;;  %3884 = vmatprep.subr.bf16.mxu0 %v14506_v3  ;;  %v14509_v40 = vld [vmem:[#allocation17 + $0x34] ss:$8 sps:$4 sm:$0xff]   ;;  %v14510_v16 = vld [vmem:[#allocation17 + $0x20] ss:$8 sps:$4 sm:$0xff]  }
 0xd2f   :  { %v3657_v53 = vpop.f32.mrf.mxu1 }
 0xd30   :  { %v3672_v54 = vadd.f32 %v3657_v53, %v16268_v18  ;;  %v3689_v20 = vadd.f32 %v15146_v61, %v3683_v34  ;;  %v14515_v34 = vld [vmem:[#allocation17 + $0x14] ss:$8 sps:$4 sm:$0xff]   ;;  %v14513_v53 = vld [vmem:[#allocation17 + $0x10] ss:$8 sps:$4 sm:$0xff]   ;;  %v14516_v61 = vld [vmem:[#allocation17] ss:$8 sps:$4 sm:$0xff]  }
 0xd31   :  { %v13743_v11 = vpop.f32.mrf.mxu1  ;;  %3885 = vmatpush1.bf16.msra.mxu0 %v14504_v15 }
 0xd32   :  { %v3684_v35 = vadd.f32 %v12475_v44, %v3672_v54  ;;  %3697 = vadd.xlane.f32.xlu0 %v3689_v20  ;;  %3886 = vmatprep.subr.bf16.mxu0 %v14509_v40  ;;  %v14518_v54 = vld [vmem:[#allocation17 + $0x4] ss:$8 sps:$4 sm:$0xff]   ;;  %v14520_v40 = vld [vmem:[#allocation19 + $0x38] sm:$0xff]  }
 0xd33   :  { %v3662_v47 = vpop.f32.mrf.mxu1 }
 0xd34   :  { %v3673_v13 = vadd.f32 %v3662_v47, %v16272_v14  ;;  %v3690_v23 = vadd.f32 %v15147_v2, %v3684_v35 }
 0xd35   :  { %v13746_v31 = vpop.f32.mrf.mxu1  ;;  %3887 = vmatpush1.bf16.msra.mxu0 %v14507_v7  ;;  %v14521_v7 = vld [vmem:[#allocation19 + $0x70] sm:$0xff]  }
 0xd36   :  { %v3685_v49 = vadd.f32 %v12475_v44, %v3673_v13  ;;  %3699 = vadd.xlane.f32.xlu0 %v3690_v23 }
 0xd37   :  { %v3665_v24 = vpop.f32.mrf.mxu1 }
 0xd38   :  { %v3674_v43 = vadd.f32 %v3665_v24, %v16276_v17  ;;  %v3691_v58 = vadd.f32 %v15148_v52, %v3685_v49 }
 0xd39   :  { %v13747_v4 = vpop.f32.mrf.mxu1 }
 0xd3a   :  { %v3686_v18 = vadd.f32 %v12475_v44, %v3674_v43  ;;  %3701 = vadd.xlane.f32.xlu0 %v3691_v58 }
 0xd3c   :  { %v3692_v46 = vadd.f32 %v15149_v51, %v3686_v18 }
 0xd3e   :  { %3703 = vadd.xlane.f32.xlu1 %v3692_v46 }
 0xdb3   :  { %v3694_v14 = vpop.xlane.xlu0 %3693 }
 0xdb4   :  { %v3706_v42 = vmul.f32 0.0078125, %v3694_v14 }
 0xdb6   :  { %v16355_v55 = vsub.f32 %v3687_v10, %v3706_v42 }
 0xdb7   :  { %v3696_v0 = vpop.xlane.xlu1 %3695 }
 0xdb8   :  { %v3707_v33 = vmul.f32 0.0078125, %v3696_v0  ;;  %v3718_v17 = vmul.f32 %v16355_v55, %v16355_v55 }
 0xdba   :  { %v16359_v6 = vsub.f32 %v3688_v60, %v3707_v33  ;;  %3724 = vadd.xlane.f32.xlu0 %v3718_v17  ;;  %v14512_v60 = vld [vmem:[#allocation17 + $0x24] ss:$8 sps:$4 sm:$0xff]  }
 0xdbb   :  { %v3698_v57 = vpop.xlane.xlu0 %3697  ;;  %3888 = vmatprep.subr.bf16.mxu0 %v14512_v60  ;;  %v14523_v60 = vld [vmem:[#allocation19 + $0x68] sm:$0xff]  }
 0xdbc   :  { %v3708_v45 = vmul.f32 0.0078125, %v3698_v57  ;;  %v3719_v12 = vmul.f32 %v16359_v6, %v16359_v6  ;;  %3889 = vmatpush1.bf16.msra.mxu0 %v14510_v16  ;;  %v12477_v57 = vld [vmem:[#allocation16] ss:$0 sm:$0xff]  ;;  %v14524_v16 = vld [vmem:[#allocation19 + $0x28] sm:$0xff]  }
 0xdbd   :  { %3890 = vmatprep.subr.bf16.mxu0 %v14515_v34  ;;  %v14525_v34 = vld [vmem:[#allocation19 + $0x60] sm:$0xff]  }
 0xdbe   :  { %v16363_v28 = vsub.f32 %v3689_v20, %v3708_v45  ;;  %3726 = vadd.xlane.f32.xlu1 %v3719_v12 }
 0xdbf   :  { %v3700_v50 = vpop.xlane.xlu0 %3699 }
 0xdc0   :  { %v3709_v22 = vmul.f32 0.0078125, %v3700_v50  ;;  %v3720_v9 = vmul.f32 %v16363_v28, %v16363_v28  ;;  %3891 = vmatpush1.bf16.msra.mxu0 %v14513_v53  ;;  %v14526_v53 = vld [vmem:[#allocation19 + $0x20] sm:$0xff]  }
 0xdc1   :  { %3892 = vmatprep.subr.bf16.mxu0 %v14518_v54  ;;  %v14527_v54 = vld [vmem:[#allocation19 + $0x58] sm:$0xff]  }
 0xdc2   :  { %v16367_v25 = vsub.f32 %v3690_v23, %v3709_v22  ;;  %3728 = vadd.xlane.f32.xlu0 %v3720_v9 }
 0xdc3   :  { %v3702_v19 = vpop.xlane.xlu0 %3701 }
 0xdc4   :  { %v3710_v26 = vmul.f32 0.0078125, %v3702_v19  ;;  %v3721_v41 = vmul.f32 %v16367_v25, %v16367_v25  ;;  %3893 = vmatpush1.bf16.msra.mxu0 %v14516_v61  ;;  %v14528_v61 = vld [vmem:[#allocation19 + $0x18] sm:$0xff]  }
 0xdc6   :  { %v16371_v44 = vsub.f32 %v3691_v58, %v3710_v26  ;;  %3730 = vadd.xlane.f32.xlu1 %v3721_v41 }
 0xdc7   :  { %v3704_v8 = vpop.xlane.xlu1 %3703 }
 0xdc8   :  { %v3711_v63 = vmul.f32 0.0078125, %v3704_v8  ;;  %v3722_v32 = vmul.f32 %v16371_v44, %v16371_v44 }
 0xdca   :  { %v16375_v21 = vsub.f32 %v3692_v46, %v3711_v63  ;;  %3732 = vadd.xlane.f32.xlu0 %v3722_v32 }
 0xdcc   :  { %v3723_v10 = vmul.f32 %v16375_v21, %v16375_v21 }
 0xdce   :  { %3734 = vadd.xlane.f32.xlu1 %v3723_v10 }
 0xe43   :  { %v3725_v20 = vpop.xlane.xlu0 %3724 }
 0xe44   :  { %v3736_v11 = vmul.f32 0.0078125, %v3725_v20  ;;  %v14529_v20 = vld [vmem:[#allocation19 + $0x50] sm:$0xff]  }
 0xe46   :  { %v3742_v35 = vadd.f32 1e-12, %v3736_v11  ;;  %v14530_v11 = vld [vmem:[#allocation19 + $0x10] sm:$0xff]  }
 0xe47   :  { %v3727_v47 = vpop.xlane.xlu1 %3726 }
 0xe48   :  { %14872 = vrsqrt.f32 %v3742_v35  ;;  %v3737_v13 = vmul.f32 0.0078125, %v3727_v47  ;;  %v14531_v35 = vld [vmem:[#allocation19 + $0x48] sm:$0xff]  }
 0xe49   :  { %v14532_v47 = vld [vmem:[#allocation19 + $0x8] sm:$0xff]  }
 0xe4a   :  { %v3743_v2 = vadd.f32 1e-12, %v3737_v13  ;;  %v14533_v13 = vld [vmem:[#allocation19 + $0x40] sm:$0xff]  }
 0xe4b   :  { %v3729_v23 = vpop.xlane.xlu0 %3728 }
 0xe4c   :  { %14874 = vrsqrt.f32 %v3743_v2  ;;  %v3738_v31 = vmul.f32 0.0078125, %v3729_v23  ;;  %v14534_v2 = vld [vmem:[#allocation19] sm:$0xff]   ;;  %v291_v23 = vld [vmem:[%s18069_s12] sm:$0x3] }
 0xe4e   :  { %v3744_v49 = vadd.f32 1e-12, %v3738_v31  ;;  %v16414_v31 = vrot.slane %v291_v23, %v15631_v38 }
 0xe4f   :  { %v3731_v24 = vpop.xlane.xlu1 %3730 }
 0xe50   :  { %14876 = vrsqrt.f32 %v3744_v49  ;;  %v3739_v43 = vmul.f32 0.0078125, %v3731_v24  ;;  %v16417_v49 = vrot.slane %v291_v23, %v15628_v37 }
 0xe52   :  { %v3745_v52 = vadd.f32 1e-12, %v3739_v43 }
 0xe53   :  { %v3733_v58 = vpop.xlane.xlu0 %3732 }
 0xe54   :  { %14878 = vrsqrt.f32 %v3745_v52  ;;  %v3740_v4 = vmul.f32 0.0078125, %v3733_v58 }
 0xe55   :  { %v14873_v18 = vpop.eup %14872 }
 0xe56   :  { %v3754_v51 = vmul.f32 %v14873_v18, %v16355_v55  ;;  %v3746_v46 = vadd.f32 1e-12, %v3740_v4 }
 0xe57   :  { %v3735_v29 = vpop.xlane.xlu1 %3734 }
 0xe58   :  { %14880 = vrsqrt.f32 %v3746_v46  ;;  %v3741_v14 = vmul.f32 0.0078125, %v3735_v29  ;;  %v3766_v17 = vmul.f32 %v12476_v27, %v3754_v51 }
 0xe59   :  { %v14875_v42 = vpop.eup %14874 }
 0xe5a   :  { %v3755_v0 = vmul.f32 %v14875_v42, %v16359_v6  ;;  %v3747_v33 = vadd.f32 1e-12, %v3741_v14  ;;  %v16384_v50 = vadd.f32 %v12477_v57, %v3766_v17 }
 0xe5c   :  { %14882 = vrsqrt.f32 %v3747_v33  ;;  %v3767_v45 = vmul.f32 %v12476_v27, %v3755_v0 }
 0xe5d   :  { %v14877_v12 = vpop.eup %14876 }
 0xe5e   :  { %v16386_v55 = vadd.f32 %v12477_v57, %v3767_v45  ;;  %v3756_v22 = vmul.f32 %v14877_v12, %v16363_v28 }
 0xe60   :  { %v3784_v9 = vpack.c.bf16 %v16386_v55, %v16384_v50  ;;  %v3768_v6 = vmul.f32 %v12476_v27, %v3756_v22 }
 0xe61   :  { %v14879_v19 = vpop.eup %14878 }
 0xe62   :  { %3911 = vmatmul.mubr.bf16.vlgmr.msra.gmra.mxu0 %v3784_v9  ;;  %v3757_v26 = vmul.f32 %v14879_v19, %v16367_v25  ;;  %v16393_v48 = vadd.f32 %v12477_v57, %v3768_v6 }
 0xe63   :  { %3920 = vmatprep.mubr.bf16.mxu0 %v18090_v5 }
 0xe64   :  { %v3769_v41 = vmul.f32 %v12476_v27, %v3757_v26 }
 0xe65   :  { %v14881_v8 = vpop.eup %14880 }
 0xe66   :  { %v16395_v63 = vadd.f32 %v12477_v57, %v3769_v41  ;;  %v3758_v32 = vmul.f32 %v14881_v8, %v16371_v44  ;;  %v14519_v44 = vld [vmem:[#allocation19 + $0x78] sm:$0xff]  }
 0xe67   :  { %13023 = vmatprep.subr.bf16.mxu1 %v14519_v44 }
 0xe68   :  { %v3785_v28 = vpack.c.bf16 %v16395_v63, %v16393_v48  ;;  %v3770_v10 = vmul.f32 %v12476_v27, %v3758_v32  ;;  %13024 = vmatpush3.bf16.msra.mxu1 %v14520_v40 }
 0xe69   :  { %v14883_v56 = vpop.eup %14882  ;;  %13025 = vmatprep.subr.bf16.mxu1 %v14521_v7 }
 0xe6a   :  { %3921 = vmatmul.mubr.bf16.gmra.mxu0 %v3785_v28  ;;  %v3759_v30 = vmul.f32 %v14883_v56, %v16375_v21  ;;  %v16402_v39 = vadd.f32 %v12477_v57, %v3770_v10  ;;  %v14522_v21 = vld [vmem:[#allocation19 + $0x30] sm:$0xff]  }
 0xe6b   :  { %3930 = vmatprep.mubr.bf16.mxu0 %v18090_v5 }
 0xe6c   :  { %v3771_v25 = vmul.f32 %v12476_v27, %v3759_v30  ;;  %13026 = vmatpush3.bf16.msra.mxu1 %v14522_v21 }
 0xe6d   :  { %13027 = vmatprep.subr.bf16.mxu1 %v14523_v60 }
 0xe6e   :  { %v16404_v3 = vadd.f32 %v12477_v57, %v3771_v25 }
 0xe70   :  { %v3786_v15 = vpack.c.bf16 %v16404_v3, %v16402_v39  ;;  %13028 = vmatpush3.bf16.msra.mxu1 %v14524_v16 }
 0xe71   :  { %13029 = vmatprep.subr.bf16.mxu1 %v14525_v34 }
 0xe72   :  { %3931 = vmatmul.mubr.bf16.gmra.mxu0 %v3786_v15 }
 0xe73   :  { %4658 = vmatprep.mubr.bf16.mxu0 %v18090_v5 }
 0xe74   :  { %13030 = vmatpush3.bf16.msra.mxu1 %v14526_v53 }
 0xe75   :  { %13031 = vmatprep.subr.bf16.mxu1 %v14527_v54 }
 0xe78   :  { %13032 = vmatpush3.bf16.msra.mxu1 %v14528_v61 }
 0xe79   :  { %13033 = vmatprep.subr.bf16.mxu1 %v14529_v20 }
 0xe7c   :  { %13034 = vmatpush3.bf16.msra.mxu1 %v14530_v11 }
 0xe7d   :  { %13035 = vmatprep.subr.bf16.mxu1 %v14531_v35 }
 0xe80   :  { %13036 = vmatpush3.bf16.msra.mxu1 %v14532_v47 }
 0xe81   :  { %13037 = vmatprep.subr.bf16.mxu1 %v14533_v13 }
 0xe84   :  { %13038 = vmatpush3.bf16.msra.mxu1 %v14534_v2 }
 0xe85   :  { %13748 = vmatprep.subr.bf16.mxu1 %v18078_v1 }
 0xf22   :  { %v3912_v24 = vpop.f32.mrf.mxu0 }
 0xf23   :  { %v16420_v43 = vadd.f32 %v3912_v24, %v16414_v31 }
 0xf24   :  { %v3914_v52 = vpop.f32.mrf.mxu0 }
 0xf25   :  { %v3953_v58 = vmul.f32 0.044715, %v16420_v43  ;;  %v16424_v4 = vadd.f32 %v3914_v52, %v16417_v49 }
 0xf26   :  { %v3916_v18 = vpop.f32.mrf.mxu0 }
 0xf27   :  { %v3965_v51 = vmul.f32 %v3953_v58, %v16420_v43  ;;  %v3954_v46 = vmul.f32 0.044715, %v16424_v4  ;;  %v16429_v29 = vadd.f32 %v3916_v18, %v16414_v31 }
 0xf28   :  { %v3918_v27 = vpop.f32.mrf.mxu0 }
 0xf29   :  { %v3977_v14 = vmul.f32 %v3965_v51, %v16420_v43  ;;  %v3966_v42 = vmul.f32 %v3954_v46, %v16424_v4  ;;  %v3955_v0 = vmul.f32 0.044715, %v16429_v29  ;;  %v16435_v33 = vadd.f32 %v3918_v27, %v16417_v49 }
 0xf2a   :  { %v3922_v17 = vpop.f32.mrf.mxu0 }
 0xf2b   :  { %v3989_v57 = vadd.f32 %v3977_v14, %v16420_v43  ;;  %v3978_v45 = vmul.f32 %v3966_v42, %v16424_v4  ;;  %v3967_v12 = vmul.f32 %v3955_v0, %v16429_v29  ;;  %v16441_v22 = vadd.f32 %v3922_v17, %v16414_v31 }
 0xf2c   :  { %v3956_v9 = vmul.f32 0.044715, %v16435_v33  ;;  %v3924_v19 = vpop.f32.mrf.mxu0 }
 0xf2d   :  { %v4001_v26 = vmul.f32 0.7978846, %v3989_v57  ;;  %v3979_v6 = vmul.f32 %v3967_v12, %v16429_v29  ;;  %v3957_v41 = vmul.f32 0.044715, %v16441_v22  ;;  %v16447_v8 = vadd.f32 %v3924_v19, %v16417_v49 }
 0xf2e   :  { %v3968_v32 = vmul.f32 %v3956_v9, %v16435_v33  ;;  %v3926_v28 = vpop.f32.mrf.mxu0  ;;  %v3990_v56 = vadd.f32 %v3978_v45, %v16424_v4 }
 0xf2f   :  { %v3991_v30 = vadd.f32 %v3979_v6, %v16429_v29  ;;  %v3969_v10 = vmul.f32 %v3957_v41, %v16441_v22  ;;  %v3958_v25 = vmul.f32 0.044715, %v16447_v8  ;;  %14884 = vtanh.f32 %v4001_v26 }
 0xf30   :  { %v3980_v15 = vmul.f32 %v3968_v32, %v16435_v33  ;;  %v16456_v44 = vadd.f32 %v3926_v28, %v16414_v31  ;;  %v3928_v40 = vpop.f32.mrf.mxu0  ;;  %v4002_v7 = vmul.f32 0.7978846, %v3990_v56 }
 0xf31   :  { %v4003_v21 = vmul.f32 0.7978846, %v3991_v30  ;;  %v3981_v60 = vmul.f32 %v3969_v10, %v16441_v22  ;;  %v3970_v16 = vmul.f32 %v3958_v25, %v16447_v8  ;;  %v16461_v34 = vadd.f32 %v3928_v40, %v16417_v49 }
 0xf32   :  { %v3959_v53 = vmul.f32 0.044715, %v16456_v44  ;;  %v3932_v54 = vpop.f32.mrf.mxu0  ;;  %v3992_v61 = vadd.f32 %v3980_v15, %v16435_v33  ;;  %14886 = vtanh.f32 %v4002_v7 }
 0xf33   :  { %14888 = vtanh.f32 %v4003_v21  ;;  %v3993_v20 = vadd.f32 %v3981_v60, %v16441_v22  ;;  %v3982_v11 = vmul.f32 %v3970_v16, %v16447_v8  ;;  %v3960_v35 = vmul.f32 0.044715, %v16461_v34 }
 0xf34   :  { %v3971_v47 = vmul.f32 %v3959_v53, %v16456_v44  ;;  %v16470_v13 = vadd.f32 %v3932_v54, %v16414_v31  ;;  %v3934_v2 = vpop.f32.mrf.mxu0  ;;  %v4004_v23 = vmul.f32 0.7978846, %v3992_v61 }
 0xf35   :  { %v4005_v24 = vmul.f32 0.7978846, %v3993_v20  ;;  %v3972_v52 = vmul.f32 %v3960_v35, %v16461_v34  ;;  %v16474_v58 = vadd.f32 %v3934_v2, %v16417_v49  ;;  %v3994_v18 = vadd.f32 %v3982_v11, %v16447_v8 }
 0xf36   :  { %v3983_v51 = vmul.f32 %v3971_v47, %v16456_v44  ;;  %v3961_v46 = vmul.f32 0.044715, %v16470_v13  ;;  %v3936_v27 = vpop.f32.mrf.mxu0  ;;  %14890 = vtanh.f32 %v4004_v23  ;;  %v3943_v23 = vmul.f32 0.5, %v16429_v29 }
 0xf37   :  { %v3984_v14 = vmul.f32 %v3972_v52, %v16461_v34  ;;  %v3962_v42 = vmul.f32 0.044715, %v16474_v58  ;;  %v16482_v0 = vadd.f32 %v3936_v27, %v16414_v31  ;;  %14892 = vtanh.f32 %v4005_v24 }
 0xf38   :  { %v3995_v17 = vadd.f32 %v3983_v51, %v16456_v44  ;;  %v3973_v57 = vmul.f32 %v3961_v46, %v16470_v13  ;;  %v3938_v45 = vpop.f32.mrf.mxu0  ;;  %v4006_v12 = vmul.f32 0.7978846, %v3994_v18  ;;  %v3942_v52 = vmul.f32 0.5, %v16424_v4 }
 0xf39   :  { %v3974_v9 = vmul.f32 %v3962_v42, %v16474_v58  ;;  %v3963_v19 = vmul.f32 0.044715, %v16482_v0  ;;  %v16489_v26 = vadd.f32 %v3938_v45, %v16417_v49  ;;  %v3996_v6 = vadd.f32 %v3984_v14, %v16461_v34 }
 0xf3a   :  { %v4007_v41 = vmul.f32 0.7978846, %v3995_v17  ;;  %v3985_v31 = vmul.f32 %v3973_v57, %v16470_v13  ;;  %14894 = vtanh.f32 %v4006_v12  ;;  %v3944_v18 = vmul.f32 0.5, %v16435_v33 }
 0xf3b   :  { %v3986_v32 = vmul.f32 %v3974_v9, %v16474_v58  ;;  %v3975_v28 = vmul.f32 %v3963_v19, %v16482_v0  ;;  %v3964_v56 = vmul.f32 0.044715, %v16489_v26  ;;  %v4008_v30 = vmul.f32 0.7978846, %v3996_v6 }
 0xf3c   :  { %14896 = vtanh.f32 %v4007_v41  ;;  %v3997_v10 = vadd.f32 %v3985_v31, %v16470_v13  ;;  %v14885_v25 = vpop.eup %14884  ;;  %v3941_v27 = vmul.f32 0.5, %v16420_v43  ;;  %v3946_v4 = vmul.f32 0.5, %v16447_v8 }
 0xf3d   :  { %v3987_v49 = vmul.f32 %v3975_v28, %v16482_v0  ;;  %v3976_v15 = vmul.f32 %v3964_v56, %v16489_v26  ;;  %14898 = vtanh.f32 %v4008_v30  ;;  %v3998_v7 = vadd.f32 %v3986_v32, %v16474_v58 }
 0xf3e   :  { %v4009_v40 = vmul.f32 0.7978846, %v3997_v10  ;;  %v4025_v2 = vadd.f32 1.0, %v14885_v25  ;;  %v3948_v33 = vmul.f32 0.5, %v16461_v34  ;;  %v3947_v43 = vmul.f32 0.5, %v16456_v44 }
 0xf3f   :  { %v14887_v21 = vpop.eup %14886  ;;  %v3999_v60 = vadd.f32 %v3987_v49, %v16482_v0  ;;  %v3988_v16 = vmul.f32 %v3976_v15, %v16489_v26  ;;  %v4010_v54 = vmul.f32 0.7978846, %v3998_v7  ;;  %v3945_v30 = vmul.f32 0.5, %v16441_v22 }
 0xf40   :  { %v14889_v53 = vpop.eup %14888  ;;  %14900 = vtanh.f32 %v4009_v40  ;;  %v4026_v35 = vadd.f32 1.0, %v14887_v21  ;;  %v4037_v45 = vmul.f32 %v4025_v2, %v3941_v27  ;;  %v3950_v34 = vmul.f32 0.5, %v16474_v58 }
 0xf41   :  { %v4027_v61 = vadd.f32 1.0, %v14889_v53  ;;  %v4011_v20 = vmul.f32 0.7978846, %v3999_v60  ;;  %v4000_v11 = vadd.f32 %v3988_v16, %v16489_v26  ;;  %14902 = vtanh.f32 %v4010_v54 }
 0xf42   :  { %v4038_v42 = vmul.f32 %v4026_v35, %v3942_v52  ;;  %v3952_v44 = vmul.f32 0.5, %v16489_v26  ;;  %v3951_v54 = vmul.f32 0.5, %v16482_v0  ;;  %v12494_v26 = vld [vmem:[%s18071_s14] ss:$0 sm:$0xff] }
 0xf43   :  { %v14891_v47 = vpop.eup %14890  ;;  %14904 = vtanh.f32 %v4011_v20  ;;  %v4012_v24 = vmul.f32 0.7978846, %v4000_v11  ;;  %v4039_v14 = vmul.f32 %v4027_v61, %v3943_v23  ;;  %v3949_v11 = vmul.f32 0.5, %v16470_v13 }
 0xf44   :  { %v4028_v51 = vadd.f32 1.0, %v14891_v47  ;;  %v14893_v46 = vpop.eup %14892 }
 0xf45   :  { %14906 = vtanh.f32 %v4012_v24  ;;  %v4049_v19 = vpack.c.bf16 %v4039_v14, %v4037_v45  ;;  %v4029_v32 = vadd.f32 1.0, %v14893_v46 }
 0xf46   :  { %v4040_v17 = vmul.f32 %v4028_v51, %v3944_v18 }
 0xf47   :  { %v14895_v57 = vpop.eup %14894  ;;  %v4041_v40 = vmul.f32 %v4029_v32, %v3945_v30 }
 0xf48   :  { %v4050_v12 = vpack.c.bf16 %v4040_v17, %v4038_v42  ;;  %v4030_v29 = vadd.f32 1.0, %v14895_v57 }
 0xf49   :  { %v14897_v9 = vpop.eup %14896 }
 0xf4a   :  { %v14899_v6 = vpop.eup %14898  ;;  %4189 = vmatprep.mubr.bf16.mxu1 %v4050_v12  ;;  %v4031_v41 = vadd.f32 1.0, %v14897_v9  ;;  %v4042_v28 = vmul.f32 %v4030_v29, %v3946_v4 }
 0xf4b   :  { %4190 = vmatmul.mubr.bf16.vlgmr.msra.gmra.mxu1 %v4049_v19  ;;  %v4032_v31 = vadd.f32 1.0, %v14899_v6 }
 0xf4c   :  { %v4043_v10 = vmul.f32 %v4031_v41, %v3947_v43 }
 0xf4d   :  { %v4044_v56 = vmul.f32 %v4032_v31, %v3948_v33  ;;  %v14901_v25 = vpop.eup %14900 }
 0xf4e   :  { %v14903_v49 = vpop.eup %14902  ;;  %v4051_v8 = vpack.c.bf16 %v4043_v10, %v4041_v40  ;;  %v4033_v22 = vadd.f32 1.0, %v14901_v25 }
 0xf4f   :  { %v4052_v15 = vpack.c.bf16 %v4044_v56, %v4042_v28  ;;  %v4034_v21 = vadd.f32 1.0, %v14903_v49 }
 0xf50   :  { %v14905_v7 = vpop.eup %14904  ;;  %v4045_v2 = vmul.f32 %v4033_v22, %v3949_v11 }
 0xf51   :  { %4197 = vmatprep.mubr.bf16.mxu1 %v4052_v15  ;;  %v4035_v60 = vadd.f32 1.0, %v14905_v7  ;;  %v4046_v61 = vmul.f32 %v4034_v21, %v3950_v34 }
 0xf52   :  { %v14907_v16 = vpop.eup %14906 }
 0xf53   :  { %4198 = vmatmul.mubr.bf16.gmra.mxu1 %v4051_v8  ;;  %v4036_v53 = vadd.f32 1.0, %v14907_v16  ;;  %v4047_v35 = vmul.f32 %v4035_v60, %v3951_v54 }
 0xf55   :  { %v4048_v20 = vmul.f32 %v4036_v53, %v3952_v44  ;;  %v4053_v23 = vpack.c.bf16 %v4047_v35, %v4045_v2  ;;  %v14537_v2 = vld [vmem:[#allocation11 + $0x22c] ss:$12 sps:$4 sm:$0xff]  }
 0xf56   :  { %4626 = vmatprep.subr.bf16.mxu0 %v14537_v2 }
 0xf57   :  { %v4054_v47 = vpack.c.bf16 %v4048_v20, %v4046_v61 }
 0xf59   :  { %4205 = vmatprep.mubr.bf16.mxu1 %v4054_v47 }
 0xf5b   :  { %4206 = vmatmul.mubr.bf16.gmra.mxu1 %v4053_v23  ;;  %v14535_v23 = vld [vmem:[#allocation11 + $0x228] ss:$12 sps:$4 sm:$0xff]  }
 0xf5c   :  { %13764 = vmatprep.mubr.msk.bf16.mxu1 %vm15455_vm0, %v18078_v1  ;;  %4627 = vmatpush1.bf16.msra.mxu0 %v14535_v23 }
0x100b   :  { %v13039_v58 = vpop.f32.mrf.mxu1 }
0x100d   :  { %v13040_v0 = vpop.f32.mrf.mxu1 }
0x100e   :  { %v13041_v24 = vadd.f32 %v13040_v0, %v13039_v58  ;;  %v14538_v58 = vld [vmem:[#allocation11 + $0x230] ss:$12 sps:$4 sm:$0xff]  }
0x100f   :  { %v13042_v52 = vpop.f32.mrf.mxu1  ;;  %13749 = vmatpush3.bf16.msra.mxu1 %v14538_v58  ;;  %v14539_v0 = vld [vmem:[#allocation11 + $0x210] ss:$12 sps:$4 sm:$0xff]  }
0x1010   :  { %v4192_v18 = vadd.f32 %v13041_v24, %v12494_v26  ;;  %13750 = vmatprep.subr.bf16.mxu1 %v18078_v1  ;;  %v14542_v24 = vld [vmem:[#allocation11 + $0x218] ss:$12 sps:$4 sm:$0xff]  }
0x1011   :  { %v13043_v51 = vpop.f32.mrf.mxu1 }
0x1012   :  { %v13044_v13 = vadd.f32 %v13043_v51, %v13042_v52  ;;  %v4214_v46 = vadd.f32 %v4192_v18, %v16384_v50  ;;  %v14545_v52 = vld [vmem:[#allocation11 + $0x1fc] ss:$12 sps:$4 sm:$0xff]   ;;  %v14543_v18 = vld [vmem:[#allocation11 + $0x1f8] ss:$12 sps:$4 sm:$0xff]   ;;  %v14546_v51 = vld [vmem:[#allocation11 + $0x200] ss:$12 sps:$4 sm:$0xff]  }
0x1013   :  { %v13045_v27 = vpop.f32.mrf.mxu1  ;;  %13751 = vmatpush3.bf16.msra.mxu1 %v14542_v24 }
0x1014   :  { %v4195_v14 = vadd.f32 %v13044_v13, %v12494_v26  ;;  %4220 = vadd.xlane.f32.xlu0 %v4214_v46  ;;  %13752 = vmatprep.subr.bf16.mxu1 %v18078_v1  ;;  %v14549_v13 = vld [vmem:[#allocation11 + $0x1e4] ss:$12 sps:$4 sm:$0xff]  }
0x1015   :  { %v13046_v42 = vpop.f32.mrf.mxu1 }
0x1016   :  { %v13047_v17 = vadd.f32 %v13046_v42, %v13045_v27  ;;  %v4215_v57 = vadd.f32 %v4195_v14, %v16386_v55  ;;  %v14550_v27 = vld [vmem:[#allocation11 + $0x1e8] ss:$12 sps:$4 sm:$0xff]   ;;  %v14553_v14 = vld [vmem:[#allocation11 + $0x1cc] ss:$12 sps:$4 sm:$0xff]  }
0x1017   :  { %v13048_v45 = vpop.f32.mrf.mxu1  ;;  %13753 = vmatpush3.bf16.msra.mxu1 %v14546_v51  ;;  %v14551_v42 = vld [vmem:[#allocation11 + $0x1c8] ss:$12 sps:$4 sm:$0xff]  }
0x1018   :  { %v4200_v12 = vadd.f32 %v13047_v17, %v12494_v26  ;;  %4222 = vadd.xlane.f32.xlu1 %v4215_v57  ;;  %13754 = vmatprep.subr.bf16.mxu1 %v18078_v1  ;;  %v14554_v17 = vld [vmem:[#allocation11 + $0x1d0] ss:$12 sps:$4 sm:$0xff]  }
0x1019   :  { %v13049_v9 = vpop.f32.mrf.mxu1 }
0x101a   :  { %v13050_v19 = vadd.f32 %v13049_v9, %v13048_v45  ;;  %v4216_v29 = vadd.f32 %v4200_v12, %v16393_v48  ;;  %v14555_v45 = vld [vmem:[#allocation11 + $0x1b0] ss:$12 sps:$4 sm:$0xff]   ;;  %v14558_v12 = vld [vmem:[#allocation11 + $0x1b8] ss:$12 sps:$4 sm:$0xff]  }
0x101b   :  { %v13051_v6 = vpop.f32.mrf.mxu1  ;;  %13755 = vmatpush3.bf16.msra.mxu1 %v14550_v27  ;;  %v14561_v9 = vld [vmem:[#allocation11 + $0x19c] ss:$12 sps:$4 sm:$0xff]  }
0x101c   :  { %v4203_v4 = vadd.f32 %v13050_v19, %v12494_v26  ;;  %4224 = vadd.xlane.f32.xlu0 %v4216_v29  ;;  %13756 = vmatprep.subr.bf16.mxu1 %v18078_v1  ;;  %v14559_v19 = vld [vmem:[#allocation11 + $0x198] ss:$12 sps:$4 sm:$0xff]  }
0x101d   :  { %v13052_v41 = vpop.f32.mrf.mxu1 }
0x101e   :  { %v13053_v33 = vadd.f32 %v13052_v41, %v13051_v6  ;;  %v4217_v50 = vadd.f32 %v4203_v4, %v16395_v63  ;;  %v14565_v6 = vld [vmem:[#allocation11 + $0x184] ss:$12 sps:$4 sm:$0xff]   ;;  %v14563_v4 = vld [vmem:[#allocation11 + $0x180] ss:$12 sps:$4 sm:$0xff]   ;;  %v14566_v41 = vld [vmem:[#allocation11 + $0x188] ss:$12 sps:$4 sm:$0xff]  }
0x101f   :  { %v13054_v31 = vpop.f32.mrf.mxu1  ;;  %13757 = vmatpush3.bf16.msra.mxu1 %v14554_v17 }
0x1020   :  { %v4208_v43 = vadd.f32 %v13053_v33, %v12494_v26  ;;  %4226 = vadd.xlane.f32.xlu1 %v4217_v50  ;;  %13758 = vmatprep.subr.bf16.mxu1 %v18078_v1 }
0x1021   :  { %v13055_v32 = vpop.f32.mrf.mxu1 }
0x1022   :  { %v13056_v28 = vadd.f32 %v13055_v32, %v13054_v31  ;;  %v4218_v55 = vadd.f32 %v4208_v43, %v16402_v39 }
0x1023   :  { %13759 = vmatpush3.bf16.msra.mxu1 %v14558_v12 }
0x1024   :  { %v4211_v56 = vadd.f32 %v13056_v28, %v12494_v26  ;;  %4228 = vadd.xlane.f32.xlu0 %v4218_v55  ;;  %v14541_v26 = vld [vmem:[#allocation11 + $0x214] ss:$12 sps:$4 sm:$0xff]   ;;  %13760 = vmatprep.subr.bf16.mxu1 %v18078_v1 }
0x1025   :  { %4628 = vmatprep.subr.bf16.mxu0 %v14541_v26 }
0x1026   :  { %v4219_v30 = vadd.f32 %v4211_v56, %v16404_v3  ;;  %4629 = vmatpush1.bf16.msra.mxu0 %v14539_v0 }
0x1027   :  { %4630 = vmatprep.subr.bf16.mxu0 %v14545_v52 }
0x1028   :  { %4230 = vadd.xlane.f32.xlu1 %v4219_v30 }
0x102a   :  { %4631 = vmatpush1.bf16.msra.mxu0 %v14543_v18 }
0x102b   :  { %4632 = vmatprep.subr.bf16.mxu0 %v14549_v13 }
0x109d   :  { %v4221_v48 = vpop.xlane.xlu0 %4220 }
0x109e   :  { %v4232_v10 = vmul.f32 0.0078125, %v4221_v48 }
0x10a0   :  { %v16526_v25 = vsub.f32 %v4214_v46, %v4232_v10  ;;  %v14547_v46 = vld [vmem:[#allocation11 + $0x1e0] ss:$12 sps:$4 sm:$0xff]  }
0x10a1   :  { %v4223_v49 = vpop.xlane.xlu1 %4222  ;;  %4633 = vmatpush1.bf16.msra.mxu0 %v14547_v46 }
0x10a2   :  { %v4233_v15 = vmul.f32 0.0078125, %v4223_v49  ;;  %v4244_v63 = vmul.f32 %v16526_v25, %v16526_v25  ;;  %4634 = vmatprep.subr.bf16.mxu0 %v14553_v14 }
0x10a4   :  { %v16530_v40 = vsub.f32 %v4215_v57, %v4233_v15  ;;  %4250 = vadd.xlane.f32.xlu0 %v4244_v63  ;;  %v14557_v57 = vld [vmem:[#allocation11 + $0x1b4] ss:$12 sps:$4 sm:$0xff]  }
0x10a5   :  { %v4225_v7 = vpop.xlane.xlu0 %4224  ;;  %4635 = vmatpush1.bf16.msra.mxu0 %v14551_v42 }
0x10a6   :  { %v4234_v8 = vmul.f32 0.0078125, %v4225_v7  ;;  %v4245_v39 = vmul.f32 %v16530_v40, %v16530_v40  ;;  %4636 = vmatprep.subr.bf16.mxu0 %v14557_v57 }
0x10a8   :  { %v16534_v21 = vsub.f32 %v4216_v29, %v4234_v8  ;;  %4252 = vadd.xlane.f32.xlu1 %v4245_v39  ;;  %v14562_v29 = vld [vmem:[#allocation11 + $0x1a0] ss:$12 sps:$4 sm:$0xff]   ;;  %v12511_v8 = vld [vmem:[%s18072_s15] ss:$0 sm:$0xff] }
0x10a9   :  { %v4227_v3 = vpop.xlane.xlu1 %4226  ;;  %4637 = vmatpush1.bf16.msra.mxu0 %v14555_v45  ;;  %13761 = vmatpush3.bf16.msra.mxu1 %v14562_v29 }
0x10aa   :  { %v4235_v60 = vmul.f32 0.0078125, %v4227_v3  ;;  %v4246_v16 = vmul.f32 %v16534_v21, %v16534_v21  ;;  %4638 = vmatprep.subr.bf16.mxu0 %v14561_v9  ;;  %13762 = vmatprep.subr.bf16.mxu1 %v18078_v1 }
0x10ac   :  { %v16538_v34 = vsub.f32 %v4217_v50, %v4235_v60  ;;  %4254 = vadd.xlane.f32.xlu0 %v4246_v16  ;;  %v12512_v60 = vld [vmem:[%s18073_s16] ss:$0 sm:$0xff] }
0x10ad   :  { %v4229_v44 = vpop.xlane.xlu0 %4228  ;;  %4639 = vmatpush1.bf16.msra.mxu0 %v14559_v19  ;;  %13763 = vmatpush3.bf16.msra.mxu1 %v14566_v41  ;;  %v214_v19 = vld [vmem:[#allocation10] sm:$0x1] }
0x10ae   :  { %v4236_v53 = vmul.f32 0.0078125, %v4229_v44  ;;  %v4247_v54 = vmul.f32 %v16538_v34, %v16538_v34  ;;  %4640 = vmatprep.subr.bf16.mxu0 %v14565_v6  ;;  %13774 = vmatprep.subr.bf16.mxu1 %v18078_v1  ;;  %v4358_v41 = vrot.slane %v214_v19, %v15631_v38 }
0x10b0   :  { %v16542_v22 = vsub.f32 %v4218_v55, %v4236_v53  ;;  %4256 = vadd.xlane.f32.xlu1 %v4247_v54 }
0x10b1   :  { %v4231_v61 = vpop.xlane.xlu1 %4230  ;;  %4641 = vmatpush1.bf16.msra.mxu0 %v14563_v4 }
0x10b2   :  { %v4237_v20 = vmul.f32 0.0078125, %v4231_v61  ;;  %v4248_v11 = vmul.f32 %v16542_v22, %v16542_v22  ;;  %13768 = vmatprep.subr.bf16.mxu0 %v18078_v1 }
0x10b4   :  { %v16546_v35 = vsub.f32 %v4219_v30, %v4237_v20  ;;  %4258 = vadd.xlane.f32.xlu0 %v4248_v11 }
0x10b6   :  { %v4249_v47 = vmul.f32 %v16546_v35, %v16546_v35 }
0x10b8   :  { %4260 = vadd.xlane.f32.xlu1 %v4249_v47 }
0x112d   :  { %v4251_v33 = vpop.xlane.xlu0 %4250 }
0x112e   :  { %v4262_v50 = vmul.f32 0.0078125, %v4251_v33 }
0x1130   :  { %v4268_v31 = vadd.f32 1e-12, %v4262_v50 }
0x1131   :  { %v4253_v43 = vpop.xlane.xlu1 %4252 }
0x1132   :  { %14908 = vrsqrt.f32 %v4268_v31  ;;  %v4263_v32 = vmul.f32 0.0078125, %v4253_v43 }
0x1134   :  { %v4269_v28 = vadd.f32 1e-12, %v4263_v32 }
0x1135   :  { %v4255_v55 = vpop.xlane.xlu0 %4254 }
0x1136   :  { %14910 = vrsqrt.f32 %v4269_v28  ;;  %v4264_v56 = vmul.f32 0.0078125, %v4255_v55  ;;  %v4399_v55 = vld [vmem:[#allocation13 + $0x6] sm:$0x7] }
0x1138   :  { %v4270_v30 = vadd.f32 1e-12, %v4264_v56  ;;  %v15459_v56 = vmov 1983009808  }
0x1139   :  { %v4257_v48 = vpop.xlane.xlu1 %4256 }
0x113a   :  { %14912 = vrsqrt.f32 %v4270_v30  ;;  %v4265_v10 = vmul.f32 0.0078125, %v4257_v48  ;;  %v4711_v30 = vunpack.c.l.s4 %v15459_v56  ;;  %v4486_v48 = vrot.slane %v4399_v55, %v15631_v38 }
0x113c   :  { %v4271_v49 = vadd.f32 1e-12, %v4265_v10  ;;  %v4494_v10 = vrot.slane %v4399_v55, %v15654_v59 }
0x113d   :  { %v4259_v15 = vpop.xlane.xlu0 %4258 }
0x113e   :  { %14914 = vrsqrt.f32 %v4271_v49  ;;  %v4266_v63 = vmul.f32 0.0078125, %v4259_v15  ;;  %v4490_v49 = vrot.slane %v4399_v55, %v15628_v37 }
0x113f   :  { %v14909_v7 = vpop.eup %14908 }
0x1140   :  { %v4280_v39 = vmul.f32 %v14909_v7, %v16526_v25  ;;  %v4272_v3 = vadd.f32 1e-12, %v4266_v63  ;;  %v4712_v7 = vunpack.c.0.s8 %v4711_v30 }
0x1141   :  { %v4261_v16 = vpop.xlane.xlu1 %4260 }
0x1142   :  { %v4292_v44 = vmul.f32 %v12511_v8, %v4280_v39  ;;  %14916 = vrsqrt.f32 %v4272_v3  ;;  %v4267_v53 = vmul.f32 0.0078125, %v4261_v16 }
0x1143   :  { %v14911_v54 = vpop.eup %14910 }
0x1144   :  { %v4304_v61 = vadd.f32 %v12512_v60, %v4292_v44  ;;  %v4281_v20 = vmul.f32 %v14911_v54, %v16530_v40  ;;  %v4273_v11 = vadd.f32 1e-12, %v4267_v53  ;;  %v16592_v54 = vsub.s32 %v4712_v7, %v15625_v36 }
0x1146   :  { %4310 = vst [vmem:[#allocation21] sm:$0xff] %v4304_v61  ;;  %v4293_v47 = vmul.f32 %v12511_v8, %v4281_v20  ;;  %14918 = vrsqrt.f32 %v4273_v11  ;;  %v4317_v17 = vrot.slane %v4304_v61, 1 }
0x1147   :  { %v14913_v2 = vpop.eup %14912 }
0x1148   :  { %v4305_v23 = vadd.f32 %v12512_v60, %v4293_v47  ;;  %v4282_v25 = vmul.f32 %v14913_v2, %v16534_v21 }
0x114a   :  { %4311 = vst [vmem:[#allocation21 + $0x8] sm:$0xff] %v4305_v23  ;;  %v4294_v58 = vmul.f32 %v12511_v8, %v4282_v25  ;;  %v4320_v27 = vrot.slane %v4305_v23, 1 }
0x114b   :  { %v14915_v26 = vpop.eup %14914 }
0x114c   :  { %v4306_v0 = vadd.f32 %v12512_v60, %v4294_v58  ;;  %v4283_v24 = vmul.f32 %v14915_v26, %v16538_v34  ;;  %v4335_v12 = vsel %vm4334_vm4, %v4317_v17, %v4320_v27 }
0x114e   :  { %4312 = vst [vmem:[#allocation21 + $0x10] sm:$0xff] %v4306_v0  ;;  %v4295_v52 = vmul.f32 %v12511_v8, %v4283_v24  ;;  %v4323_v21 = vrot.slane %v4306_v0, 1 }
0x114f   :  { %v14917_v18 = vpop.eup %14916 }
0x1150   :  { %v4307_v51 = vadd.f32 %v12512_v60, %v4295_v52  ;;  %v4284_v40 = vmul.f32 %v14917_v18, %v16542_v22  ;;  %v4337_v22 = vsel %vm4336_vm5, %v4335_v12, %v4323_v21 }
0x1152   :  { %4313 = vst [vmem:[#allocation21 + $0x18] sm:$0xff] %v4307_v51  ;;  %v4296_v13 = vmul.f32 %v12511_v8, %v4284_v40  ;;  %v4326_v57 = vrot.slane %v4307_v51, 6 }
0x1153   :  { %v14919_v46 = vpop.eup %14918 }
0x1154   :  { %v4308_v14 = vadd.f32 %v12512_v60, %v4296_v13  ;;  %v4285_v42 = vmul.f32 %v14919_v46, %v16546_v35  ;;  %v4339_v29 = vsel %vm4338_vm6, %v4337_v22, %v4326_v57  ;;  %v12543_v13 = vld.sshfl [vmem:[#allocation8] sm:$0x11 pattern:$0x75316420] }
0x1155   :  { %v4746_v46 = vcombine.high %v12543_v13, %v12543_v13  ;;  %v4753_v27 = vrot.slane %v12543_v13, %v15740_v62 }
0x1156   :  { %4314 = vst [vmem:[#allocation21 + $0x20] sm:$0xff] %v4308_v14  ;;  %v4297_v34 = vmul.f32 %v12511_v8, %v4285_v42  ;;  %v4329_v45 = vrot.slane %v4308_v14, 6 }
0x1157   :  { %v4760_v14 = vrot.slane %v4746_v46, %v15740_v62  ;;  %v16622_v42 = vrot.slane %v4753_v27, %v15631_v38 }
0x1158   :  { %v4309_v9 = vadd.f32 %v12512_v60, %v4297_v34  ;;  %v4340_v6 = vsel %vm1085_vm2, %v4339_v29, %v4329_v45 }
0x1159   :  { %18091 = vst [vmem:[#allocation31_spill] sm:$0xff] %v16622_v42  ;;  %v16625_v21 = vrot.slane %v4760_v14, %v15631_v38 }
0x115a   :  { %4315 = vst [vmem:[#allocation21 + $0x28] sm:$0xff] %v4309_v9  ;;  %v4332_v35 = vrot.slane %v4309_v9, 6 }
0x115b   :  { %18092 = vst [vmem:[#allocation32_spill] sm:$0xff] %v16625_v21 }
0x115c   :  { %v4342_v4 = vsel %vm4341_vm7, %v4340_v6, %v4332_v35 }
0x115d   :  { %v4352_v33 = vrot.slane %v4342_v4, 7  ;;  %4343 = vst [vmem:[#allocation21 + $0x5] ss:$9 sps:$4 sm:$0x26] %v4342_v4   ;;  %4346 = vst [vmem:[#allocation21 + $0x11] sm:$0x3] %v4342_v4 }
0x115e   :  { %4344 = vst [vmem:[#allocation21 + $0x6] ss:$24 sps:$4 sm:$0x38] %v4342_v4   ;;  %4348 = vst [vmem:[#allocation21 + $0x21] sm:$0x1] %v4342_v4  ;;  %v4360_v50 = vrot.slane %v4342_v4, 6 }
0x115f   :  { %4349 = vst [vmem:[#allocation21 + $0x25] sm:$0x4] %v4342_v4  ;;  %4350 = vst [vmem:[#allocation21 + $0x26] sm:$0x18] %v4342_v4  ;;  %v4362_v31 = vsel %vm4334_vm4, %v214_v19, %v4352_v33 }
0x1160   :  { %v4363_v43 = vsel %vm1085_vm2, %v4362_v31, %v4358_v41 }
0x1161   :  { %v16580_v32 = vsel %vm4341_vm7, %v4363_v43, %v4360_v50 }
0x1162   :  { %v4481_v28 = vpack.c.bf16 %v16580_v32, %v16580_v32 }
0x1164   :  { %4659 = vmatmul.mubr.bf16.vlgmr.msra.gmra.mxu0 %v4481_v28  ;;  %13765 = vmatmul.mubr.bf16.vlgmr.msra.gmra.mxu1 %v4481_v28 }
0x1165   :  { %13770 = vmatprep.mubr.msk.bf16.mxu0 %vm15455_vm0, %v18078_v1  ;;  %13776 = vmatprep.mubr.msk.bf16.mxu1 %vm15455_vm0, %v18078_v1 }
0x1224   :  { %v4660_v15 = vpop.f32.mrf.mxu0  ;;  %v4701_v63 = vpop.f32.mrf.mxu1 }
0x1225   :  { %v4661_v8 = vadd.f32 %v4660_v15, %v4486_v48  ;;  %v4702_v60 = vadd.f32 %v4701_v63, %v4494_v10 }
0x1226   :  { %v4662_v39 = vpop.f32.mrf.mxu0  ;;  %v13766_v3 = vpop.f32.mrf.mxu1 }
0x1227   :  { %v4663_v16 = vadd.f32 %v4662_v39, %v4490_v49  ;;  %v4707_v61 = vmul.f32 0.17677669, %v4661_v8  ;;  %v4728_v2 = vpack.c.bf16 %v4702_v60, %v4702_v60 }
0x1228   :  { %v4664_v44 = vpop.f32.mrf.mxu0  ;;  %v4704_v53 = vpop.f32.mrf.mxu1 }
0x1229   :  { %v4718_v20 = vpack.c.bf16 %v4663_v16, %v4663_v16  ;;  %v4708_v25 = vpack.c.bf16 %v4707_v61, %v4707_v61  ;;  %v16597_v0 = vrot.slane %v4728_v2, %v16592_v54 }
0x122a   :  { %v4665_v11 = vpop.f32.mrf.mxu0  ;;  %v13767_v47 = vpop.f32.mrf.mxu1 }
0x122b   :  { %v4726_v23 = vrot.slane %v4718_v20, %v16592_v54  ;;  %v4716_v36 = vrot.slane %v4708_v25, %v16592_v54  ;;  %v16605_v52 = vcombine.high %v16597_v0, %v16597_v0  ;;  %v4893_v51 = vsel %vm4336_vm5, %v16597_v0, 0 }
0x122d   :  { %v4775_v58 = vsel %vm732_vm1, %v4726_v23, 0  ;;  %v4727_v26 = vcombine.high %v4726_v23, %v4726_v23  ;;  %v4717_v18 = vcombine.high %v4716_v36, %v4716_v36  ;;  %v4939_v40 = vsel %vm4336_vm5, %v16605_v52, 0 }
0x122e   :  { %13769 = vmatpush3.bf16.xpose.msra.mxu0 %v4775_v58  ;;  %v16639_v49 = vrot.slane %v4716_v36, %v16592_v54  ;;  %v16644_v15 = vrot.slane %v4726_v23, %v16592_v54 }
0x122f   :  { %v4821_v24 = vsel %vm732_vm1, %v4727_v26, 0  ;;  %13780 = vmatprep.subr.bf16.mxu0 %v18078_v1  ;;  %v16632_v41 = vrot.slane %v4727_v26, %v16592_v54  ;;  %v16647_v63 = vrot.slane %v4717_v18, %v16592_v54 }
0x1230   :  { %13775 = vmatpush3.bf16.xpose.msra.mxu1 %v4821_v24 }
0x1231   :  { %13786 = vmatprep.subr.bf16.mxu1 %v18078_v1 }
0x1235   :  { %13771 = vmatmul.mubr.msk.bf16.vlgmr.msra.gmra.mxu0 %vm732_vm1, %v4716_v36 }
0x1236   :  { %13781 = vmatpush3.bf16.msra.mxu0 %v4893_v51  ;;  %13782 = vmatprep.mubr.msk.bf16.mxu0 %vm15455_vm0, %v18078_v1 }
0x1237   :  { %13777 = vmatmul.mubr.msk.bf16.vlgmr.msra.gmra.mxu1 %vm732_vm1, %v4717_v18  ;;  %13792 = vmatprep.subr.bf16.mxu0 %v18078_v1 }
0x1238   :  { %13787 = vmatpush3.bf16.msra.mxu1 %v4939_v40  ;;  %13788 = vmatprep.mubr.msk.bf16.mxu1 %vm15455_vm0, %v18078_v1 }
0x1239   :  { %13798 = vmatprep.subr.bf16.mxu1 %v18078_v1 }
0x12f5   :  { %v4811_v17 = vpop.f32.mrf.mxu0 }
0x12f6   :  { %v4812_v57 = vadd.f32 %v4811_v17, %v16622_v42 }
0x12f7   :  { %v13772_v34 = vpop.f32.mrf.mxu0  ;;  %v4857_v45 = vpop.f32.mrf.mxu1 }
0x12f8   :  { %v4858_v12 = vadd.f32 %v4857_v45, %v16625_v21  ;;  %v4864_v9 = vsel %vm4863_vm8, %v4812_v57, -inf }
0x12f9   :  { %4865 = vmax.xlane.f32.xlu0 %v4864_v9  ;;  %v4814_v22 = vpop.f32.mrf.mxu0  ;;  %v13778_v19 = vpop.f32.mrf.mxu1 }
0x12fa   :  { %v4867_v29 = vsel %vm4863_vm8, %v4858_v12, -inf }
0x12fb   :  { %v13773_v35 = vpop.f32.mrf.mxu0  ;;  %4868 = vmax.xlane.f32.xlu1 %v4867_v29  ;;  %v4860_v6 = vpop.f32.mrf.mxu1 }
0x12fc   :  { %v16677_v35 = vrot.slane %v16605_v52, %v16592_v54 }
0x12fd   :  { %v13779_v4 = vpop.f32.mrf.mxu1 }
0x130c   :  { %5066 = vrot.lane.b32.xlu1 %v16632_v41, %s15457_s10 }
0x1382   :  { %v4866_v33 = vpop.xlane.xlu0 %4865 }
0x1383   :  { %v4870_v50 = vsub.f32 %v4812_v57, %v4866_v33 }
0x1384   :  { %v4869_v31 = vpop.xlane.xlu1 %4868 }
0x1385   :  { %v4872_v43 = vmul.f32 1.442695, %v4870_v50  ;;  %v4871_v28 = vsub.f32 %v4858_v12, %v4869_v31 }
0x1387   :  { %14920 = vpow2.f32 %v4872_v43  ;;  %v4874_v55 = vmul.f32 1.442695, %v4871_v28 }
0x1388   :  { %v5067_v7 = vpop.permute.xlu1 %5066 }
0x1389   :  { %14922 = vpow2.f32 %v4874_v55  ;;  %v5072_v47 = vsel %vm732_vm1, %v5067_v7, 0 }
0x1394   :  { %v14921_v56 = vpop.eup %14920 }
0x1395   :  { %v4876_v30 = vsel %vm4863_vm8, %v14921_v56, 0.0 }
0x1396   :  { %v14923_v48 = vpop.eup %14922  ;;  %4877 = vadd.xlane.f32.xlu0 %v4876_v30 }
0x1397   :  { %v4879_v10 = vsel %vm4863_vm8, %v14923_v48, 0.0 }
0x1398   :  { %4880 = vadd.xlane.f32.xlu1 %v4879_v10  ;;  %v16693_v10 = vrot.slane %v16597_v0, %v16592_v54 }
0x13a9   :  { %4993 = vrot.lane.b32.xlu1 %v16639_v49, %s15457_s10 }
0x13ac   :  { %5002 = vrot.lane.b32.xlu0 %v16644_v15, %s15457_s10 }
0x13ad   :  { %5057 = vrot.lane.b32.xlu1 %v16647_v63, %s15457_s10 }
0x141f   :  { %v4878_v8 = vpop.xlane.xlu0 %4877 }
0x1420   :  { %14924 = vrcp.f32 %v4878_v8 }
0x1421   :  { %v4881_v39 = vpop.xlane.xlu1 %4880 }
0x1422   :  { %14926 = vrcp.f32 %v4881_v39 }
0x1423   :  { %v5003_v44 = vpop.permute.xlu0 %5002 }
0x1424   :  { %v5008_v11 = vsel %vm732_vm1, %v5003_v44, 0 }
0x1425   :  { %v4994_v2 = vpop.permute.xlu1 %4993 }
0x1429   :  { %v5058_v23 = vpop.permute.xlu1 %5057 }
0x142d   :  { %v14925_v3 = vpop.eup %14924 }
0x142e   :  { %v4884_v60 = vmul.f32 %v14925_v3, %v14921_v56 }
0x142f   :  { %v14927_v16 = vpop.eup %14926 }
0x1430   :  { %v4886_v53 = vpack.c.bf16 %v4884_v60, %v4884_v60  ;;  %v4885_v61 = vmul.f32 %v14927_v16, %v14923_v48 }
0x1432   :  { %v4887_v20 = vpack.c.bf16 %v4885_v61, %v4885_v61  ;;  %13783 = vmatmul.mubr.msk.bf16.vlgmr.msra.gmra.mxu0 %vm4888_vm9, %v4886_v53  ;;  %v14567_v61 = vld [vmem:[#allocation14 + $0x88] sm:$0xff]  }
0x1433   :  { %13793 = vmatpush3.bf16.xpose.msra.mxu0 %v5008_v11  ;;  %13794 = vmatprep.mubr.msk.bf16.mxu0 %vm15455_vm0, %v18078_v1 }
0x1434   :  { %13789 = vmatmul.mubr.msk.bf16.vlgmr.msra.gmra.mxu1 %vm4888_vm9, %v4887_v20  ;;  %13804 = vmatprep.subr.bf16.mxu0 %v18078_v1 }
0x1435   :  { %13799 = vmatpush3.bf16.xpose.msra.mxu1 %v5072_v47  ;;  %13800 = vmatprep.mubr.msk.bf16.mxu1 %vm15455_vm0, %v18078_v1  ;;  %v14568_v47 = vld [vmem:[#allocation14 + $0x80] sm:$0xff]  }
0x1436   :  { %13810 = vmatprep.subr.bf16.mxu1 %v18078_v1 }
0x143a   :  { %13795 = vmatmul.mubr.msk.bf16.vlgmr.msra.gmra.mxu0 %vm732_vm1, %v4994_v2 }
0x143b   :  { %13806 = vmatprep.mubr.msk.bf16.mxu0 %vm15455_vm0, %v18078_v1 }
0x143c   :  { %13801 = vmatmul.mubr.msk.bf16.vlgmr.msra.gmra.mxu1 %vm732_vm1, %v5058_v23 }
0x143d   :  { %13812 = vmatprep.mubr.msk.bf16.mxu1 %vm15455_vm0, %v18078_v1 }
0x14f2   :  { %v4929_v25 = vpop.f32.mrf.mxu0 }
0x14f4   :  { %v13784_v58 = vpop.f32.mrf.mxu0  ;;  %v4975_v26 = vpop.f32.mrf.mxu1 }
0x14f5   :  { %v16669_v24 = vcombine.low %v4929_v25, %v4975_v26  ;;  %v14569_v26 = vld [vmem:[#allocation14 + $0x98] sm:$0xff]  }
0x14f6   :  { %v4932_v36 = vpop.f32.mrf.mxu0  ;;  %v13790_v18 = vpop.f32.mrf.mxu1 }
0x14f7   :  { %v4985_v23 = vpack.c.bf16 %v16669_v24, %v16669_v24  ;;  %v14570_v24 = vld [vmem:[#allocation14 + $0x90] sm:$0xff]  }
0x14f8   :  { %v13785_v51 = vpop.f32.mrf.mxu0  ;;  %v4978_v40 = vpop.f32.mrf.mxu1 }
0x14fa   :  { %v13791_v13 = vpop.f32.mrf.mxu1  ;;  %v5044_v46 = vpop.f32.mrf.mxu0 }
0x14fb   :  { %v5045_v27 = vadd.f32 %v5044_v46, %v16622_v42 }
0x14fc   :  { %v13796_v14 = vpop.f32.mrf.mxu0  ;;  %v5108_v17 = vpop.f32.mrf.mxu1 }
0x14fd   :  { %v5109_v57 = vadd.f32 %v5108_v17, %v16625_v21  ;;  %v5114_v34 = vsel %vm4863_vm8, %v5045_v27, -inf }
0x14fe   :  { %5115 = vmax.xlane.f32.xlu0 %v5114_v34  ;;  %v5047_v45 = vpop.f32.mrf.mxu0  ;;  %v13802_v12 = vpop.f32.mrf.mxu1 }
0x14ff   :  { %v5117_v9 = vsel %vm4863_vm8, %v5109_v57, -inf }
0x1500   :  { %v13797_v22 = vpop.f32.mrf.mxu0  ;;  %5118 = vmax.xlane.f32.xlu1 %v5117_v9  ;;  %v5111_v19 = vpop.f32.mrf.mxu1 }
0x1502   :  { %v13803_v29 = vpop.f32.mrf.mxu1 }
0x1511   :  { %5200 = vrot.lane.b32.xlu1 %v16677_v35, %s15457_s10 }
0x1515   :  { %5365 = vrot.lane.b32.xlu1 %v16644_v15, %s15438_s30 }
0x1519   :  { %5415 = vrot.lane.b32.xlu1 %v16632_v41, %s15438_s30 }
0x151d   :  { %5413 = vrot.lane.b32.xlu1 %v16647_v63, %s15438_s30 }
0x1587   :  { %v5116_v6 = vpop.xlane.xlu0 %5115 }
0x1588   :  { %v5120_v4 = vsub.f32 %v5045_v27, %v5116_v6 }
0x1589   :  { %v5119_v33 = vpop.xlane.xlu1 %5118 }
0x158a   :  { %v5122_v50 = vmul.f32 1.442695, %v5120_v4  ;;  %v5121_v31 = vsub.f32 %v5109_v57, %v5119_v33 }
0x158c   :  { %14928 = vpow2.f32 %v5122_v50  ;;  %v5124_v52 = vmul.f32 1.442695, %v5121_v31 }
0x158d   :  { %v5201_v43 = vpop.permute.xlu1 %5200 }
0x158e   :  { %14930 = vpow2.f32 %v5124_v52  ;;  %v5206_v28 = vsel %vm4336_vm5, %v5201_v43, 0 }
0x158f   :  { %13811 = vmatpush3.bf16.msra.mxu1 %v5206_v28 }
0x1590   :  { %13824 = vmatprep.subr.bf16.mxu1 %v18078_v1 }
0x1591   :  { %v5366_v11 = vpop.permute.xlu1 %5365 }
0x1592   :  { %v5371_v57 = vsel %vm732_vm1, %v5366_v11, 0 }
0x1595   :  { %v5416_v2 = vpop.permute.xlu1 %5415 }
0x1596   :  { %v5421_v25 = vsel %vm732_vm1, %v5416_v2, 0 }
0x1599   :  { %v14929_v55 = vpop.eup %14928  ;;  %v5414_v58 = vpop.permute.xlu1 %5413 }
0x159a   :  { %v5126_v56 = vsel %vm4863_vm8, %v14929_v55, 0.0 }
0x159b   :  { %v14931_v30 = vpop.eup %14930  ;;  %5127 = vadd.xlane.f32.xlu0 %v5126_v56 }
0x159c   :  { %v5129_v48 = vsel %vm4863_vm8, %v14931_v30, 0.0 }
0x159f   :  { %5130 = vadd.xlane.f32.xlu0 %v5129_v48 }
0x15b5   :  { %5145 = vrot.lane.b32.xlu0 %v16693_v10, %s15457_s10 }
0x15b9   :  { %5363 = vrot.lane.b32.xlu0 %v16639_v49, %s15438_s30 }
0x1624   :  { %v5128_v7 = vpop.xlane.xlu0 %5127 }
0x1625   :  { %14932 = vrcp.f32 %v5128_v7 }
0x1628   :  { %v5131_v8 = vpop.xlane.xlu0 %5130 }
0x1629   :  { %14934 = vrcp.f32 %v5131_v8 }
0x162c   :  { %v5146_v39 = vpop.permute.xlu0 %5145 }
0x162d   :  { %v5151_v3 = vsel %vm4336_vm5, %v5146_v39, 0 }
0x162e   :  { %13805 = vmatpush3.bf16.msra.mxu0 %v5151_v3 }
0x162f   :  { %13816 = vmatprep.subr.bf16.mxu0 %v18078_v1 }
0x1630   :  { %v5364_v9 = vpop.permute.xlu0 %5363 }
0x1632   :  { %v14933_v60 = vpop.eup %14932 }
0x1633   :  { %v5134_v16 = vmul.f32 %v14933_v60, %v14929_v55 }
0x1635   :  { %v5136_v0 = vpack.c.bf16 %v5134_v16, %v5134_v16 }
0x1636   :  { %v14935_v44 = vpop.eup %14934 }
0x1637   :  { %v5135_v53 = vmul.f32 %v14935_v44, %v14931_v30  ;;  %13807 = vmatmul.mubr.msk.bf16.vlgmr.msra.gmra.mxu0 %vm4888_vm9, %v5136_v0 }
0x1638   :  { %13820 = vmatprep.mubr.msk.bf16.mxu0 %vm15455_vm0, %v18078_v1  ;;  %13817 = vmatpush3.bf16.msra.mxu0 %v14569_v26 }
0x1639   :  { %v5137_v20 = vpack.c.bf16 %v5135_v53, %v5135_v53  ;;  %13818 = vmatprep.subr.bf16.mxu0 %v18078_v1 }
0x163b   :  { %13813 = vmatmul.mubr.msk.bf16.vlgmr.msra.gmra.mxu1 %vm4888_vm9, %v5137_v20 }
0x163c   :  { %13825 = vmatpush3.bf16.msra.mxu1 %v14567_v61  ;;  %13828 = vmatprep.mubr.msk.bf16.mxu1 %vm15455_vm0, %v18078_v1 }
0x163d   :  { %13826 = vmatprep.subr.bf16.mxu1 %v18078_v1  ;;  %13819 = vmatpush3.bf16.msra.mxu0 %v14570_v24 }
0x163e   :  { %13832 = vmatprep.subr.bf16.mxu0 %v18078_v1 }
0x1640   :  { %13827 = vmatpush3.bf16.msra.mxu1 %v14568_v47 }
0x1641   :  { %13838 = vmatprep.subr.bf16.mxu1 %v18078_v1 }
0x1643   :  { %13829 = vmatmul.mubr.msk.bf16.vlgmr.msra.gmra.mxu1 %vm732_vm1, %v4985_v23 }
0x1644   :  { %13839 = vmatpush3.bf16.xpose.msra.mxu1 %v5421_v25  ;;  %13840 = vmatprep.mubr.msk.bf16.mxu1 %vm15455_vm0, %v18078_v1 }
0x1645   :  { %13850 = vmatprep.subr.bf16.mxu1 %v18078_v1 }
0x164b   :  { %13841 = vmatmul.mubr.msk.bf16.vlgmr.msra.gmra.mxu1 %vm732_vm1, %v5414_v58 }
0x164c   :  { %13852 = vmatprep.mubr.msk.bf16.mxu1 %vm15455_vm0, %v18078_v1 }
0x16f7   :  { %v5187_v36 = vpop.f32.mrf.mxu0 }
0x16f9   :  { %v13808_v18 = vpop.f32.mrf.mxu0 }
0x16fb   :  { %v5190_v51 = vpop.f32.mrf.mxu0  ;;  %v5242_v40 = vpop.f32.mrf.mxu1 }
0x16fc   :  { %v5250_v13 = vcombine.low %v5187_v36, %v5242_v40 }
0x16fd   :  { %v13809_v46 = vpop.f32.mrf.mxu0  ;;  %v13814_v27 = vpop.f32.mrf.mxu1 }
0x16fe   :  { %v5252_v14 = vpack.c.bf16 %v5250_v13, %v5250_v13 }
0x16ff   :  { %v5245_v17 = vpop.f32.mrf.mxu1 }
0x1700   :  { %13821 = vmatmul.mubr.msk.bf16.vlgmr.msra.gmra.mxu0 %vm732_vm1, %v5252_v14 }
0x1701   :  { %13833 = vmatpush3.bf16.xpose.msra.mxu0 %v5371_v57  ;;  %v13815_v34 = vpop.f32.mrf.mxu1  ;;  %13834 = vmatprep.mubr.msk.bf16.mxu0 %vm15455_vm0, %v18078_v1  ;;  %v14571_v57 = vld [vmem:[#allocation14 + $0xa8] sm:$0xff]  }
0x1702   :  { %13844 = vmatprep.subr.bf16.mxu0 %v18078_v1  ;;  %v14572_v34 = vld [vmem:[#allocation14 + $0xa0] sm:$0xff]  }
0x1703   :  { %v16726_v45 = vpop.f32.mrf.mxu1 }
0x1705   :  { %v13830_v12 = vpop.f32.mrf.mxu1 }
0x1707   :  { %v5360_v22 = vpop.f32.mrf.mxu1 }
0x1708   :  { %13835 = vmatmul.mubr.msk.bf16.vlgmr.msra.gmra.mxu0 %vm732_vm1, %v5364_v9 }
0x1709   :  { %v13831_v19 = vpop.f32.mrf.mxu1  ;;  %13846 = vmatprep.mubr.msk.bf16.mxu0 %vm15455_vm0, %v18078_v1 }
0x170b   :  { %v5457_v29 = vpop.f32.mrf.mxu1 }
0x170c   :  { %v5458_v6 = vadd.f32 %v5457_v29, %v16625_v21 }
0x170d   :  { %v13842_v4 = vpop.f32.mrf.mxu1 }
0x170e   :  { %v5466_v33 = vsel %vm4863_vm8, %v5458_v6, -inf }
0x170f   :  { %5467 = vmax.xlane.f32.xlu1 %v5466_v33  ;;  %v5460_v50 = vpop.f32.mrf.mxu1 }
0x1711   :  { %v13843_v31 = vpop.f32.mrf.mxu1 }
0x1720   :  { %5535 = vrot.lane.b32.xlu1 %v16677_v35, %s15438_s30 }
0x1724   :  { %5646 = vrot.lane.b32.xlu1 %v16644_v15, %s15458_s13 }
0x1728   :  { %5696 = vrot.lane.b32.xlu1 %v16632_v41, %s15458_s13 }
0x172c   :  { %5694 = vrot.lane.b32.xlu1 %v16647_v63, %s15458_s13 }
0x1798   :  { %v5468_v52 = vpop.xlane.xlu1 %5467 }
0x1799   :  { %v5470_v55 = vsub.f32 %v5458_v6, %v5468_v52 }
0x179b   :  { %v5473_v56 = vmul.f32 1.442695, %v5470_v55 }
0x179c   :  { %v5536_v43 = vpop.permute.xlu1 %5535 }
0x179d   :  { %v5541_v28 = vsel %vm4336_vm5, %v5536_v43, 0  ;;  %14936 = vpow2.f32 %v5473_v56 }
0x179e   :  { %13851 = vmatpush3.bf16.msra.mxu1 %v5541_v28 }
0x179f   :  { %13864 = vmatprep.subr.bf16.mxu1 %v18078_v1 }
0x17a0   :  { %v5647_v25 = vpop.permute.xlu1 %5646 }
0x17a1   :  { %v5652_v26 = vsel %vm732_vm1, %v5647_v25, 0 }
0x17a4   :  { %v5697_v50 = vpop.permute.xlu1 %5696 }
0x17a5   :  { %v5702_v28 = vsel %vm732_vm1, %v5697_v50, 0 }
0x17a8   :  { %v5695_v56 = vpop.permute.xlu1 %5694 }
0x17aa   :  { %v14937_v3 = vpop.eup %14936 }
0x17ab   :  { %v5478_v0 = vsel %vm4863_vm8, %v14937_v3, 0.0 }
0x17c0   :  { %v16743_v30 = vpop.f32.mrf.mxu0 }
0x17c2   :  { %v13822_v48 = vpop.f32.mrf.mxu0 }
0x17c4   :  { %v5305_v15 = vpop.f32.mrf.mxu0 }
0x17c6   :  { %v13823_v7 = vpop.f32.mrf.mxu0 }
0x17c8   :  { %v5407_v8 = vpop.f32.mrf.mxu0 }
0x17c9   :  { %v5408_v41 = vadd.f32 %v5407_v8, %v16622_v42 }
0x17ca   :  { %v13836_v39 = vpop.f32.mrf.mxu0 }
0x17cb   :  { %v5463_v63 = vsel %vm4863_vm8, %v5408_v41, -inf  ;;  %v5358_v39 = vadd.f32 %v16726_v45, %v16743_v30 }
0x17cc   :  { %5464 = vmax.xlane.f32.xlu0 %v5463_v63  ;;  %v5410_v60 = vpop.f32.mrf.mxu0 }
0x17ce   :  { %v13837_v16 = vpop.f32.mrf.mxu0 }
0x17d0   :  { %5479 = vadd.xlane.f32.xlu0 %v5478_v0 }
0x1855   :  { %v5465_v44 = vpop.xlane.xlu0 %5464 }
0x1856   :  { %v5469_v53 = vsub.f32 %v5408_v41, %v5465_v44 }
0x1858   :  { %v5471_v61 = vmul.f32 1.442695, %v5469_v53 }
0x1859   :  { %v5480_v20 = vpop.xlane.xlu0 %5479 }
0x185a   :  { %14938 = vpow2.f32 %v5471_v61 }
0x185b   :  { %14940 = vrcp.f32 %v5480_v20 }
0x1867   :  { %v14939_v11 = vpop.eup %14938 }
0x1868   :  { %v14941_v47 = vpop.eup %14940  ;;  %v5475_v2 = vsel %vm4863_vm8, %v14939_v11, 0.0 }
0x1869   :  { %v5484_v23 = vmul.f32 %v14941_v47, %v14937_v3  ;;  %5476 = vadd.xlane.f32.xlu0 %v5475_v2 }
0x186b   :  { %v5486_v58 = vpack.c.bf16 %v5484_v23, %v5484_v23 }
0x186d   :  { %13853 = vmatmul.mubr.msk.bf16.vlgmr.msra.gmra.mxu1 %vm4888_vm9, %v5486_v58 }
0x186e   :  { %13865 = vmatpush3.bf16.xpose.msra.mxu1 %v5652_v26  ;;  %13866 = vmatprep.mubr.msk.bf16.mxu1 %vm15455_vm0, %v18078_v1 }
0x186f   :  { %13876 = vmatprep.subr.bf16.mxu1 %v18078_v1 }
0x187f   :  { %5487 = vrot.lane.b32.xlu0 %v16693_v10, %s15438_s30 }
0x1883   :  { %5644 = vrot.lane.b32.xlu0 %v16639_v49, %s15458_s13 }
0x18f2   :  { %v5477_v24 = vpop.xlane.xlu0 %5476 }
0x18f3   :  { %14942 = vrcp.f32 %v5477_v24 }
0x18f6   :  { %v5488_v36 = vpop.permute.xlu0 %5487 }
0x18f7   :  { %v5493_v18 = vsel %vm4336_vm5, %v5488_v36, 0 }
0x18f8   :  { %13845 = vmatpush3.bf16.msra.mxu0 %v5493_v18 }
0x18f9   :  { %13856 = vmatprep.subr.bf16.mxu0 %v18078_v1 }
0x18fa   :  { %v5645_v51 = vpop.permute.xlu0 %5644 }
0x18fb   :  { %13867 = vmatmul.mubr.msk.bf16.vlgmr.msra.gmra.mxu1 %vm732_vm1, %v5645_v51 }
0x18fc   :  { %13878 = vmatprep.mubr.msk.bf16.mxu1 %vm15455_vm0, %v18078_v1 }
0x1900   :  { %v14943_v40 = vpop.eup %14942 }
0x1901   :  { %v5483_v13 = vmul.f32 %v14943_v40, %v14939_v11 }
0x1903   :  { %v5485_v46 = vpack.c.bf16 %v5483_v13, %v5483_v13 }
0x1905   :  { %13847 = vmatmul.mubr.msk.bf16.vlgmr.msra.gmra.mxu0 %vm4888_vm9, %v5485_v46 }
0x1906   :  { %13860 = vmatprep.mubr.msk.bf16.mxu0 %vm15455_vm0, %v18078_v1  ;;  %13857 = vmatpush3.bf16.msra.mxu0 %v14571_v57 }
0x1907   :  { %13858 = vmatprep.subr.bf16.mxu0 %v18078_v1 }
0x190a   :  { %13859 = vmatpush3.bf16.msra.mxu0 %v14572_v34 }
0x190b   :  { %13870 = vmatprep.subr.bf16.mxu0 %v18078_v1 }
0x192d   :  { %v5577_v49 = vpop.f32.mrf.mxu1 }
0x192f   :  { %v13854_v27 = vpop.f32.mrf.mxu1 }
0x1930   :  { %v14573_v27 = vld [vmem:[#allocation14 + $0xb8] sm:$0xff]  }
0x1931   :  { %v5580_v14 = vpop.f32.mrf.mxu1 }
0x1932   :  { %v14574_v14 = vld [vmem:[#allocation14 + $0xb0] sm:$0xff]  }
0x1933   :  { %v13855_v17 = vpop.f32.mrf.mxu1 }
0x19bb   :  { %v5688_v12 = vpop.f32.mrf.mxu1 }
0x19bc   :  { %v5689_v9 = vadd.f32 %v5688_v12, %v16622_v42 }
0x19bd   :  { %v13868_v22 = vpop.f32.mrf.mxu1 }
0x19be   :  { %v5744_v19 = vsel %vm4863_vm8, %v5689_v9, -inf }
0x19bf   :  { %5745 = vmax.xlane.f32.xlu0 %v5744_v19  ;;  %v5691_v29 = vpop.f32.mrf.mxu1 }
0x19c1   :  { %v13869_v6 = vpop.f32.mrf.mxu1 }
0x19c5   :  { %v5529_v4 = vpop.f32.mrf.mxu0 }
0x19c6   :  { %v5585_v33 = vcombine.low %v5529_v4, %v5577_v49 }
0x19c7   :  { %v13848_v31 = vpop.f32.mrf.mxu0 }
0x19c8   :  { %v5587_v52 = vpack.c.bf16 %v5585_v33, %v5585_v33  ;;  %v12572_v33 = vld [vmem:[%s18065_s8 + $0x2] ss:$0 sm:$0xff] }
0x19c9   :  { %v5532_v43 = vpop.f32.mrf.mxu0 }
0x19ca   :  { %13861 = vmatmul.mubr.msk.bf16.vlgmr.msra.gmra.mxu0 %vm732_vm1, %v5587_v52 }
0x19cb   :  { %13871 = vmatpush3.bf16.xpose.msra.mxu0 %v5702_v28  ;;  %v13849_v55 = vpop.f32.mrf.mxu0  ;;  %13872 = vmatprep.mubr.msk.bf16.mxu0 %vm15455_vm0, %v18078_v1 }
0x19cc   :  { %13882 = vmatprep.subr.bf16.mxu0 %v18078_v1 }
0x19d2   :  { %13873 = vmatmul.mubr.msk.bf16.vlgmr.msra.gmra.mxu0 %vm732_vm1, %v5695_v56 }
0x19d3   :  { %13884 = vmatprep.mubr.msk.bf16.mxu0 %vm15455_vm0, %v18078_v1 }
0x1a48   :  { %v5746_v48 = vpop.xlane.xlu0 %5745 }
0x1a49   :  { %v5750_v15 = vsub.f32 %v5689_v9, %v5746_v48  ;;  %v14575_v48 = vld [vmem:[#allocation17 + $0x170] ss:$8 sps:$4 sm:$0xff]  }
0x1a4b   :  { %v5752_v7 = vmul.f32 1.442695, %v5750_v15  ;;  %v14577_v15 = vld [vmem:[#allocation17 + $0x174] ss:$8 sps:$4 sm:$0xff]  }
0x1a4d   :  { %14944 = vpow2.f32 %v5752_v7  ;;  %v14580_v7 = vld [vmem:[#allocation17 + $0x164] ss:$8 sps:$4 sm:$0xff]  }
0x1a5a   :  { %v14945_v8 = vpop.eup %14944 }
0x1a5b   :  { %v5756_v41 = vsel %vm4863_vm8, %v14945_v8, 0.0 }
0x1a5c   :  { %5757 = vadd.xlane.f32.xlu0 %v5756_v41 }
0x1a8a   :  { %v5637_v63 = vpop.f32.mrf.mxu0 }
0x1a8b   :  { %v5643_v3 = vadd.f32 %v5637_v63, %v5358_v39 }
0x1a8c   :  { %v13862_v60 = vpop.f32.mrf.mxu0 }
0x1a8e   :  { %v5640_v16 = vpop.f32.mrf.mxu0 }
0x1a8f   :  { %v14581_v16 = vld [vmem:[#allocation17 + $0x150] ss:$8 sps:$4 sm:$0xff]  }
0x1a90   :  { %v13863_v0 = vpop.f32.mrf.mxu0 }
0x1a91   :  { %v14584_v0 = vld [vmem:[#allocation17 + $0x140] ss:$8 sps:$4 sm:$0xff]  }
0x1a92   :  { %v5738_v44 = vpop.f32.mrf.mxu0 }
0x1a93   :  { %v5739_v53 = vadd.f32 %v5738_v44, %v16625_v21  ;;  %v14589_v44 = vld [vmem:[#allocation17 + $0x134] ss:$8 sps:$4 sm:$0xff]  }
0x1a94   :  { %v13874_v61 = vpop.f32.mrf.mxu0 }
0x1a95   :  { %v5747_v20 = vsel %vm4863_vm8, %v5739_v53, -inf  ;;  %v14592_v61 = vld [vmem:[#allocation17 + $0x124] ss:$8 sps:$4 sm:$0xff]  }
0x1a96   :  { %5748 = vmax.xlane.f32.xlu1 %v5747_v20  ;;  %v5741_v11 = vpop.f32.mrf.mxu0  ;;  %v14590_v20 = vld [vmem:[#allocation17 + $0x120] ss:$8 sps:$4 sm:$0xff]  }
0x1a97   :  { %v14593_v11 = vld [vmem:[#allocation17 + $0x110] ss:$8 sps:$4 sm:$0xff]  }
0x1a98   :  { %v13875_v47 = vpop.f32.mrf.mxu0 }
0x1a99   :  { %v14595_v47 = vld [vmem:[#allocation17 + $0x114] ss:$8 sps:$4 sm:$0xff]  }
0x1aa7   :  { %5816 = vrot.lane.b32.xlu1 %v16677_v35, %s15458_s13 }
0x1ae5   :  { %v5758_v24 = vpop.xlane.xlu0 %5757 }
0x1b1f   :  { %v5749_v2 = vpop.xlane.xlu1 %5748 }
0x1b20   :  { %v5751_v23 = vsub.f32 %v5739_v53, %v5749_v2  ;;  %v14587_v53 = vld [vmem:[#allocation17 + $0x130] ss:$8 sps:$4 sm:$0xff]   ;;  %v14598_v2 = vld [vmem:[#allocation17 + $0x104] ss:$8 sps:$4 sm:$0xff]  }
0x1b22   :  { %v5754_v45 = vmul.f32 1.442695, %v5751_v23  ;;  %v14596_v23 = vld [vmem:[#allocation17 + $0x100] ss:$8 sps:$4 sm:$0xff]  }
0x1b23   :  { %v5817_v30 = vpop.permute.xlu1 %5816 }
0x1b24   :  { %14946 = vpow2.f32 %v5754_v45  ;;  %v5822_v25 = vsel %vm4336_vm5, %v5817_v30, 0 }
0x1b25   :  { %13883 = vmatpush3.bf16.msra.mxu0 %v5822_v25  ;;  %14948 = vrcp.f32 %v5758_v24 }
0x1b26   :  { %6050 = vmatprep.subr.bf16.mxu0 %v14577_v15 }
0x1b31   :  { %v14947_v58 = vpop.eup %14946 }
0x1b32   :  { %v5759_v26 = vsel %vm4863_vm8, %v14947_v58, 0.0  ;;  %v14949_v36 = vpop.eup %14948 }
0x1b33   :  { %5760 = vadd.xlane.f32.xlu0 %v5759_v26  ;;  %v5764_v35 = vmul.f32 %v14949_v36, %v14945_v8  ;;  %v14578_v8 = vld [vmem:[#allocation17 + $0x160] ss:$8 sps:$4 sm:$0xff]   ;;  %v12573_v26 = vld [vmem:[%s18066_s9 + $0x2] ss:$0 sm:$0xff]  ;;  %v12574_v36 = vld [vmem:[#allocation16 + $0x2] ss:$0 sm:$0xff] }
0x1b35   :  { %v5766_v13 = vpack.c.bf16 %v5764_v35, %v5764_v35 }
0x1b49   :  { %5768 = vrot.lane.b32.xlu0 %v16693_v10, %s15458_s13 }
0x1bbc   :  { %v5761_v18 = vpop.xlane.xlu0 %5760 }
0x1bbd   :  { %14950 = vrcp.f32 %v5761_v18 }
0x1bc0   :  { %v5769_v51 = vpop.permute.xlu0 %5768 }
0x1bc1   :  { %v5774_v40 = vsel %vm4336_vm5, %v5769_v51, 0 }
0x1bc2   :  { %13877 = vmatpush3.bf16.msra.mxu1 %v5774_v40  ;;  %v14599_v40 = vld [vmem:[#allocation19 + $0x178] sm:$0xff]  }
0x1bc3   :  { %13888 = vmatprep.subr.bf16.mxu1 %v18078_v1 }
0x1bc5   :  { %13879 = vmatmul.mubr.msk.bf16.vlgmr.msra.gmra.mxu1 %vm4888_vm9, %v5766_v13  ;;  %v14600_v13 = vld [vmem:[#allocation19 + $0x138] sm:$0xff]  }
0x1bc6   :  { %13892 = vmatprep.mubr.msk.bf16.mxu1 %vm15455_vm0, %v18078_v1  ;;  %13889 = vmatpush3.bf16.msra.mxu1 %v14573_v27  ;;  %v14604_v27 = vld [vmem:[#allocation19 + $0x128] sm:$0xff]  }
0x1bc7   :  { %13890 = vmatprep.subr.bf16.mxu1 %v18078_v1 }
0x1bca   :  { %v14951_v46 = vpop.eup %14950  ;;  %13891 = vmatpush3.bf16.msra.mxu1 %v14574_v14  ;;  %v14605_v14 = vld [vmem:[#allocation19 + $0x160] sm:$0xff]  }
0x1bcb   :  { %v5765_v10 = vmul.f32 %v14951_v46, %v14947_v58  ;;  %13110 = vmatprep.subr.bf16.mxu1 %v14599_v40  ;;  %v14601_v46 = vld [vmem:[#allocation19 + $0x170] sm:$0xff]  }
0x1bcd   :  { %v5767_v49 = vpack.c.bf16 %v5765_v10, %v5765_v10  ;;  %v14602_v10 = vld [vmem:[#allocation19 + $0x130] sm:$0xff]  }
0x1bcf   :  { %13885 = vmatmul.mubr.msk.bf16.vlgmr.msra.gmra.mxu0 %vm4888_vm9, %v5767_v49  ;;  %v14603_v49 = vld [vmem:[#allocation19 + $0x168] sm:$0xff]  }
0x1bd0   :  { %6082 = vmatprep.mubr.bf16.mxu0 %v18090_v5  ;;  %6051 = vmatpush1.bf16.msra.mxu0 %v14575_v48 }
0x1bd1   :  { %6052 = vmatprep.subr.bf16.mxu0 %v14580_v7 }
0x1bd4   :  { %6053 = vmatpush1.bf16.msra.mxu0 %v14578_v8 }
0x1c85   :  { %v5810_v17 = vpop.f32.mrf.mxu1 }
0x1c87   :  { %v13880_v57 = vpop.f32.mrf.mxu1 }
0x1c88   :  { %v14607_v57 = vld [vmem:[#allocation19 + $0x158] sm:$0xff]  }
0x1c89   :  { %v5813_v34 = vpop.f32.mrf.mxu1 }
0x1c8a   :  { %v14608_v34 = vld [vmem:[#allocation19 + $0x118] sm:$0xff]  }
0x1c8b   :  { %v13881_v12 = vpop.f32.mrf.mxu1 }
0x1c8c   :  { %v14609_v12 = vld [vmem:[#allocation19 + $0x150] sm:$0xff]  }
0x1c8f   :  { %v5858_v9 = vpop.f32.mrf.mxu0 }
0x1c90   :  { %v5866_v22 = vcombine.low %v5810_v17, %v5858_v9  ;;  %v14606_v17 = vld [vmem:[#allocation19 + $0x120] sm:$0xff]   ;;  %v14610_v9 = vld [vmem:[#allocation19 + $0x110] sm:$0xff]  }
0x1c91   :  { %v13886_v19 = vpop.f32.mrf.mxu0 }
0x1c92   :  { %v5868_v29 = vpack.c.bf16 %v5866_v22, %v5866_v22  ;;  %v14611_v22 = vld [vmem:[#allocation19 + $0x148] sm:$0xff]  }
0x1c93   :  { %v5861_v6 = vpop.f32.mrf.mxu0  ;;  %v14612_v19 = vld [vmem:[#allocation19 + $0x108] sm:$0xff]  }
0x1c94   :  { %13893 = vmatmul.mubr.msk.bf16.vlgmr.msra.gmra.mxu1 %vm732_vm1, %v5868_v29  ;;  %v14613_v29 = vld [vmem:[#allocation19 + $0x140] sm:$0xff]  }
0x1c95   :  { %v13887_v4 = vpop.f32.mrf.mxu0  ;;  %13111 = vmatpush3.bf16.msra.mxu1 %v14600_v13  ;;  %v14614_v6 = vld [vmem:[#allocation19 + $0x100] sm:$0xff]  }
0x1c96   :  { %13112 = vmatprep.subr.bf16.mxu1 %v14601_v46  ;;  %v12515_v4 = vld [vmem:[%s18069_s12 + $0x4] sm:$0x3] }
0x1c99   :  { %13113 = vmatpush3.bf16.msra.mxu1 %v14602_v10  ;;  %v14617_v10 = vld [vmem:[#allocation11 + $0x16c] ss:$12 sps:$4 sm:$0xff]  }
0x1c9a   :  { %13114 = vmatprep.subr.bf16.mxu1 %v14603_v49  ;;  %v14615_v49 = vld [vmem:[#allocation11 + $0x168] ss:$12 sps:$4 sm:$0xff]  }
0x1c9d   :  { %13115 = vmatpush3.bf16.msra.mxu1 %v14604_v27  ;;  %v14618_v27 = vld [vmem:[#allocation11 + $0x170] ss:$12 sps:$4 sm:$0xff]  }
0x1c9e   :  { %13116 = vmatprep.subr.bf16.mxu1 %v14605_v14  ;;  %v14621_v14 = vld [vmem:[#allocation11 + $0x154] ss:$12 sps:$4 sm:$0xff]  }
0x1ca1   :  { %13117 = vmatpush3.bf16.msra.mxu1 %v14606_v17  ;;  %v14619_v17 = vld [vmem:[#allocation11 + $0x150] ss:$12 sps:$4 sm:$0xff]  }
0x1ca2   :  { %13118 = vmatprep.subr.bf16.mxu1 %v14607_v57  ;;  %v14625_v57 = vld [vmem:[#allocation11 + $0x13c] ss:$12 sps:$4 sm:$0xff]  }
0x1ca5   :  { %13119 = vmatpush3.bf16.msra.mxu1 %v14608_v34  ;;  %v14623_v34 = vld [vmem:[#allocation11 + $0x138] ss:$12 sps:$4 sm:$0xff]  }
0x1ca6   :  { %13120 = vmatprep.subr.bf16.mxu1 %v14609_v12  ;;  %v14626_v12 = vld [vmem:[#allocation11 + $0x140] ss:$12 sps:$4 sm:$0xff]  }
0x1ca9   :  { %13121 = vmatpush3.bf16.msra.mxu1 %v14610_v9  ;;  %v14629_v9 = vld [vmem:[#allocation11 + $0x124] ss:$12 sps:$4 sm:$0xff]  }
0x1caa   :  { %13122 = vmatprep.subr.bf16.mxu1 %v14611_v22  ;;  %v14627_v22 = vld [vmem:[#allocation11 + $0x120] ss:$12 sps:$4 sm:$0xff]  }
0x1cad   :  { %13123 = vmatpush3.bf16.msra.mxu1 %v14612_v19  ;;  %v14630_v19 = vld [vmem:[#allocation11 + $0x128] ss:$12 sps:$4 sm:$0xff]  }
0x1cae   :  { %13124 = vmatprep.subr.bf16.mxu1 %v14613_v29  ;;  %v14633_v29 = vld [vmem:[#allocation11 + $0x10c] ss:$12 sps:$4 sm:$0xff]  }
0x1cb1   :  { %13125 = vmatpush3.bf16.msra.mxu1 %v14614_v6  ;;  %v14631_v6 = vld [vmem:[#allocation11 + $0x108] ss:$12 sps:$4 sm:$0xff]  }
0x1cb2   :  { %13896 = vmatprep.subr.bf16.mxu1 %v18078_v1 }
0x1d54   :  { %v5918_v50 = vpop.f32.mrf.mxu1 }
0x1d55   :  { %v5924_v31 = vadd.f32 %v5918_v50, %v5643_v3  ;;  %v14583_v3 = vld [vmem:[#allocation17 + $0x154] ss:$8 sps:$4 sm:$0xff]   ;;  %v5967_v50 = vrot.slane %v12515_v4, %v15628_v37 }
0x1d56   :  { %v13894_v52 = vpop.f32.mrf.mxu1  ;;  %6054 = vmatprep.subr.bf16.mxu0 %v14583_v3 }
0x1d57   :  { %v5931_v43 = vadd.f32 %v12572_v33, %v5924_v31  ;;  %6055 = vmatpush1.bf16.msra.mxu0 %v14581_v16  ;;  %v5963_v33 = vrot.slane %v12515_v4, %v15631_v38  ;;  %v14634_v4 = vld [vmem:[#allocation11 + $0x110] ss:$12 sps:$4 sm:$0xff]  }
0x1d58   :  { %v5921_v28 = vpop.f32.mrf.mxu1 }
0x1d59   :  { %v5932_v55 = vadd.f32 %v5931_v43, %v16580_v32  ;;  %v14586_v32 = vld [vmem:[#allocation17 + $0x144] ss:$8 sps:$4 sm:$0xff]  }
0x1d5a   :  { %v13895_v56 = vpop.f32.mrf.mxu1  ;;  %6056 = vmatprep.subr.bf16.mxu0 %v14586_v32 }
0x1d5b   :  { %5933 = vadd.xlane.f32.xlu1 %v5932_v55  ;;  %6057 = vmatpush1.bf16.msra.mxu0 %v14584_v0 }
0x1d5c   :  { %6058 = vmatprep.subr.bf16.mxu0 %v14589_v44 }
0x1d5f   :  { %6059 = vmatpush1.bf16.msra.mxu0 %v14587_v53 }
0x1d60   :  { %6060 = vmatprep.subr.bf16.mxu0 %v14592_v61 }
0x1d63   :  { %6061 = vmatpush1.bf16.msra.mxu0 %v14590_v20 }
0x1d64   :  { %6062 = vmatprep.subr.bf16.mxu0 %v14595_v47 }
0x1d67   :  { %6063 = vmatpush1.bf16.msra.mxu0 %v14593_v11 }
0x1d68   :  { %6064 = vmatprep.subr.bf16.mxu0 %v14598_v2 }
0x1d6b   :  { %6065 = vmatpush1.bf16.msra.mxu0 %v14596_v23 }
0x1d6c   :  { %6559 = vmatprep.subr.bf16.mxu0 %v14617_v10 }
0x1de4   :  { %v5934_v41 = vpop.xlane.xlu1 %5933 }
0x1de5   :  { %v5935_v39 = vmul.f32 0.0078125, %v5934_v41 }
0x1de7   :  { %v5936_v63 = vsub.f32 %v5932_v55, %v5935_v39 }
0x1de9   :  { %v5937_v60 = vmul.f32 %v5936_v63, %v5936_v63 }
0x1deb   :  { %5938 = vadd.xlane.f32.xlu0 %v5937_v60 }
0x1e74   :  { %v5939_v45 = vpop.xlane.xlu0 %5938 }
0x1e75   :  { %v5940_v30 = vmul.f32 0.0078125, %v5939_v45 }
0x1e77   :  { %v5941_v25 = vadd.f32 1e-12, %v5940_v30  ;;  %v12591_v30 = vld [vmem:[%s18071_s14 + $0x2] ss:$0 sm:$0xff] }
0x1e79   :  { %14952 = vrsqrt.f32 %v5941_v25 }
0x1e86   :  { %v14953_v58 = vpop.eup %14952 }
0x1e87   :  { %v5943_v24 = vmul.f32 %v14953_v58, %v5936_v63 }
0x1e89   :  { %v5950_v18 = vmul.f32 %v12573_v26, %v5943_v24 }
0x1e8b   :  { %v16805_v35 = vadd.f32 %v12574_v36, %v5950_v18 }
0x1e8d   :  { %v5958_v51 = vpack.c.bf16 %v16805_v35, %v16805_v35 }
0x1e8f   :  { %6083 = vmatmul.mubr.bf16.vlgmr.msra.gmra.mxu0 %v5958_v51 }
0x1e90   :  { %6591 = vmatprep.mubr.bf16.mxu0 %v18090_v5  ;;  %6560 = vmatpush1.bf16.msra.mxu0 %v14615_v49 }
0x1e91   :  { %6561 = vmatprep.subr.bf16.mxu0 %v14621_v14 }
0x1e94   :  { %6562 = vmatpush1.bf16.msra.mxu0 %v14619_v17 }
0x1e95   :  { %6563 = vmatprep.subr.bf16.mxu0 %v14625_v57 }
0x1e98   :  { %6564 = vmatpush1.bf16.msra.mxu0 %v14623_v34 }
0x1e99   :  { %6565 = vmatprep.subr.bf16.mxu0 %v14629_v9 }
0x1e9c   :  { %6566 = vmatpush1.bf16.msra.mxu0 %v14627_v22 }
0x1e9d   :  { %6567 = vmatprep.subr.bf16.mxu0 %v14633_v29 }
0x1ea0   :  { %6568 = vmatpush1.bf16.msra.mxu0 %v14631_v6 }
0x1f4f   :  { %v6084_v31 = vpop.f32.mrf.mxu0 }
0x1f50   :  { %v6085_v52 = vadd.f32 %v6084_v31, %v5963_v33  ;;  %v14637_v33 = vld [vmem:[#allocation11 + $0xf4] ss:$12 sps:$4 sm:$0xff]   ;;  %v14638_v31 = vld [vmem:[#allocation11 + $0xf8] ss:$12 sps:$4 sm:$0xff]  }
0x1f51   :  { %v6086_v43 = vpop.f32.mrf.mxu0  ;;  %6569 = vmatprep.subr.bf16.mxu0 %v14637_v33 }
0x1f52   :  { %v6093_v28 = vmul.f32 0.044715, %v6085_v52  ;;  %v6087_v55 = vadd.f32 %v6086_v43, %v5967_v50  ;;  %v6091_v53 = vmul.f32 0.5, %v6085_v52  ;;  %v14635_v50 = vld [vmem:[#allocation11 + $0xf0] ss:$12 sps:$4 sm:$0xff]  }
0x1f53   :  { %v6088_v56 = vpop.f32.mrf.mxu0  ;;  %6570 = vmatpush1.bf16.msra.mxu0 %v14635_v50  ;;  %v14639_v43 = vld [vmem:[#allocation11 + $0xd8] ss:$12 sps:$4 sm:$0xff]  }
0x1f54   :  { %v6095_v48 = vmul.f32 %v6093_v28, %v6085_v52  ;;  %v6094_v15 = vmul.f32 0.044715, %v6087_v55  ;;  %v6092_v61 = vmul.f32 0.5, %v6087_v55  ;;  %v14642_v28 = vld [vmem:[#allocation11 + $0xe0] ss:$12 sps:$4 sm:$0xff]  }
0x1f55   :  { %v6089_v7 = vpop.f32.mrf.mxu0  ;;  %v14643_v56 = vld [vmem:[#allocation11 + $0xc0] ss:$12 sps:$4 sm:$0xff]  }
0x1f56   :  { %v6097_v8 = vmul.f32 %v6095_v48, %v6085_v52  ;;  %v6096_v41 = vmul.f32 %v6094_v15, %v6087_v55  ;;  %v14646_v48 = vld [vmem:[#allocation11 + $0xc8] ss:$12 sps:$4 sm:$0xff]  }
0x1f58   :  { %v6099_v39 = vadd.f32 %v6097_v8, %v6085_v52  ;;  %v6098_v63 = vmul.f32 %v6096_v41, %v6087_v55  ;;  %v14641_v52 = vld [vmem:[#allocation11 + $0xdc] ss:$12 sps:$4 sm:$0xff]  }
0x1f59   :  { %6571 = vmatprep.subr.bf16.mxu0 %v14641_v52 }
0x1f5a   :  { %v6101_v60 = vmul.f32 0.7978846, %v6099_v39  ;;  %v6100_v3 = vadd.f32 %v6098_v63, %v6087_v55  ;;  %v14645_v55 = vld [vmem:[#allocation11 + $0xc4] ss:$12 sps:$4 sm:$0xff]   ;;  %6572 = vmatpush1.bf16.msra.mxu0 %v14639_v43  ;;  %v12608_v39 = vld [vmem:[%s18072_s15 + $0x2] ss:$0 sm:$0xff] }
0x1f5b   :  { %6573 = vmatprep.subr.bf16.mxu0 %v14645_v55 }
0x1f5c   :  { %14954 = vtanh.f32 %v6101_v60  ;;  %v6102_v16 = vmul.f32 0.7978846, %v6100_v3  ;;  %v12609_v60 = vld [vmem:[%s18073_s16 + $0x2] ss:$0 sm:$0xff] }
0x1f5e   :  { %14956 = vtanh.f32 %v6102_v16  ;;  %6574 = vmatpush1.bf16.msra.mxu0 %v14643_v56 }
0x1f5f   :  { %13924 = vmatprep.subr.bf16.mxu0 %v18078_v1 }
0x1f69   :  { %v14955_v32 = vpop.eup %14954 }
0x1f6a   :  { %v6105_v0 = vadd.f32 1.0, %v14955_v32 }
0x1f6b   :  { %v14957_v44 = vpop.eup %14956 }
0x1f6c   :  { %v6106_v20 = vadd.f32 1.0, %v14957_v44  ;;  %v6107_v11 = vmul.f32 %v6105_v0, %v6091_v53 }
0x1f6e   :  { %v6108_v47 = vmul.f32 %v6106_v20, %v6092_v61  ;;  %v6109_v23 = vpack.c.bf16 %v6107_v11, %v6107_v11 }
0x1f70   :  { %v6110_v2 = vpack.c.bf16 %v6108_v47, %v6108_v47 }
0x1f72   :  { %6245 = vmatprep.mubr.bf16.mxu1 %v6110_v2 }
0x1f73   :  { %6246 = vmatmul.mubr.bf16.vlgmr.msra.gmra.mxu1 %v6109_v23  ;;  %v6330_v23 = vld [vmem:[#allocation13 + $0x3] sm:$0x7] }
0x1f74   :  { %13912 = vmatprep.mubr.msk.bf16.mxu1 %vm15455_vm0, %v18078_v1  ;;  %13897 = vmatpush3.bf16.msra.mxu1 %v14618_v27  ;;  %v16872_v49 = vrot.slane %v6330_v23, %v15654_v59 }
0x1f75   :  { %13898 = vmatprep.subr.bf16.mxu1 %v18078_v1 }
0x2033   :  { %v13126_v45 = vpop.f32.mrf.mxu1 }
0x2035   :  { %v13127_v25 = vpop.f32.mrf.mxu1 }
0x2036   :  { %v13128_v58 = vadd.f32 %v13127_v25, %v13126_v45  ;;  %v16858_v45 = vrot.slane %v6330_v23, %v15628_v37 }
0x2037   :  { %v13129_v26 = vpop.f32.mrf.mxu1 }
0x2038   :  { %v6248_v24 = vadd.f32 %v13128_v58, %v12591_v30  ;;  %v16863_v58 = vrot.slane %v6330_v23, %v15631_v38 }
0x2039   :  { %v13130_v36 = vpop.f32.mrf.mxu1 }
0x203a   :  { %v6253_v18 = vadd.f32 %v6248_v24, %v16805_v35  ;;  %v14622_v35 = vld [vmem:[#allocation11 + $0x158] ss:$12 sps:$4 sm:$0xff]  }
0x203b   :  { %13899 = vmatpush3.bf16.msra.mxu1 %v14622_v35 }
0x203c   :  { %6254 = vadd.xlane.f32.xlu0 %v6253_v18  ;;  %13900 = vmatprep.subr.bf16.mxu1 %v18078_v1 }
0x203f   :  { %13901 = vmatpush3.bf16.msra.mxu1 %v14626_v12 }
0x2040   :  { %13902 = vmatprep.subr.bf16.mxu1 %v18078_v1 }
0x2043   :  { %13903 = vmatpush3.bf16.msra.mxu1 %v14630_v19 }
0x2044   :  { %13904 = vmatprep.subr.bf16.mxu1 %v18078_v1 }
0x2047   :  { %13905 = vmatpush3.bf16.msra.mxu1 %v14634_v4 }
0x2048   :  { %13906 = vmatprep.subr.bf16.mxu1 %v18078_v1 }
0x204b   :  { %13907 = vmatpush3.bf16.msra.mxu1 %v14638_v31 }
0x204c   :  { %13908 = vmatprep.subr.bf16.mxu1 %v18078_v1 }
0x204f   :  { %13909 = vmatpush3.bf16.msra.mxu1 %v14642_v28 }
0x2050   :  { %13910 = vmatprep.subr.bf16.mxu1 %v18078_v1 }
0x2053   :  { %13911 = vmatpush3.bf16.msra.mxu1 %v14646_v48 }
0x2054   :  { %13930 = vmatprep.subr.bf16.mxu1 %v18078_v1 }
0x20c5   :  { %v6255_v51 = vpop.xlane.xlu0 %6254 }
0x20c6   :  { %v6256_v40 = vmul.f32 0.0078125, %v6255_v51 }
0x20c8   :  { %v16822_v13 = vsub.f32 %v6253_v18, %v6256_v40 }
0x20ca   :  { %v6258_v46 = vmul.f32 %v16822_v13, %v16822_v13 }
0x20cc   :  { %6259 = vadd.xlane.f32.xlu1 %v6258_v46 }
0x2155   :  { %v6260_v15 = vpop.xlane.xlu1 %6259 }
0x2156   :  { %v6261_v7 = vmul.f32 0.0078125, %v6260_v15 }
0x2158   :  { %v6262_v8 = vadd.f32 1e-12, %v6261_v7 }
0x215a   :  { %14958 = vrsqrt.f32 %v6262_v8 }
0x2167   :  { %v14959_v41 = vpop.eup %14958 }
0x2168   :  { %v6264_v63 = vmul.f32 %v14959_v41, %v16822_v13 }
0x216a   :  { %v6271_v3 = vmul.f32 %v12608_v39, %v6264_v63 }
0x216c   :  { %v16842_v16 = vadd.f32 %v12609_v60, %v6271_v3 }
0x216e   :  { %6283 = vst [vmem:[#allocation21 - $0x1] ss:$24 sps:$4 sm:$0x22] %v16842_v16   ;;  %6284 = vst [vmem:[#allocation21 + $0x6] ss:$24 sps:$4 sm:$0x44] %v16842_v16  }
0x216f   :  { %6285 = vst [vmem:[#allocation21 + $0xd] ss:$24 sps:$4 sm:$0x88] %v16842_v16  }
0x2175   :  { %v6290_v32 = vld [vmem:[#allocation21] sm:$0xff]  ;;  %v6291_v0 = vld [vmem:[#allocation21 + $0x8] sm:$0xff]  ;;  %v6293_v61 = vld [vmem:[#allocation21 + $0x18] sm:$0xff] }
0x2176   :  { %v6412_v44 = vpack.c.bf16 %v6291_v0, %v6290_v32  ;;  %v6292_v53 = vld [vmem:[#allocation21 + $0x10] sm:$0xff]  ;;  %v6294_v11 = vld [vmem:[#allocation21 + $0x20] sm:$0xff]  ;;  %v6295_v47 = vld [vmem:[#allocation21 + $0x28] sm:$0xff] }
0x2177   :  { %v6413_v20 = vpack.c.bf16 %v6293_v61, %v6292_v53  ;;  %v6414_v2 = vpack.c.bf16 %v6295_v47, %v6294_v11 }
0x2178   :  { %6592 = vmatmul.mubr.bf16.vlgmr.msra.gmra.mxu0 %v6412_v44  ;;  %13913 = vmatmul.mubr.bf16.vlgmr.msra.gmra.mxu1 %v6412_v44 }
0x2179   :  { %6601 = vmatprep.mubr.bf16.mxu0 %v18090_v5  ;;  %13916 = vmatprep.mubr.msk.bf16.mxu1 %vm15455_vm0, %v18078_v1 }
0x2180   :  { %6602 = vmatmul.mubr.bf16.gmra.mxu0 %v6413_v20  ;;  %13917 = vmatmul.mubr.bf16.gmra.mxu1 %v6413_v20 }
0x2181   :  { %6611 = vmatprep.mubr.bf16.mxu0 %v18090_v5  ;;  %13920 = vmatprep.mubr.msk.bf16.mxu1 %vm15455_vm0, %v18078_v1 }
0x2188   :  { %6612 = vmatmul.mubr.bf16.gmra.mxu0 %v6414_v2  ;;  %13921 = vmatmul.mubr.bf16.gmra.mxu1 %v6414_v2 }
0x2189   :  { %13926 = vmatprep.mubr.msk.bf16.mxu0 %vm15455_vm0, %v18078_v1  ;;  %13932 = vmatprep.mubr.msk.bf16.mxu1 %vm15455_vm0, %v18078_v1 }
0x2238   :  { %v6593_v30 = vpop.f32.mrf.mxu0  ;;  %v16860_v25 = vpop.f32.mrf.mxu1 }
0x2239   :  { %v6594_v40 = vadd.f32 %v6593_v30, %v16863_v58 }
0x223a   :  { %v6595_v26 = vpop.f32.mrf.mxu0  ;;  %v13914_v24 = vpop.f32.mrf.mxu1 }
0x223b   :  { %v6596_v36 = vadd.f32 %v6595_v26, %v16858_v45  ;;  %v6679_v57 = vmul.f32 0.17677669, %v6594_v40 }
0x223c   :  { %v6597_v18 = vpop.f32.mrf.mxu0  ;;  %v16866_v51 = vpop.f32.mrf.mxu1 }
0x223d   :  { %v16869_v13 = vpack.c.bf16 %v6596_v36, %v6596_v36  ;;  %v6598_v34 = vadd.f32 %v6597_v18, %v16863_v58  ;;  %v16888_v31 = vpack.c.bf16 %v6679_v57, %v6679_v57  ;;  %v6657_v36 = vadd.f32 %v16860_v25, %v16872_v49 }
0x223e   :  { %v6599_v46 = vpop.f32.mrf.mxu0  ;;  %v13915_v10 = vpop.f32.mrf.mxu1  ;;  %v6660_v25 = vadd.f32 %v16866_v51, %v16872_v49 }
0x223f   :  { %v6600_v27 = vadd.f32 %v6599_v46, %v16858_v45  ;;  %v6821_v14 = vsel %vm732_vm1, %v16869_v13, 0  ;;  %v6680_v52 = vmul.f32 0.17677669, %v6598_v34 }
0x2240   :  { %v6603_v17 = vpop.f32.mrf.mxu0  ;;  %v6664_v35 = vpop.f32.mrf.mxu1  ;;  %13925 = vmatpush3.bf16.xpose.msra.mxu0 %v6821_v14  ;;  %v16956_v57 = vpack.c.bf16 %v6660_v25, %v6660_v25 }
0x2241   :  { %v16878_v12 = vpack.c.bf16 %v6600_v27, %v6600_v27  ;;  %v16881_v9 = vadd.f32 %v6664_v35, %v16872_v49  ;;  %13936 = vmatprep.subr.bf16.mxu0 %v18078_v1  ;;  %v6604_v4 = vadd.f32 %v6603_v17, %v16863_v58  ;;  %v16903_v39 = vpack.c.bf16 %v6680_v52, %v6680_v52 }
0x2242   :  { %v6605_v22 = vpop.f32.mrf.mxu0  ;;  %v13918_v19 = vpop.f32.mrf.mxu1  ;;  %v7215_v34 = vsel %vm1085_vm2, %v16956_v57, 0 }
0x2243   :  { %v6606_v29 = vadd.f32 %v6605_v22, %v16858_v45  ;;  %v6867_v6 = vsel %vm732_vm1, %v16878_v12, 0  ;;  %v6681_v7 = vmul.f32 0.17677669, %v6604_v4  ;;  %v6289_v22 = vld [vmem:[#allocation7] sm:$0x3f] }
0x2244   :  { %v6607_v33 = vpop.f32.mrf.mxu0  ;;  %v6667_v50 = vpop.f32.mrf.mxu1  ;;  %13931 = vmatpush3.bf16.xpose.msra.mxu1 %v6867_v6  ;;  %v6747_v19 = vrot.slane %v6289_v22, %v15740_v62 }
0x2245   :  { %v16890_v43 = vpack.c.bf16 %v6606_v29, %v6606_v29  ;;  %v16893_v28 = vadd.f32 %v6667_v50, %v16872_v49  ;;  %13942 = vmatprep.subr.bf16.mxu1 %v18078_v1  ;;  %v6608_v63 = vadd.f32 %v6607_v33, %v16863_v58  ;;  %v16917_v61 = vpack.c.bf16 %v6681_v7, %v6681_v7 }
0x2246   :  { %v6609_v55 = vpop.f32.mrf.mxu0  ;;  %v13919_v56 = vpop.f32.mrf.mxu1  ;;  %v6763_v29 = vrot.slane %v6747_v19, %v15740_v62  ;;  %v6755_v6 = vcombine.high %v6747_v19, %v6747_v19 }
0x2247   :  { %v6610_v48 = vadd.f32 %v6609_v55, %v16858_v45  ;;  %13927 = vmatmul.mubr.msk.bf16.vlgmr.msra.gmra.mxu0 %vm732_vm1, %v16888_v31  ;;  %v6913_v15 = vsel %vm732_vm1, %v16890_v43, 0  ;;  %v6682_v47 = vmul.f32 0.17677669, %v6608_v63 }
0x2248   :  { %v6613_v8 = vpop.f32.mrf.mxu0  ;;  %v6672_v41 = vpop.f32.mrf.mxu1  ;;  %13937 = vmatpush3.bf16.xpose.msra.mxu0 %v6913_v15  ;;  %13938 = vmatprep.mubr.msk.bf16.mxu0 %vm15455_vm0, %v18078_v1  ;;  %v16977_v4 = vrot.slane %v6763_v29, %v15631_v38  ;;  %v6777_v33 = vrot.slane %v6755_v6, %v15740_v62  ;;  %v6785_v56 = vcombine.high %v6763_v29, %v6763_v29 }
0x2249   :  { %v16906_v60 = vpack.c.bf16 %v6610_v48, %v6610_v48  ;;  %v16909_v3 = vadd.f32 %v6672_v41, %v16872_v49  ;;  %13948 = vmatprep.subr.bf16.mxu0 %v18078_v1  ;;  %v6614_v2 = vadd.f32 %v6613_v8, %v16863_v58  ;;  %v16937_v46 = vpack.c.bf16 %v6682_v47, %v6682_v47 }
0x224a   :  { %v6615_v32 = vpop.f32.mrf.mxu0  ;;  %v13922_v0 = vpop.f32.mrf.mxu1  ;;  %v16982_v55 = vrot.slane %v6777_v33, %v15631_v38  ;;  %v6740_v48 = vcombine.high %v6289_v22, %v6289_v22 }
0x224b   :  { %v6616_v44 = vadd.f32 %v6615_v32, %v16858_v45  ;;  %13933 = vmatmul.mubr.msk.bf16.vlgmr.msra.gmra.mxu1 %vm732_vm1, %v16903_v39  ;;  %v6959_v53 = vsel %vm732_vm1, %v16906_v60, 0  ;;  %v6683_v10 = vmul.f32 0.17677669, %v6614_v2  ;;  %v16987_v32 = vrot.slane %v6785_v56, %v15631_v38 }
0x224c   :  { %v6617_v20 = vpop.f32.mrf.mxu0  ;;  %v6675_v11 = vpop.f32.mrf.mxu1  ;;  %13943 = vmatpush3.bf16.xpose.msra.mxu1 %v6959_v53  ;;  %13944 = vmatprep.mubr.msk.bf16.mxu1 %vm15455_vm0, %v18078_v1  ;;  %v6786_v0 = vcombine.high %v6777_v33, %v6777_v33 }
0x224d   :  { %v16922_v23 = vpack.c.bf16 %v6616_v44, %v6616_v44  ;;  %v16925_v30 = vadd.f32 %v6675_v11, %v16872_v49  ;;  %13954 = vmatprep.subr.bf16.mxu1 %v18078_v1  ;;  %v6618_v27 = vadd.f32 %v6617_v20, %v16863_v58  ;;  %v16953_v58 = vpack.c.bf16 %v6683_v10, %v6683_v10 }
0x224e   :  { %v6619_v26 = vpop.f32.mrf.mxu0  ;;  %v13923_v24 = vpop.f32.mrf.mxu1  ;;  %v6754_v44 = vrot.slane %v6740_v48, %v15740_v62 }
0x224f   :  { %v6620_v18 = vadd.f32 %v6619_v26, %v16858_v45  ;;  %13939 = vmatmul.mubr.msk.bf16.vlgmr.msra.gmra.mxu0 %vm732_vm1, %v16917_v61  ;;  %v7005_v40 = vsel %vm732_vm1, %v16922_v23, 0  ;;  %v16943_v45 = vpack.c.bf16 %v6657_v36, %v6657_v36  ;;  %v6684_v35 = vmul.f32 0.17677669, %v6618_v27 }
0x2250   :  { %13949 = vmatpush3.bf16.xpose.msra.mxu0 %v7005_v40  ;;  %13950 = vmatprep.mubr.msk.bf16.mxu0 %vm15455_vm0, %v18078_v1  ;;  %v16993_v24 = vrot.slane %v6786_v0, %v15631_v38  ;;  %v6770_v36 = vrot.slane %v6754_v44, %v15740_v62 }
0x2251   :  { %v16940_v14 = vpack.c.bf16 %v6620_v18, %v6620_v18  ;;  %13960 = vmatprep.subr.bf16.mxu0 %v18078_v1  ;;  %v7169_v51 = vsel %vm1085_vm2, %v16943_v45, 0  ;;  %v16964_v49 = vpack.c.bf16 %v6684_v35, %v6684_v35  ;;  %v6756_v18 = vcombine.high %v6754_v44, %v6754_v44 }
0x2253   :  { %13945 = vmatmul.mubr.msk.bf16.vlgmr.msra.gmra.mxu1 %vm732_vm1, %v16937_v46  ;;  %v7051_v17 = vsel %vm732_vm1, %v16940_v14, 0 }
0x2254   :  { %13955 = vmatpush3.bf16.xpose.msra.mxu1 %v7051_v17  ;;  %13956 = vmatprep.mubr.msk.bf16.mxu1 %vm15455_vm0, %v18078_v1 }
0x2255   :  { %13966 = vmatprep.subr.bf16.mxu1 %v18078_v1 }
0x2257   :  { %13951 = vmatmul.mubr.msk.bf16.vlgmr.msra.gmra.mxu0 %vm732_vm1, %v16953_v58 }
0x2258   :  { %13961 = vmatpush3.bf16.msra.mxu0 %v7169_v51  ;;  %13962 = vmatprep.mubr.msk.bf16.mxu0 %vm15455_vm0, %v18078_v1  ;;  %v16999_v51 = vrot.slane %v6770_v36, %v15631_v38 }
0x2259   :  { %13972 = vmatprep.subr.bf16.mxu0 %v18078_v1 }
0x225b   :  { %13957 = vmatmul.mubr.msk.bf16.vlgmr.msra.gmra.mxu1 %vm732_vm1, %v16964_v49 }
0x225c   :  { %13967 = vmatpush3.bf16.msra.mxu1 %v7215_v34  ;;  %13968 = vmatprep.mubr.msk.bf16.mxu1 %vm15455_vm0, %v18078_v1  ;;  %v6784_v34 = vrot.slane %v6756_v18, %v15740_v62 }
0x225d   :  { %13978 = vmatprep.subr.bf16.mxu1 %v18078_v1 }
0x225e   :  { %v17005_v56 = vrot.slane %v6784_v34, %v15631_v38 }
0x2307   :  { %v6857_v50 = vpop.f32.mrf.mxu0 }
0x2308   :  { %v6858_v52 = vadd.f32 %v6857_v50, %v16977_v4 }
0x2309   :  { %v13928_v15 = vpop.f32.mrf.mxu0 }
0x230a   :  { %v7093_v7 = vsel %vm1009_vm3, %v6858_v52, -inf }
0x230b   :  { %v6903_v8 = vpop.f32.mrf.mxu1  ;;  %7094 = vmax.xlane.f32.xlu0 %v7093_v7  ;;  %v6860_v41 = vpop.f32.mrf.mxu0 }
0x230c   :  { %v6904_v63 = vadd.f32 %v6903_v8, %v16982_v55 }
0x230d   :  { %v13929_v53 = vpop.f32.mrf.mxu0  ;;  %v13934_v20 = vpop.f32.mrf.mxu1 }
0x230e   :  { %v7096_v11 = vsel %vm1009_vm3, %v6904_v63, -inf }
0x230f   :  { %7097 = vmax.xlane.f32.xlu1 %v7096_v11  ;;  %v6906_v47 = vpop.f32.mrf.mxu1  ;;  %v6949_v2 = vpop.f32.mrf.mxu0 }
0x2310   :  { %v6950_v26 = vadd.f32 %v6949_v2, %v16987_v32 }
0x2311   :  { %v13935_v40 = vpop.f32.mrf.mxu1  ;;  %v13940_v10 = vpop.f32.mrf.mxu0 }
0x2312   :  { %v7099_v27 = vsel %vm1009_vm3, %v6950_v26, -inf }
0x2313   :  { %v6995_v25 = vpop.f32.mrf.mxu1  ;;  %7100 = vmax.xlane.f32.xlu0 %v7099_v27  ;;  %v6952_v17 = vpop.f32.mrf.mxu0 }
0x2314   :  { %v6996_v35 = vadd.f32 %v6995_v25, %v16993_v24 }
0x2315   :  { %v13941_v22 = vpop.f32.mrf.mxu0  ;;  %v13946_v19 = vpop.f32.mrf.mxu1 }
0x2316   :  { %v7102_v29 = vsel %vm1009_vm3, %v6996_v35, -inf }
0x2317   :  { %7103 = vmax.xlane.f32.xlu1 %v7102_v29  ;;  %v6998_v6 = vpop.f32.mrf.mxu1  ;;  %v7041_v33 = vpop.f32.mrf.mxu0 }
0x2318   :  { %v7042_v50 = vadd.f32 %v7041_v33, %v16999_v51 }
0x2319   :  { %v13947_v48 = vpop.f32.mrf.mxu1  ;;  %v13952_v15 = vpop.f32.mrf.mxu0 }
0x231a   :  { %v7105_v7 = vsel %vm1009_vm3, %v7042_v50, -inf }
0x231b   :  { %v7087_v8 = vpop.f32.mrf.mxu1  ;;  %7106 = vmax.xlane.f32.xlu0 %v7105_v7  ;;  %v7044_v41 = vpop.f32.mrf.mxu0 }
0x231c   :  { %v7088_v62 = vadd.f32 %v7087_v8, %v17005_v56 }
0x231d   :  { %v13953_v0 = vpop.f32.mrf.mxu0  ;;  %v13958_v44 = vpop.f32.mrf.mxu1 }
0x231e   :  { %v7108_v53 = vsel %vm1009_vm3, %v7088_v62, -inf }
0x231f   :  { %7109 = vmax.xlane.f32.xlu1 %v7108_v53  ;;  %v7090_v20 = vpop.f32.mrf.mxu1 }
0x2321   :  { %v13959_v11 = vpop.f32.mrf.mxu1 }
0x2394   :  { %v7095_v47 = vpop.xlane.xlu0 %7094 }
0x2395   :  { %v7111_v2 = vsub.f32 %v6858_v52, %v7095_v47 }
0x2397   :  { %v7117_v36 = vmul.f32 1.442695, %v7111_v2 }
0x2398   :  { %v7098_v18 = vpop.xlane.xlu1 %7097 }
0x2399   :  { %14960 = vpow2.f32 %v7117_v36  ;;  %v7112_v40 = vsub.f32 %v6904_v63, %v7098_v18 }
0x239b   :  { %v7119_v10 = vmul.f32 1.442695, %v7112_v40  ;;  %v17048_v40 = vpack.c.bf16 %v16881_v9, %v16881_v9 }
0x239c   :  { %v7101_v27 = vpop.xlane.xlu0 %7100 }
0x239d   :  { %14962 = vpow2.f32 %v7119_v10  ;;  %v7113_v25 = vsub.f32 %v6950_v26, %v7101_v27 }
0x239f   :  { %v7121_v17 = vmul.f32 1.442695, %v7113_v25 }
0x23a0   :  { %v7104_v34 = vpop.xlane.xlu1 %7103 }
0x23a1   :  { %14964 = vpow2.f32 %v7121_v17  ;;  %v7114_v22 = vsub.f32 %v6996_v35, %v7104_v34  ;;  %v17052_v34 = vpack.c.bf16 %v16893_v28, %v16893_v28 }
0x23a3   :  { %v7123_v19 = vmul.f32 1.442695, %v7114_v22 }
0x23a4   :  { %v7107_v29 = vpop.xlane.xlu0 %7106 }
0x23a5   :  { %14966 = vpow2.f32 %v7123_v19  ;;  %v7115_v6 = vsub.f32 %v7042_v50, %v7107_v29  ;;  %v7261_v19 = vsel %vm1085_vm2, %v17048_v40, 0 }
0x23a6   :  { %v14961_v33 = vpop.eup %14960 }
0x23a7   :  { %v7125_v48 = vmul.f32 1.442695, %v7115_v6  ;;  %v7129_v52 = vsel %vm1009_vm3, %v14961_v33, 0.0  ;;  %v17062_v6 = vpack.c.bf16 %v16909_v3, %v16909_v3 }
0x23a8   :  { %7130 = vadd.xlane.f32.xlu0 %v7129_v52  ;;  %v7110_v0 = vpop.xlane.xlu1 %7109 }
0x23a9   :  { %14968 = vpow2.f32 %v7125_v48  ;;  %v7116_v44 = vsub.f32 %v7088_v62, %v7110_v0 }
0x23aa   :  { %v14963_v15 = vpop.eup %14962 }
0x23ab   :  { %v7132_v63 = vsel %vm1009_vm3, %v14963_v15, 0.0  ;;  %v7127_v53 = vmul.f32 1.442695, %v7116_v44 }
0x23ac   :  { %7133 = vadd.xlane.f32.xlu1 %v7132_v63  ;;  %v7353_v63 = vsel %vm1085_vm2, %v17062_v6, 0 }
0x23ad   :  { %14970 = vpow2.f32 %v7127_v53 }
0x23ae   :  { %v14965_v7 = vpop.eup %14964 }
0x23af   :  { %v7135_v26 = vsel %vm1009_vm3, %v14965_v7, 0.0 }
0x23b0   :  { %7136 = vadd.xlane.f32.xlu0 %v7135_v26 }
0x23b2   :  { %v14967_v8 = vpop.eup %14966 }
0x23b3   :  { %v7138_v35 = vsel %vm1009_vm3, %v14967_v8, 0.0 }
0x23b4   :  { %7139 = vadd.xlane.f32.xlu1 %v7138_v35 }
0x23b6   :  { %v17014_v41 = vpop.eup %14968 }
0x23b7   :  { %v7141_v50 = vsel %vm1009_vm3, %v17014_v41, 0.0 }
0x23b8   :  { %7142 = vadd.xlane.f32.xlu0 %v7141_v50 }
0x23ba   :  { %v17032_v20 = vpop.eup %14970 }
0x23bb   :  { %v7144_v11 = vsel %vm1009_vm3, %v17032_v20, 0.0 }
0x23c5   :  { %7496 = vrot.lane.b32.xlu1 %v16878_v12, %s15457_s10 }
0x23c9   :  { %7444 = vrot.lane.b32.xlu1 %v16888_v31, %s15457_s10 }
0x23ce   :  { %7446 = vrot.lane.b32.xlu0 %v16869_v13, %s15457_s10 }
0x23d2   :  { %7546 = vrot.lane.b32.xlu0 %v16890_v43, %s15457_s10 }
0x23d6   :  { %7544 = vrot.lane.b32.xlu0 %v16917_v61, %s15457_s10 }
0x23da   :  { %7646 = vrot.lane.b32.xlu0 %v16922_v23, %s15457_s10 }
0x23de   :  { %7644 = vrot.lane.b32.xlu0 %v16953_v58, %s15457_s10 }
0x23ed   :  { %7145 = vadd.xlane.f32.xlu1 %v7144_v11 }
0x23fe   :  { %7494 = vrot.lane.b32.xlu1 %v16903_v39, %s15457_s10 }
0x2402   :  { %7596 = vrot.lane.b32.xlu1 %v16906_v60, %s15457_s10 }
0x2406   :  { %7594 = vrot.lane.b32.xlu1 %v16937_v46, %s15457_s10 }
0x240a   :  { %7696 = vrot.lane.b32.xlu1 %v16940_v14, %s15457_s10 }
0x240e   :  { %7694 = vrot.lane.b32.xlu1 %v16964_v49, %s15457_s10 }
0x2431   :  { %v7131_v62 = vpop.xlane.xlu0 %7130 }
0x2432   :  { %14972 = vrcp.f32 %v7131_v62 }
0x2435   :  { %v7134_v47 = vpop.xlane.xlu1 %7133 }
0x2436   :  { %14974 = vrcp.f32 %v7134_v47 }
0x2439   :  { %v7137_v2 = vpop.xlane.xlu0 %7136 }
0x243a   :  { %14976 = vrcp.f32 %v7137_v2 }
0x243d   :  { %v7140_v36 = vpop.xlane.xlu1 %7139 }
0x243e   :  { %14978 = vrcp.f32 %v7140_v36 }
0x243f   :  { %v14973_v18 = vpop.eup %14972 }
0x2440   :  { %v7153_v10 = vmul.f32 %v14973_v18, %v14961_v33  ;;  %v7307_v33 = vsel %vm1085_vm2, %v17052_v34, 0 }
0x2441   :  { %v7143_v27 = vpop.xlane.xlu0 %7142  ;;  %v7497_v44 = vpop.permute.xlu1 %7496 }
0x2442   :  { %v7159_v25 = vpack.c.bf16 %v7153_v10, %v7153_v10  ;;  %14980 = vrcp.f32 %v7143_v27 }
0x2443   :  { %v14975_v17 = vpop.eup %14974 }
0x2444   :  { %v7154_v22 = vmul.f32 %v14975_v17, %v14963_v15  ;;  %13963 = vmatmul.mubr.msk.bf16.vlgmr.msra.gmra.mxu0 %vm1009_vm3, %v7159_v25  ;;  %v17072_v15 = vpack.c.bf16 %v16925_v30, %v16925_v30 }
0x2445   :  { %13973 = vmatpush3.bf16.msra.mxu0 %v7261_v19  ;;  %13974 = vmatprep.mubr.msk.bf16.mxu0 %vm15455_vm0, %v18078_v1  ;;  %v7447_v35 = vpop.permute.xlu0 %7446 }
0x2446   :  { %v7160_v9 = vpack.c.bf16 %v7154_v22, %v7154_v22  ;;  %13984 = vmatprep.subr.bf16.mxu0 %v18078_v1  ;;  %v7399_v30 = vsel %vm1085_vm2, %v17072_v15, 0  ;;  %v7452_v0 = vsel %vm732_vm1, %v7447_v35, 0  ;;  %v7502_v22 = vsel %vm732_vm1, %v7497_v44, 0 }
0x2447   :  { %v14977_v29 = vpop.eup %14976 }
0x2448   :  { %v7155_v28 = vmul.f32 %v14977_v29, %v14965_v7  ;;  %13969 = vmatmul.mubr.msk.bf16.vlgmr.msra.gmra.mxu1 %vm1009_vm3, %v7160_v9 }
0x2449   :  { %13979 = vmatpush3.bf16.msra.mxu1 %v7307_v33  ;;  %13980 = vmatprep.mubr.msk.bf16.mxu1 %vm15455_vm0, %v18078_v1  ;;  %v7547_v53 = vpop.permute.xlu0 %7546 }
0x244a   :  { %v7161_v48 = vpack.c.bf16 %v7155_v28, %v7155_v28  ;;  %13990 = vmatprep.subr.bf16.mxu1 %v18078_v1  ;;  %v7552_v62 = vsel %vm732_vm1, %v7547_v53, 0 }
0x244b   :  { %v14979_v52 = vpop.eup %14978 }
0x244c   :  { %v7156_v3 = vmul.f32 %v14979_v52, %v14967_v8  ;;  %13975 = vmatmul.mubr.msk.bf16.vlgmr.msra.gmra.mxu0 %vm1009_vm3, %v7161_v48 }
0x244d   :  { %13985 = vmatpush3.bf16.msra.mxu0 %v7353_v63  ;;  %13986 = vmatprep.mubr.msk.bf16.mxu0 %vm15455_vm0, %v18078_v1  ;;  %v7545_v11 = vpop.permute.xlu0 %7544 }
0x244e   :  { %v7162_v7 = vpack.c.bf16 %v7156_v3, %v7156_v3  ;;  %13996 = vmatprep.subr.bf16.mxu0 %v18078_v1 }
0x244f   :  { %v14981_v26 = vpop.eup %14980 }
0x2450   :  { %v7157_v50 = vmul.f32 %v14981_v26, %v17014_v41  ;;  %13981 = vmatmul.mubr.msk.bf16.vlgmr.msra.gmra.mxu1 %vm1009_vm3, %v7162_v7  ;;  %v7445_v41 = vpop.permute.xlu1 %7444 }
0x2451   :  { %13991 = vmatpush3.bf16.msra.mxu1 %v7399_v30  ;;  %13992 = vmatprep.mubr.msk.bf16.mxu1 %vm15455_vm0, %v18078_v1  ;;  %v7647_v47 = vpop.permute.xlu0 %7646 }
0x2452   :  { %v7163_v8 = vpack.c.bf16 %v7157_v50, %v7157_v50  ;;  %14002 = vmatprep.subr.bf16.mxu1 %v18078_v1  ;;  %v7652_v2 = vsel %vm732_vm1, %v7647_v47, 0 }
0x2454   :  { %13987 = vmatmul.mubr.msk.bf16.vlgmr.msra.gmra.mxu0 %vm1009_vm3, %v7163_v8 }
0x2455   :  { %13997 = vmatpush3.bf16.xpose.msra.mxu0 %v7452_v0  ;;  %13998 = vmatprep.mubr.msk.bf16.mxu0 %vm15455_vm0, %v18078_v1  ;;  %v7645_v36 = vpop.permute.xlu0 %7644 }
0x2456   :  { %14008 = vmatprep.subr.bf16.mxu0 %v18078_v1 }
0x245c   :  { %13999 = vmatmul.mubr.msk.bf16.vlgmr.msra.gmra.mxu0 %vm732_vm1, %v7445_v41 }
0x245d   :  { %14009 = vmatpush3.bf16.xpose.msra.mxu0 %v7552_v62  ;;  %14010 = vmatprep.mubr.msk.bf16.mxu0 %vm15455_vm0, %v18078_v1 }
0x245e   :  { %14020 = vmatprep.subr.bf16.mxu0 %v18078_v1 }
0x2464   :  { %14011 = vmatmul.mubr.msk.bf16.vlgmr.msra.gmra.mxu0 %vm732_vm1, %v7545_v11 }
0x2465   :  { %14021 = vmatpush3.bf16.xpose.msra.mxu0 %v7652_v2  ;;  %14022 = vmatprep.mubr.msk.bf16.mxu0 %vm15455_vm0, %v18078_v1 }
0x2466   :  { %14032 = vmatprep.subr.bf16.mxu0 %v18078_v1 }
0x246c   :  { %14023 = vmatmul.mubr.msk.bf16.vlgmr.msra.gmra.mxu0 %vm732_vm1, %v7645_v36 }
0x246d   :  { %14034 = vmatprep.mubr.msk.bf16.mxu0 %vm15455_vm0, %v18078_v1 }
0x2476   :  { %v7146_v18 = vpop.xlane.xlu1 %7145 }
0x2477   :  { %14982 = vrcp.f32 %v7146_v18 }
0x247a   :  { %v7495_v27 = vpop.permute.xlu1 %7494 }
0x247e   :  { %v7597_v19 = vpop.permute.xlu1 %7596 }
0x247f   :  { %v7602_v29 = vsel %vm732_vm1, %v7597_v19, 0 }
0x2482   :  { %v7595_v9 = vpop.permute.xlu1 %7594 }
0x2484   :  { %v14983_v10 = vpop.eup %14982 }
0x2485   :  { %v7158_v25 = vmul.f32 %v14983_v10, %v17032_v20 }
0x2486   :  { %v7697_v20 = vpop.permute.xlu1 %7696 }
0x2487   :  { %v7164_v17 = vpack.c.bf16 %v7158_v25, %v7158_v25  ;;  %v7702_v28 = vsel %vm732_vm1, %v7697_v20, 0 }
0x2489   :  { %13993 = vmatmul.mubr.msk.bf16.vlgmr.msra.gmra.mxu1 %vm1009_vm3, %v7164_v17 }
0x248a   :  { %14003 = vmatpush3.bf16.xpose.msra.mxu1 %v7502_v22  ;;  %14004 = vmatprep.mubr.msk.bf16.mxu1 %vm15455_vm0, %v18078_v1  ;;  %v7695_v33 = vpop.permute.xlu1 %7694 }
0x248b   :  { %14014 = vmatprep.subr.bf16.mxu1 %v18078_v1 }
0x2491   :  { %14005 = vmatmul.mubr.msk.bf16.vlgmr.msra.gmra.mxu1 %vm732_vm1, %v7495_v27 }
0x2492   :  { %14015 = vmatpush3.bf16.xpose.msra.mxu1 %v7602_v29  ;;  %14016 = vmatprep.mubr.msk.bf16.mxu1 %vm15455_vm0, %v18078_v1 }
0x2493   :  { %14026 = vmatprep.subr.bf16.mxu1 %v18078_v1 }
0x2499   :  { %14017 = vmatmul.mubr.msk.bf16.vlgmr.msra.gmra.mxu1 %vm732_vm1, %v7595_v9 }
0x249a   :  { %14027 = vmatpush3.bf16.xpose.msra.mxu1 %v7702_v28  ;;  %14028 = vmatprep.mubr.msk.bf16.mxu1 %vm15455_vm0, %v18078_v1 }
0x249b   :  { %14038 = vmatprep.subr.bf16.mxu1 %v18078_v1 }
0x24a1   :  { %14029 = vmatmul.mubr.msk.bf16.vlgmr.msra.gmra.mxu1 %vm732_vm1, %v7695_v33 }
0x24a2   :  { %14040 = vmatprep.mubr.msk.bf16.mxu1 %vm15455_vm0, %v18078_v1 }
0x2504   :  { %v17124_v48 = vpop.f32.mrf.mxu0 }
0x2506   :  { %v13964_v52 = vpop.f32.mrf.mxu0 }
0x2508   :  { %v7208_v3 = vpop.f32.mrf.mxu0  ;;  %v17126_v63 = vpop.f32.mrf.mxu1 }
0x2509   :  { %v7441_v7 = vpack.c.bf16 %v17126_v63, %v17124_v48 }
0x250a   :  { %v13965_v26 = vpop.f32.mrf.mxu0  ;;  %v13970_v35 = vpop.f32.mrf.mxu1 }
0x250c   :  { %v7254_v50 = vpop.f32.mrf.mxu1  ;;  %v17130_v30 = vpop.f32.mrf.mxu0 }
0x250e   :  { %v13971_v8 = vpop.f32.mrf.mxu1  ;;  %v13976_v0 = vpop.f32.mrf.mxu0 }
0x2510   :  { %v7300_v44 = vpop.f32.mrf.mxu0  ;;  %v17132_v53 = vpop.f32.mrf.mxu1 }
0x2511   :  { %v7442_v41 = vpack.c.bf16 %v17132_v53, %v17130_v30 }
0x2512   :  { %v13977_v11 = vpop.f32.mrf.mxu0  ;;  %v13982_v62 = vpop.f32.mrf.mxu1 }
0x2514   :  { %v7346_v47 = vpop.f32.mrf.mxu1  ;;  %v17136_v2 = vpop.f32.mrf.mxu0 }
0x2516   :  { %v13983_v36 = vpop.f32.mrf.mxu1  ;;  %v13988_v18 = vpop.f32.mrf.mxu0 }
0x2518   :  { %v7392_v10 = vpop.f32.mrf.mxu0 }
0x251a   :  { %v13989_v27 = vpop.f32.mrf.mxu0 }
0x251c   :  { %v7488_v25 = vpop.f32.mrf.mxu0 }
0x251d   :  { %v7489_v17 = vadd.f32 %v7488_v25, %v16977_v4 }
0x251e   :  { %v14000_v22 = vpop.f32.mrf.mxu0 }
0x251f   :  { %v7744_v19 = vsel %vm1009_vm3, %v7489_v17, -inf }
0x2520   :  { %7745 = vmax.xlane.f32.xlu0 %v7744_v19  ;;  %v7491_v9 = vpop.f32.mrf.mxu0 }
0x2522   :  { %v14001_v29 = vpop.f32.mrf.mxu0 }
0x2524   :  { %v7588_v20 = vpop.f32.mrf.mxu0 }
0x2525   :  { %v7589_v28 = vadd.f32 %v7588_v20, %v16987_v32 }
0x2526   :  { %v14012_v33 = vpop.f32.mrf.mxu0 }
0x2527   :  { %v7750_v52 = vsel %vm1009_vm3, %v7589_v28, -inf }
0x2528   :  { %7751 = vmax.xlane.f32.xlu0 %v7750_v52  ;;  %v7591_v3 = vpop.f32.mrf.mxu0 }
0x252a   :  { %v14013_v26 = vpop.f32.mrf.mxu0 }
0x252c   :  { %v7688_v35 = vpop.f32.mrf.mxu0 }
0x252d   :  { %v7689_v33 = vadd.f32 %v7688_v35, %v16999_v51 }
0x252e   :  { %v14024_v50 = vpop.f32.mrf.mxu0 }
0x252f   :  { %v7756_v50 = vsel %vm1009_vm3, %v7689_v33, -inf }
0x2530   :  { %v7691_v8 = vpop.f32.mrf.mxu0 }
0x2532   :  { %v14025_v0 = vpop.f32.mrf.mxu0 }
0x2549   :  { %v17142_v44 = vpop.f32.mrf.mxu1 }
0x254a   :  { %v7443_v11 = vpack.c.bf16 %v17142_v44, %v17136_v2 }
0x254b   :  { %v13994_v62 = vpop.f32.mrf.mxu1 }
0x254d   :  { %v7438_v47 = vpop.f32.mrf.mxu1 }
0x254f   :  { %v13995_v36 = vpop.f32.mrf.mxu1 }
0x2551   :  { %v7538_v18 = vpop.f32.mrf.mxu1 }
0x2552   :  { %v7539_v10 = vadd.f32 %v7538_v18, %v16982_v55 }
0x2553   :  { %v14006_v27 = vpop.f32.mrf.mxu1 }
0x2554   :  { %v7747_v25 = vsel %vm1009_vm3, %v7539_v10, -inf }
0x2555   :  { %7748 = vmax.xlane.f32.xlu1 %v7747_v25  ;;  %v7541_v22 = vpop.f32.mrf.mxu1 }
0x2557   :  { %v14007_v19 = vpop.f32.mrf.mxu1 }
0x2559   :  { %v7638_v9 = vpop.f32.mrf.mxu1 }
0x255a   :  { %v7639_v29 = vadd.f32 %v7638_v9, %v16993_v24 }
0x255b   :  { %v14018_v20 = vpop.f32.mrf.mxu1 }
0x255c   :  { %v7753_v52 = vsel %vm1009_vm3, %v7639_v29, -inf }
0x255d   :  { %v7641_v3 = vpop.f32.mrf.mxu1  ;;  %7754 = vmax.xlane.f32.xlu0 %v7753_v52 }
0x255f   :  { %v14019_v26 = vpop.f32.mrf.mxu1 }
0x2561   :  { %v7738_v8 = vpop.f32.mrf.mxu1  ;;  %7757 = vmax.xlane.f32.xlu0 %v7756_v50 }
0x2562   :  { %v7739_v0 = vadd.f32 %v7738_v8, %v17005_v56 }
0x2563   :  { %v14030_v62 = vpop.f32.mrf.mxu1 }
0x2564   :  { %v7759_v47 = vsel %vm1009_vm3, %v7739_v0, -inf }
0x2565   :  { %7760 = vmax.xlane.f32.xlu1 %v7759_v47  ;;  %v7741_v36 = vpop.f32.mrf.mxu1 }
0x2567   :  { %v14031_v18 = vpop.f32.mrf.mxu1 }
0x2576   :  { %7864 = vrot.lane.b32.xlu1 %v16956_v57, %s15457_s10 }
0x257a   :  { %7912 = vrot.lane.b32.xlu1 %v17048_v40, %s15457_s10 }
0x257e   :  { %7960 = vrot.lane.b32.xlu1 %v17052_v34, %s15457_s10 }
0x25a9   :  { %v7746_v35 = vpop.xlane.xlu0 %7745 }
0x25aa   :  { %v7762_v27 = vsub.f32 %v7489_v17, %v7746_v35 }
0x25ac   :  { %v7768_v25 = vmul.f32 1.442695, %v7762_v27 }
0x25ae   :  { %14984 = vpow2.f32 %v7768_v25 }
0x25b1   :  { %v7752_v9 = vpop.xlane.xlu0 %7751 }
0x25b2   :  { %v7764_v20 = vsub.f32 %v7589_v28, %v7752_v9 }
0x25b4   :  { %v7772_v52 = vmul.f32 1.442695, %v7764_v20 }
0x25b6   :  { %14986 = vpow2.f32 %v7772_v52 }
0x25bb   :  { %v17160_v22 = vpop.eup %14984 }
0x25bc   :  { %v7780_v19 = vsel %vm1009_vm3, %v17160_v22, 0.0 }
0x25bd   :  { %7781 = vadd.xlane.f32.xlu0 %v7780_v19 }
0x25c3   :  { %v17166_v35 = vpop.eup %14986 }
0x25d3   :  { %7816 = vrot.lane.b32.xlu0 %v16943_v45, %s15457_s10 }
0x25de   :  { %v7749_v3 = vpop.xlane.xlu1 %7748 }
0x25df   :  { %v7763_v26 = vsub.f32 %v7539_v10, %v7749_v3  ;;  %v7786_v10 = vsel %vm1009_vm3, %v17166_v35, 0.0 }
0x25e1   :  { %v7770_v50 = vmul.f32 1.442695, %v7763_v26 }
0x25e3   :  { %14988 = vpow2.f32 %v7770_v50 }
0x25e6   :  { %v7755_v17 = vpop.xlane.xlu0 %7754 }
0x25e7   :  { %v7765_v8 = vsub.f32 %v7639_v29, %v7755_v17 }
0x25e9   :  { %v7774_v62 = vmul.f32 1.442695, %v7765_v8 }
0x25ea   :  { %v7758_v47 = vpop.xlane.xlu0 %7757 }
0x25eb   :  { %14990 = vpow2.f32 %v7774_v62  ;;  %v7766_v36 = vsub.f32 %v7689_v33, %v7758_v47 }
0x25ed   :  { %v7776_v18 = vmul.f32 1.442695, %v7766_v36 }
0x25ee   :  { %v7761_v27 = vpop.xlane.xlu1 %7760 }
0x25ef   :  { %14992 = vpow2.f32 %v7776_v18  ;;  %v7767_v25 = vsub.f32 %v7739_v0, %v7761_v27 }
0x25f0   :  { %v14989_v19 = vpop.eup %14988 }
0x25f1   :  { %v7778_v28 = vmul.f32 1.442695, %v7767_v25  ;;  %v7783_v9 = vsel %vm1009_vm3, %v14989_v19, 0.0 }
0x25f2   :  { %7784 = vadd.xlane.f32.xlu1 %v7783_v9  ;;  %v7865_v20 = vpop.permute.xlu1 %7864  ;;  %7787 = vadd.xlane.f32.xlu0 %v7786_v10 }
0x25f3   :  { %14994 = vpow2.f32 %v7778_v28  ;;  %v7870_v29 = vsel %vm1085_vm2, %v7865_v20, 0 }
0x25f4   :  { %14039 = vmatpush3.bf16.msra.mxu1 %v7870_v29 }
0x25f5   :  { %14050 = vmatprep.subr.bf16.mxu1 %v18078_v1 }
0x25f6   :  { %v7913_v18 = vpop.permute.xlu1 %7912 }
0x25f7   :  { %v7918_v25 = vsel %vm1085_vm2, %v7913_v18, 0 }
0x25f8   :  { %v17173_v33 = vpop.eup %14990 }
0x25f9   :  { %v7789_v0 = vsel %vm1009_vm3, %v17173_v33, 0.0 }
0x25fa   :  { %7790 = vadd.xlane.f32.xlu1 %v7789_v0  ;;  %v7961_v28 = vpop.permute.xlu1 %7960 }
0x25fb   :  { %v7966_v18 = vsel %vm1085_vm2, %v7961_v28, 0 }
0x25fc   :  { %v17177_v52 = vpop.eup %14992 }
0x25fd   :  { %v7792_v3 = vsel %vm1009_vm3, %v17177_v52, 0.0 }
0x25fe   :  { %7793 = vadd.xlane.f32.xlu0 %v7792_v3 }
0x2600   :  { %v17181_v26 = vpop.eup %14994 }
0x2601   :  { %v7795_v50 = vsel %vm1009_vm3, %v17181_v26, 0.0 }
0x2602   :  { %7796 = vadd.xlane.f32.xlu1 %v7795_v50 }
0x2613   :  { %8056 = vrot.lane.b32.xlu1 %v17072_v15, %s15457_s10 }
0x2614   :  { %8008 = vrot.lane.b32.xlu0 %v17062_v6, %s15457_s10 }
0x2617   :  { %8315 = vrot.lane.b32.xlu1 %v16878_v12, %s15438_s30 }
0x2618   :  { %8265 = vrot.lane.b32.xlu0 %v16869_v13, %s15438_s30 }
0x261b   :  { %8313 = vrot.lane.b32.xlu1 %v16903_v39, %s15438_s30 }
0x261c   :  { %8263 = vrot.lane.b32.xlu0 %v16888_v31, %s15438_s30 }
0x261f   :  { %8415 = vrot.lane.b32.xlu1 %v16906_v60, %s15438_s30 }
0x2620   :  { %8365 = vrot.lane.b32.xlu0 %v16890_v43, %s15438_s30 }
0x2623   :  { %8413 = vrot.lane.b32.xlu1 %v16937_v46, %s15438_s30 }
0x2624   :  { %8363 = vrot.lane.b32.xlu0 %v16917_v61, %s15438_s30 }
0x2627   :  { %8515 = vrot.lane.b32.xlu1 %v16940_v14, %s15438_s30 }
0x2628   :  { %8465 = vrot.lane.b32.xlu0 %v16922_v23, %s15438_s30 }
0x262b   :  { %8513 = vrot.lane.b32.xlu1 %v16964_v49, %s15438_s30 }
0x262c   :  { %8463 = vrot.lane.b32.xlu0 %v16953_v58, %s15438_s30 }
0x2646   :  { %v7782_v17 = vpop.xlane.xlu0 %7781 }
0x2647   :  { %14996 = vrcp.f32 %v7782_v17 }
0x264a   :  { %v7817_v8 = vpop.permute.xlu0 %7816 }
0x264b   :  { %v7822_v62 = vsel %vm1085_vm2, %v7817_v8, 0 }
0x264c   :  { %14033 = vmatpush3.bf16.msra.mxu0 %v7822_v62 }
0x264d   :  { %14044 = vmatprep.subr.bf16.mxu0 %v18078_v1 }
0x2654   :  { %v14997_v47 = vpop.eup %14996 }
0x2655   :  { %v7804_v36 = vmul.f32 %v14997_v47, %v17160_v22 }
0x2657   :  { %v7810_v27 = vpack.c.bf16 %v7804_v36, %v7804_v36 }
0x2659   :  { %14035 = vmatmul.mubr.msk.bf16.vlgmr.msra.gmra.mxu0 %vm1009_vm3, %v7810_v27 }
0x265a   :  { %14045 = vmatpush3.bf16.msra.mxu0 %v7918_v25  ;;  %14046 = vmatprep.mubr.msk.bf16.mxu0 %vm15455_vm0, %v18078_v1 }
0x265b   :  { %14056 = vmatprep.subr.bf16.mxu0 %v18078_v1 }
0x267b   :  { %v7785_v9 = vpop.xlane.xlu1 %7784  ;;  %v7788_v10 = vpop.xlane.xlu0 %7787 }
0x267c   :  { %14998 = vrcp.f32 %v7785_v9 }
0x267d   :  { %15000 = vrcp.f32 %v7788_v10 }
0x2683   :  { %v7791_v20 = vpop.xlane.xlu1 %7790 }
0x2684   :  { %15002 = vrcp.f32 %v7791_v20 }
0x2687   :  { %v7794_v22 = vpop.xlane.xlu0 %7793 }
0x2688   :  { %15004 = vrcp.f32 %v7794_v22 }
0x2689   :  { %v14999_v29 = vpop.eup %14998 }
0x268a   :  { %v15001_v0 = vpop.eup %15000  ;;  %v7805_v3 = vmul.f32 %v14999_v29, %v14989_v19  ;;  %v14648_v29 = vld [vmem:[#allocation14 + $0x48] sm:$0xff]  }
0x268b   :  { %v7806_v50 = vmul.f32 %v15001_v0, %v17166_v35  ;;  %v7797_v17 = vpop.xlane.xlu1 %7796  ;;  %v8009_v8 = vpop.permute.xlu0 %8008  ;;  %v14649_v0 = vld [vmem:[#allocation14 + $0x40] sm:$0xff]  }
0x268c   :  { %v7811_v62 = vpack.c.bf16 %v7805_v3, %v7805_v3  ;;  %15006 = vrcp.f32 %v7797_v17  ;;  %v8014_v36 = vsel %vm1085_vm2, %v8009_v8, 0  ;;  %v14650_v3 = vld [vmem:[#allocation14 + $0x58] sm:$0xff]  }
0x268d   :  { %v7812_v47 = vpack.c.bf16 %v7806_v50, %v7806_v50  ;;  %v14651_v50 = vld [vmem:[#allocation14 + $0x50] sm:$0xff]  }
0x268e   :  { %14041 = vmatmul.mubr.msk.bf16.vlgmr.msra.gmra.mxu1 %vm1009_vm3, %v7811_v62 }
0x268f   :  { %14047 = vmatmul.mubr.msk.bf16.vlgmr.msra.gmra.mxu0 %vm1009_vm3, %v7812_v47  ;;  %14051 = vmatpush3.bf16.msra.mxu1 %v7966_v18  ;;  %v8057_v27 = vpop.permute.xlu1 %8056  ;;  %v8266_v47 = vpop.permute.xlu0 %8265 }
0x2690   :  { %14057 = vmatpush3.bf16.msra.mxu0 %v8014_v36  ;;  %14052 = vmatprep.mubr.msk.bf16.mxu1 %vm15455_vm0, %v18078_v1  ;;  %v8062_v10 = vsel %vm1085_vm2, %v8057_v27, 0  ;;  %v8271_v27 = vsel %vm732_vm1, %v8266_v47, 0 }
0x2691   :  { %v15003_v19 = vpop.eup %15002  ;;  %14062 = vmatprep.subr.bf16.mxu1 %v18078_v1  ;;  %14058 = vmatprep.mubr.msk.bf16.mxu0 %vm15455_vm0, %v18078_v1 }
0x2692   :  { %v7807_v35 = vmul.f32 %v15003_v19, %v17173_v33  ;;  %14068 = vmatprep.subr.bf16.mxu0 %v18078_v1 }
0x2694   :  { %v7813_v25 = vpack.c.bf16 %v7807_v35, %v7807_v35 }
0x2695   :  { %v15005_v28 = vpop.eup %15004 }
0x2696   :  { %v7808_v9 = vmul.f32 %v15005_v28, %v17177_v52  ;;  %14053 = vmatmul.mubr.msk.bf16.vlgmr.msra.gmra.mxu1 %vm1009_vm3, %v7813_v25 }
0x2697   :  { %14063 = vmatpush3.bf16.msra.mxu1 %v8062_v10  ;;  %14064 = vmatprep.mubr.msk.bf16.mxu1 %vm15455_vm0, %v18078_v1 }
0x2698   :  { %v7814_v20 = vpack.c.bf16 %v7808_v9, %v7808_v9  ;;  %14084 = vmatprep.subr.bf16.mxu1 %v18078_v1 }
0x2699   :  { %v15007_v22 = vpop.eup %15006 }
0x269a   :  { %v7809_v33 = vmul.f32 %v15007_v22, %v17181_v26  ;;  %14059 = vmatmul.mubr.msk.bf16.vlgmr.msra.gmra.mxu0 %vm1009_vm3, %v7814_v20  ;;  %v8316_v26 = vpop.permute.xlu1 %8315 }
0x269b   :  { %14072 = vmatprep.mubr.msk.bf16.mxu0 %vm15455_vm0, %v18078_v1  ;;  %14069 = vmatpush3.bf16.msra.mxu0 %v14650_v3  ;;  %v8321_v17 = vsel %vm732_vm1, %v8316_v26, 0  ;;  %v8264_v3 = vpop.permute.xlu0 %8263 }
0x269c   :  { %v7815_v52 = vpack.c.bf16 %v7809_v33, %v7809_v33  ;;  %14070 = vmatprep.subr.bf16.mxu0 %v18078_v1 }
0x269e   :  { %14065 = vmatmul.mubr.msk.bf16.vlgmr.msra.gmra.mxu1 %vm1009_vm3, %v7815_v52  ;;  %v8314_v8 = vpop.permute.xlu1 %8313 }
0x269f   :  { %14085 = vmatpush3.bf16.msra.mxu1 %v14648_v29  ;;  %14088 = vmatprep.mubr.msk.bf16.mxu1 %vm15455_vm0, %v18078_v1 }
0x26a0   :  { %14086 = vmatprep.subr.bf16.mxu1 %v18078_v1  ;;  %14071 = vmatpush3.bf16.msra.mxu0 %v14651_v50 }
0x26a1   :  { %14100 = vmatprep.subr.bf16.mxu0 %v18078_v1 }
0x26a2   :  { %v8416_v48 = vpop.permute.xlu1 %8415 }
0x26a3   :  { %14087 = vmatpush3.bf16.msra.mxu1 %v14649_v0 }
0x26a4   :  { %14106 = vmatprep.subr.bf16.mxu1 %v18078_v1 }
0x26a6   :  { %14089 = vmatmul.mubr.msk.bf16.vlgmr.msra.gmra.mxu1 %vm732_vm1, %v7441_v7  ;;  %v8414_v63 = vpop.permute.xlu1 %8413  ;;  %v8421_v7 = vsel %vm732_vm1, %v8416_v48, 0 }
0x26a7   :  { %14107 = vmatpush3.bf16.xpose.msra.mxu1 %v8321_v17  ;;  %14092 = vmatprep.mubr.msk.bf16.mxu1 %vm15455_vm0, %v18078_v1 }
0x26a8   :  { %14118 = vmatprep.subr.bf16.mxu1 %v18078_v1 }
0x26aa   :  { %v8516_v30 = vpop.permute.xlu1 %8515 }
0x26ab   :  { %v8521_v53 = vsel %vm732_vm1, %v8516_v30, 0  ;;  %v8366_v30 = vpop.permute.xlu0 %8365 }
0x26ae   :  { %14093 = vmatmul.mubr.msk.bf16.gmra.mxu1 %vm732_vm1, %v7442_v41  ;;  %v8514_v41 = vpop.permute.xlu1 %8513 }
0x26af   :  { %14096 = vmatprep.mubr.msk.bf16.mxu1 %vm15455_vm0, %v18078_v1 }
0x26b6   :  { %14097 = vmatmul.mubr.msk.bf16.gmra.mxu1 %vm732_vm1, %v7443_v11 }
0x26b7   :  { %14108 = vmatprep.mubr.msk.bf16.mxu1 %vm15455_vm0, %v18078_v1 }
0x26be   :  { %14109 = vmatmul.mubr.msk.bf16.vlgmr.msra.gmra.mxu1 %vm732_vm1, %v8314_v8 }
0x26bf   :  { %14119 = vmatpush3.bf16.xpose.msra.mxu1 %v8421_v7  ;;  %14120 = vmatprep.mubr.msk.bf16.mxu1 %vm15455_vm0, %v18078_v1 }
0x26c0   :  { %14130 = vmatprep.subr.bf16.mxu1 %v18078_v1 }
0x26c6   :  { %14121 = vmatmul.mubr.msk.bf16.vlgmr.msra.gmra.mxu1 %vm732_vm1, %v8414_v63 }
0x26c7   :  { %14131 = vmatpush3.bf16.xpose.msra.mxu1 %v8521_v53  ;;  %14132 = vmatprep.mubr.msk.bf16.mxu1 %vm15455_vm0, %v18078_v1 }
0x26c8   :  { %14142 = vmatprep.subr.bf16.mxu1 %v18078_v1 }
0x26ce   :  { %14133 = vmatmul.mubr.msk.bf16.vlgmr.msra.gmra.mxu1 %vm732_vm1, %v8514_v41 }
0x26cf   :  { %14144 = vmatprep.mubr.msk.bf16.mxu1 %vm15455_vm0, %v18078_v1 }
0x2719   :  { %v7858_v2 = vpop.f32.mrf.mxu0 }
0x271b   :  { %v14036_v44 = vpop.f32.mrf.mxu0 }
0x271c   :  { %v8364_v44 = vpop.permute.xlu0 %8363 }
0x271d   :  { %v7861_v11 = vpop.f32.mrf.mxu0 }
0x271f   :  { %v14037_v62 = vpop.f32.mrf.mxu0 }
0x2720   :  { %v8371_v62 = vsel %vm732_vm1, %v8366_v30, 0 }
0x274e   :  { %v7906_v36 = vpop.f32.mrf.mxu1 }
0x274f   :  { %v8104_v18 = vpack.c.bf16 %v7906_v36, %v7858_v2  ;;  %v7954_v19 = vpop.f32.mrf.mxu0 }
0x2750   :  { %v14042_v35 = vpop.f32.mrf.mxu1 }
0x2751   :  { %v14048_v25 = vpop.f32.mrf.mxu0  ;;  %14073 = vmatmul.mubr.msk.bf16.vlgmr.msra.gmra.mxu0 %vm732_vm1, %v8104_v18  ;;  %v8466_v18 = vpop.permute.xlu0 %8465 }
0x2752   :  { %14101 = vmatpush3.bf16.xpose.msra.mxu0 %v8271_v27  ;;  %v7909_v28 = vpop.f32.mrf.mxu1  ;;  %14076 = vmatprep.mubr.msk.bf16.mxu0 %vm15455_vm0, %v18078_v1  ;;  %v8471_v27 = vsel %vm732_vm1, %v8466_v18, 0 }
0x2753   :  { %v7957_v9 = vpop.f32.mrf.mxu0  ;;  %14112 = vmatprep.subr.bf16.mxu0 %v18078_v1 }
0x2754   :  { %v14043_v10 = vpop.f32.mrf.mxu1 }
0x2755   :  { %v14049_v20 = vpop.f32.mrf.mxu0  ;;  %v8464_v10 = vpop.permute.xlu0 %8463 }
0x2756   :  { %v8002_v22 = vpop.f32.mrf.mxu1 }
0x2757   :  { %v8105_v33 = vpack.c.bf16 %v8002_v22, %v7954_v19 }
0x2758   :  { %v14054_v29 = vpop.f32.mrf.mxu1 }
0x2759   :  { %14077 = vmatmul.mubr.msk.bf16.gmra.mxu0 %vm732_vm1, %v8105_v33 }
0x275a   :  { %v8005_v52 = vpop.f32.mrf.mxu1  ;;  %v8050_v0 = vpop.f32.mrf.mxu0  ;;  %14080 = vmatprep.mubr.msk.bf16.mxu0 %vm15455_vm0, %v18078_v1 }
0x275c   :  { %v14055_v50 = vpop.f32.mrf.mxu1  ;;  %v14060_v26 = vpop.f32.mrf.mxu0 }
0x275e   :  { %v8053_v17 = vpop.f32.mrf.mxu0  ;;  %v8098_v8 = vpop.f32.mrf.mxu1 }
0x275f   :  { %v8106_v48 = vpack.c.bf16 %v8098_v8, %v8050_v0 }
0x2760   :  { %v14061_v63 = vpop.f32.mrf.mxu0  ;;  %v14066_v7 = vpop.f32.mrf.mxu1 }
0x2761   :  { %14081 = vmatmul.mubr.msk.bf16.gmra.mxu0 %vm732_vm1, %v8106_v48 }
0x2762   :  { %v8101_v53 = vpop.f32.mrf.mxu1  ;;  %14102 = vmatprep.mubr.msk.bf16.mxu0 %vm15455_vm0, %v18078_v1 }
0x2764   :  { %v14067_v41 = vpop.f32.mrf.mxu1 }
0x2766   :  { %v17294_v2 = vpop.f32.mrf.mxu1 }
0x2768   :  { %v14090_v11 = vpop.f32.mrf.mxu1 }
0x2769   :  { %14103 = vmatmul.mubr.msk.bf16.vlgmr.msra.gmra.mxu0 %vm732_vm1, %v8264_v3 }
0x276a   :  { %14113 = vmatpush3.bf16.xpose.msra.mxu0 %v8371_v62  ;;  %v17298_v47 = vpop.f32.mrf.mxu1  ;;  %14114 = vmatprep.mubr.msk.bf16.mxu0 %vm15455_vm0, %v18078_v1 }
0x276b   :  { %14124 = vmatprep.subr.bf16.mxu0 %v18078_v1 }
0x276c   :  { %v14091_v36 = vpop.f32.mrf.mxu1 }
0x276e   :  { %v17303_v19 = vpop.f32.mrf.mxu1 }
0x2770   :  { %v14094_v35 = vpop.f32.mrf.mxu1 }
0x2771   :  { %14115 = vmatmul.mubr.msk.bf16.vlgmr.msra.gmra.mxu0 %vm732_vm1, %v8364_v44 }
0x2772   :  { %14125 = vmatpush3.bf16.xpose.msra.mxu0 %v8471_v27  ;;  %v17307_v25 = vpop.f32.mrf.mxu1  ;;  %14126 = vmatprep.mubr.msk.bf16.mxu0 %vm15455_vm0, %v18078_v1 }
0x2773   :  { %14136 = vmatprep.subr.bf16.mxu0 %v18078_v1 }
0x2774   :  { %v14095_v28 = vpop.f32.mrf.mxu1 }
0x2776   :  { %v17312_v9 = vpop.f32.mrf.mxu1 }
0x2778   :  { %v14098_v20 = vpop.f32.mrf.mxu1 }
0x2779   :  { %14127 = vmatmul.mubr.msk.bf16.vlgmr.msra.gmra.mxu0 %vm732_vm1, %v8464_v10 }
0x277a   :  { %v17315_v22 = vpop.f32.mrf.mxu1  ;;  %14138 = vmatprep.mubr.msk.bf16.mxu0 %vm15455_vm0, %v18078_v1 }
0x277c   :  { %v14099_v33 = vpop.f32.mrf.mxu1 }
0x277e   :  { %v8357_v29 = vpop.f32.mrf.mxu1 }
0x277f   :  { %v8358_v52 = vadd.f32 %v8357_v29, %v16982_v55 }
0x2780   :  { %v14110_v0 = vpop.f32.mrf.mxu1 }
0x2781   :  { %v8566_v3 = vsel %vm1009_vm3, %v8358_v52, -inf }
0x2782   :  { %8567 = vmax.xlane.f32.xlu1 %v8566_v3  ;;  %v8360_v50 = vpop.f32.mrf.mxu1 }
0x2784   :  { %v14111_v26 = vpop.f32.mrf.mxu1 }
0x2786   :  { %v8457_v17 = vpop.f32.mrf.mxu1 }
0x2788   :  { %v14122_v8 = vpop.f32.mrf.mxu1 }
0x278a   :  { %v8460_v48 = vpop.f32.mrf.mxu1 }
0x278c   :  { %v14123_v63 = vpop.f32.mrf.mxu1 }
0x278e   :  { %v8557_v7 = vpop.f32.mrf.mxu1 }
0x278f   :  { %v8558_v30 = vadd.f32 %v8557_v7, %v17005_v56 }
0x2790   :  { %v14134_v53 = vpop.f32.mrf.mxu1 }
0x2791   :  { %v8578_v41 = vsel %vm1009_vm3, %v8558_v30, -inf }
0x2792   :  { %8579 = vmax.xlane.f32.xlu1 %v8578_v41  ;;  %v8560_v44 = vpop.f32.mrf.mxu1 }
0x2794   :  { %v14135_v11 = vpop.f32.mrf.mxu1 }
0x280b   :  { %v8568_v62 = vpop.xlane.xlu1 %8567 }
0x280c   :  { %v8582_v36 = vsub.f32 %v8358_v52, %v8568_v62 }
0x280e   :  { %v8589_v18 = vmul.f32 1.442695, %v8582_v36 }
0x2810   :  { %15008 = vpow2.f32 %v8589_v18 }
0x2811   :  { %v17323_v35 = vpop.f32.mrf.mxu0 }
0x2813   :  { %v14074_v27 = vpop.f32.mrf.mxu0 }
0x2814   :  { %v8458_v27 = vadd.f32 %v8457_v17, %v16993_v24 }
0x2815   :  { %v17325_v28 = vpop.f32.mrf.mxu0 }
0x2817   :  { %v14075_v10 = vpop.f32.mrf.mxu0 }
0x2819   :  { %v17327_v20 = vpop.f32.mrf.mxu0 }
0x281b   :  { %v14078_v33 = vpop.f32.mrf.mxu0 }
0x281d   :  { %v17329_v29 = vpop.eup %15008  ;;  %v17331_v0 = vpop.f32.mrf.mxu0 }
0x281e   :  { %v8602_v3 = vsel %vm1009_vm3, %v17329_v29, 0.0 }
0x281f   :  { %8603 = vadd.xlane.f32.xlu1 %v8602_v3  ;;  %v14079_v52 = vpop.f32.mrf.mxu0 }
0x2820   :  { %v8572_v52 = vsel %vm1009_vm3, %v8458_v27, -inf }
0x2821   :  { %v17335_v50 = vpop.f32.mrf.mxu0 }
0x2823   :  { %v14082_v26 = vpop.f32.mrf.mxu0 }
0x2825   :  { %v17337_v8 = vpop.f32.mrf.mxu0 }
0x2827   :  { %v14083_v48 = vpop.f32.mrf.mxu0 }
0x2829   :  { %v8307_v63 = vpop.f32.mrf.mxu0 }
0x282a   :  { %v8308_v7 = vadd.f32 %v8307_v63, %v16977_v4 }
0x282b   :  { %v14104_v53 = vpop.f32.mrf.mxu0 }
0x282c   :  { %v8563_v41 = vsel %vm1009_vm3, %v8308_v7, -inf }
0x282d   :  { %8564 = vmax.xlane.f32.xlu0 %v8563_v41  ;;  %v8310_v44 = vpop.f32.mrf.mxu0 }
0x282f   :  { %v14105_v11 = vpop.f32.mrf.mxu0 }
0x2831   :  { %v8407_v62 = vpop.f32.mrf.mxu0 }
0x2832   :  { %v8408_v36 = vadd.f32 %v8407_v62, %v16987_v32 }
0x2833   :  { %v14116_v18 = vpop.f32.mrf.mxu0 }
0x2834   :  { %v8569_v10 = vsel %vm1009_vm3, %v8408_v36, -inf  ;;  %v8580_v18 = vpop.xlane.xlu1 %8579 }
0x2835   :  { %8570 = vmax.xlane.f32.xlu0 %v8569_v10  ;;  %v8410_v33 = vpop.f32.mrf.mxu0 }
0x2836   :  { %v8586_v33 = vsub.f32 %v8558_v30, %v8580_v18 }
0x2837   :  { %v14117_v3 = vpop.f32.mrf.mxu0 }
0x2838   :  { %v8597_v21 = vmul.f32 1.442695, %v8586_v33 }
0x2839   :  { %8573 = vmax.xlane.f32.xlu0 %v8572_v52  ;;  %v8507_v26 = vpop.f32.mrf.mxu0 }
0x283a   :  { %v8508_v48 = vadd.f32 %v8507_v26, %v16999_v51 }
0x283b   :  { %v14128_v63 = vpop.f32.mrf.mxu0 }
0x283c   :  { %v8575_v53 = vsel %vm1009_vm3, %v8508_v48, -inf }
0x283d   :  { %8576 = vmax.xlane.f32.xlu0 %v8575_v53  ;;  %v8510_v41 = vpop.f32.mrf.mxu0 }
0x283f   :  { %v14129_v44 = vpop.f32.mrf.mxu0 }
0x28b6   :  { %v8565_v11 = vpop.xlane.xlu0 %8564 }
0x28b7   :  { %v8581_v62 = vsub.f32 %v8308_v7, %v8565_v11 }
0x28b9   :  { %v8587_v17 = vmul.f32 1.442695, %v8581_v62 }
0x28bb   :  { %15010 = vpow2.f32 %v8587_v17 }
0x28be   :  { %v8571_v10 = vpop.xlane.xlu0 %8570 }
0x28c2   :  { %v8574_v3 = vpop.xlane.xlu0 %8573 }
0x28c3   :  { %v8584_v1 = vsub.f32 %v8458_v27, %v8574_v3 }
0x28c5   :  { %v8593_v52 = vmul.f32 1.442695, %v8584_v1  ;;  %v8583_v1 = vsub.f32 %v8408_v36, %v8571_v10 }
0x28c7   :  { %15012 = vpow2.f32 %v8593_v52  ;;  %v8591_v27 = vmul.f32 1.442695, %v8583_v1 }
0x28c8   :  { %v15011_v42 = vpop.eup %15010  ;;  %15014 = vpow2.f32 %v8597_v21  ;;  %v8577_v21 = vpop.xlane.xlu0 %8576 }
0x28c9   :  { %v8599_v26 = vsel %vm1009_vm3, %v15011_v42, 0.0  ;;  %v8585_v41 = vsub.f32 %v8508_v48, %v8577_v21  ;;  %15016 = vpow2.f32 %v8591_v27 }
0x28ca   :  { %8600 = vadd.xlane.f32.xlu0 %v8599_v26 }
0x28cb   :  { %v8595_v44 = vmul.f32 1.442695, %v8585_v41 }
0x28cd   :  { %15018 = vpow2.f32 %v8595_v44 }
0x28d4   :  { %v17348_v63 = vpop.eup %15012 }
0x28d5   :  { %v8608_v7 = vsel %vm1009_vm3, %v17348_v63, 0.0  ;;  %v17352_v53 = vpop.eup %15014 }
0x28d6   :  { %8609 = vadd.xlane.f32.xlu1 %v8608_v7  ;;  %v8614_v30 = vsel %vm1009_vm3, %v17352_v53, 0.0  ;;  %v17366_v11 = vpop.eup %15016 }
0x28d7   :  { %v8605_v36 = vsel %vm1009_vm3, %v17366_v11, 0.0 }
0x28da   :  { %8615 = vadd.xlane.f32.xlu1 %v8614_v30  ;;  %v17372_v48 = vpop.eup %15018 }
0x28db   :  { %v8611_v62 = vsel %vm1009_vm3, %v17372_v48, 0.0 }
0x28e0   :  { %8635 = vrot.lane.b32.xlu0 %v16943_v45, %s15438_s30 }
0x28eb   :  { %8683 = vrot.lane.b32.xlu1 %v16956_v57, %s15438_s30 }
0x28ef   :  { %8731 = vrot.lane.b32.xlu1 %v17048_v40, %s15438_s30 }
0x28f3   :  { %8779 = vrot.lane.b32.xlu1 %v17052_v34, %s15438_s30 }
0x28f7   :  { %8875 = vrot.lane.b32.xlu1 %v17072_v15, %s15438_s30 }
0x28fb   :  { %9010 = vrot.lane.b32.xlu1 %v16888_v31, %s15458_s13  ;;  %v8604_v31 = vpop.xlane.xlu1 %8603 }
0x28ff   :  { %9060 = vrot.lane.b32.xlu1 %v16903_v39, %s15458_s13  ;;  %8606 = vadd.xlane.f32.xlu0 %v8605_v36 }
0x2903   :  { %9162 = vrot.lane.b32.xlu1 %v16906_v60, %s15458_s13  ;;  %8612 = vadd.xlane.f32.xlu0 %v8611_v62 }
0x2907   :  { %9160 = vrot.lane.b32.xlu1 %v16937_v46, %s15458_s13 }
0x290b   :  { %9262 = vrot.lane.b32.xlu1 %v16940_v14, %s15458_s13 }
0x290f   :  { %9260 = vrot.lane.b32.xlu1 %v16964_v49, %s15458_s13 }
0x2919   :  { %8827 = vrot.lane.b32.xlu0 %v17062_v6, %s15438_s30 }
0x291d   :  { %9012 = vrot.lane.b32.xlu0 %v16869_v13, %s15458_s13 }
0x2921   :  { %9062 = vrot.lane.b32.xlu0 %v16878_v12, %s15458_s13  ;;  %v18093_v12 = vmov 0.0  }
0x2925   :  { %9112 = vrot.lane.b32.xlu0 %v16890_v43, %s15458_s13 }
0x2929   :  { %9110 = vrot.lane.b32.xlu0 %v16917_v61, %s15458_s13 }
0x292d   :  { %9212 = vrot.lane.b32.xlu0 %v16922_v23, %s15458_s13 }
0x2931   :  { %9210 = vrot.lane.b32.xlu0 %v16953_v58, %s15458_s13 }
0x2953   :  { %v8601_v39 = vpop.xlane.xlu0 %8600 }
0x2954   :  { %15020 = vrcp.f32 %v8601_v39 }
0x2955   :  { %15022 = vrcp.f32 %v8604_v31 }
0x2957   :  { %v8636_v13 = vpop.permute.xlu0 %8635 }
0x2958   :  { %v8641_v60 = vsel %vm1085_vm2, %v8636_v13, 0 }
0x2959   :  { %14137 = vmatpush3.bf16.msra.mxu0 %v8641_v60 }
0x295a   :  { %14148 = vmatprep.subr.bf16.mxu0 %v18093_v12 }
0x295f   :  { %v8610_v43 = vpop.xlane.xlu1 %8609 }
0x2960   :  { %15024 = vrcp.f32 %v8610_v43 }
0x2961   :  { %v15021_v46 = vpop.eup %15020 }
0x2962   :  { %v8623_v61 = vmul.f32 %v15021_v46, %v15011_v42  ;;  %v15023_v14 = vpop.eup %15022 }
0x2963   :  { %v8616_v49 = vpop.xlane.xlu1 %8615  ;;  %v8624_v17 = vmul.f32 %v15023_v14, %v17329_v29 }
0x2964   :  { %v8629_v23 = vpack.c.bf16 %v8623_v61, %v8623_v61  ;;  %15026 = vrcp.f32 %v8616_v49 }
0x2965   :  { %v8630_v10 = vpack.c.bf16 %v8624_v17, %v8624_v17 }
0x2966   :  { %14139 = vmatmul.mubr.msk.bf16.vlgmr.msra.gmra.mxu0 %vm1009_vm3, %v8629_v23 }
0x2967   :  { %v8684_v58 = vpop.permute.xlu1 %8683  ;;  %14150 = vmatprep.mubr.msk.bf16.mxu0 %vm15455_vm0, %v18093_v12 }
0x2968   :  { %v8689_v18 = vsel %vm1085_vm2, %v8684_v58, 0 }
0x2969   :  { %14143 = vmatpush3.bf16.msra.mxu1 %v8689_v18  ;;  %v14652_v18 = vld [vmem:[#allocation14 + $0x68] sm:$0xff]  }
0x296a   :  { %14154 = vmatprep.subr.bf16.mxu1 %v18093_v12 }
0x296b   :  { %v8732_v33 = vpop.permute.xlu1 %8731 }
0x296c   :  { %v8737_v42 = vsel %vm1085_vm2, %v8732_v33, 0  ;;  %14145 = vmatmul.mubr.msk.bf16.vlgmr.msra.gmra.mxu1 %vm1009_vm3, %v8630_v10  ;;  %v14653_v33 = vld [vmem:[#allocation14 + $0x60] sm:$0xff]  }
0x296d   :  { %v15025_v3 = vpop.eup %15024  ;;  %14149 = vmatpush3.bf16.msra.mxu0 %v8737_v42  ;;  %14156 = vmatprep.mubr.msk.bf16.mxu1 %vm15455_vm0, %v18093_v12 }
0x296e   :  { %v8626_v29 = vmul.f32 %v15025_v3, %v17348_v63  ;;  %14160 = vmatprep.subr.bf16.mxu0 %v18093_v12 }
0x296f   :  { %v8780_v52 = vpop.permute.xlu1 %8779 }
0x2970   :  { %v8785_v26 = vsel %vm1085_vm2, %v8780_v52, 0  ;;  %v8632_v7 = vpack.c.bf16 %v8626_v29, %v8626_v29 }
0x2971   :  { %14155 = vmatpush3.bf16.msra.mxu1 %v8785_v26  ;;  %v15027_v30 = vpop.eup %15026 }
0x2972   :  { %14166 = vmatprep.subr.bf16.mxu1 %v18093_v12  ;;  %v8628_v63 = vmul.f32 %v15027_v30, %v17352_v53 }
0x2973   :  { %v8876_v1 = vpop.permute.xlu1 %8875 }
0x2974   :  { %v8881_v21 = vsel %vm1085_vm2, %v8876_v1, 0  ;;  %14157 = vmatmul.mubr.msk.bf16.vlgmr.msra.gmra.mxu1 %vm1009_vm3, %v8632_v7  ;;  %v8634_v27 = vpack.c.bf16 %v8628_v63, %v8628_v63 }
0x2975   :  { %14167 = vmatpush3.bf16.msra.mxu1 %v8881_v21  ;;  %14168 = vmatprep.mubr.msk.bf16.mxu1 %vm15455_vm0, %v18093_v12 }
0x2976   :  { %14188 = vmatprep.subr.bf16.mxu1 %v18093_v12 }
0x2977   :  { %v9011_v61 = vpop.permute.xlu1 %9010 }
0x297b   :  { %v9061_v17 = vpop.permute.xlu1 %9060 }
0x297c   :  { %14169 = vmatmul.mubr.msk.bf16.vlgmr.msra.gmra.mxu1 %vm1009_vm3, %v8634_v27 }
0x297d   :  { %14190 = vmatprep.mubr.msk.bf16.mxu1 %vm15455_vm0, %v18093_v12 }
0x297f   :  { %v9163_v7 = vpop.permute.xlu1 %9162 }
0x2980   :  { %v9168_v27 = vsel %vm732_vm1, %v9163_v7, 0 }
0x2988   :  { %v8607_v41 = vpop.xlane.xlu0 %8606 }
0x2989   :  { %15028 = vrcp.f32 %v8607_v41 }
0x298c   :  { %v8613_v44 = vpop.xlane.xlu0 %8612 }
0x298d   :  { %15030 = vrcp.f32 %v8613_v44 }
0x2990   :  { %v8828_v36 = vpop.permute.xlu0 %8827 }
0x2991   :  { %v8833_v46 = vsel %vm1085_vm2, %v8828_v36, 0 }
0x2994   :  { %v9013_v62 = vpop.permute.xlu0 %9012 }
0x2995   :  { %v9018_v31 = vsel %vm732_vm1, %v9013_v62, 0 }
0x2996   :  { %v15029_v39 = vpop.eup %15028  ;;  %14189 = vmatpush3.bf16.xpose.msra.mxu1 %v9018_v31 }
0x2997   :  { %v8625_v53 = vmul.f32 %v15029_v39, %v17366_v11  ;;  %14194 = vmatprep.subr.bf16.mxu1 %v18093_v12 }
0x2998   :  { %v9063_v13 = vpop.permute.xlu0 %9062 }
0x2999   :  { %v8631_v60 = vpack.c.bf16 %v8625_v53, %v8625_v53  ;;  %v9068_v49 = vsel %vm732_vm1, %v9063_v13, 0 }
0x299a   :  { %v15031_v43 = vpop.eup %15030 }
0x299b   :  { %14151 = vmatmul.mubr.msk.bf16.vlgmr.msra.gmra.mxu0 %vm1009_vm3, %v8631_v60  ;;  %v8627_v14 = vmul.f32 %v15031_v43, %v17372_v48 }
0x299c   :  { %14161 = vmatpush3.bf16.msra.mxu0 %v8833_v46  ;;  %14162 = vmatprep.mubr.msk.bf16.mxu0 %vm15455_vm0, %v18093_v12  ;;  %v9113_v11 = vpop.permute.xlu0 %9112 }
0x299d   :  { %14191 = vmatmul.mubr.msk.bf16.vlgmr.msra.gmra.mxu1 %vm732_vm1, %v9011_v61  ;;  %14172 = vmatprep.subr.bf16.mxu0 %v18093_v12  ;;  %v8633_v23 = vpack.c.bf16 %v8627_v14, %v8627_v14  ;;  %v9118_v48 = vsel %vm732_vm1, %v9113_v11, 0 }
0x299e   :  { %14195 = vmatpush3.bf16.xpose.msra.mxu1 %v9068_v49  ;;  %14196 = vmatprep.mubr.msk.bf16.mxu1 %vm15455_vm0, %v18093_v12 }
0x299f   :  { %14200 = vmatprep.subr.bf16.mxu1 %v18093_v12 }
0x29a0   :  { %v9111_v58 = vpop.permute.xlu0 %9110 }
0x29a3   :  { %14163 = vmatmul.mubr.msk.bf16.vlgmr.msra.gmra.mxu0 %vm1009_vm3, %v8633_v23 }
0x29a4   :  { %14176 = vmatprep.mubr.msk.bf16.mxu0 %vm15455_vm0, %v18093_v12  ;;  %14173 = vmatpush3.bf16.msra.mxu0 %v14652_v18  ;;  %v9213_v10 = vpop.permute.xlu0 %9212 }
0x29a5   :  { %14197 = vmatmul.mubr.msk.bf16.vlgmr.msra.gmra.mxu1 %vm732_vm1, %v9061_v17  ;;  %14174 = vmatprep.subr.bf16.mxu0 %v18093_v12  ;;  %v9218_v42 = vsel %vm732_vm1, %v9213_v10, 0 }
0x29a6   :  { %14201 = vmatpush3.bf16.xpose.msra.mxu1 %v9118_v48  ;;  %14202 = vmatprep.mubr.msk.bf16.mxu1 %vm15455_vm0, %v18093_v12 }
0x29a7   :  { %14212 = vmatprep.subr.bf16.mxu1 %v18093_v12 }
0x29a8   :  { %14175 = vmatpush3.bf16.msra.mxu0 %v14653_v33  ;;  %v9211_v3 = vpop.permute.xlu0 %9210 }
0x29a9   :  { %14206 = vmatprep.subr.bf16.mxu0 %v18093_v12 }
0x29ad   :  { %14203 = vmatmul.mubr.msk.bf16.vlgmr.msra.gmra.mxu1 %vm732_vm1, %v9111_v58 }
0x29ae   :  { %14213 = vmatpush3.bf16.xpose.msra.mxu1 %v9218_v42  ;;  %14214 = vmatprep.mubr.msk.bf16.mxu1 %vm15455_vm0, %v18093_v12  ;;  %v9161_v42 = vpop.permute.xlu1 %9160 }
0x29af   :  { %14224 = vmatprep.subr.bf16.mxu1 %v18093_v12 }
0x29b5   :  { %14215 = vmatmul.mubr.msk.bf16.vlgmr.msra.gmra.mxu1 %vm732_vm1, %v9211_v3 }
0x29b6   :  { %14226 = vmatprep.mubr.msk.bf16.mxu1 %vm15455_vm0, %v18093_v12 }
0x2a26   :  { %v8677_v29 = vpop.f32.mrf.mxu0 }
0x2a28   :  { %v14140_v52 = vpop.f32.mrf.mxu0 }
0x2a2a   :  { %v8680_v26 = vpop.f32.mrf.mxu0 }
0x2a2c   :  { %v14141_v30 = vpop.f32.mrf.mxu0  ;;  %v8725_v1 = vpop.f32.mrf.mxu1 }
0x2a2d   :  { %v8923_v21 = vpack.c.bf16 %v8725_v1, %v8677_v29 }
0x2a2e   :  { %v14146_v63 = vpop.f32.mrf.mxu1 }
0x2a2f   :  { %14177 = vmatmul.mubr.msk.bf16.vlgmr.msra.gmra.mxu0 %vm732_vm1, %v8923_v21  ;;  %v9263_v63 = vpop.permute.xlu1 %9262 }
0x2a30   :  { %14207 = vmatpush3.bf16.xpose.msra.mxu0 %v9168_v27  ;;  %v8728_v41 = vpop.f32.mrf.mxu1  ;;  %14180 = vmatprep.mubr.msk.bf16.mxu0 %vm15455_vm0, %v18093_v12 }
0x2a31   :  { %14218 = vmatprep.subr.bf16.mxu0 %v18093_v12 }
0x2a32   :  { %v14147_v44 = vpop.f32.mrf.mxu1 }
0x2a33   :  { %v9268_v44 = vsel %vm732_vm1, %v9263_v63, 0 }
0x2a34   :  { %v8821_v36 = vpop.f32.mrf.mxu1 }
0x2a36   :  { %v14158_v62 = vpop.f32.mrf.mxu1 }
0x2a38   :  { %v8824_v31 = vpop.f32.mrf.mxu1 }
0x2a3a   :  { %v14159_v39 = vpop.f32.mrf.mxu1 }
0x2a3c   :  { %v8917_v53 = vpop.f32.mrf.mxu1 }
0x2a3e   :  { %v14170_v13 = vpop.f32.mrf.mxu1 }
0x2a40   :  { %v8920_v60 = vpop.f32.mrf.mxu1 }
0x2a42   :  { %v14171_v43 = vpop.f32.mrf.mxu1 }
0x2a5b   :  { %v8773_v46 = vpop.f32.mrf.mxu0 }
0x2a5c   :  { %v8924_v61 = vpack.c.bf16 %v8821_v36, %v8773_v46  ;;  %v8241_v46 = vadd.f32 %v17294_v2, %v17323_v35  ;;  %v8252_v2 = vadd.f32 %v17307_v25, %v17331_v0  ;;  %v8260_v25 = vadd.f32 %v17315_v22, %v17337_v8 }
0x2a5d   :  { %v14152_v14 = vpop.f32.mrf.mxu0  ;;  %v9054_v49 = vpop.f32.mrf.mxu1 }
0x2a5e   :  { %v17463_v11 = vadd.f32 %v9054_v49, %v16977_v4  ;;  %14181 = vmatmul.mubr.msk.bf16.gmra.mxu0 %vm732_vm1, %v8924_v61 }
0x2a5f   :  { %v8776_v23 = vpop.f32.mrf.mxu0  ;;  %v14192_v17 = vpop.f32.mrf.mxu1  ;;  %14184 = vmatprep.mubr.msk.bf16.mxu0 %vm15455_vm0, %v18093_v12 }
0x2a60   :  { %v9310_v58 = vsel %vm1009_vm3, %v17463_v11, -inf  ;;  %v8244_v23 = vadd.f32 %v17298_v47, %v17325_v28 }
0x2a61   :  { %9311 = vmax.xlane.f32.xlu0 %v9310_v58  ;;  %v14153_v48 = vpop.f32.mrf.mxu0  ;;  %v9057_v18 = vpop.f32.mrf.mxu1 }
0x2a62   :  { %v8249_v18 = vadd.f32 %v17303_v19, %v17327_v20  ;;  %v8257_v19 = vadd.f32 %v17312_v9, %v17335_v50 }
0x2a63   :  { %v8869_v10 = vpop.f32.mrf.mxu0  ;;  %v14193_v33 = vpop.f32.mrf.mxu1 }
0x2a64   :  { %v8925_v3 = vpack.c.bf16 %v8917_v53, %v8869_v10  ;;  %v9261_v53 = vpop.permute.xlu1 %9260 }
0x2a65   :  { %v14164_v29 = vpop.f32.mrf.mxu0  ;;  %v9104_v4 = vpop.f32.mrf.mxu1 }
0x2a66   :  { %v9105_v52 = vadd.f32 %v9104_v4, %v16982_v55  ;;  %14185 = vmatmul.mubr.msk.bf16.gmra.mxu0 %vm732_vm1, %v8925_v3 }
0x2a67   :  { %v8872_v26 = vpop.f32.mrf.mxu0  ;;  %v14198_v7 = vpop.f32.mrf.mxu1  ;;  %14208 = vmatprep.mubr.msk.bf16.mxu0 %vm15455_vm0, %v18093_v12 }
0x2a68   :  { %v9313_v30 = vsel %vm1009_vm3, %v9105_v52, -inf }
0x2a69   :  { %9314 = vmax.xlane.f32.xlu1 %v9313_v30  ;;  %v14165_v1 = vpop.f32.mrf.mxu0  ;;  %v9107_v21 = vpop.f32.mrf.mxu1 }
0x2a6b   :  { %v14199_v27 = vpop.f32.mrf.mxu1 }
0x2a6d   :  { %v9154_v41 = vpop.f32.mrf.mxu1 }
0x2a6e   :  { %v9155_v36 = vadd.f32 %v9154_v41, %v16987_v32  ;;  %14209 = vmatmul.mubr.msk.bf16.vlgmr.msra.gmra.mxu0 %vm732_vm1, %v9161_v42 }
0x2a6f   :  { %14219 = vmatpush3.bf16.xpose.msra.mxu0 %v9268_v44  ;;  %v14204_v55 = vpop.f32.mrf.mxu1  ;;  %14220 = vmatprep.mubr.msk.bf16.mxu0 %vm15455_vm0, %v18093_v12 }
0x2a70   :  { %v9316_v62 = vsel %vm1009_vm3, %v9155_v36, -inf  ;;  %14230 = vmatprep.subr.bf16.mxu0 %v18093_v12 }
0x2a71   :  { %9317 = vmax.xlane.f32.xlu0 %v9316_v62  ;;  %v9157_v31 = vpop.f32.mrf.mxu1 }
0x2a73   :  { %v14205_v39 = vpop.f32.mrf.mxu1 }
0x2a75   :  { %v9254_v13 = vpop.f32.mrf.mxu1 }
0x2a76   :  { %14221 = vmatmul.mubr.msk.bf16.vlgmr.msra.gmra.mxu0 %vm732_vm1, %v9261_v53 }
0x2a77   :  { %v14216_v60 = vpop.f32.mrf.mxu1  ;;  %14232 = vmatprep.mubr.msk.bf16.mxu0 %vm15455_vm0, %v18093_v12 }
0x2a79   :  { %v9257_v32 = vpop.f32.mrf.mxu1 }
0x2a7b   :  { %v14217_v43 = vpop.f32.mrf.mxu1 }
0x2aea   :  { %v9312_v10 = vpop.xlane.xlu0 %9311 }
0x2aeb   :  { %v9328_v35 = vsub.f32 %v17463_v11, %v9312_v10 }
0x2aed   :  { %v9334_v20 = vmul.f32 1.442695, %v9328_v35 }
0x2aef   :  { %v8981_v61 = vpop.f32.mrf.mxu0  ;;  %15032 = vpow2.f32 %v9334_v20 }
0x2af0   :  { %v17487_v14 = vadd.f32 %v8981_v61, %v8241_v46 }
0x2af1   :  { %v14178_v49 = vpop.f32.mrf.mxu0 }
0x2af2   :  { %v9315_v29 = vpop.xlane.xlu1 %9314 }
0x2af3   :  { %v8984_v17 = vpop.f32.mrf.mxu0  ;;  %v9329_v26 = vsub.f32 %v9105_v52, %v9315_v29 }
0x2af4   :  { %v17491_v58 = vadd.f32 %v8984_v17, %v8244_v23 }
0x2af5   :  { %v14179_v48 = vpop.f32.mrf.mxu0  ;;  %v9336_v63 = vmul.f32 1.442695, %v9329_v26 }
0x2af7   :  { %15034 = vpow2.f32 %v9336_v63 }
0x2afa   :  { %v9318_v4 = vpop.xlane.xlu0 %9317 }
0x2afb   :  { %v9330_v30 = vsub.f32 %v9155_v36, %v9318_v4  ;;  %v9255_v36 = vadd.f32 %v9254_v13, %v16999_v51 }
0x2afc   :  { %v17514_v8 = vpop.eup %15032 }
0x2afd   :  { %v9338_v0 = vmul.f32 1.442695, %v9330_v30  ;;  %v9322_v22 = vsel %vm1009_vm3, %v9255_v36, -inf }
0x2aff   :  { %15036 = vpow2.f32 %v9338_v0 }
0x2b04   :  { %v15035_v32 = vpop.eup %15034 }
0x2b05   :  { %v9349_v49 = vsel %vm1009_vm3, %v15035_v32, 0.0 }
0x2b0c   :  { %v17520_v13 = vpop.eup %15036 }
0x2b0d   :  { %v9352_v61 = vsel %vm1009_vm3, %v17520_v13, 0.0 }
0x2b1e   :  { %v8989_v33 = vpop.f32.mrf.mxu0 }
0x2b1f   :  { %v17495_v42 = vadd.f32 %v8989_v33, %v8249_v18 }
0x2b20   :  { %v14182_v3 = vpop.f32.mrf.mxu0 }
0x2b22   :  { %v8992_v47 = vpop.f32.mrf.mxu0 }
0x2b23   :  { %v17500_v28 = vadd.f32 %v8992_v47, %v8252_v2 }
0x2b24   :  { %v14183_v7 = vpop.f32.mrf.mxu0 }
0x2b26   :  { %v8997_v1 = vpop.f32.mrf.mxu0 }
0x2b27   :  { %v17504_v21 = vadd.f32 %v8997_v1, %v8257_v19 }
0x2b28   :  { %v14186_v27 = vpop.f32.mrf.mxu0 }
0x2b2a   :  { %v9000_v11 = vpop.f32.mrf.mxu0 }
0x2b2b   :  { %v17508_v41 = vadd.f32 %v9000_v11, %v8260_v25 }
0x2b2c   :  { %v14187_v52 = vpop.f32.mrf.mxu0 }
0x2b2e   :  { %v9204_v44 = vpop.f32.mrf.mxu0 }
0x2b2f   :  { %v9205_v9 = vadd.f32 %v9204_v44, %v16993_v24  ;;  %v9346_v24 = vsel %vm1009_vm3, %v17514_v8, 0.0 }
0x2b30   :  { %v14210_v50 = vpop.f32.mrf.mxu0 }
0x2b31   :  { %v9319_v55 = vsel %vm1009_vm3, %v9205_v9, -inf }
0x2b32   :  { %9320 = vmax.xlane.f32.xlu0 %v9319_v55  ;;  %v9207_v62 = vpop.f32.mrf.mxu0 }
0x2b34   :  { %v14211_v31 = vpop.f32.mrf.mxu0 }
0x2b36   :  { %9323 = vmax.xlane.f32.xlu0 %v9322_v22  ;;  %v9304_v39 = vpop.f32.mrf.mxu0 }
0x2b37   :  { %v9305_v53 = vadd.f32 %v9304_v39, %v17005_v56 }
0x2b38   :  { %v14222_v60 = vpop.f32.mrf.mxu0 }
0x2b39   :  { %v9325_v51 = vsel %vm1009_vm3, %v9305_v53, -inf }
0x2b3a   :  { %9347 = vadd.xlane.f32.xlu0 %v9346_v24  ;;  %9326 = vmax.xlane.f32.xlu1 %v9325_v51  ;;  %v9307_v43 = vpop.f32.mrf.mxu0 }
0x2b3c   :  { %v14223_v46 = vpop.f32.mrf.mxu0 }
0x2b3e   :  { %9353 = vadd.xlane.f32.xlu0 %v9352_v61  ;;  %9350 = vadd.xlane.f32.xlu1 %v9349_v49  ;;  %v14654_v49 = vld [vmem:[#allocation14 + $0x78] sm:$0xff]  }
0x2b4f   :  { %9430 = vrot.lane.b32.xlu1 %v16956_v57, %s15458_s13 }
0x2b53   :  { %9478 = vrot.lane.b32.xlu1 %v17048_v40, %s15458_s13 }
0x2b57   :  { %9526 = vrot.lane.b32.xlu1 %v17052_v34, %s15458_s13 }
0x2bbb   :  { %v9321_v56 = vpop.xlane.xlu0 %9320 }
0x2bbc   :  { %v9331_v23 = vsub.f32 %v9205_v9, %v9321_v56 }
0x2bbe   :  { %v9340_v17 = vmul.f32 1.442695, %v9331_v23 }
0x2bbf   :  { %v9324_v48 = vpop.xlane.xlu0 %9323 }
0x2bc0   :  { %15038 = vpow2.f32 %v9340_v17  ;;  %v9332_v18 = vsub.f32 %v9255_v36, %v9324_v48 }
0x2bc2   :  { %v9342_v10 = vmul.f32 1.442695, %v9332_v18 }
0x2bc3   :  { %v9327_v33 = vpop.xlane.xlu1 %9326  ;;  %v9348_v25 = vpop.xlane.xlu0 %9347 }
0x2bc4   :  { %15040 = vpow2.f32 %v9342_v10  ;;  %v9333_v3 = vsub.f32 %v9305_v53, %v9327_v33  ;;  %v14655_v10 = vld [vmem:[#allocation14 + $0x70] sm:$0xff]  }
0x2bc6   :  { %v9344_v2 = vmul.f32 1.442695, %v9333_v3 }
0x2bc7   :  { %v9351_v35 = vpop.xlane.xlu1 %9350  ;;  %v9354_v0 = vpop.xlane.xlu0 %9353 }
0x2bc8   :  { %15042 = vpow2.f32 %v9344_v2 }
0x2bc9   :  { %15044 = vrcp.f32 %v9351_v35 }
0x2bca   :  { %15046 = vrcp.f32 %v9348_v25 }
0x2bcb   :  { %v9431_v57 = vpop.permute.xlu1 %9430  ;;  %15048 = vrcp.f32 %v9354_v0 }
0x2bcc   :  { %v9436_v40 = vsel %vm1085_vm2, %v9431_v57, 0 }
0x2bcd   :  { %v15039_v29 = vpop.eup %15038  ;;  %14231 = vmatpush3.bf16.msra.mxu0 %v9436_v40 }
0x2bce   :  { %v9355_v34 = vsel %vm1009_vm3, %v15039_v29, 0.0  ;;  %14242 = vmatprep.subr.bf16.mxu0 %v18093_v12 }
0x2bcf   :  { %9356 = vadd.xlane.f32.xlu1 %v9355_v34  ;;  %v9479_v26 = vpop.permute.xlu1 %9478 }
0x2bd0   :  { %v9484_v55 = vsel %vm1085_vm2, %v9479_v26, 0 }
0x2bd1   :  { %v15041_v4 = vpop.eup %15040 }
0x2bd2   :  { %v9358_v47 = vsel %vm1009_vm3, %v15041_v4, 0.0 }
0x2bd3   :  { %9359 = vadd.xlane.f32.xlu0 %v9358_v47  ;;  %v9527_v1 = vpop.permute.xlu1 %9526 }
0x2bd4   :  { %v9532_v27 = vsel %vm1085_vm2, %v9527_v1, 0 }
0x2bd5   :  { %v15043_v7 = vpop.eup %15042 }
0x2bd6   :  { %v9361_v19 = vsel %vm1009_vm3, %v15043_v7, 0.0  ;;  %v15045_v20 = vpop.eup %15044 }
0x2bd7   :  { %9362 = vadd.xlane.f32.xlu1 %v9361_v19  ;;  %v9371_v30 = vmul.f32 %v15045_v20, %v15035_v32  ;;  %v15047_v52 = vpop.eup %15046 }
0x2bd8   :  { %v9370_v9 = vmul.f32 %v15047_v52, %v17514_v8 }
0x2bd9   :  { %v9377_v63 = vpack.c.bf16 %v9371_v30, %v9371_v30 }
0x2bdb   :  { %14233 = vmatmul.mubr.msk.bf16.vlgmr.msra.gmra.mxu0 %vm1009_vm3, %v9377_v63 }
0x2bdc   :  { %14243 = vmatpush3.bf16.msra.mxu0 %v9532_v27  ;;  %14244 = vmatprep.mubr.msk.bf16.mxu0 %vm15455_vm0, %v18093_v12 }
0x2bdd   :  { %14254 = vmatprep.subr.bf16.mxu0 %v18093_v12 }
0x2be8   :  { %9622 = vrot.lane.b32.xlu1 %v17072_v15, %s15458_s13 }
0x2be9   :  { %9382 = vrot.lane.b32.xlu0 %v16943_v45, %s15458_s13  ;;  %v9376_v45 = vpack.c.bf16 %v9370_v9, %v9370_v9  ;;  %v12726_v9 = vld [vmem:[%s18065_s8 + $0x1] ss:$0 sm:$0xff] }
0x2bed   :  { %9574 = vrot.lane.b32.xlu0 %v17062_v6, %s15458_s13  ;;  %v15049_v6 = vpop.eup %15048 }
0x2bee   :  { %v9372_v31 = vmul.f32 %v15049_v6, %v17520_v13 }
0x2bf0   :  { %v9378_v60 = vpack.c.bf16 %v9372_v31, %v9372_v31 }
0x2c58   :  { %v9357_v11 = vpop.xlane.xlu1 %9356 }
0x2c59   :  { %15050 = vrcp.f32 %v9357_v11 }
0x2c5c   :  { %v9360_v44 = vpop.xlane.xlu0 %9359 }
0x2c5d   :  { %15052 = vrcp.f32 %v9360_v44 }
0x2c60   :  { %v9383_v50 = vpop.permute.xlu0 %9382  ;;  %v9363_v36 = vpop.xlane.xlu1 %9362 }
0x2c61   :  { %v9388_v15 = vsel %vm1085_vm2, %v9383_v50, 0  ;;  %15054 = vrcp.f32 %v9363_v36 }
0x2c62   :  { %14225 = vmatpush3.bf16.msra.mxu1 %v9388_v15 }
0x2c63   :  { %14236 = vmatprep.subr.bf16.mxu1 %v18093_v12 }
0x2c64   :  { %v9623_v8 = vpop.permute.xlu1 %9622  ;;  %v9575_v53 = vpop.permute.xlu0 %9574 }
0x2c65   :  { %14227 = vmatmul.mubr.msk.bf16.vlgmr.msra.gmra.mxu1 %vm1009_vm3, %v9376_v45  ;;  %v9628_v32 = vsel %vm1085_vm2, %v9623_v8, 0  ;;  %v9580_v51 = vsel %vm1085_vm2, %v9575_v53, 0 }
0x2c66   :  { %v15051_v62 = vpop.eup %15050  ;;  %14237 = vmatpush3.bf16.msra.mxu1 %v9484_v55  ;;  %14238 = vmatprep.mubr.msk.bf16.mxu1 %vm15455_vm0, %v18093_v12 }
0x2c67   :  { %v9373_v22 = vmul.f32 %v15051_v62, %v15039_v29  ;;  %14248 = vmatprep.subr.bf16.mxu1 %v18093_v12  ;;  %v15150_v62 = vld [vmem:[#allocation21] sm:$0xff] }
0x2c69   :  { %v9379_v39 = vpack.c.bf16 %v9373_v22, %v9373_v22 }
0x2c6a   :  { %v15053_v24 = vpop.eup %15052 }
0x2c6b   :  { %14245 = vmatmul.mubr.msk.bf16.vlgmr.msra.gmra.mxu0 %vm1009_vm3, %v9379_v39  ;;  %v9374_v43 = vmul.f32 %v15053_v24, %v15041_v4 }
0x2c6c   :  { %14255 = vmatpush3.bf16.msra.mxu0 %v9628_v32  ;;  %14256 = vmatprep.mubr.msk.bf16.mxu0 %vm15455_vm0, %v18093_v12 }
0x2c6d   :  { %14239 = vmatmul.mubr.msk.bf16.vlgmr.msra.gmra.mxu1 %vm1009_vm3, %v9378_v60  ;;  %v9380_v56 = vpack.c.bf16 %v9374_v43, %v9374_v43  ;;  %v15151_v60 = vld [vmem:[#allocation21 + $0x8] sm:$0xff]  ;;  %v15152_v43 = vld [vmem:[#allocation21 + $0x10] sm:$0xff] }
0x2c6e   :  { %v15055_v13 = vpop.eup %15054  ;;  %14249 = vmatpush3.bf16.msra.mxu1 %v9580_v51  ;;  %14250 = vmatprep.mubr.msk.bf16.mxu1 %vm15455_vm0, %v18093_v12 }
0x2c6f   :  { %v9375_v46 = vmul.f32 %v15055_v13, %v15043_v7  ;;  %14260 = vmatprep.subr.bf16.mxu1 %v18093_v12 }
0x2c71   :  { %v9381_v61 = vpack.c.bf16 %v9375_v46, %v9375_v46 }
0x2c73   :  { %14257 = vmatmul.mubr.msk.bf16.vlgmr.msra.gmra.mxu0 %vm1009_vm3, %v9381_v61 }
0x2c74   :  { %9991 = vmatprep.mubr.bf16.mxu0 %v18090_v5 }
0x2c75   :  { %14251 = vmatmul.mubr.msk.bf16.vlgmr.msra.gmra.mxu1 %vm1009_vm3, %v9380_v56 }
0x2c76   :  { %14261 = vmatpush3.bf16.msra.mxu1 %v14654_v49  ;;  %14264 = vmatprep.mubr.msk.bf16.mxu1 %vm15455_vm0, %v18093_v12 }
0x2c77   :  { %14262 = vmatprep.subr.bf16.mxu1 %v18093_v12 }
0x2c7a   :  { %14263 = vmatpush3.bf16.msra.mxu1 %v14655_v10 }
0x2c9b   :  { %v9472_v23 = vpop.f32.mrf.mxu0 }
0x2c9d   :  { %v14234_v17 = vpop.f32.mrf.mxu0 }
0x2c9f   :  { %v9475_v48 = vpop.f32.mrf.mxu0 }
0x2ca1   :  { %v14235_v18 = vpop.f32.mrf.mxu0 }
0x2d25   :  { %v9424_v33 = vpop.f32.mrf.mxu1 }
0x2d26   :  { %v9670_v3 = vpack.c.bf16 %v9472_v23, %v9424_v33  ;;  %v15153_v23 = vld [vmem:[#allocation21 + $0x18] sm:$0xff]  ;;  %v15154_v33 = vld [vmem:[#allocation21 + $0x20] sm:$0xff] }
0x2d27   :  { %v14228_v2 = vpop.f32.mrf.mxu1 }
0x2d28   :  { %14265 = vmatmul.mubr.msk.bf16.vlgmr.msra.gmra.mxu1 %vm732_vm1, %v9670_v3 }
0x2d29   :  { %v9427_v35 = vpop.f32.mrf.mxu1  ;;  %14268 = vmatprep.mubr.msk.bf16.mxu1 %vm15455_vm0, %v18093_v12 }
0x2d2a   :  { %v15155_v35 = vld [vmem:[#allocation21 + $0x28] sm:$0xff] }
0x2d2b   :  { %v14229_v57 = vpop.f32.mrf.mxu1  ;;  %v9568_v40 = vpop.f32.mrf.mxu0 }
0x2d2d   :  { %v9520_v29 = vpop.f32.mrf.mxu1  ;;  %v14246_v34 = vpop.f32.mrf.mxu0 }
0x2d2e   :  { %v9671_v4 = vpack.c.bf16 %v9568_v40, %v9520_v29  ;;  %v14656_v40 = vld [vmem:[#allocation17 + $0xf0] ss:$8 sps:$4 sm:$0xff]   ;;  %v14658_v29 = vld [vmem:[#allocation17 + $0xf4] ss:$8 sps:$4 sm:$0xff]  }
0x2d2f   :  { %v14240_v47 = vpop.f32.mrf.mxu1  ;;  %v9571_v26 = vpop.f32.mrf.mxu0  ;;  %9959 = vmatprep.subr.bf16.mxu0 %v14658_v29  ;;  %v12727_v29 = vld [vmem:[%s18066_s9 + $0x1] ss:$0 sm:$0xff] }
0x2d30   :  { %14269 = vmatmul.mubr.msk.bf16.gmra.mxu1 %vm732_vm1, %v9671_v4  ;;  %9960 = vmatpush1.bf16.msra.mxu0 %v14656_v40 }
0x2d31   :  { %v9523_v7 = vpop.f32.mrf.mxu1  ;;  %v14247_v19 = vpop.f32.mrf.mxu0  ;;  %14272 = vmatprep.mubr.msk.bf16.mxu1 %vm15455_vm0, %v18093_v12 }
0x2d33   :  { %v14241_v20 = vpop.f32.mrf.mxu1  ;;  %v9664_v30 = vpop.f32.mrf.mxu0 }
0x2d35   :  { %v9616_v1 = vpop.f32.mrf.mxu1  ;;  %v14258_v63 = vpop.f32.mrf.mxu0 }
0x2d36   :  { %v9672_v27 = vpack.c.bf16 %v9664_v30, %v9616_v1 }
0x2d37   :  { %v14252_v25 = vpop.f32.mrf.mxu1  ;;  %v9667_v0 = vpop.f32.mrf.mxu0 }
0x2d38   :  { %14273 = vmatmul.mubr.msk.bf16.gmra.mxu1 %vm732_vm1, %v9672_v27 }
0x2d39   :  { %v9619_v11 = vpop.f32.mrf.mxu1  ;;  %v14259_v52 = vpop.f32.mrf.mxu0 }
0x2d3b   :  { %v14253_v44 = vpop.f32.mrf.mxu1 }
0x2de8   :  { %v9728_v50 = vpop.f32.mrf.mxu1 }
0x2de9   :  { %v9751_v36 = vadd.f32 %v9728_v50, %v17487_v14 }
0x2dea   :  { %v14266_v15 = vpop.f32.mrf.mxu1 }
0x2deb   :  { %v9763_v45 = vadd.f32 %v12726_v9, %v9751_v36  ;;  %v14661_v36 = vld [vmem:[#allocation17 + $0xe4] ss:$8 sps:$4 sm:$0xff]  }
0x2dec   :  { %v9731_v6 = vpop.f32.mrf.mxu1  ;;  %9961 = vmatprep.subr.bf16.mxu0 %v14661_v36 }
0x2ded   :  { %v9752_v55 = vadd.f32 %v9731_v6, %v17491_v58  ;;  %v9769_v31 = vadd.f32 %v15150_v62, %v9763_v45  ;;  %v14659_v6 = vld [vmem:[#allocation17 + $0xe0] ss:$8 sps:$4 sm:$0xff]   ;;  %v14664_v62 = vld [vmem:[#allocation17 + $0xd4] ss:$8 sps:$4 sm:$0xff]  }
0x2dee   :  { %v14267_v22 = vpop.f32.mrf.mxu1  ;;  %9962 = vmatpush1.bf16.msra.mxu0 %v14659_v6 }
0x2def   :  { %v9764_v8 = vadd.f32 %v12726_v9, %v9752_v55  ;;  %9775 = vadd.xlane.f32.xlu0 %v9769_v31  ;;  %v14662_v22 = vld [vmem:[#allocation17 + $0xd0] ss:$8 sps:$4 sm:$0xff]   ;;  %9963 = vmatprep.subr.bf16.mxu0 %v14664_v62 }
0x2df0   :  { %v9736_v39 = vpop.f32.mrf.mxu1 }
0x2df1   :  { %v9753_v53 = vadd.f32 %v9736_v39, %v17495_v42  ;;  %v9770_v32 = vadd.f32 %v15151_v60, %v9764_v8  ;;  %v14667_v8 = vld [vmem:[#allocation17 + $0xc4] ss:$8 sps:$4 sm:$0xff]   ;;  %v14665_v39 = vld [vmem:[#allocation17 + $0xc0] ss:$8 sps:$4 sm:$0xff]   ;;  %v14668_v60 = vld [vmem:[#allocation17 + $0xb0] ss:$8 sps:$4 sm:$0xff]  }
0x2df2   :  { %v14270_v24 = vpop.f32.mrf.mxu1  ;;  %9964 = vmatpush1.bf16.msra.mxu0 %v14662_v22 }
0x2df3   :  { %v9765_v51 = vadd.f32 %v12726_v9, %v9753_v53  ;;  %9777 = vadd.xlane.f32.xlu1 %v9770_v32  ;;  %9965 = vmatprep.subr.bf16.mxu0 %v14667_v8  ;;  %v14670_v53 = vld [vmem:[#allocation17 + $0xb4] ss:$8 sps:$4 sm:$0xff]   ;;  %v14671_v24 = vld [vmem:[#allocation17 + $0xa0] ss:$8 sps:$4 sm:$0xff]  }
0x2df4   :  { %v9739_v13 = vpop.f32.mrf.mxu1 }
0x2df5   :  { %v9754_v14 = vadd.f32 %v9739_v13, %v17500_v28  ;;  %v9771_v46 = vadd.f32 %v15152_v43, %v9765_v51  ;;  %v14676_v51 = vld [vmem:[#allocation17 + $0x94] ss:$8 sps:$4 sm:$0xff]   ;;  %v14674_v13 = vld [vmem:[#allocation17 + $0x90] ss:$8 sps:$4 sm:$0xff]   ;;  %v14677_v43 = vld [vmem:[#allocation17 + $0x80] ss:$8 sps:$4 sm:$0xff]  }
0x2df6   :  { %v14271_v61 = vpop.f32.mrf.mxu1  ;;  %9966 = vmatpush1.bf16.msra.mxu0 %v14665_v39 }
0x2df7   :  { %v9766_v58 = vadd.f32 %v12726_v9, %v9754_v14  ;;  %9779 = vadd.xlane.f32.xlu0 %v9771_v46  ;;  %9967 = vmatprep.subr.bf16.mxu0 %v14670_v53  ;;  %v14679_v14 = vld [vmem:[#allocation17 + $0x84] ss:$8 sps:$4 sm:$0xff]   ;;  %v14681_v53 = vld [vmem:[#allocation19 + $0xb8] sm:$0xff]  }
0x2df8   :  { %v9744_v49 = vpop.f32.mrf.mxu1 }
0x2df9   :  { %v9755_v56 = vadd.f32 %v9744_v49, %v17504_v21  ;;  %v9772_v17 = vadd.f32 %v15153_v23, %v9766_v58 }
0x2dfa   :  { %v14274_v48 = vpop.f32.mrf.mxu1  ;;  %9968 = vmatpush1.bf16.msra.mxu0 %v14668_v60  ;;  %v14682_v60 = vld [vmem:[#allocation19 + $0xf0] sm:$0xff]  }
0x2dfb   :  { %v9767_v42 = vadd.f32 %v12726_v9, %v9755_v56  ;;  %9781 = vadd.xlane.f32.xlu0 %v9772_v17 }
0x2dfc   :  { %v9747_v18 = vpop.f32.mrf.mxu1 }
0x2dfd   :  { %v9756_v10 = vadd.f32 %v9747_v18, %v17508_v41  ;;  %v9773_v3 = vadd.f32 %v15154_v33, %v9767_v42 }
0x2dfe   :  { %v14275_v2 = vpop.f32.mrf.mxu1 }
0x2dff   :  { %v9768_v28 = vadd.f32 %v12726_v9, %v9756_v10  ;;  %9783 = vadd.xlane.f32.xlu0 %v9773_v3 }
0x2e01   :  { %v9774_v57 = vadd.f32 %v15155_v35, %v9768_v28 }
0x2e03   :  { %9785 = vadd.xlane.f32.xlu1 %v9774_v57 }
0x2e78   :  { %v9776_v21 = vpop.xlane.xlu0 %9775 }
0x2e79   :  { %v9787_v34 = vmul.f32 0.0078125, %v9776_v21 }
0x2e7b   :  { %v17587_v4 = vsub.f32 %v9769_v31, %v9787_v34 }
0x2e7c   :  { %v9778_v47 = vpop.xlane.xlu1 %9777 }
0x2e7d   :  { %v9788_v26 = vmul.f32 0.0078125, %v9778_v47  ;;  %v9799_v41 = vmul.f32 %v17587_v4, %v17587_v4 }
0x2e7f   :  { %v17591_v7 = vsub.f32 %v9770_v32, %v9788_v26  ;;  %9805 = vadd.xlane.f32.xlu0 %v9799_v41  ;;  %v14673_v32 = vld [vmem:[#allocation17 + $0xa4] ss:$8 sps:$4 sm:$0xff]  }
0x2e80   :  { %v9780_v19 = vpop.xlane.xlu0 %9779  ;;  %9969 = vmatprep.subr.bf16.mxu0 %v14673_v32  ;;  %v14684_v32 = vld [vmem:[#allocation19 + $0xe8] sm:$0xff]  }
0x2e81   :  { %v9789_v20 = vmul.f32 0.0078125, %v9780_v19  ;;  %v9800_v30 = vmul.f32 %v17591_v7, %v17591_v7  ;;  %9970 = vmatpush1.bf16.msra.mxu0 %v14671_v24  ;;  %v12728_v19 = vld [vmem:[#allocation16 + $0x1] ss:$0 sm:$0xff]  ;;  %v14685_v24 = vld [vmem:[#allocation19 + $0xa8] sm:$0xff]  }
0x2e82   :  { %9971 = vmatprep.subr.bf16.mxu0 %v14676_v51  ;;  %v14686_v51 = vld [vmem:[#allocation19 + $0xe0] sm:$0xff]  }
0x2e83   :  { %v17595_v1 = vsub.f32 %v9771_v46, %v9789_v20  ;;  %9807 = vadd.xlane.f32.xlu1 %v9800_v30 }
0x2e84   :  { %v9782_v63 = vpop.xlane.xlu0 %9781 }
0x2e85   :  { %v9790_v27 = vmul.f32 0.0078125, %v9782_v63  ;;  %v9801_v25 = vmul.f32 %v17595_v1, %v17595_v1  ;;  %9972 = vmatpush1.bf16.msra.mxu0 %v14674_v13  ;;  %v14687_v13 = vld [vmem:[#allocation19 + $0xa0] sm:$0xff]  }
0x2e86   :  { %9973 = vmatprep.subr.bf16.mxu0 %v14679_v14  ;;  %v14688_v14 = vld [vmem:[#allocation19 + $0xd8] sm:$0xff]  }
0x2e87   :  { %v17599_v0 = vsub.f32 %v9772_v17, %v9790_v27  ;;  %9809 = vadd.xlane.f32.xlu0 %v9801_v25 }
0x2e88   :  { %v9784_v11 = vpop.xlane.xlu0 %9783 }
0x2e89   :  { %v9791_v52 = vmul.f32 0.0078125, %v9784_v11  ;;  %v9802_v44 = vmul.f32 %v17599_v0, %v17599_v0  ;;  %9974 = vmatpush1.bf16.msra.mxu0 %v14677_v43  ;;  %v14689_v43 = vld [vmem:[#allocation19 + $0x98] sm:$0xff]  }
0x2e8b   :  { %v17603_v9 = vsub.f32 %v9773_v3, %v9791_v52  ;;  %9811 = vadd.xlane.f32.xlu1 %v9802_v44 }
0x2e8c   :  { %v9786_v50 = vpop.xlane.xlu1 %9785 }
0x2e8d   :  { %v9792_v15 = vmul.f32 0.0078125, %v9786_v50  ;;  %v9803_v45 = vmul.f32 %v17603_v9, %v17603_v9 }
0x2e8f   :  { %v17607_v55 = vsub.f32 %v9774_v57, %v9792_v15  ;;  %9813 = vadd.xlane.f32.xlu0 %v9803_v45 }
0x2e91   :  { %v9804_v31 = vmul.f32 %v17607_v55, %v17607_v55 }
0x2e93   :  { %9815 = vadd.xlane.f32.xlu1 %v9804_v31 }
0x2f08   :  { %v9806_v46 = vpop.xlane.xlu0 %9805 }
0x2f09   :  { %v9817_v61 = vmul.f32 0.0078125, %v9806_v46  ;;  %v14690_v46 = vld [vmem:[#allocation19 + $0xd0] sm:$0xff]  }
0x2f0b   :  { %v9823_v58 = vadd.f32 1e-12, %v9817_v61  ;;  %v14691_v61 = vld [vmem:[#allocation19 + $0x90] sm:$0xff]  }
0x2f0c   :  { %v9808_v49 = vpop.xlane.xlu1 %9807 }
0x2f0d   :  { %15056 = vrsqrt.f32 %v9823_v58  ;;  %v9818_v56 = vmul.f32 0.0078125, %v9808_v49  ;;  %v14692_v58 = vld [vmem:[#allocation19 + $0xc8] sm:$0xff]  }
0x2f0e   :  { %v14693_v49 = vld [vmem:[#allocation19 + $0x88] sm:$0xff]  }
0x2f0f   :  { %v9824_v23 = vadd.f32 1e-12, %v9818_v56  ;;  %v14694_v56 = vld [vmem:[#allocation19 + $0xc0] sm:$0xff]  }
0x2f10   :  { %v9810_v17 = vpop.xlane.xlu0 %9809 }
0x2f11   :  { %15058 = vrsqrt.f32 %v9824_v23  ;;  %v9819_v48 = vmul.f32 0.0078125, %v9810_v17  ;;  %v14695_v23 = vld [vmem:[#allocation19 + $0x80] sm:$0xff]   ;;  %v12612_v17 = vld [vmem:[%s18069_s12 + $0x2] sm:$0x3] }
0x2f13   :  { %v9825_v42 = vadd.f32 1e-12, %v9819_v48  ;;  %v17646_v48 = vrot.slane %v12612_v17, %v15631_v38 }
0x2f14   :  { %v9812_v18 = vpop.xlane.xlu1 %9811 }
0x2f15   :  { %15060 = vrsqrt.f32 %v9825_v42  ;;  %v9820_v10 = vmul.f32 0.0078125, %v9812_v18  ;;  %v17649_v42 = vrot.slane %v12612_v17, %v15628_v37 }
0x2f17   :  { %v9826_v33 = vadd.f32 1e-12, %v9820_v10 }
0x2f18   :  { %v9814_v3 = vpop.xlane.xlu0 %9813 }
0x2f19   :  { %15062 = vrsqrt.f32 %v9826_v33  ;;  %v9821_v2 = vmul.f32 0.0078125, %v9814_v3 }
0x2f1a   :  { %v15057_v28 = vpop.eup %15056 }
0x2f1b   :  { %v9835_v35 = vmul.f32 %v15057_v28, %v17587_v4  ;;  %v9827_v57 = vadd.f32 1e-12, %v9821_v2 }
0x2f1c   :  { %v9816_v40 = vpop.xlane.xlu1 %9815 }
0x2f1d   :  { %15064 = vrsqrt.f32 %v9827_v57  ;;  %v9822_v21 = vmul.f32 0.0078125, %v9816_v40  ;;  %v9847_v41 = vmul.f32 %v12727_v29, %v9835_v35 }
0x2f1e   :  { %v15059_v34 = vpop.eup %15058 }
0x2f1f   :  { %v9836_v47 = vmul.f32 %v15059_v34, %v17591_v7  ;;  %v9828_v26 = vadd.f32 1e-12, %v9822_v21  ;;  %v17616_v63 = vadd.f32 %v12728_v19, %v9847_v41 }
0x2f21   :  { %15066 = vrsqrt.f32 %v9828_v26  ;;  %v9848_v20 = vmul.f32 %v12727_v29, %v9836_v47 }
0x2f22   :  { %v15061_v30 = vpop.eup %15060 }
0x2f23   :  { %v17618_v4 = vadd.f32 %v12728_v19, %v9848_v20  ;;  %v9837_v27 = vmul.f32 %v15061_v30, %v17595_v1 }
0x2f25   :  { %v9865_v25 = vpack.c.bf16 %v17618_v4, %v17616_v63  ;;  %v9849_v7 = vmul.f32 %v12727_v29, %v9837_v27 }
0x2f26   :  { %v15063_v11 = vpop.eup %15062 }
0x2f27   :  { %9992 = vmatmul.mubr.bf16.vlgmr.msra.gmra.mxu0 %v9865_v25  ;;  %v9838_v52 = vmul.f32 %v15063_v11, %v17599_v0  ;;  %v17625_v36 = vadd.f32 %v12728_v19, %v9849_v7 }
0x2f28   :  { %10001 = vmatprep.mubr.bf16.mxu0 %v18090_v5 }
0x2f29   :  { %v9850_v44 = vmul.f32 %v12727_v29, %v9838_v52 }
0x2f2a   :  { %v15065_v50 = vpop.eup %15064 }
0x2f2b   :  { %v17627_v15 = vadd.f32 %v12728_v19, %v9850_v44  ;;  %v9839_v45 = vmul.f32 %v15065_v50, %v17603_v9  ;;  %v14680_v9 = vld [vmem:[#allocation19 + $0xf8] sm:$0xff]  }
0x2f2c   :  { %13259 = vmatprep.subr.bf16.mxu1 %v14680_v9 }
0x2f2d   :  { %v9866_v1 = vpack.c.bf16 %v17627_v15, %v17625_v36  ;;  %v9851_v31 = vmul.f32 %v12727_v29, %v9839_v45  ;;  %13260 = vmatpush3.bf16.msra.mxu1 %v14681_v53 }
0x2f2e   :  { %v15067_v6 = vpop.eup %15066  ;;  %13261 = vmatprep.subr.bf16.mxu1 %v14682_v60 }
0x2f2f   :  { %10002 = vmatmul.mubr.bf16.gmra.mxu0 %v9866_v1  ;;  %v9840_v62 = vmul.f32 %v15067_v6, %v17607_v55  ;;  %v17634_v22 = vadd.f32 %v12728_v19, %v9851_v31  ;;  %v14683_v55 = vld [vmem:[#allocation19 + $0xb0] sm:$0xff]  }
0x2f30   :  { %10011 = vmatprep.mubr.bf16.mxu0 %v18090_v5 }
0x2f31   :  { %v9852_v0 = vmul.f32 %v12727_v29, %v9840_v62  ;;  %13262 = vmatpush3.bf16.msra.mxu1 %v14683_v55 }
0x2f32   :  { %13263 = vmatprep.subr.bf16.mxu1 %v14684_v32 }
0x2f33   :  { %v17636_v8 = vadd.f32 %v12728_v19, %v9852_v0 }
0x2f35   :  { %v9867_v39 = vpack.c.bf16 %v17636_v8, %v17634_v22  ;;  %13264 = vmatpush3.bf16.msra.mxu1 %v14685_v24 }
0x2f36   :  { %13265 = vmatprep.subr.bf16.mxu1 %v14686_v51 }
0x2f37   :  { %10012 = vmatmul.mubr.bf16.gmra.mxu0 %v9867_v39 }
0x2f38   :  { %10732 = vmatprep.mubr.bf16.mxu0 %v18090_v5 }
0x2f39   :  { %13266 = vmatpush3.bf16.msra.mxu1 %v14687_v13 }
0x2f3a   :  { %13267 = vmatprep.subr.bf16.mxu1 %v14688_v14 }
0x2f3d   :  { %13268 = vmatpush3.bf16.msra.mxu1 %v14689_v43 }
0x2f3e   :  { %13269 = vmatprep.subr.bf16.mxu1 %v14690_v46 }
0x2f41   :  { %13270 = vmatpush3.bf16.msra.mxu1 %v14691_v61 }
0x2f42   :  { %13271 = vmatprep.subr.bf16.mxu1 %v14692_v58 }
0x2f45   :  { %13272 = vmatpush3.bf16.msra.mxu1 %v14693_v49 }
0x2f46   :  { %13273 = vmatprep.subr.bf16.mxu1 %v14694_v56 }
0x2f49   :  { %13274 = vmatpush3.bf16.msra.mxu1 %v14695_v23 }
0x2f4a   :  { %14276 = vmatprep.subr.bf16.mxu1 %v18093_v12 }
0x2fe7   :  { %v9993_v18 = vpop.f32.mrf.mxu0 }
0x2fe8   :  { %v17652_v10 = vadd.f32 %v9993_v18, %v17646_v48 }
0x2fe9   :  { %v9995_v33 = vpop.f32.mrf.mxu0 }
0x2fea   :  { %v10034_v3 = vmul.f32 0.044715, %v17652_v10  ;;  %v17656_v2 = vadd.f32 %v9995_v33, %v17649_v42 }
0x2feb   :  { %v9997_v28 = vpop.f32.mrf.mxu0 }
0x2fec   :  { %v10046_v35 = vmul.f32 %v10034_v3, %v17652_v10  ;;  %v10035_v57 = vmul.f32 0.044715, %v17656_v2  ;;  %v17661_v40 = vadd.f32 %v9997_v28, %v17646_v48 }
0x2fed   :  { %v9999_v29 = vpop.f32.mrf.mxu0 }
0x2fee   :  { %v10058_v21 = vmul.f32 %v10046_v35, %v17652_v10  ;;  %v10047_v34 = vmul.f32 %v10035_v57, %v17656_v2  ;;  %v10036_v47 = vmul.f32 0.044715, %v17661_v40  ;;  %v17667_v26 = vadd.f32 %v9999_v29, %v17649_v42 }
0x2fef   :  { %v10003_v41 = vpop.f32.mrf.mxu0 }
0x2ff0   :  { %v10070_v19 = vadd.f32 %v10058_v21, %v17652_v10  ;;  %v10059_v20 = vmul.f32 %v10047_v34, %v17656_v2  ;;  %v10048_v30 = vmul.f32 %v10036_v47, %v17661_v40  ;;  %v17673_v27 = vadd.f32 %v10003_v41, %v17646_v48 }
0x2ff1   :  { %v10037_v25 = vmul.f32 0.044715, %v17667_v26  ;;  %v10005_v11 = vpop.f32.mrf.mxu0 }
0x2ff2   :  { %v10082_v52 = vmul.f32 0.7978846, %v10070_v19  ;;  %v10060_v7 = vmul.f32 %v10048_v30, %v17661_v40  ;;  %v10038_v44 = vmul.f32 0.044715, %v17673_v27  ;;  %v17679_v50 = vadd.f32 %v10005_v11, %v17649_v42 }
0x2ff3   :  { %v10049_v45 = vmul.f32 %v10037_v25, %v17667_v26  ;;  %v10007_v1 = vpop.f32.mrf.mxu0  ;;  %v10071_v6 = vadd.f32 %v10059_v20, %v17656_v2 }
0x2ff4   :  { %v10072_v62 = vadd.f32 %v10060_v7, %v17661_v40  ;;  %v10050_v31 = vmul.f32 %v10038_v44, %v17673_v27  ;;  %v10039_v0 = vmul.f32 0.044715, %v17679_v50  ;;  %15068 = vtanh.f32 %v10082_v52 }
0x2ff5   :  { %v10061_v39 = vmul.f32 %v10049_v45, %v17667_v26  ;;  %v17688_v9 = vadd.f32 %v10007_v1, %v17646_v48  ;;  %v10009_v53 = vpop.f32.mrf.mxu0  ;;  %v10083_v60 = vmul.f32 0.7978846, %v10071_v6 }
0x2ff6   :  { %v10084_v55 = vmul.f32 0.7978846, %v10072_v62  ;;  %v10062_v32 = vmul.f32 %v10050_v31, %v17673_v27  ;;  %v10051_v24 = vmul.f32 %v10039_v0, %v17679_v50  ;;  %v17693_v51 = vadd.f32 %v10009_v53, %v17649_v42 }
0x2ff7   :  { %v10040_v13 = vmul.f32 0.044715, %v17688_v9  ;;  %v10013_v14 = vpop.f32.mrf.mxu0  ;;  %v10073_v43 = vadd.f32 %v10061_v39, %v17667_v26  ;;  %15070 = vtanh.f32 %v10083_v60 }
0x2ff8   :  { %15072 = vtanh.f32 %v10084_v55  ;;  %v10074_v46 = vadd.f32 %v10062_v32, %v17673_v27  ;;  %v10063_v61 = vmul.f32 %v10051_v24, %v17679_v50  ;;  %v10041_v58 = vmul.f32 0.044715, %v17693_v51 }
0x2ff9   :  { %v10052_v49 = vmul.f32 %v10040_v13, %v17688_v9  ;;  %v17702_v56 = vadd.f32 %v10013_v14, %v17646_v48  ;;  %v10015_v23 = vpop.f32.mrf.mxu0  ;;  %v10085_v17 = vmul.f32 0.7978846, %v10073_v43 }
0x2ffa   :  { %v10086_v18 = vmul.f32 0.7978846, %v10074_v46  ;;  %v10053_v33 = vmul.f32 %v10041_v58, %v17693_v51  ;;  %v17706_v3 = vadd.f32 %v10015_v23, %v17649_v42  ;;  %v10075_v28 = vadd.f32 %v10063_v61, %v17679_v50 }
0x2ffb   :  { %v10064_v35 = vmul.f32 %v10052_v49, %v17688_v9  ;;  %v10042_v57 = vmul.f32 0.044715, %v17702_v56  ;;  %v10017_v29 = vpop.f32.mrf.mxu0  ;;  %15074 = vtanh.f32 %v10085_v17  ;;  %v10024_v17 = vmul.f32 0.5, %v17661_v40 }
0x2ffc   :  { %v10065_v21 = vmul.f32 %v10053_v33, %v17693_v51  ;;  %v10043_v34 = vmul.f32 0.044715, %v17706_v3  ;;  %v17714_v47 = vadd.f32 %v10017_v29, %v17646_v48  ;;  %15076 = vtanh.f32 %v10086_v18 }
0x2ffd   :  { %v10076_v41 = vadd.f32 %v10064_v35, %v17688_v9  ;;  %v10054_v19 = vmul.f32 %v10042_v57, %v17702_v56  ;;  %v10019_v20 = vpop.f32.mrf.mxu0  ;;  %v10087_v30 = vmul.f32 0.7978846, %v10075_v28  ;;  %v10023_v33 = vmul.f32 0.5, %v17656_v2 }
0x2ffe   :  { %v10055_v25 = vmul.f32 %v10043_v34, %v17706_v3  ;;  %v10044_v11 = vmul.f32 0.044715, %v17714_v47  ;;  %v17721_v52 = vadd.f32 %v10019_v20, %v17649_v42  ;;  %v10077_v7 = vadd.f32 %v10065_v21, %v17693_v51 }
0x2fff   :  { %v10088_v44 = vmul.f32 0.7978846, %v10076_v41  ;;  %v10066_v48 = vmul.f32 %v10054_v19, %v17702_v56  ;;  %15078 = vtanh.f32 %v10087_v30  ;;  %v10025_v28 = vmul.f32 0.5, %v17667_v26 }
0x3000   :  { %v10067_v45 = vmul.f32 %v10055_v25, %v17706_v3  ;;  %v10056_v1 = vmul.f32 %v10044_v11, %v17714_v47  ;;  %v10045_v6 = vmul.f32 0.044715, %v17721_v52  ;;  %v10089_v62 = vmul.f32 0.7978846, %v10077_v7 }
0x3001   :  { %15080 = vtanh.f32 %v10088_v44  ;;  %v10078_v31 = vadd.f32 %v10066_v48, %v17702_v56  ;;  %v15069_v0 = vpop.eup %15068  ;;  %v10022_v29 = vmul.f32 0.5, %v17652_v10  ;;  %v10027_v2 = vmul.f32 0.5, %v17679_v50 }
0x3002   :  { %v10068_v42 = vmul.f32 %v10056_v1, %v17714_v47  ;;  %v10057_v39 = vmul.f32 %v10045_v6, %v17721_v52  ;;  %15082 = vtanh.f32 %v10089_v62  ;;  %v10079_v60 = vadd.f32 %v10067_v45, %v17706_v3 }
0x3003   :  { %v10090_v53 = vmul.f32 0.7978846, %v10078_v31  ;;  %v10106_v23 = vadd.f32 1.0, %v15069_v0  ;;  %v10029_v26 = vmul.f32 0.5, %v17693_v51  ;;  %v10028_v10 = vmul.f32 0.5, %v17688_v9 }
0x3004   :  { %v15071_v55 = vpop.eup %15070  ;;  %v10080_v32 = vadd.f32 %v10068_v42, %v17714_v47  ;;  %v10069_v24 = vmul.f32 %v10057_v39, %v17721_v52  ;;  %v10091_v14 = vmul.f32 0.7978846, %v10079_v60  ;;  %v10026_v62 = vmul.f32 0.5, %v17673_v27 }
0x3005   :  { %v15073_v13 = vpop.eup %15072  ;;  %15084 = vtanh.f32 %v10090_v53  ;;  %v10107_v58 = vadd.f32 1.0, %v15071_v55  ;;  %v10118_v20 = vmul.f32 %v10106_v23, %v10022_v29  ;;  %v10031_v51 = vmul.f32 0.5, %v17706_v3 }
0x3006   :  { %v10108_v43 = vadd.f32 1.0, %v15073_v13  ;;  %v10092_v46 = vmul.f32 0.7978846, %v10080_v32  ;;  %v10081_v61 = vadd.f32 %v10069_v24, %v17721_v52  ;;  %15086 = vtanh.f32 %v10091_v14 }
0x3007   :  { %v10119_v34 = vmul.f32 %v10107_v58, %v10023_v33  ;;  %v10033_v9 = vmul.f32 0.5, %v17721_v52  ;;  %v10032_v14 = vmul.f32 0.5, %v17714_v47  ;;  %v12745_v52 = vld [vmem:[%s18071_s14 + $0x1] ss:$0 sm:$0xff] }
0x3008   :  { %v15075_v49 = vpop.eup %15074  ;;  %15088 = vtanh.f32 %v10092_v46  ;;  %v10093_v18 = vmul.f32 0.7978846, %v10081_v61  ;;  %v10120_v21 = vmul.f32 %v10108_v43, %v10024_v17  ;;  %v10030_v61 = vmul.f32 0.5, %v17702_v56 }
0x3009   :  { %v10109_v35 = vadd.f32 1.0, %v15075_v49  ;;  %v15077_v57 = vpop.eup %15076 }
0x300a   :  { %15090 = vtanh.f32 %v10093_v18  ;;  %v10130_v11 = vpack.c.bf16 %v10120_v21, %v10118_v20  ;;  %v10110_v45 = vadd.f32 1.0, %v15077_v57 }
0x300b   :  { %v10121_v41 = vmul.f32 %v10109_v35, %v10025_v28 }
0x300c   :  { %v15079_v19 = vpop.eup %15078  ;;  %v10122_v53 = vmul.f32 %v10110_v45, %v10026_v62 }
0x300d   :  { %v10131_v30 = vpack.c.bf16 %v10121_v41, %v10119_v34  ;;  %v10111_v40 = vadd.f32 1.0, %v15079_v19 }
0x300e   :  { %v15081_v25 = vpop.eup %15080 }
0x300f   :  { %v15083_v7 = vpop.eup %15082  ;;  %10270 = vmatprep.mubr.bf16.mxu1 %v10131_v30  ;;  %v10112_v44 = vadd.f32 1.0, %v15081_v25  ;;  %v10123_v1 = vmul.f32 %v10111_v40, %v10027_v2 }
0x3010   :  { %10271 = vmatmul.mubr.bf16.vlgmr.msra.gmra.mxu1 %v10130_v11  ;;  %v10113_v48 = vadd.f32 1.0, %v15083_v7 }
0x3011   :  { %v10124_v31 = vmul.f32 %v10112_v44, %v10028_v10 }
0x3012   :  { %v10125_v6 = vmul.f32 %v10113_v48, %v10029_v26  ;;  %v15085_v0 = vpop.eup %15084 }
0x3013   :  { %v15087_v42 = vpop.eup %15086  ;;  %v10132_v50 = vpack.c.bf16 %v10124_v31, %v10122_v53  ;;  %v10114_v27 = vadd.f32 1.0, %v15085_v0 }
0x3014   :  { %v10133_v39 = vpack.c.bf16 %v10125_v6, %v10123_v1  ;;  %v10115_v55 = vadd.f32 1.0, %v15087_v42 }
0x3015   :  { %v15089_v60 = vpop.eup %15088  ;;  %v10126_v23 = vmul.f32 %v10114_v27, %v10030_v61 }
0x3016   :  { %10278 = vmatprep.mubr.bf16.mxu1 %v10133_v39  ;;  %v10116_v32 = vadd.f32 1.0, %v15089_v60  ;;  %v10127_v43 = vmul.f32 %v10115_v55, %v10031_v51 }
0x3017   :  { %v15091_v24 = vpop.eup %15090 }
0x3018   :  { %10279 = vmatmul.mubr.bf16.gmra.mxu1 %v10132_v50  ;;  %v10117_v13 = vadd.f32 1.0, %v15091_v24  ;;  %v10128_v58 = vmul.f32 %v10116_v32, %v10032_v14 }
0x301a   :  { %v10129_v46 = vmul.f32 %v10117_v13, %v10033_v9  ;;  %v10134_v17 = vpack.c.bf16 %v10128_v58, %v10126_v23  ;;  %v14698_v23 = vld [vmem:[#allocation11 + $0x2ec] ss:$12 sps:$4 sm:$0xff]  }
0x301b   :  { %10700 = vmatprep.subr.bf16.mxu0 %v14698_v23 }
0x301c   :  { %v10135_v49 = vpack.c.bf16 %v10129_v46, %v10127_v43 }
0x301e   :  { %10286 = vmatprep.mubr.bf16.mxu1 %v10135_v49 }
0x3020   :  { %10287 = vmatmul.mubr.bf16.gmra.mxu1 %v10134_v17  ;;  %v14696_v17 = vld [vmem:[#allocation11 + $0x2e8] ss:$12 sps:$4 sm:$0xff]  }
0x3021   :  { %14292 = vmatprep.mubr.msk.bf16.mxu1 %vm15455_vm0, %v18093_v12  ;;  %10701 = vmatpush1.bf16.msra.mxu0 %v14696_v17 }
0x30d0   :  { %v13275_v3 = vpop.f32.mrf.mxu1 }
0x30d2   :  { %v13276_v47 = vpop.f32.mrf.mxu1 }
0x30d3   :  { %v13277_v18 = vadd.f32 %v13276_v47, %v13275_v3  ;;  %v14699_v3 = vld [vmem:[#allocation11 + $0x2f0] ss:$12 sps:$4 sm:$0xff]  }
0x30d4   :  { %v13278_v33 = vpop.f32.mrf.mxu1  ;;  %14277 = vmatpush3.bf16.msra.mxu1 %v14699_v3  ;;  %v14700_v47 = vld [vmem:[#allocation11 + $0x2d0] ss:$12 sps:$4 sm:$0xff]  }
0x30d5   :  { %v10273_v28 = vadd.f32 %v13277_v18, %v12745_v52  ;;  %14278 = vmatprep.subr.bf16.mxu1 %v18093_v12  ;;  %v14703_v18 = vld [vmem:[#allocation11 + $0x2d8] ss:$12 sps:$4 sm:$0xff]  }
0x30d6   :  { %v13279_v35 = vpop.f32.mrf.mxu1 }
0x30d7   :  { %v13280_v56 = vadd.f32 %v13279_v35, %v13278_v33  ;;  %v10295_v57 = vadd.f32 %v10273_v28, %v17616_v63  ;;  %v14706_v33 = vld [vmem:[#allocation11 + $0x2bc] ss:$12 sps:$4 sm:$0xff]   ;;  %v14704_v28 = vld [vmem:[#allocation11 + $0x2b8] ss:$12 sps:$4 sm:$0xff]   ;;  %v14707_v35 = vld [vmem:[#allocation11 + $0x2c0] ss:$12 sps:$4 sm:$0xff]  }
0x30d8   :  { %v13281_v29 = vpop.f32.mrf.mxu1  ;;  %14279 = vmatpush3.bf16.msra.mxu1 %v14703_v18 }
0x30d9   :  { %v10276_v21 = vadd.f32 %v13280_v56, %v12745_v52  ;;  %10301 = vadd.xlane.f32.xlu0 %v10295_v57  ;;  %14280 = vmatprep.subr.bf16.mxu1 %v18093_v12  ;;  %v14710_v56 = vld [vmem:[#allocation11 + $0x2a4] ss:$12 sps:$4 sm:$0xff]  }
0x30da   :  { %v13282_v34 = vpop.f32.mrf.mxu1 }
0x30db   :  { %v13283_v41 = vadd.f32 %v13282_v34, %v13281_v29  ;;  %v10296_v19 = vadd.f32 %v10276_v21, %v17618_v4  ;;  %v14711_v29 = vld [vmem:[#allocation11 + $0x2a8] ss:$12 sps:$4 sm:$0xff]   ;;  %v14714_v21 = vld [vmem:[#allocation11 + $0x28c] ss:$12 sps:$4 sm:$0xff]  }
0x30dc   :  { %v13284_v20 = vpop.f32.mrf.mxu1  ;;  %14281 = vmatpush3.bf16.msra.mxu1 %v14707_v35  ;;  %v14712_v34 = vld [vmem:[#allocation11 + $0x288] ss:$12 sps:$4 sm:$0xff]  }
0x30dd   :  { %v10281_v30 = vadd.f32 %v13283_v41, %v12745_v52  ;;  %10303 = vadd.xlane.f32.xlu1 %v10296_v19  ;;  %14282 = vmatprep.subr.bf16.mxu1 %v18093_v12  ;;  %v14715_v41 = vld [vmem:[#allocation11 + $0x290] ss:$12 sps:$4 sm:$0xff]  }
0x30de   :  { %v13285_v25 = vpop.f32.mrf.mxu1 }
0x30df   :  { %v13286_v11 = vadd.f32 %v13285_v25, %v13284_v20  ;;  %v10297_v40 = vadd.f32 %v10281_v30, %v17625_v36  ;;  %v14716_v20 = vld [vmem:[#allocation11 + $0x270] ss:$12 sps:$4 sm:$0xff]   ;;  %v14719_v30 = vld [vmem:[#allocation11 + $0x278] ss:$12 sps:$4 sm:$0xff]  }
0x30e0   :  { %v13287_v7 = vpop.f32.mrf.mxu1  ;;  %14283 = vmatpush3.bf16.msra.mxu1 %v14711_v29  ;;  %v14722_v25 = vld [vmem:[#allocation11 + $0x25c] ss:$12 sps:$4 sm:$0xff]  }
0x30e1   :  { %v10284_v2 = vadd.f32 %v13286_v11, %v12745_v52  ;;  %10305 = vadd.xlane.f32.xlu0 %v10297_v40  ;;  %14284 = vmatprep.subr.bf16.mxu1 %v18093_v12  ;;  %v14720_v11 = vld [vmem:[#allocation11 + $0x258] ss:$12 sps:$4 sm:$0xff]  }
0x30e2   :  { %v13288_v44 = vpop.f32.mrf.mxu1 }
0x30e3   :  { %v13289_v26 = vadd.f32 %v13288_v44, %v13287_v7  ;;  %v10298_v63 = vadd.f32 %v10284_v2, %v17627_v15  ;;  %v14726_v7 = vld [vmem:[#allocation11 + $0x244] ss:$12 sps:$4 sm:$0xff]   ;;  %v14724_v2 = vld [vmem:[#allocation11 + $0x240] ss:$12 sps:$4 sm:$0xff]   ;;  %v14727_v44 = vld [vmem:[#allocation11 + $0x248] ss:$12 sps:$4 sm:$0xff]  }
0x30e4   :  { %v13290_v48 = vpop.f32.mrf.mxu1  ;;  %14285 = vmatpush3.bf16.msra.mxu1 %v14715_v41 }
0x30e5   :  { %v10289_v10 = vadd.f32 %v13289_v26, %v12745_v52  ;;  %10307 = vadd.xlane.f32.xlu1 %v10298_v63  ;;  %14286 = vmatprep.subr.bf16.mxu1 %v18093_v12 }
0x30e6   :  { %v13291_v45 = vpop.f32.mrf.mxu1 }
0x30e7   :  { %v13292_v1 = vadd.f32 %v13291_v45, %v13290_v48  ;;  %v10299_v4 = vadd.f32 %v10289_v10, %v17634_v22 }
0x30e8   :  { %14287 = vmatpush3.bf16.msra.mxu1 %v14719_v30 }
0x30e9   :  { %v10292_v6 = vadd.f32 %v13292_v1, %v12745_v52  ;;  %10309 = vadd.xlane.f32.xlu0 %v10299_v4  ;;  %v14702_v52 = vld [vmem:[#allocation11 + $0x2d4] ss:$12 sps:$4 sm:$0xff]   ;;  %14288 = vmatprep.subr.bf16.mxu1 %v18093_v12 }
0x30ea   :  { %10702 = vmatprep.subr.bf16.mxu0 %v14702_v52 }
0x30eb   :  { %v10300_v62 = vadd.f32 %v10292_v6, %v17636_v8  ;;  %10703 = vmatpush1.bf16.msra.mxu0 %v14700_v47 }
0x30ec   :  { %10704 = vmatprep.subr.bf16.mxu0 %v14706_v33 }
0x30ed   :  { %10311 = vadd.xlane.f32.xlu1 %v10300_v62 }
0x30ef   :  { %10705 = vmatpush1.bf16.msra.mxu0 %v14704_v28 }
0x30f0   :  { %10706 = vmatprep.subr.bf16.mxu0 %v14710_v56 }
0x3162   :  { %v10302_v36 = vpop.xlane.xlu0 %10301 }
0x3163   :  { %v10313_v31 = vmul.f32 0.0078125, %v10302_v36 }
0x3165   :  { %v17758_v0 = vsub.f32 %v10295_v57, %v10313_v31  ;;  %v14708_v57 = vld [vmem:[#allocation11 + $0x2a0] ss:$12 sps:$4 sm:$0xff]  }
0x3166   :  { %v10304_v42 = vpop.xlane.xlu1 %10303  ;;  %10707 = vmatpush1.bf16.msra.mxu0 %v14708_v57 }
0x3167   :  { %v10314_v39 = vmul.f32 0.0078125, %v10304_v42  ;;  %v10325_v15 = vmul.f32 %v17758_v0, %v17758_v0  ;;  %10708 = vmatprep.subr.bf16.mxu0 %v14714_v21 }
0x3169   :  { %v17762_v53 = vsub.f32 %v10296_v19, %v10314_v39  ;;  %10331 = vadd.xlane.f32.xlu0 %v10325_v15  ;;  %v14718_v19 = vld [vmem:[#allocation11 + $0x274] ss:$12 sps:$4 sm:$0xff]  }
0x316a   :  { %v10306_v60 = vpop.xlane.xlu0 %10305  ;;  %10709 = vmatpush1.bf16.msra.mxu0 %v14712_v34 }
0x316b   :  { %v10315_v50 = vmul.f32 0.0078125, %v10306_v60  ;;  %v10326_v22 = vmul.f32 %v17762_v53, %v17762_v53  ;;  %10710 = vmatprep.subr.bf16.mxu0 %v14718_v19 }
0x316d   :  { %v17766_v55 = vsub.f32 %v10297_v40, %v10315_v50  ;;  %10333 = vadd.xlane.f32.xlu1 %v10326_v22  ;;  %v14723_v40 = vld [vmem:[#allocation11 + $0x260] ss:$12 sps:$4 sm:$0xff]   ;;  %v12762_v50 = vld [vmem:[%s18072_s15 + $0x1] ss:$0 sm:$0xff] }
0x316e   :  { %v10308_v8 = vpop.xlane.xlu1 %10307  ;;  %10711 = vmatpush1.bf16.msra.mxu0 %v14716_v20  ;;  %14289 = vmatpush3.bf16.msra.mxu1 %v14723_v40 }
0x316f   :  { %v10316_v32 = vmul.f32 0.0078125, %v10308_v8  ;;  %v10327_v24 = vmul.f32 %v17766_v55, %v17766_v55  ;;  %10712 = vmatprep.subr.bf16.mxu0 %v14722_v25  ;;  %14290 = vmatprep.subr.bf16.mxu1 %v18093_v12 }
0x3171   :  { %v17770_v51 = vsub.f32 %v10298_v63, %v10316_v32  ;;  %10335 = vadd.xlane.f32.xlu0 %v10327_v24  ;;  %v12763_v32 = vld [vmem:[%s18073_s16 + $0x1] ss:$0 sm:$0xff] }
0x3172   :  { %v10310_v9 = vpop.xlane.xlu0 %10309  ;;  %10713 = vmatpush1.bf16.msra.mxu0 %v14720_v11  ;;  %14291 = vmatpush3.bf16.msra.mxu1 %v14727_v44 }
0x3173   :  { %v10317_v13 = vmul.f32 0.0078125, %v10310_v9  ;;  %v10328_v14 = vmul.f32 %v17770_v51, %v17770_v51  ;;  %10714 = vmatprep.subr.bf16.mxu0 %v14726_v7  ;;  %14302 = vmatprep.subr.bf16.mxu1 %v18093_v12 }
0x3175   :  { %v17774_v27 = vsub.f32 %v10299_v4, %v10317_v13  ;;  %10337 = vadd.xlane.f32.xlu1 %v10328_v14 }
0x3176   :  { %v10312_v43 = vpop.xlane.xlu1 %10311  ;;  %10715 = vmatpush1.bf16.msra.mxu0 %v14724_v2 }
0x3177   :  { %v10318_v46 = vmul.f32 0.0078125, %v10312_v43  ;;  %v10329_v61 = vmul.f32 %v17774_v27, %v17774_v27  ;;  %14296 = vmatprep.subr.bf16.mxu0 %v18093_v12 }
0x3179   :  { %v17778_v58 = vsub.f32 %v10300_v62, %v10318_v46  ;;  %10339 = vadd.xlane.f32.xlu0 %v10329_v61 }
0x317b   :  { %v10330_v49 = vmul.f32 %v17778_v58, %v17778_v58 }
0x317d   :  { %10341 = vadd.xlane.f32.xlu1 %v10330_v49 }
0x31f2   :  { %v10332_v26 = vpop.xlane.xlu0 %10331 }
0x31f3   :  { %v10343_v63 = vmul.f32 0.0078125, %v10332_v26 }
0x31f5   :  { %v10349_v48 = vadd.f32 1e-12, %v10343_v63 }
0x31f6   :  { %v10334_v10 = vpop.xlane.xlu1 %10333 }
0x31f7   :  { %15092 = vrsqrt.f32 %v10349_v48  ;;  %v10344_v45 = vmul.f32 0.0078125, %v10334_v10 }
0x31f9   :  { %v10350_v1 = vadd.f32 1e-12, %v10344_v45 }
0x31fa   :  { %v10336_v4 = vpop.xlane.xlu0 %10335 }
0x31fb   :  { %15094 = vrsqrt.f32 %v10350_v1  ;;  %v10345_v6 = vmul.f32 0.0078125, %v10336_v4  ;;  %v10473_v4 = vld [vmem:[#allocation13 + $0x9] sm:$0x7] }
0x31fd   :  { %v10351_v62 = vadd.f32 1e-12, %v10345_v6  ;;  %v10560_v6 = vrot.slane %v10473_v4, %v15631_v38 }
0x31fe   :  { %v10338_v36 = vpop.xlane.xlu1 %10337 }
0x31ff   :  { %15096 = vrsqrt.f32 %v10351_v62  ;;  %v10346_v31 = vmul.f32 0.0078125, %v10338_v36  ;;  %v10568_v62 = vrot.slane %v10473_v4, %v15654_v59  ;;  %v10564_v36 = vrot.slane %v10473_v4, %v15628_v37 }
0x3201   :  { %v10352_v42 = vadd.f32 1e-12, %v10346_v31 }
0x3202   :  { %v10340_v39 = vpop.xlane.xlu0 %10339 }
0x3203   :  { %15098 = vrsqrt.f32 %v10352_v42  ;;  %v10347_v15 = vmul.f32 0.0078125, %v10340_v39 }
0x3204   :  { %v15093_v60 = vpop.eup %15092 }
0x3205   :  { %v10361_v22 = vmul.f32 %v15093_v60, %v17758_v0  ;;  %v10353_v8 = vadd.f32 1e-12, %v10347_v15 }
0x3206   :  { %v10342_v24 = vpop.xlane.xlu1 %10341 }
0x3207   :  { %v10373_v9 = vmul.f32 %v12762_v50, %v10361_v22  ;;  %15100 = vrsqrt.f32 %v10353_v8  ;;  %v10348_v13 = vmul.f32 0.0078125, %v10342_v24 }
0x3208   :  { %v15095_v14 = vpop.eup %15094 }
0x3209   :  { %v10385_v43 = vadd.f32 %v12763_v32, %v10373_v9  ;;  %v10362_v46 = vmul.f32 %v15095_v14, %v17762_v53  ;;  %v10354_v61 = vadd.f32 1e-12, %v10348_v13 }
0x320b   :  { %10391 = vst [vmem:[#allocation21] sm:$0xff] %v10385_v43  ;;  %v10374_v49 = vmul.f32 %v12762_v50, %v10362_v46  ;;  %15102 = vrsqrt.f32 %v10354_v61  ;;  %v10398_v41 = vrot.slane %v10385_v43, 1 }
0x320c   :  { %v15097_v23 = vpop.eup %15096 }
0x320d   :  { %v10386_v17 = vadd.f32 %v12763_v32, %v10374_v49  ;;  %v10363_v0 = vmul.f32 %v15097_v23, %v17766_v55 }
0x320f   :  { %10392 = vst [vmem:[#allocation21 + $0x8] sm:$0xff] %v10386_v17  ;;  %v10375_v3 = vmul.f32 %v12762_v50, %v10363_v0  ;;  %v10401_v29 = vrot.slane %v10386_v17, 1 }
0x3210   :  { %v15099_v52 = vpop.eup %15098 }
0x3211   :  { %v10387_v47 = vadd.f32 %v12763_v32, %v10375_v3  ;;  %v10364_v18 = vmul.f32 %v15099_v52, %v17770_v51  ;;  %v6280_v51 = vrot.slane %v16842_v16, 3  ;;  %v10415_v25 = vsel %vm4334_vm4, %v10398_v41, %v10401_v29 }
0x3213   :  { %10393 = vst [vmem:[#allocation21 + $0x10] sm:$0xff] %v10387_v47  ;;  %v10376_v33 = vmul.f32 %v12762_v50, %v10364_v18  ;;  %v10404_v55 = vrot.slane %v10387_v47, 1 }
0x3214   :  { %v15101_v28 = vpop.eup %15100 }
0x3215   :  { %v10388_v35 = vadd.f32 %v12763_v32, %v10376_v33  ;;  %v10365_v53 = vmul.f32 %v15101_v28, %v17774_v27  ;;  %v10416_v27 = vsel %vm4336_vm5, %v10415_v25, %v10404_v55  ;;  %v18094_v28 = vld [vmem:[#allocation31_spill] sm:$0xff] }
0x3217   :  { %10394 = vst [vmem:[#allocation21 + $0x18] sm:$0xff] %v10388_v35  ;;  %v10377_v56 = vmul.f32 %v12762_v50, %v10365_v53  ;;  %v10407_v19 = vrot.slane %v10388_v35, 6 }
0x3218   :  { %v15103_v57 = vpop.eup %15102 }
0x3219   :  { %v10389_v21 = vadd.f32 %v12763_v32, %v10377_v56  ;;  %v10366_v34 = vmul.f32 %v15103_v57, %v17778_v58  ;;  %v10417_v40 = vsel %vm4338_vm6, %v10416_v27, %v10407_v19  ;;  %v6282_v58 = vsel %vm4334_vm4, %v16842_v16, %v6280_v51  ;;  %v18095_v57 = vld [vmem:[#allocation32_spill] sm:$0xff] }
0x321a   :  { %v10432_v63 = vrot.slane %v6282_v58, 5 }
0x321b   :  { %10395 = vst [vmem:[#allocation21 + $0x20] sm:$0xff] %v10389_v21  ;;  %v10378_v20 = vmul.f32 %v12762_v50, %v10366_v34  ;;  %v10410_v30 = vrot.slane %v10389_v21, 6 }
0x321d   :  { %v10390_v11 = vadd.f32 %v12763_v32, %v10378_v20  ;;  %v10418_v2 = vsel %vm1085_vm2, %v10417_v40, %v10410_v30 }
0x321f   :  { %10396 = vst [vmem:[#allocation21 + $0x28] sm:$0xff] %v10390_v11  ;;  %v10413_v7 = vrot.slane %v10390_v11, 6 }
0x3221   :  { %v10419_v44 = vsel %vm4341_vm7, %v10418_v2, %v10413_v7 }
0x3222   :  { %10420 = vst [vmem:[#allocation21 + $0x5] ss:$9 sps:$4 sm:$0x26] %v10419_v44   ;;  %10421 = vst [vmem:[#allocation21 + $0x6] ss:$24 sps:$4 sm:$0x38] %v10419_v44  }
0x3223   :  { %10423 = vst [vmem:[#allocation21 + $0x11] sm:$0x3] %v10419_v44  ;;  %10425 = vst [vmem:[#allocation21 + $0x21] sm:$0x1] %v10419_v44  ;;  %v10429_v26 = vrot.slane %v10419_v44, 7  ;;  %v10434_v48 = vrot.slane %v10419_v44, 6 }
0x3224   :  { %10426 = vst [vmem:[#allocation21 + $0x25] sm:$0x4] %v10419_v44  ;;  %10427 = vst [vmem:[#allocation21 + $0x26] sm:$0x18] %v10419_v44 }
0x3225   :  { %v10436_v10 = vsel %vm4334_vm4, %v6282_v58, %v10429_v26 }
0x3226   :  { %v10437_v45 = vsel %vm1085_vm2, %v10436_v10, %v10432_v63 }
0x3227   :  { %v17814_v1 = vsel %vm4341_vm7, %v10437_v45, %v10434_v48 }
0x3228   :  { %v10555_v16 = vpack.c.bf16 %v17814_v1, %v17814_v1 }
0x322a   :  { %10733 = vmatmul.mubr.bf16.vlgmr.msra.gmra.mxu0 %v10555_v16  ;;  %14293 = vmatmul.mubr.bf16.vlgmr.msra.gmra.mxu1 %v10555_v16 }
0x322b   :  { %14298 = vmatprep.mubr.msk.bf16.mxu0 %vm15455_vm0, %v18093_v12  ;;  %14304 = vmatprep.mubr.msk.bf16.mxu1 %vm15455_vm0, %v18093_v12 }
0x32ea   :  { %v10734_v31 = vpop.f32.mrf.mxu0  ;;  %v10775_v42 = vpop.f32.mrf.mxu1 }
0x32eb   :  { %v10735_v39 = vadd.f32 %v10734_v31, %v10560_v6  ;;  %v10776_v50 = vadd.f32 %v10775_v42, %v10568_v62 }
0x32ec   :  { %v10736_v15 = vpop.f32.mrf.mxu0  ;;  %v14294_v60 = vpop.f32.mrf.mxu1 }
0x32ed   :  { %v10737_v22 = vadd.f32 %v10736_v15, %v10564_v36  ;;  %v10781_v24 = vmul.f32 0.17677669, %v10735_v39  ;;  %v10802_v43 = vpack.c.bf16 %v10776_v50, %v10776_v50 }
0x32ee   :  { %v10738_v8 = vpop.f32.mrf.mxu0  ;;  %v10778_v32 = vpop.f32.mrf.mxu1 }
0x32ef   :  { %v10792_v9 = vpack.c.bf16 %v10737_v22, %v10737_v22  ;;  %v10782_v61 = vpack.c.bf16 %v10781_v24, %v10781_v24  ;;  %v17828_v23 = vrot.slane %v10802_v43, %v16592_v54 }
0x32f0   :  { %v10739_v13 = vpop.f32.mrf.mxu0  ;;  %v14295_v14 = vpop.f32.mrf.mxu1 }
0x32f1   :  { %v10800_v46 = vrot.slane %v10792_v9, %v16592_v54  ;;  %v10790_v0 = vrot.slane %v10782_v61, %v16592_v54  ;;  %v17836_v3 = vcombine.high %v17828_v23, %v17828_v23  ;;  %v10932_v47 = vsel %vm4336_vm5, %v17828_v23, 0 }
0x32f3   :  { %v10816_v59 = vsel %vm732_vm1, %v10800_v46, 0  ;;  %v10801_v49 = vcombine.high %v10800_v46, %v10800_v46  ;;  %v10791_v52 = vcombine.high %v10790_v0, %v10790_v0  ;;  %v10978_v18 = vsel %vm4336_vm5, %v17836_v3, 0 }
0x32f4   :  { %14297 = vmatpush3.bf16.xpose.msra.mxu0 %v10816_v59  ;;  %v17862_v48 = vrot.slane %v10790_v0, %v16592_v54  ;;  %v17867_v10 = vrot.slane %v10800_v46, %v16592_v54 }
0x32f5   :  { %v10862_v17 = vsel %vm732_vm1, %v10801_v49, 0  ;;  %14308 = vmatprep.subr.bf16.mxu0 %v18093_v12  ;;  %v17855_v51 = vrot.slane %v10801_v49, %v16592_v54  ;;  %v17870_v45 = vrot.slane %v10791_v52, %v16592_v54 }
0x32f6   :  { %14303 = vmatpush3.bf16.xpose.msra.mxu1 %v10862_v17 }
0x32f7   :  { %14314 = vmatprep.subr.bf16.mxu1 %v18093_v12 }
0x32fb   :  { %14299 = vmatmul.mubr.msk.bf16.vlgmr.msra.gmra.mxu0 %vm732_vm1, %v10790_v0 }
0x32fc   :  { %14309 = vmatpush3.bf16.msra.mxu0 %v10932_v47  ;;  %14310 = vmatprep.mubr.msk.bf16.mxu0 %vm15455_vm0, %v18093_v12 }
0x32fd   :  { %14305 = vmatmul.mubr.msk.bf16.vlgmr.msra.gmra.mxu1 %vm732_vm1, %v10791_v52  ;;  %14320 = vmatprep.subr.bf16.mxu0 %v18093_v12 }
0x32fe   :  { %14315 = vmatpush3.bf16.msra.mxu1 %v10978_v18  ;;  %14316 = vmatprep.mubr.msk.bf16.mxu1 %vm15455_vm0, %v18093_v12 }
0x32ff   :  { %14326 = vmatprep.subr.bf16.mxu1 %v18093_v12 }
0x33bb   :  { %v10852_v33 = vpop.f32.mrf.mxu0 }
0x33bc   :  { %v10853_v35 = vadd.f32 %v10852_v33, %v18094_v28 }
0x33bd   :  { %v14300_v53 = vpop.f32.mrf.mxu0  ;;  %v10898_v56 = vpop.f32.mrf.mxu1 }
0x33be   :  { %v10899_v29 = vadd.f32 %v10898_v56, %v18095_v57  ;;  %v10904_v21 = vsel %vm4863_vm8, %v10853_v35, -inf }
0x33bf   :  { %10905 = vmax.xlane.f32.xlu0 %v10904_v21  ;;  %v10855_v34 = vpop.f32.mrf.mxu0  ;;  %v14306_v55 = vpop.f32.mrf.mxu1 }
0x33c0   :  { %v10907_v41 = vsel %vm4863_vm8, %v10899_v29, -inf  ;;  %v17900_v55 = vrot.slane %v17836_v3, %v16592_v54 }
0x33c1   :  { %v14301_v19 = vpop.f32.mrf.mxu0  ;;  %10908 = vmax.xlane.f32.xlu1 %v10907_v41  ;;  %v10901_v20 = vpop.f32.mrf.mxu1 }
0x33c3   :  { %v14307_v30 = vpop.f32.mrf.mxu1 }
0x33d2   :  { %11105 = vrot.lane.b32.xlu1 %v17855_v51, %s15457_s10 }
0x3448   :  { %v10906_v25 = vpop.xlane.xlu0 %10905 }
0x3449   :  { %v10910_v11 = vsub.f32 %v10853_v35, %v10906_v25 }
0x344a   :  { %v10909_v27 = vpop.xlane.xlu1 %10908 }
0x344b   :  { %v10912_v40 = vmul.f32 1.442695, %v10910_v11  ;;  %v10911_v7 = vsub.f32 %v10899_v29, %v10909_v27 }
0x344d   :  { %15104 = vpow2.f32 %v10912_v40  ;;  %v10914_v2 = vmul.f32 1.442695, %v10911_v7 }
0x344e   :  { %v11106_v16 = vpop.permute.xlu1 %11105 }
0x344f   :  { %15106 = vpow2.f32 %v10914_v2  ;;  %v11111_v22 = vsel %vm732_vm1, %v11106_v16, 0 }
0x345a   :  { %v15105_v58 = vpop.eup %15104 }
0x345b   :  { %v10916_v44 = vsel %vm4863_vm8, %v15105_v58, 0.0 }
0x345c   :  { %v15107_v26 = vpop.eup %15106  ;;  %10917 = vadd.xlane.f32.xlu0 %v10916_v44  ;;  %v17916_v44 = vrot.slane %v17828_v23, %v16592_v54 }
0x345d   :  { %v10919_v63 = vsel %vm4863_vm8, %v15107_v26, 0.0 }
0x345e   :  { %10920 = vadd.xlane.f32.xlu1 %v10919_v63 }
0x346f   :  { %11032 = vrot.lane.b32.xlu1 %v17862_v48, %s15457_s10 }
0x3472   :  { %11041 = vrot.lane.b32.xlu0 %v17867_v10, %s15457_s10 }
0x3473   :  { %11096 = vrot.lane.b32.xlu1 %v17870_v45, %s15457_s10 }
0x34e5   :  { %v10918_v4 = vpop.xlane.xlu0 %10917 }
0x34e6   :  { %15108 = vrcp.f32 %v10918_v4 }
0x34e7   :  { %v10921_v6 = vpop.xlane.xlu1 %10920 }
0x34e8   :  { %15110 = vrcp.f32 %v10921_v6 }
0x34e9   :  { %v11042_v42 = vpop.permute.xlu0 %11041 }
0x34ea   :  { %v11047_v50 = vsel %vm732_vm1, %v11042_v42, 0 }
0x34eb   :  { %v11033_v8 = vpop.permute.xlu1 %11032 }
0x34ef   :  { %v11097_v32 = vpop.permute.xlu1 %11096 }
0x34f3   :  { %v15109_v62 = vpop.eup %15108 }
0x34f4   :  { %v10924_v36 = vmul.f32 %v15109_v62, %v15105_v58 }
0x34f5   :  { %v15111_v31 = vpop.eup %15110 }
0x34f6   :  { %v10926_v39 = vpack.c.bf16 %v10924_v36, %v10924_v36  ;;  %v10925_v15 = vmul.f32 %v15111_v31, %v15107_v26  ;;  %v14728_v31 = vld [vmem:[#allocation14 + $0xc8] sm:$0xff]  }
0x34f8   :  { %v10927_v60 = vpack.c.bf16 %v10925_v15, %v10925_v15  ;;  %14311 = vmatmul.mubr.msk.bf16.vlgmr.msra.gmra.mxu0 %vm4888_vm9, %v10926_v39  ;;  %v14729_v15 = vld [vmem:[#allocation14 + $0xc0] sm:$0xff]  }
0x34f9   :  { %14321 = vmatpush3.bf16.xpose.msra.mxu0 %v11047_v50  ;;  %14322 = vmatprep.mubr.msk.bf16.mxu0 %vm15455_vm0, %v18093_v12 }
0x34fa   :  { %14317 = vmatmul.mubr.msk.bf16.vlgmr.msra.gmra.mxu1 %vm4888_vm9, %v10927_v60  ;;  %14332 = vmatprep.subr.bf16.mxu0 %v18093_v12 }
0x34fb   :  { %14327 = vmatpush3.bf16.xpose.msra.mxu1 %v11111_v22  ;;  %14328 = vmatprep.mubr.msk.bf16.mxu1 %vm15455_vm0, %v18093_v12 }
0x34fc   :  { %14338 = vmatprep.subr.bf16.mxu1 %v18093_v12 }
0x3500   :  { %14323 = vmatmul.mubr.msk.bf16.vlgmr.msra.gmra.mxu0 %vm732_vm1, %v11033_v8 }
0x3501   :  { %14334 = vmatprep.mubr.msk.bf16.mxu0 %vm15455_vm0, %v18093_v12 }
0x3502   :  { %14329 = vmatmul.mubr.msk.bf16.vlgmr.msra.gmra.mxu1 %vm732_vm1, %v11097_v32  ;;  %v14730_v32 = vld [vmem:[#allocation14 + $0xd8] sm:$0xff]  }
0x3503   :  { %14340 = vmatprep.mubr.msk.bf16.mxu1 %vm15455_vm0, %v18093_v12 }
0x35b8   :  { %v10968_v24 = vpop.f32.mrf.mxu0 }
0x35ba   :  { %v14312_v9 = vpop.f32.mrf.mxu0  ;;  %v11014_v13 = vpop.f32.mrf.mxu1 }
0x35bb   :  { %v17892_v14 = vcombine.low %v10968_v24, %v11014_v13  ;;  %v14731_v24 = vld [vmem:[#allocation14 + $0xd0] sm:$0xff]  }
0x35bc   :  { %v10971_v43 = vpop.f32.mrf.mxu0  ;;  %v14318_v46 = vpop.f32.mrf.mxu1 }
0x35bd   :  { %v11024_v50 = vpack.c.bf16 %v17892_v14, %v17892_v14 }
0x35be   :  { %v14313_v61 = vpop.f32.mrf.mxu0  ;;  %v11017_v59 = vpop.f32.mrf.mxu1 }
0x35c0   :  { %v14319_v49 = vpop.f32.mrf.mxu1  ;;  %v11083_v17 = vpop.f32.mrf.mxu0 }
0x35c1   :  { %v11084_v0 = vadd.f32 %v11083_v17, %v18094_v28 }
0x35c2   :  { %v14324_v52 = vpop.f32.mrf.mxu0  ;;  %v11147_v47 = vpop.f32.mrf.mxu1 }
0x35c3   :  { %v11148_v18 = vadd.f32 %v11147_v47, %v18095_v57  ;;  %v11153_v33 = vsel %vm4863_vm8, %v11084_v0, -inf }
0x35c4   :  { %11154 = vmax.xlane.f32.xlu0 %v11153_v33  ;;  %v11086_v35 = vpop.f32.mrf.mxu0  ;;  %v14330_v53 = vpop.f32.mrf.mxu1 }
0x35c5   :  { %v11156_v56 = vsel %vm4863_vm8, %v11148_v18, -inf }
0x35c6   :  { %v14325_v29 = vpop.f32.mrf.mxu0  ;;  %11157 = vmax.xlane.f32.xlu1 %v11156_v56  ;;  %v11150_v21 = vpop.f32.mrf.mxu1 }
0x35c8   :  { %v14331_v34 = vpop.f32.mrf.mxu1 }
0x35d7   :  { %11239 = vrot.lane.b32.xlu1 %v17900_v55, %s15457_s10 }
0x35db   :  { %11404 = vrot.lane.b32.xlu1 %v17867_v10, %s15438_s30 }
0x35df   :  { %11454 = vrot.lane.b32.xlu1 %v17855_v51, %s15438_s30 }
0x35e3   :  { %11452 = vrot.lane.b32.xlu1 %v17870_v45, %s15438_s30 }
0x364d   :  { %v11155_v41 = vpop.xlane.xlu0 %11154 }
0x364e   :  { %v11159_v19 = vsub.f32 %v11084_v0, %v11155_v41 }
0x364f   :  { %v11158_v20 = vpop.xlane.xlu1 %11157 }
0x3650   :  { %v11161_v30 = vmul.f32 1.442695, %v11159_v19  ;;  %v11160_v25 = vsub.f32 %v11148_v18, %v11158_v20 }
0x3652   :  { %15112 = vpow2.f32 %v11161_v30  ;;  %v11163_v3 = vmul.f32 1.442695, %v11160_v25 }
0x3653   :  { %v11240_v11 = vpop.permute.xlu1 %11239 }
0x3654   :  { %15114 = vpow2.f32 %v11163_v3  ;;  %v11245_v27 = vsel %vm4336_vm5, %v11240_v11, 0 }
0x3655   :  { %14339 = vmatpush3.bf16.msra.mxu1 %v11245_v27 }
0x3656   :  { %14352 = vmatprep.subr.bf16.mxu1 %v18093_v12 }
0x3657   :  { %v11405_v39 = vpop.permute.xlu1 %11404 }
0x3658   :  { %v11410_v0 = vsel %vm732_vm1, %v11405_v39, 0 }
0x365b   :  { %v11455_v60 = vpop.permute.xlu1 %11454 }
0x365c   :  { %v11460_v22 = vsel %vm732_vm1, %v11455_v60, 0 }
0x365f   :  { %v15113_v40 = vpop.eup %15112  ;;  %v11453_v8 = vpop.permute.xlu1 %11452 }
0x3660   :  { %v11165_v7 = vsel %vm4863_vm8, %v15113_v40, 0.0 }
0x3661   :  { %v15115_v2 = vpop.eup %15114  ;;  %11166 = vadd.xlane.f32.xlu0 %v11165_v7 }
0x3662   :  { %v11168_v58 = vsel %vm4863_vm8, %v15115_v2, 0.0 }
0x3665   :  { %11169 = vadd.xlane.f32.xlu0 %v11168_v58 }
0x367b   :  { %11184 = vrot.lane.b32.xlu0 %v17916_v44, %s15457_s10 }
0x367f   :  { %11402 = vrot.lane.b32.xlu0 %v17862_v48, %s15438_s30 }
0x36ea   :  { %v11167_v26 = vpop.xlane.xlu0 %11166 }
0x36eb   :  { %15116 = vrcp.f32 %v11167_v26 }
0x36ee   :  { %v11170_v63 = vpop.xlane.xlu0 %11169 }
0x36ef   :  { %15118 = vrcp.f32 %v11170_v63 }
0x36f2   :  { %v11185_v16 = vpop.permute.xlu0 %11184 }
0x36f3   :  { %v11190_v4 = vsel %vm4336_vm5, %v11185_v16, 0 }
0x36f4   :  { %14333 = vmatpush3.bf16.msra.mxu0 %v11190_v4 }
0x36f5   :  { %14344 = vmatprep.subr.bf16.mxu0 %v18093_v12 }
0x36f6   :  { %v11403_v33 = vpop.permute.xlu0 %11402 }
0x36f8   :  { %v15117_v6 = vpop.eup %15116 }
0x36f9   :  { %v11173_v62 = vmul.f32 %v15117_v6, %v15113_v40 }
0x36fb   :  { %v11175_v54 = vpack.c.bf16 %v11173_v62, %v11173_v62 }
0x36fc   :  { %v15119_v23 = vpop.eup %15118 }
0x36fd   :  { %v11174_v36 = vmul.f32 %v15119_v23, %v15115_v2  ;;  %14335 = vmatmul.mubr.msk.bf16.vlgmr.msra.gmra.mxu0 %vm4888_vm9, %v11175_v54 }
0x36fe   :  { %14348 = vmatprep.mubr.msk.bf16.mxu0 %vm15455_vm0, %v18093_v12  ;;  %14345 = vmatpush3.bf16.msra.mxu0 %v14730_v32 }
0x36ff   :  { %v11176_v42 = vpack.c.bf16 %v11174_v36, %v11174_v36  ;;  %14346 = vmatprep.subr.bf16.mxu0 %v18093_v12 }
0x3701   :  { %14341 = vmatmul.mubr.msk.bf16.vlgmr.msra.gmra.mxu1 %vm4888_vm9, %v11176_v42 }
0x3702   :  { %14353 = vmatpush3.bf16.msra.mxu1 %v14728_v31  ;;  %14356 = vmatprep.mubr.msk.bf16.mxu1 %vm15455_vm0, %v18093_v12 }
0x3703   :  { %14354 = vmatprep.subr.bf16.mxu1 %v18093_v12  ;;  %14347 = vmatpush3.bf16.msra.mxu0 %v14731_v24 }
0x3704   :  { %14360 = vmatprep.subr.bf16.mxu0 %v18093_v12 }
0x3706   :  { %14355 = vmatpush3.bf16.msra.mxu1 %v14729_v15 }
0x3707   :  { %14366 = vmatprep.subr.bf16.mxu1 %v18093_v12 }
0x3709   :  { %14357 = vmatmul.mubr.msk.bf16.vlgmr.msra.gmra.mxu1 %vm732_vm1, %v11024_v50 }
0x370a   :  { %14367 = vmatpush3.bf16.xpose.msra.mxu1 %v11460_v22  ;;  %14368 = vmatprep.mubr.msk.bf16.mxu1 %vm15455_vm0, %v18093_v12 }
0x370b   :  { %14378 = vmatprep.subr.bf16.mxu1 %v18093_v12 }
0x3711   :  { %14369 = vmatmul.mubr.msk.bf16.vlgmr.msra.gmra.mxu1 %vm732_vm1, %v11453_v8 }
0x3712   :  { %14380 = vmatprep.mubr.msk.bf16.mxu1 %vm15455_vm0, %v18093_v12 }
0x37bd   :  { %v11226_v9 = vpop.f32.mrf.mxu0 }
0x37bf   :  { %v14336_v13 = vpop.f32.mrf.mxu0 }
0x37c1   :  { %v11229_v14 = vpop.f32.mrf.mxu0  ;;  %v11281_v43 = vpop.f32.mrf.mxu1 }
0x37c2   :  { %v11289_v46 = vcombine.low %v11226_v9, %v11281_v43 }
0x37c3   :  { %v14337_v61 = vpop.f32.mrf.mxu0  ;;  %v14342_v59 = vpop.f32.mrf.mxu1 }
0x37c4   :  { %v11291_v49 = vpack.c.bf16 %v11289_v46, %v11289_v46  ;;  %v14732_v59 = vld [vmem:[#allocation14 + $0xe8] sm:$0xff]  }
0x37c5   :  { %v11284_v17 = vpop.f32.mrf.mxu1 }
0x37c6   :  { %14349 = vmatmul.mubr.msk.bf16.vlgmr.msra.gmra.mxu0 %vm732_vm1, %v11291_v49  ;;  %v14733_v49 = vld [vmem:[#allocation14 + $0xe0] sm:$0xff]  }
0x37c7   :  { %14361 = vmatpush3.bf16.xpose.msra.mxu0 %v11410_v0  ;;  %v14343_v52 = vpop.f32.mrf.mxu1  ;;  %14362 = vmatprep.mubr.msk.bf16.mxu0 %vm15455_vm0, %v18093_v12 }
0x37c8   :  { %14372 = vmatprep.subr.bf16.mxu0 %v18093_v12 }
0x37c9   :  { %v17949_v47 = vpop.f32.mrf.mxu1 }
0x37cb   :  { %v14358_v18 = vpop.f32.mrf.mxu1 }
0x37cd   :  { %v11399_v35 = vpop.f32.mrf.mxu1 }
0x37ce   :  { %14363 = vmatmul.mubr.msk.bf16.vlgmr.msra.gmra.mxu0 %vm732_vm1, %v11403_v33 }
0x37cf   :  { %v14359_v53 = vpop.f32.mrf.mxu1  ;;  %14374 = vmatprep.mubr.msk.bf16.mxu0 %vm15455_vm0, %v18093_v12 }
0x37d1   :  { %v11496_v56 = vpop.f32.mrf.mxu1 }
0x37d2   :  { %v11497_v29 = vadd.f32 %v11496_v56, %v18095_v57 }
0x37d3   :  { %v14370_v21 = vpop.f32.mrf.mxu1 }
0x37d4   :  { %v11505_v34 = vsel %vm4863_vm8, %v11497_v29, -inf }
0x37d5   :  { %11506 = vmax.xlane.f32.xlu1 %v11505_v34  ;;  %v11499_v41 = vpop.f32.mrf.mxu1 }
0x37d7   :  { %v14371_v19 = vpop.f32.mrf.mxu1 }
0x37e6   :  { %11574 = vrot.lane.b32.xlu1 %v17900_v55, %s15438_s30 }
0x37ea   :  { %11685 = vrot.lane.b32.xlu1 %v17867_v10, %s15458_s13 }
0x37ee   :  { %11735 = vrot.lane.b32.xlu1 %v17855_v51, %s15458_s13 }
0x37f2   :  { %11733 = vrot.lane.b32.xlu1 %v17870_v45, %s15458_s13 }
0x385e   :  { %v11507_v20 = vpop.xlane.xlu1 %11506 }
0x385f   :  { %v11509_v3 = vsub.f32 %v11497_v29, %v11507_v20 }
0x3861   :  { %v11512_v11 = vmul.f32 1.442695, %v11509_v3 }
0x3862   :  { %v11575_v30 = vpop.permute.xlu1 %11574 }
0x3863   :  { %v11580_v25 = vsel %vm4336_vm5, %v11575_v30, 0  ;;  %15120 = vpow2.f32 %v11512_v11 }
0x3864   :  { %14379 = vmatpush3.bf16.msra.mxu1 %v11580_v25 }
0x3865   :  { %14392 = vmatprep.subr.bf16.mxu1 %v18093_v12 }
0x3866   :  { %v11686_v15 = vpop.permute.xlu1 %11685 }
0x3867   :  { %v11691_v50 = vsel %vm732_vm1, %v11686_v15, 0 }
0x386a   :  { %v11736_v29 = vpop.permute.xlu1 %11735 }
0x386b   :  { %v11741_v19 = vsel %vm732_vm1, %v11736_v29, 0  ;;  %v14736_v29 = vld [vmem:[#allocation17 + $0x1f0] ss:$8 sps:$4 sm:$0xff]  }
0x3870   :  { %v15121_v26 = vpop.eup %15120 }
0x3871   :  { %v11517_v4 = vsel %vm4863_vm8, %v15121_v26, 0.0 }
0x3886   :  { %v17966_v27 = vpop.f32.mrf.mxu0 }
0x3888   :  { %v14350_v40 = vpop.f32.mrf.mxu0 }
0x388a   :  { %v11344_v10 = vpop.f32.mrf.mxu0 }
0x388b   :  { %v11397_v10 = vadd.f32 %v17949_v47, %v17966_v27 }
0x388c   :  { %v14351_v7 = vpop.f32.mrf.mxu0 }
0x388e   :  { %v11446_v2 = vpop.f32.mrf.mxu0 }
0x388f   :  { %v11447_v51 = vadd.f32 %v11446_v2, %v18094_v28 }
0x3890   :  { %v14364_v58 = vpop.f32.mrf.mxu0 }
0x3891   :  { %v11502_v45 = vsel %vm4863_vm8, %v11447_v51, -inf }
0x3892   :  { %11503 = vmax.xlane.f32.xlu0 %v11502_v45  ;;  %v11449_v63 = vpop.f32.mrf.mxu0 }
0x3894   :  { %v14365_v16 = vpop.f32.mrf.mxu0 }
0x3896   :  { %11518 = vadd.xlane.f32.xlu0 %v11517_v4 }
0x391b   :  { %v11504_v6 = vpop.xlane.xlu0 %11503 }
0x391c   :  { %v11508_v62 = vsub.f32 %v11447_v51, %v11504_v6 }
0x391e   :  { %v11510_v54 = vmul.f32 1.442695, %v11508_v62 }
0x391f   :  { %v11519_v23 = vpop.xlane.xlu0 %11518 }
0x3920   :  { %15122 = vpow2.f32 %v11510_v54 }
0x3921   :  { %15124 = vrcp.f32 %v11519_v23 }
0x392d   :  { %v15123_v36 = vpop.eup %15122 }
0x392e   :  { %v15125_v31 = vpop.eup %15124  ;;  %v11514_v42 = vsel %vm4863_vm8, %v15123_v36, 0.0 }
0x392f   :  { %v11523_v39 = vmul.f32 %v15125_v31, %v15121_v26  ;;  %11515 = vadd.xlane.f32.xlu0 %v11514_v42 }
0x3931   :  { %v11525_v60 = vpack.c.bf16 %v11523_v39, %v11523_v39 }
0x3933   :  { %14381 = vmatmul.mubr.msk.bf16.vlgmr.msra.gmra.mxu1 %vm4888_vm9, %v11525_v60 }
0x3934   :  { %14393 = vmatpush3.bf16.xpose.msra.mxu1 %v11691_v50  ;;  %14394 = vmatprep.mubr.msk.bf16.mxu1 %vm15455_vm0, %v18093_v12 }
0x3935   :  { %14404 = vmatprep.subr.bf16.mxu1 %v18093_v12 }
0x3945   :  { %11526 = vrot.lane.b32.xlu0 %v17916_v44, %s15438_s30 }
0x3949   :  { %11683 = vrot.lane.b32.xlu0 %v17862_v48, %s15458_s13 }
0x39b8   :  { %v11516_v22 = vpop.xlane.xlu0 %11515 }
0x39b9   :  { %15126 = vrcp.f32 %v11516_v22 }
0x39bc   :  { %v11527_v8 = vpop.permute.xlu0 %11526 }
0x39bd   :  { %v11532_v32 = vsel %vm4336_vm5, %v11527_v8, 0 }
0x39be   :  { %14373 = vmatpush3.bf16.msra.mxu0 %v11532_v32 }
0x39bf   :  { %14384 = vmatprep.subr.bf16.mxu0 %v18093_v12 }
0x39c0   :  { %v11684_v24 = vpop.permute.xlu0 %11683 }
0x39c1   :  { %14395 = vmatmul.mubr.msk.bf16.vlgmr.msra.gmra.mxu1 %vm732_vm1, %v11684_v24  ;;  %v14734_v24 = vld [vmem:[#allocation14 + $0xf8] sm:$0xff]  }
0x39c2   :  { %14406 = vmatprep.mubr.msk.bf16.mxu1 %vm15455_vm0, %v18093_v12 }
0x39c6   :  { %v15127_v9 = vpop.eup %15126 }
0x39c7   :  { %v11522_v13 = vmul.f32 %v15127_v9, %v15123_v36  ;;  %v14735_v9 = vld [vmem:[#allocation14 + $0xf0] sm:$0xff]  }
0x39c9   :  { %v11524_v14 = vpack.c.bf16 %v11522_v13, %v11522_v13 }
0x39cb   :  { %14375 = vmatmul.mubr.msk.bf16.vlgmr.msra.gmra.mxu0 %vm4888_vm9, %v11524_v14 }
0x39cc   :  { %14388 = vmatprep.mubr.msk.bf16.mxu0 %vm15455_vm0, %v18093_v12  ;;  %14385 = vmatpush3.bf16.msra.mxu0 %v14732_v59 }
0x39cd   :  { %14386 = vmatprep.subr.bf16.mxu0 %v18093_v12 }
0x39d0   :  { %14387 = vmatpush3.bf16.msra.mxu0 %v14733_v49 }
0x39d1   :  { %14398 = vmatprep.subr.bf16.mxu0 %v18093_v12 }
0x39f3   :  { %v11616_v48 = vpop.f32.mrf.mxu1 }
0x39f5   :  { %v14382_v43 = vpop.f32.mrf.mxu1 }
0x39f7   :  { %v11619_v46 = vpop.f32.mrf.mxu1 }
0x39f9   :  { %v14383_v61 = vpop.f32.mrf.mxu1 }
0x3a81   :  { %v11727_v17 = vpop.f32.mrf.mxu1 }
0x3a82   :  { %v11728_v0 = vadd.f32 %v11727_v17, %v18094_v28  ;;  %v11734_v28 = vpop.permute.xlu1 %11733 }
0x3a83   :  { %v14396_v52 = vpop.f32.mrf.mxu1 }
0x3a84   :  { %v11783_v18 = vsel %vm4863_vm8, %v11728_v0, -inf }
0x3a85   :  { %11784 = vmax.xlane.f32.xlu0 %v11783_v18  ;;  %v11730_v33 = vpop.f32.mrf.mxu1 }
0x3a87   :  { %v14397_v35 = vpop.f32.mrf.mxu1 }
0x3a8b   :  { %v11568_v53 = vpop.f32.mrf.mxu0 }
0x3a8c   :  { %v11624_v56 = vcombine.low %v11568_v53, %v11616_v48 }
0x3a8d   :  { %v14376_v21 = vpop.f32.mrf.mxu0 }
0x3a8e   :  { %v11626_v34 = vpack.c.bf16 %v11624_v56, %v11624_v56  ;;  %v14738_v21 = vld [vmem:[#allocation17 + $0x1f4] ss:$8 sps:$4 sm:$0xff]  }
0x3a8f   :  { %v11571_v41 = vpop.f32.mrf.mxu0 }
0x3a90   :  { %14389 = vmatmul.mubr.msk.bf16.vlgmr.msra.gmra.mxu0 %vm732_vm1, %v11626_v34  ;;  %v14741_v34 = vld [vmem:[#allocation17 + $0x1e4] ss:$8 sps:$4 sm:$0xff]   ;;  %v14739_v41 = vld [vmem:[#allocation17 + $0x1e0] ss:$8 sps:$4 sm:$0xff]  }
0x3a91   :  { %14399 = vmatpush3.bf16.xpose.msra.mxu0 %v11741_v19  ;;  %v14377_v20 = vpop.f32.mrf.mxu0  ;;  %14400 = vmatprep.mubr.msk.bf16.mxu0 %vm15455_vm0, %v18093_v12 }
0x3a92   :  { %14410 = vmatprep.subr.bf16.mxu0 %v18093_v12 }
0x3a98   :  { %14401 = vmatmul.mubr.msk.bf16.vlgmr.msra.gmra.mxu0 %vm732_vm1, %v11734_v28 }
0x3a99   :  { %14412 = vmatprep.mubr.msk.bf16.mxu0 %vm15455_vm0, %v18093_v12 }
0x3b0e   :  { %v11785_v30 = vpop.xlane.xlu0 %11784 }
0x3b0f   :  { %v11789_v25 = vsub.f32 %v11728_v0, %v11785_v30 }
0x3b11   :  { %v11791_v3 = vmul.f32 1.442695, %v11789_v25  ;;  %v14744_v25 = vld [vmem:[#allocation17 + $0x1d4] ss:$8 sps:$4 sm:$0xff]  }
0x3b13   :  { %15128 = vpow2.f32 %v11791_v3  ;;  %v14742_v3 = vld [vmem:[#allocation17 + $0x1d0] ss:$8 sps:$4 sm:$0xff]  }
0x3b20   :  { %v15129_v11 = vpop.eup %15128 }
0x3b21   :  { %v11795_v40 = vsel %vm4863_vm8, %v15129_v11, 0.0 }
0x3b22   :  { %11796 = vadd.xlane.f32.xlu0 %v11795_v40  ;;  %v14750_v40 = vld [vmem:[#allocation17 + $0x1b4] ss:$8 sps:$4 sm:$0xff]  }
0x3b50   :  { %v11676_v7 = vpop.f32.mrf.mxu0 }
0x3b51   :  { %v11682_v2 = vadd.f32 %v11676_v7, %v11397_v10  ;;  %v14748_v10 = vld [vmem:[#allocation17 + $0x1b0] ss:$8 sps:$4 sm:$0xff]   ;;  %v14753_v7 = vld [vmem:[#allocation17 + $0x1a4] ss:$8 sps:$4 sm:$0xff]  }
0x3b52   :  { %v14390_v51 = vpop.f32.mrf.mxu0 }
0x3b53   :  { %v14754_v51 = vld [vmem:[#allocation17 + $0x190] ss:$8 sps:$4 sm:$0xff]  }
0x3b54   :  { %v11679_v58 = vpop.f32.mrf.mxu0 }
0x3b55   :  { %v14756_v58 = vld [vmem:[#allocation17 + $0x194] ss:$8 sps:$4 sm:$0xff]  }
0x3b56   :  { %v14391_v45 = vpop.f32.mrf.mxu0 }
0x3b57   :  { %v14759_v45 = vld [vmem:[#allocation17 + $0x184] ss:$8 sps:$4 sm:$0xff]  }
0x3b58   :  { %v11777_v26 = vpop.f32.mrf.mxu0 }
0x3b59   :  { %v11778_v63 = vadd.f32 %v11777_v26, %v18095_v57  ;;  %v14757_v26 = vld [vmem:[#allocation17 + $0x180] ss:$8 sps:$4 sm:$0xff]  }
0x3b5a   :  { %v14402_v16 = vpop.f32.mrf.mxu0 }
0x3b5b   :  { %v11786_v4 = vsel %vm4863_vm8, %v11778_v63, -inf }
0x3b5c   :  { %11787 = vmax.xlane.f32.xlu1 %v11786_v4  ;;  %v11780_v6 = vpop.f32.mrf.mxu0 }
0x3b5e   :  { %v14403_v62 = vpop.f32.mrf.mxu0 }
0x3b5f   :  { %v12823_v62 = vld [vmem:[%s18066_s9 + $0x3] ss:$0 sm:$0xff] }
0x3b6d   :  { %11855 = vrot.lane.b32.xlu1 %v17900_v55, %s15458_s13 }
0x3bab   :  { %v11797_v42 = vpop.xlane.xlu0 %11796 }
0x3be5   :  { %v11788_v54 = vpop.xlane.xlu1 %11787 }
0x3be6   :  { %v11790_v23 = vsub.f32 %v11778_v63, %v11788_v54 }
0x3be8   :  { %v11793_v47 = vmul.f32 1.442695, %v11790_v23  ;;  %v12824_v23 = vld [vmem:[#allocation16 + $0x3] ss:$0 sm:$0xff] }
0x3be9   :  { %v11856_v27 = vpop.permute.xlu1 %11855 }
0x3bea   :  { %15130 = vpow2.f32 %v11793_v47  ;;  %v11861_v36 = vsel %vm4336_vm5, %v11856_v27, 0 }
0x3beb   :  { %14411 = vmatpush3.bf16.msra.mxu0 %v11861_v36  ;;  %15132 = vrcp.f32 %v11797_v42  ;;  %v14762_v42 = vld [vmem:[#allocation19 + $0x1f0] sm:$0xff]  }
0x3bec   :  { %12089 = vmatprep.subr.bf16.mxu0 %v14738_v21 }
0x3bf7   :  { %v15131_v31 = vpop.eup %15130 }
0x3bf8   :  { %v11798_v57 = vsel %vm4863_vm8, %v15131_v31, 0.0  ;;  %v15133_v39 = vpop.eup %15132 }
0x3bf9   :  { %11799 = vadd.xlane.f32.xlu0 %v11798_v57  ;;  %v11803_v55 = vmul.f32 %v15133_v39, %v15129_v11  ;;  %v14745_v11 = vld [vmem:[#allocation17 + $0x1c0] ss:$8 sps:$4 sm:$0xff]   ;;  %v14761_v57 = vld [vmem:[#allocation19 + $0x1b8] sm:$0xff]   ;;  %v14763_v39 = vld [vmem:[#allocation19 + $0x1b0] sm:$0xff]  }
0x3bfb   :  { %v11805_v22 = vpack.c.bf16 %v11803_v55, %v11803_v55  ;;  %v14765_v55 = vld [vmem:[#allocation19 + $0x1a8] sm:$0xff]  }
0x3c0f   :  { %11807 = vrot.lane.b32.xlu0 %v17916_v44, %s15458_s13 }
0x3c82   :  { %v11800_v15 = vpop.xlane.xlu0 %11799 }
0x3c83   :  { %15134 = vrcp.f32 %v11800_v15  ;;  %v14764_v15 = vld [vmem:[#allocation19 + $0x1e8] sm:$0xff]  }
0x3c86   :  { %v11808_v60 = vpop.permute.xlu0 %11807 }
0x3c87   :  { %v11813_v50 = vsel %vm4336_vm5, %v11808_v60, 0  ;;  %v14766_v60 = vld [vmem:[#allocation19 + $0x1e0] sm:$0xff]  }
0x3c88   :  { %14405 = vmatpush3.bf16.msra.mxu1 %v11813_v50  ;;  %v14767_v50 = vld [vmem:[#allocation19 + $0x1a0] sm:$0xff]  }
0x3c89   :  { %14416 = vmatprep.subr.bf16.mxu1 %v18093_v12 }
0x3c8b   :  { %14407 = vmatmul.mubr.msk.bf16.vlgmr.msra.gmra.mxu1 %vm4888_vm9, %v11805_v22  ;;  %v14768_v22 = vld [vmem:[#allocation19 + $0x1d8] sm:$0xff]  }
0x3c8c   :  { %14420 = vmatprep.mubr.msk.bf16.mxu1 %vm15455_vm0, %v18093_v12  ;;  %14417 = vmatpush3.bf16.msra.mxu1 %v14734_v24  ;;  %v14772_v24 = vld [vmem:[#allocation19 + $0x1c8] sm:$0xff]  }
0x3c8d   :  { %14418 = vmatprep.subr.bf16.mxu1 %v18093_v12 }
0x3c90   :  { %v15135_v8 = vpop.eup %15134  ;;  %14419 = vmatpush3.bf16.msra.mxu1 %v14735_v9  ;;  %v14773_v9 = vld [vmem:[#allocation19 + $0x188] sm:$0xff]  }
0x3c91   :  { %v11804_v44 = vmul.f32 %v15135_v8, %v15131_v31  ;;  %v14760_v31 = vld [vmem:[#allocation19 + $0x1f8] sm:$0xff]  }
0x3c92   :  { %13346 = vmatprep.subr.bf16.mxu1 %v14760_v31  ;;  %v14769_v8 = vld [vmem:[#allocation19 + $0x198] sm:$0xff]  }
0x3c93   :  { %v11806_v32 = vpack.c.bf16 %v11804_v44, %v11804_v44  ;;  %v14770_v44 = vld [vmem:[#allocation19 + $0x1d0] sm:$0xff]  }
0x3c95   :  { %14413 = vmatmul.mubr.msk.bf16.vlgmr.msra.gmra.mxu0 %vm4888_vm9, %v11806_v32  ;;  %v14771_v32 = vld [vmem:[#allocation19 + $0x190] sm:$0xff]  }
0x3c96   :  { %12121 = vmatprep.mubr.bf16.mxu0 %v18090_v5  ;;  %v12822_v5 = vld [vmem:[%s18065_s8 + $0x3] ss:$0 sm:$0xff]  ;;  %12090 = vmatpush1.bf16.msra.mxu0 %v14736_v29 }
0x3c97   :  { %12091 = vmatprep.subr.bf16.mxu0 %v14741_v34 }
0x3c9a   :  { %12092 = vmatpush1.bf16.msra.mxu0 %v14739_v41 }
0x3c9b   :  { %12093 = vmatprep.subr.bf16.mxu0 %v14744_v25 }
0x3c9e   :  { %12094 = vmatpush1.bf16.msra.mxu0 %v14742_v3 }
0x3d4b   :  { %v11849_v13 = vpop.f32.mrf.mxu1 }
0x3d4d   :  { %v14408_v14 = vpop.f32.mrf.mxu1 }
0x3d4e   :  { %v14775_v14 = vld [vmem:[#allocation19 + $0x180] sm:$0xff]  }
0x3d4f   :  { %v11852_v48 = vpop.f32.mrf.mxu1 }
0x3d50   :  { %v12766_v48 = vld [vmem:[%s18069_s12 + $0x6] sm:$0x3] }
0x3d51   :  { %v14409_v43 = vpop.f32.mrf.mxu1 }
0x3d52   :  { %v12002_v43 = vrot.slane %v12766_v48, %v15631_v38 }
0x3d55   :  { %v11897_v46 = vpop.f32.mrf.mxu0 }
0x3d56   :  { %v11905_v61 = vcombine.low %v11849_v13, %v11897_v46  ;;  %v14774_v13 = vld [vmem:[#allocation19 + $0x1c0] sm:$0xff]   ;;  %v12006_v46 = vrot.slane %v12766_v48, %v15628_v37 }
0x3d57   :  { %v14414_v59 = vpop.f32.mrf.mxu0 }
0x3d58   :  { %v11907_v49 = vpack.c.bf16 %v11905_v61, %v11905_v61 }
0x3d59   :  { %v11900_v17 = vpop.f32.mrf.mxu0 }
0x3d5a   :  { %14421 = vmatmul.mubr.msk.bf16.vlgmr.msra.gmra.mxu1 %vm732_vm1, %v11907_v49 }
0x3d5b   :  { %v14415_v0 = vpop.f32.mrf.mxu0  ;;  %13347 = vmatpush3.bf16.msra.mxu1 %v14761_v57 }
0x3d5c   :  { %13348 = vmatprep.subr.bf16.mxu1 %v14762_v42 }
0x3d5f   :  { %13349 = vmatpush3.bf16.msra.mxu1 %v14763_v39 }
0x3d60   :  { %13350 = vmatprep.subr.bf16.mxu1 %v14764_v15 }
0x3d63   :  { %13351 = vmatpush3.bf16.msra.mxu1 %v14765_v55 }
0x3d64   :  { %13352 = vmatprep.subr.bf16.mxu1 %v14766_v60 }
0x3d67   :  { %13353 = vmatpush3.bf16.msra.mxu1 %v14767_v50 }
0x3d68   :  { %13354 = vmatprep.subr.bf16.mxu1 %v14768_v22 }
0x3d6b   :  { %13355 = vmatpush3.bf16.msra.mxu1 %v14769_v8 }
0x3d6c   :  { %13356 = vmatprep.subr.bf16.mxu1 %v14770_v44 }
0x3d6f   :  { %13357 = vmatpush3.bf16.msra.mxu1 %v14771_v32 }
0x3d70   :  { %13358 = vmatprep.subr.bf16.mxu1 %v14772_v24 }
0x3d73   :  { %13359 = vmatpush3.bf16.msra.mxu1 %v14773_v9 }
0x3d74   :  { %13360 = vmatprep.subr.bf16.mxu1 %v14774_v13 }
0x3d77   :  { %13361 = vmatpush3.bf16.msra.mxu1 %v14775_v14 }
0x3e1a   :  { %v11957_v52 = vpop.f32.mrf.mxu1 }
0x3e1b   :  { %v11963_v12 = vadd.f32 %v11957_v52, %v11682_v2  ;;  %v14751_v2 = vld [vmem:[#allocation17 + $0x1a0] ss:$8 sps:$4 sm:$0xff]  }
0x3e1c   :  { %v14422_v18 = vpop.f32.mrf.mxu1 }
0x3e1d   :  { %v11970_v33 = vadd.f32 %v12822_v5, %v11963_v12 }
0x3e1e   :  { %v11960_v35 = vpop.f32.mrf.mxu1 }
0x3e1f   :  { %v11971_v53 = vadd.f32 %v11970_v33, %v17814_v1  ;;  %v14747_v1 = vld [vmem:[#allocation17 + $0x1c4] ss:$8 sps:$4 sm:$0xff]  }
0x3e20   :  { %v14423_v56 = vpop.f32.mrf.mxu1  ;;  %12095 = vmatprep.subr.bf16.mxu0 %v14747_v1 }
0x3e21   :  { %11972 = vadd.xlane.f32.xlu1 %v11971_v53  ;;  %12096 = vmatpush1.bf16.msra.mxu0 %v14745_v11 }
0x3e22   :  { %12097 = vmatprep.subr.bf16.mxu0 %v14750_v40  ;;  %v12841_v40 = vld [vmem:[%s18071_s14 + $0x3] ss:$0 sm:$0xff] }
0x3e25   :  { %12098 = vmatpush1.bf16.msra.mxu0 %v14748_v10 }
0x3e26   :  { %12099 = vmatprep.subr.bf16.mxu0 %v14753_v7 }
0x3e29   :  { %12100 = vmatpush1.bf16.msra.mxu0 %v14751_v2 }
0x3e2a   :  { %12101 = vmatprep.subr.bf16.mxu0 %v14756_v58 }
0x3e2d   :  { %12102 = vmatpush1.bf16.msra.mxu0 %v14754_v51 }
0x3e2e   :  { %12103 = vmatprep.subr.bf16.mxu0 %v14759_v45 }
0x3e31   :  { %12104 = vmatpush1.bf16.msra.mxu0 %v14757_v26 }
0x3eaa   :  { %v11973_v19 = vpop.xlane.xlu1 %11972 }
0x3eab   :  { %v11974_v20 = vmul.f32 0.0078125, %v11973_v19 }
0x3ead   :  { %v11975_v28 = vsub.f32 %v11971_v53, %v11974_v20 }
0x3eaf   :  { %v11976_v30 = vmul.f32 %v11975_v28, %v11975_v28 }
0x3eb1   :  { %11977 = vadd.xlane.f32.xlu0 %v11976_v30 }
0x3f3a   :  { %v11978_v63 = vpop.xlane.xlu0 %11977 }
0x3f3b   :  { %v11979_v16 = vmul.f32 0.0078125, %v11978_v63 }
0x3f3d   :  { %v11980_v4 = vadd.f32 1e-12, %v11979_v16 }
0x3f3f   :  { %15136 = vrsqrt.f32 %v11980_v4 }
0x3f4c   :  { %v15137_v6 = vpop.eup %15136 }
0x3f4d   :  { %v11982_v54 = vmul.f32 %v15137_v6, %v11975_v28 }
0x3f4f   :  { %v11989_v47 = vmul.f32 %v12823_v62, %v11982_v54 }
0x3f51   :  { %v18028_v27 = vadd.f32 %v12824_v23, %v11989_v47  ;;  %v12858_v47 = vld [vmem:[%s18072_s15 + $0x3] ss:$0 sm:$0xff] }
0x3f53   :  { %v11997_v36 = vpack.c.bf16 %v18028_v27, %v18028_v27 }
0x3f55   :  { %12122 = vmatmul.mubr.bf16.vlgmr.msra.gmra.mxu0 %v11997_v36 }
0x4015   :  { %v12123_v61 = vpop.f32.mrf.mxu0 }
0x4016   :  { %v12124_v59 = vadd.f32 %v12123_v61, %v12002_v43 }
0x4017   :  { %v12125_v49 = vpop.f32.mrf.mxu0 }
0x4018   :  { %v12132_v17 = vmul.f32 0.044715, %v12124_v59  ;;  %v12126_v0 = vadd.f32 %v12125_v49, %v12006_v46  ;;  %v12130_v19 = vmul.f32 0.5, %v12124_v59 }
0x4019   :  { %v12127_v5 = vpop.f32.mrf.mxu0 }
0x401a   :  { %v12134_v52 = vmul.f32 %v12132_v17, %v12124_v59  ;;  %v12133_v12 = vmul.f32 0.044715, %v12126_v0  ;;  %v12131_v20 = vmul.f32 0.5, %v12126_v0 }
0x401b   :  { %v12128_v18 = vpop.f32.mrf.mxu0 }
0x401c   :  { %v12136_v33 = vmul.f32 %v12134_v52, %v12124_v59  ;;  %v12135_v35 = vmul.f32 %v12133_v12, %v12126_v0 }
0x401e   :  { %v12138_v53 = vadd.f32 %v12136_v33, %v12124_v59  ;;  %v12137_v56 = vmul.f32 %v12135_v35, %v12126_v0 }
0x4020   :  { %v12140_v29 = vmul.f32 0.7978846, %v12138_v53  ;;  %v12139_v21 = vadd.f32 %v12137_v56, %v12126_v0 }
0x4022   :  { %15138 = vtanh.f32 %v12140_v29  ;;  %v12141_v34 = vmul.f32 0.7978846, %v12139_v21 }
0x4024   :  { %15140 = vtanh.f32 %v12141_v34 }
0x402f   :  { %v15139_v38 = vpop.eup %15138 }
0x4030   :  { %v12144_v37 = vadd.f32 1.0, %v15139_v38 }
0x4031   :  { %v15141_v41 = vpop.eup %15140 }
0x4032   :  { %v12145_v28 = vadd.f32 1.0, %v15141_v41  ;;  %v12146_v30 = vmul.f32 %v12144_v37, %v12130_v19 }
0x4034   :  { %v12147_v25 = vmul.f32 %v12145_v28, %v12131_v20  ;;  %v12148_v1 = vpack.c.bf16 %v12146_v30, %v12146_v30 }
0x4036   :  { %v12149_v3 = vpack.c.bf16 %v12147_v25, %v12147_v25 }
0x4038   :  { %12284 = vmatprep.mubr.bf16.mxu1 %v12149_v3 }
0x4039   :  { %12285 = vmatmul.mubr.bf16.vlgmr.msra.gmra.mxu1 %v12148_v1 }
0x40f9   :  { %v13362_v11 = vpop.f32.mrf.mxu1 }
0x40fb   :  { %v13363_v10 = vpop.f32.mrf.mxu1 }
0x40fc   :  { %v13364_v7 = vadd.f32 %v13363_v10, %v13362_v11 }
0x40fd   :  { %v13365_v2 = vpop.f32.mrf.mxu1 }
0x40fe   :  { %v12287_v51 = vadd.f32 %v13364_v7, %v12841_v40 }
0x40ff   :  { %v13366_v58 = vpop.f32.mrf.mxu1 }
0x4100   :  { %v12292_v45 = vadd.f32 %v12287_v51, %v18028_v27  ;;  %v12859_v27 = vld [vmem:[%s18073_s16 + $0x3] ss:$0 sm:$0xff] }
0x4102   :  { %12293 = vadd.xlane.f32.xlu0 %v12292_v45 }
0x418b   :  { %v12294_v26 = vpop.xlane.xlu0 %12293 }
0x418c   :  { %v12295_v63 = vmul.f32 0.0078125, %v12294_v26 }
0x418e   :  { %v12296_v16 = vsub.f32 %v12292_v45, %v12295_v63 }
0x4190   :  { %v12297_v4 = vmul.f32 %v12296_v16, %v12296_v16 }
0x4192   :  { %12298 = vadd.xlane.f32.xlu1 %v12297_v4 }
0x421b   :  { %v12299_v6 = vpop.xlane.xlu1 %12298 }
0x421c   :  { %v12300_v62 = vmul.f32 0.0078125, %v12299_v6 }
0x421e   :  { %v12301_v54 = vadd.f32 1e-12, %v12300_v62 }
0x4220   :  { %15142 = vrsqrt.f32 %v12301_v54 }
0x422d   :  { %v15143_v23 = vpop.eup %15142 }
0x422e   :  { %v12303_v36 = vmul.f32 %v15143_v23, %v12296_v16 }
0x4230   :  { %v12310_v31 = vmul.f32 %v12858_v47, %v12303_v36 }
0x4232   :  { %v12317_v57 = vadd.f32 %v12859_v27, %v12310_v31 }
0x4234   :  { %12322 = vst [vmem:[#allocation21 - $0x1] ss:$24 sps:$4 sm:$0x22] %v12317_v57   ;;  %12323 = vst [vmem:[#allocation21 + $0x6] ss:$24 sps:$4 sm:$0x44] %v12317_v57  }
0x4235   :  { %12324 = vst [vmem:[#allocation21 + $0xd] ss:$24 sps:$4 sm:$0x88] %v12317_v57   ;;  %v12319_v42 = vrot.slane %v12317_v57, 3 }
0x4236   :  { %15387 = shalt.err (!%p15384_p3)
}
0x4237   :  { %12350 = dma.vmem_to_hbm [thread:$0]  %s12345_s22, 768, %s18075_s18, [#allocation22], %s15442_s25, %s15442_s25, %s15443_s26   ;;  %v12321_v39 = vsel %vm4334_vm4, %v12317_v57, %v12319_v42 }
0x4238   :  { %12328 = vst [vmem:[#allocation20] sm:$0x3] %v12321_v39  ;;  %s15396_s24 = scalar_lea.vmem %s12336_s4, 32  ;;  %p15401_p5 = scmp.lt.s32.totalorder %s12336_s4, %s12336_s4 }
0x4239   :  { %p15397_p4 = scmp.ne.s32.totalorder %s12336_s4, %s15396_s24  ;;  %p15402_p6 = scmp.lt.s32.totalorder %s15396_s24, %s15396_s24 }
0x423b   :  { %p15403_p7 = por %p15402_p6, %p15401_p5 }
0x423d   :  { %p15404_p8 = pnand %p15403_p7, %p15397_p4 }
0x423f   :  { %15407 = shalt.err (!%p15404_p8)
}
0x4240   :  { %12338 = dma.vmem_to_hbm [thread:$0]  %s12336_s4, 32, %s18074_s17, [#allocation4]  }
0x4241   :  { %15428 = dma.done.wait [#allocation4], 32  }
0x4242   :  { %15429 = vsyncadd [#allocation4], 4294967264 }
0x4243   :  { %15430 = dma.done.wait [#allocation22], 768  }
0x4244   :  { %15431 = vsyncadd [#allocation22], 4294966528 }
0x4245   :  { %12357 = vsyncpa [#allocation3], 1 }
0x4246   :  { %12358 = vsyncpa [#allocation6], 1 }
0x4247   :  { %12359 = vsyncpa [#allocation9], 1 }
0x4248   :  { %12360 = vsyncpa [#allocation12], 1 }
0x4249   :  { %12361 = vsyncpa [#allocation15], 1 }
0x424a   :  { %12362 = vsyncpa [#allocation18], 1 }
0x424b   :  { %12363 = vsyncpa [#allocation4], 1 }
0x424c   :  { %12364 = vsyncpa [#allocation22], 1 }

</bundles_post_ra>
